<compile_context>
chip_gen: v7x
topology: tpu7x:2x2x1
jax: 0.10.0
libtpu: 0.0.40
codegen_flags: <defaults>
</compile_context>

<pallas_src>
import functools
import math

import jax
import jax.numpy as jnp
from jax.experimental import pallas as pl
from jax.experimental.pallas import tpu as pltpu


_LN_EPS = 1e-5


def _vmem_limit_bytes():
    # v5e/v6e have 128 MiB physical VMEM -> allow ~64 MiB scoped; v7x has
    # 64 MiB -> stay at 32 MiB.  Fall back to 32 MiB if the query fails.
    try:
        phys = pltpu.get_tpu_info().vmem_capacity_bytes
    except Exception:
        phys = 64 * 1024 * 1024
    return int(min(max(phys // 2, 32 * 1024 * 1024), 96 * 1024 * 1024))


_VMEM_LIMIT = _vmem_limit_bytes()


def _round_up(x, m):
    return (x + m - 1) // m * m


def _choose_tile_m(m):
    """Token tile for the MLP kernel: as large as possible while keeping >= 2
    grid steps (software pipelining + both v7x TensorCores get work)."""
    for t in (1024, 512, 256, 128, 64, 32, 16, 8):
        if m >= 2 * t:
            return t
    return min(_round_up(m, 8), 1024)


def _choose_tile_t(t):
    """Sequence tile for the embed kernel (must divide T exactly)."""
    for cand in (512, 256, 128, 64, 32, 16, 8):
        if t >= 2 * cand and t % cand == 0:
            return cand
    return t


def _const_spec(shape):
    """Full-array BlockSpec for a grid-invariant operand (weights / biases)."""
    ndim = len(shape)
    return pl.BlockSpec(shape, lambda *_idx: (0,) * ndim)


def _compiler_params(grid_ndim):
    return pltpu.CompilerParams(
        dimension_semantics=("parallel",) * grid_ndim,
        vmem_limit_bytes=_VMEM_LIMIT,
    )


# ----------------------------- kernel bodies ------------------------------ #

def _gelu_exact(x):
    # nn.GELU() default (erf form).
    return 0.5 * x * (1.0 + jax.lax.erf(x * (1.0 / math.sqrt(2.0))))


def _layernorm(x, g, b, eps):
    mu = jnp.mean(x, axis=-1, keepdims=True)
    var = jnp.mean(jnp.square(x - mu), axis=-1, keepdims=True)
    return (x - mu) * jax.lax.rsqrt(var + eps) * g + b


def _embed_kernel(x_ref, mean_ref, std_ref, w_ref, b_ref, pos_ref, o_ref):
    # x_ref: (1, tile_t, 1) raw spectrum values; data_embed has in_features=1
    # so the projection is the rank-1 outer product xn * w_data.
    xn = (x_ref[...][0].astype(jnp.float32) - mean_ref[...]) / std_ref[...]
    y = xn * w_ref[...] + b_ref[...] + pos_ref[...].astype(jnp.float32)
    o_ref[...] = y[None].astype(o_ref.dtype)


def _attn_block_kernel(h_ref, g_ref, b_ref, wqkv_ref, bqkv_ref,
                       wproj_ref, bproj_ref, o_ref, *, num_heads, eps, scale):
    """Fused: h + Proj(SelfAttn(QKV(LN1(h)))) for one batch element."""
    x = h_ref[...][0].astype(jnp.float32)                      # (T, E)
    E = x.shape[-1]
    hs = E // num_heads

    xn = _layernorm(x, g_ref[...], b_ref[...], eps)
    qkv = jnp.dot(xn.astype(wqkv_ref.dtype), wqkv_ref[...],
                  preferred_element_type=jnp.float32) + bqkv_ref[...]

    out = x + bproj_ref[...]                                   # residual + bias
    for hd in range(num_heads):                                # static, unrolled
        q = qkv[:, hd * hs:(hd + 1) * hs]
        k = qkv[:, E + hd * hs:E + (hd + 1) * hs]
        v = qkv[:, 2 * E + hd * hs:2 * E + (hd + 1) * hs]
        # scores = q @ k^T (contract the head dim directly, no transpose)
        s = jax.lax.dot_general(q, k, (((1,), (1,)), ((), ())),
                                preferred_element_type=jnp.float32) * scale
        m = jnp.max(s, axis=-1, keepdims=True)
        p = jnp.exp(s - m)
        denom = jnp.sum(p, axis=-1, keepdims=True)
        y = jnp.dot(p, v, preferred_element_type=jnp.float32)  # un-normalised
        # defer softmax normalisation to the (T, hs) output; reciprocal -> EUP
        y = y * pl.reciprocal(denom, approx=True)
        # fold the head-merge into the output projection:
        #   concat_h(y_h) @ W_proj == sum_h y_h @ W_proj[h*hs:(h+1)*hs, :]
        out = out + jnp.dot(y.astype(wproj_ref.dtype),
                            wproj_ref[hd * hs:(hd + 1) * hs, :],
                            preferred_element_type=jnp.float32)

    o_ref[...] = out[None].astype(o_ref.dtype)


def _ln_mlp_residual_kernel(x_ref, g_ref, b_ref, w1_ref, b1_ref, w2_ref, b2_ref,
                            o_ref, *, eps):
    """Fused: h + MLP(LN2(h)) for one token tile."""
    x = x_ref[...].astype(jnp.float32)
    xn = _layernorm(x, g_ref[...], b_ref[...], eps)
    h = jnp.dot(xn.astype(w1_ref.dtype), w1_ref[...],
                preferred_element_type=jnp.float32) + b1_ref[...]
    h = _gelu_exact(h)
    y = jnp.dot(h.astype(w2_ref.dtype), w2_ref[...],
                preferred_element_type=jnp.float32) + b2_ref[...]
    o_ref[...] = (x + y).astype(o_ref.dtype)


def _final_kernel(h_ref, g_ref, b_ref, wh_ref, bh_ref, o_ref, *, eps, inv_t):
    """Fused: head(mean_T(LN_f(h))) for one batch element."""
    x = h_ref[...][0].astype(jnp.float32)                      # (T, E)
    xn = _layernorm(x, g_ref[...], b_ref[...], eps)
    pooled = jnp.sum(xn, axis=0, keepdims=True) * inv_t        # (1, E)
    y = jnp.dot(pooled.astype(wh_ref.dtype), wh_ref[...],
                preferred_element_type=jnp.float32) + bh_ref[...]
    o_ref[...] = y[None].astype(o_ref.dtype)


# ----------------------------- pallas wrappers ----------------------------- #

def _embed(x3d, mean, std, w_data, b_data, pos):
    B, T, _ = x3d.shape
    E = w_data.shape[1]
    tile_t = _choose_tile_t(T)
    grid = (B, T // tile_t)
    return pl.pallas_call(
        _embed_kernel,
        out_shape=jax.ShapeDtypeStruct((B, T, E), jnp.float32),
        grid=grid,
        in_specs=[
            pl.BlockSpec((1, tile_t, 1), lambda b, t: (b, t, 0)),
            _const_spec(mean.shape),
            _const_spec(std.shape),
            _const_spec(w_data.shape),
            _const_spec(b_data.shape),
            pl.BlockSpec((tile_t, E), lambda b, t: (t, 0)),   # pos, no jnp.tile
        ],
        out_specs=pl.BlockSpec((1, tile_t, E), lambda b, t: (b, t, 0)),
        compiler_params=_compiler_params(2),
    )(x3d, mean, std, w_data, b_data, pos)


def _attention_block(h, blk, *, num_heads, scale):
    B, T, E = h.shape
    hs = E // num_heads
    cost = pl.CostEstimate(
        flops=2 * B * T * E * 3 * E + 2 * B * T * E * E
              + 4 * B * num_heads * T * T * hs,
        transcendentals=B * num_heads * T * T,
        bytes_accessed=4 * (2 * B * T * E + 4 * E * E + 4 * E),
    )
    block = pl.BlockSpec((1, T, E), lambda b: (b, 0, 0))
    return pl.pallas_call(
        functools.partial(_attn_block_kernel, num_heads=num_heads,
                          eps=_LN_EPS, scale=scale),
        out_shape=jax.ShapeDtypeStruct((B, T, E), jnp.float32),
        grid=(B,),
        in_specs=[
            block,
            _const_spec(blk["ln1_g"].shape), _const_spec(blk["ln1_b"].shape),
            _const_spec(blk["w_qkv"].shape), _const_spec(blk["b_qkv"].shape),
            _const_spec(blk["w_proj"].shape), _const_spec(blk["b_proj"].shape),
        ],
        out_specs=block,
        compiler_params=_compiler_params(1),
        cost_estimate=cost,
    )(h, blk["ln1_g"], blk["ln1_b"], blk["w_qkv"], blk["b_qkv"],
      blk["w_proj"], blk["b_proj"])


def _token_pallas(kernel, args, out_feat, out_dtype, *, cost=None):
    """Run a kernel tiled over a flattened token axis; ragged M is padded."""
    rows = [a for a, kind in args if kind == "row"]
    M = rows[0].shape[0]
    tile_m = _choose_tile_m(M)
    M_pad = _round_up(M, tile_m)
    grid = (M_pad // tile_m,)

    in_specs, operands = [], []
    for a, kind in args:
        if kind == "row":
            if M_pad != M:
                a = jnp.pad(a, ((0, M_pad - M), (0, 0)))
            in_specs.append(pl.BlockSpec((tile_m, a.shape[1]), lambda i: (i, 0)))
        else:
            in_specs.append(_const_spec(a.shape))
        operands.append(a)

    out = pl.pallas_call(
        kernel,
        out_shape=jax.ShapeDtypeStruct((M_pad, out_feat), out_dtype),
        grid=grid,
        in_specs=in_specs,
        out_specs=pl.BlockSpec((tile_m, out_feat), lambda i: (i, 0)),
        compiler_params=_compiler_params(1),
        cost_estimate=cost,
    )(*operands)
    return out[:M] if M_pad != M else out


def _mlp_block(h2d, blk):
    M, E = h2d.shape
    H = blk["w_mlp1"].shape[1]
    cost = pl.CostEstimate(
        flops=4 * M * E * H, transcendentals=M * H,
        bytes_accessed=4 * (2 * M * E + 2 * E * H + E + H))
    return _token_pallas(
        functools.partial(_ln_mlp_residual_kernel, eps=_LN_EPS),
        [(h2d, "row"), (blk["ln2_g"], "const"), (blk["ln2_b"], "const"),
         (blk["w_mlp1"], "const"), (blk["b_mlp1"], "const"),
         (blk["w_mlp2"], "const"), (blk["b_mlp2"], "const")],
        E, jnp.float32, cost=cost)


def _final_head(h, lnf_g, lnf_b, w_head, b_head):
    B, T, E = h.shape
    O = w_head.shape[1]
    out = pl.pallas_call(
        functools.partial(_final_kernel, eps=_LN_EPS, inv_t=1.0 / T),
        out_shape=jax.ShapeDtypeStruct((B, 1, O), jnp.float32),
        grid=(B,),
        in_specs=[
            pl.BlockSpec((1, T, E), lambda b: (b, 0, 0)),
            _const_spec(lnf_g.shape), _const_spec(lnf_b.shape),
            _const_spec(w_head.shape), _const_spec(b_head.shape),
        ],
        out_specs=pl.BlockSpec((1, 1, O), lambda b: (b, 0, 0)),
        compiler_params=_compiler_params(1),
    )(h, lnf_g, lnf_b, w_head, b_head)
    return out[:, 0, :]


# ------------------------------ full forward ------------------------------ #

def specformer_forward(params, x, *, num_heads):
    """Pallas forward pass matching SpecFormer.forward (eval mode)."""
    x = jnp.squeeze(x)                     # torch.squeeze(x)
    x = x[..., None].astype(jnp.float32)   # x[..., None] -> (B, T, 1)
    B, T, _ = x.shape
    E = params["w_data"].shape[1]
    max_len = params["pos_embed"].shape[0]
    if T > max_len:
        raise ValueError(f"Cannot forward sequence of length {T}, "
                         f"block size is only {max_len}")
    if E % num_heads != 0:
        raise ValueError("embedding_dim should be divisible by num_heads")
    scale = 1.0 / math.sqrt(E // num_heads)

    pos = params["pos_embed"][:T]          # (T, E); indexed by the kernel grid
    h = _embed(x, params["mean"], params["std"],
               params["w_data"], params["b_data"], pos)
    # TODO(synk): nn.Dropout (embedding / attention / residual / MLP, p=0.1) is
    # a no-op in eval mode; training-mode stochastic dropout is not implemented.

    for blk in params["blocks"]:
        # attention half-block: one fused pallas_call per layer, grid=(B,)
        h = _attention_block(h, blk, num_heads=num_heads, scale=scale)
        # MLP half-block: token-tiled fused LN2 + Linear + GELU + Linear + res
        h = _mlp_block(h.reshape(B * T, E), blk).reshape(B, T, E)

    # final LayerNorm + mean over sequence + head, fused, grid=(B,)
    return _final_head(h, params["lnf_g"], params["lnf_b"],
                       params["w_head"], params["b_head"])


# ----------------------------- params / reference -------------------------- #

def init_specformer_params(key, *, embed_dim, num_layers, num_heads, max_len,
                           out_dims, mlp_expansion=4, mean=0.3, std=1.7,
                           dtype=jnp.float32):
    del num_heads  # only shapes matter here
    E = embed_dim
    H = mlp_expansion * E
    keys = iter(jax.random.split(key, 8 + 12 * num_layers))

    def linear(k, fan_in, fan_out):
        kw, kb = jax.random.split(k)
        bound = 1.0 / math.sqrt(fan_in)
        w = jax.random.uniform(kw, (fan_in, fan_out), dtype, -bound, bound)
        b = jax.random.uniform(kb, (1, fan_out), dtype, -bound, bound)
        return w, b

    # LayerNorm params are randomized (PyTorch inits them to ones/zeros) so the
    # affine part of the LN math is actually exercised by the check below.
    def ln_params(k):
        kg, kb = jax.random.split(k)
        return (1.0 + 0.1 * jax.random.normal(kg, (1, E), dtype),
                0.05 * jax.random.normal(kb, (1, E), dtype))

    w_data, b_data = linear(next(keys), 1, E)
    pos_embed = 0.02 * jax.random.normal(next(keys), (max_len, E), dtype)
    blocks = []
    for _ in range(num_layers):
        ln1_g, ln1_b = ln_params(next(keys))
        w_qkv, b_qkv = linear(next(keys), E, 3 * E)
        w_proj, b_proj = linear(next(keys), E, E)
        ln2_g, ln2_b = ln_params(next(keys))
        w1, b1 = linear(next(keys), E, H)
        w2, b2 = linear(next(keys), H, E)
        blocks.append(dict(ln1_g=ln1_g, ln1_b=ln1_b, w_qkv=w_qkv, b_qkv=b_qkv,
                           w_proj=w_proj, b_proj=b_proj, ln2_g=ln2_g,
                           ln2_b=ln2_b, w_mlp1=w1, b_mlp1=b1,
                           w_mlp2=w2, b_mlp2=b2))
    lnf_g, lnf_b = ln_params(next(keys))
    w_head, b_head = linear(next(keys), E, out_dims)
    return dict(mean=jnp.full((1, 1), mean, dtype),
                std=jnp.full((1, 1), std, dtype),
                w_data=w_data, b_data=b_data, pos_embed=pos_embed,
                blocks=blocks, lnf_g=lnf_g, lnf_b=lnf_b,
                w_head=w_head, b_head=b_head)


def specformer_reference(params, x, *, num_heads):
    """Pure-JAX (non-Pallas) reference with full-f32 matmul precision."""
    with jax.default_matmul_precision("float32"):
        x = jnp.squeeze(x)
        x = x[..., None].astype(jnp.float32)
        B, T, _ = x.shape
        E = params["w_data"].shape[1]
        nh = num_heads
        hs = E // nh

        def ln(z, g, b):
            mu = jnp.mean(z, axis=-1, keepdims=True)
            var = jnp.mean(jnp.square(z - mu), axis=-1, keepdims=True)
            return (z - mu) * jax.lax.rsqrt(var + _LN_EPS) * g + b

        xn = (x - params["mean"][0, 0]) / params["std"][0, 0]
        h = xn @ params["w_data"] + params["b_data"] + params["pos_embed"][None, :T, :]
        for blk in params["blocks"]:
            z = ln(h, blk["ln1_g"], blk["ln1_b"])
            qkv = z @ blk["w_qkv"] + blk["b_qkv"]
            q, k, v = jnp.split(qkv, 3, axis=-1)
            q = q.reshape(B, T, nh, hs).transpose(0, 2, 1, 3)
            k = k.reshape(B, T, nh, hs).transpose(0, 2, 1, 3)
            v = v.reshape(B, T, nh, hs).transpose(0, 2, 1, 3)
            att = jnp.einsum("bhtd,bhsd->bhts", q, k) / math.sqrt(hs)
            att = jax.nn.softmax(att, axis=-1)
            y = jnp.einsum("bhts,bhsd->bhtd", att, v)
            y = y.transpose(0, 2, 1, 3).reshape(B, T, E)
            h = h + y @ blk["w_proj"] + blk["b_proj"]
            z = ln(h, blk["ln2_g"], blk["ln2_b"])
            m = z @ blk["w_mlp1"] + blk["b_mlp1"]
            m = 0.5 * m * (1.0 + jax.lax.erf(m / math.sqrt(2.0)))
            h = h + m @ blk["w_mlp2"] + blk["b_mlp2"]
        h = ln(h, params["lnf_g"], params["lnf_b"])
        pooled = jnp.mean(h, axis=1)
        return pooled @ params["w_head"] + params["b_head"]


if __name__ == "__main__":
    # Small but lane-aligned shapes: E=128 (full vreg lanes), T=128, B=2.
    BATCH, SEQ = 2, 128
    EMBED, HEADS, LAYERS, OUT_DIMS, MAX_LEN = 128, 4, 2, 8, 128

    key = jax.random.PRNGKey(0)
    kx, kp = jax.random.split(key)
    x = jax.random.normal(kx, (BATCH, SEQ, 1), jnp.float32)
    params = init_specformer_params(kp, embed_dim=EMBED, num_layers=LAYERS,
                                    num_heads=HEADS, max_len=MAX_LEN,
                                    out_dims=OUT_DIMS)

    forward = jax.jit(specformer_forward, static_argnames=("num_heads",))
    y = forward(params, x, num_heads=HEADS)
    jax.block_until_ready(y)

    y_ref = specformer_reference(params, x, num_heads=HEADS)
    assert y.shape == (BATCH, OUT_DIMS), y.shape
    assert bool(jnp.all(jnp.isfinite(y)))
    max_err = float(jnp.max(jnp.abs(y - y_ref)))
    # f32 Pallas (MXU reduction order + approx EUP reciprocal in softmax) vs
    # f32 XLA reference.
    assert bool(jnp.allclose(y, y_ref, atol=3e-3, rtol=3e-3)), max_err

    print("KERNEL_OK")
</pallas_src>

<mosaic_0001>
module attributes {stable_mosaic.version = 11 : i64} {
  func.func @_attn_block_kernel(%arg0: i32, %arg1: memref<1x128x128xf32, #tpu.memory_space<vmem>>, %arg2: memref<1x128xf32, #tpu.memory_space<vmem>>, %arg3: memref<1x128xf32, #tpu.memory_space<vmem>>, %arg4: memref<128x384xf32, #tpu.memory_space<vmem>>, %arg5: memref<1x384xf32, #tpu.memory_space<vmem>>, %arg6: memref<128x128xf32, #tpu.memory_space<vmem>>, %arg7: memref<1x128xf32, #tpu.memory_space<vmem>>, %arg8: memref<1x128x128xf32, #tpu.memory_space<vmem>>) attributes {dimension_semantics = [#tpu.dimension_semantics<parallel>], iteration_bounds = array<i64: 2>, scalar_prefetch = 0 : i64, scratch_operands = 0 : i64, tpu.core_type = #tpu.core_type<tc>, window_params = [{transform_indices = @transform_0, window_bounds = array<i64: 1, 128, 128>}, {pipeline_mode = #tpu.pipeline_mode<synchronous>, transform_indices = @transform_1, window_bounds = array<i64: 1, 128>}, {pipeline_mode = #tpu.pipeline_mode<synchronous>, transform_indices = @transform_2, window_bounds = array<i64: 1, 128>}, {pipeline_mode = #tpu.pipeline_mode<synchronous>, transform_indices = @transform_3, window_bounds = array<i64: 128, 384>}, {pipeline_mode = #tpu.pipeline_mode<synchronous>, transform_indices = @transform_4, window_bounds = array<i64: 1, 384>}, {pipeline_mode = #tpu.pipeline_mode<synchronous>, transform_indices = @transform_5, window_bounds = array<i64: 128, 128>}, {pipeline_mode = #tpu.pipeline_mode<synchronous>, transform_indices = @transform_6, window_bounds = array<i64: 1, 128>}, {transform_indices = @transform_7, window_bounds = array<i64: 1, 128, 128>}]} {
    %c0 = arith.constant 0 : index
    %c0_0 = arith.constant 0 : index
    %c0_1 = arith.constant 0 : index
    %0 = vector.load %arg1[%c0, %c0_0, %c0_1] : memref<1x128x128xf32, #tpu.memory_space<vmem>>, vector<1x128x128xf32>
    %1 = vector.shape_cast %0 : vector<1x128x128xf32> to vector<128x128xf32>
    %c0_2 = arith.constant 0 : index
    %c0_3 = arith.constant 0 : index
    %2 = vector.load %arg2[%c0_2, %c0_3] : memref<1x128xf32, #tpu.memory_space<vmem>>, vector<1x128xf32>
    %c0_4 = arith.constant 0 : index
    %c0_5 = arith.constant 0 : index
    %3 = vector.load %arg3[%c0_4, %c0_5] : memref<1x128xf32, #tpu.memory_space<vmem>>, vector<1x128xf32>
    %cst = arith.constant dense<0.000000e+00> : vector<128xf32>
    %4 = vector.multi_reduction <add>, %1, %cst [1] : vector<128x128xf32> to vector<128xf32>
    %5 = vector.shape_cast %4 : vector<128xf32> to vector<128x1xf32>
    %cst_6 = arith.constant 1.280000e+02 : f32
    %6 = vector.broadcast %cst_6 : f32 to vector<128x1xf32>
    %7 = arith.divf %5, %6 : vector<128x1xf32>
    %8 = vector.broadcast %7 : vector<128x1xf32> to vector<128x128xf32>
    %9 = arith.subf %1, %8 : vector<128x128xf32>
    %10 = arith.mulf %9, %9 : vector<128x128xf32>
    %cst_7 = arith.constant dense<0.000000e+00> : vector<128xf32>
    %11 = vector.multi_reduction <add>, %10, %cst_7 [1] : vector<128x128xf32> to vector<128xf32>
    %12 = vector.shape_cast %11 : vector<128xf32> to vector<128x1xf32>
    %cst_8 = arith.constant 1.280000e+02 : f32
    %13 = vector.broadcast %cst_8 : f32 to vector<128x1xf32>
    %14 = arith.divf %12, %13 : vector<128x1xf32>
    %15 = vector.broadcast %7 : vector<128x1xf32> to vector<128x128xf32>
    %16 = arith.subf %1, %15 : vector<128x128xf32>
    %cst_9 = arith.constant 9.99999974E-6 : f32
    %17 = vector.broadcast %cst_9 : f32 to vector<128x1xf32>
    %18 = arith.addf %14, %17 : vector<128x1xf32>
    %19 = math.rsqrt %18 : vector<128x1xf32>
    %20 = vector.broadcast %19 : vector<128x1xf32> to vector<128x128xf32>
    %21 = arith.mulf %16, %20 : vector<128x128xf32>
    %22 = vector.broadcast %2 : vector<1x128xf32> to vector<128x128xf32>
    %23 = arith.mulf %21, %22 : vector<128x128xf32>
    %24 = vector.broadcast %3 : vector<1x128xf32> to vector<128x128xf32>
    %25 = arith.addf %23, %24 : vector<128x128xf32>
    %c0_10 = arith.constant 0 : index
    %c0_11 = arith.constant 0 : index
    %26 = vector.load %arg4[%c0_10, %c0_11] : memref<128x384xf32, #tpu.memory_space<vmem>>, vector<128x384xf32>
    %cst_12 = arith.constant dense<0.000000e+00> : vector<128x384xf32>
    %27 = tpu.matmul %25, %26, %cst_12 {dimension_numbers = #tpu.dot_dimension_numbers<[1], [0], [0], [1], [0, 0, 1, 1], [], []>} : vector<128x128xf32>, vector<128x384xf32>, vector<128x384xf32> -> vector<128x384xf32>
    %c0_13 = arith.constant 0 : index
    %c0_14 = arith.constant 0 : index
    %28 = vector.load %arg5[%c0_13, %c0_14] : memref<1x384xf32, #tpu.memory_space<vmem>>, vector<1x384xf32>
    %29 = vector.broadcast %28 : vector<1x384xf32> to vector<128x384xf32>
    %30 = arith.addf %27, %29 : vector<128x384xf32>
    %c0_15 = arith.constant 0 : index
    %c0_16 = arith.constant 0 : index
    %31 = vector.load %arg7[%c0_15, %c0_16] : memref<1x128xf32, #tpu.memory_space<vmem>>, vector<1x128xf32>
    %32 = vector.broadcast %31 : vector<1x128xf32> to vector<128x128xf32>
    %33 = arith.addf %1, %32 : vector<128x128xf32>
    %34 = vector.extract_strided_slice %30 {offsets = [0, 0], sizes = [128, 32], strides = [1, 1]} : vector<128x384xf32> to vector<128x32xf32>
    %35 = vector.extract_strided_slice %30 {offsets = [0, 128], sizes = [128, 32], strides = [1, 1]} : vector<128x384xf32> to vector<128x32xf32>
    %36 = vector.extract_strided_slice %30 {offsets = [0, 256], sizes = [128, 32], strides = [1, 1]} : vector<128x384xf32> to vector<128x32xf32>
    %cst_17 = arith.constant dense<0.000000e+00> : vector<128x128xf32>
    %37 = tpu.matmul %34, %35, %cst_17 {dimension_numbers = #tpu.dot_dimension_numbers<[1], [1], [0], [0], [0, 0, 1, 0], [], []>} : vector<128x32xf32>, vector<128x32xf32>, vector<128x128xf32> -> vector<128x128xf32>
    %cst_18 = arith.constant 0.176776692 : f32
    %38 = vector.broadcast %cst_18 : f32 to vector<128x128xf32>
    %39 = arith.mulf %37, %38 : vector<128x128xf32>
    %cst_19 = arith.constant dense<0xFF800000> : vector<128xf32>
    %40 = vector.multi_reduction <maximumf>, %39, %cst_19 [1] : vector<128x128xf32> to vector<128xf32>
    %41 = vector.shape_cast %40 : vector<128xf32> to vector<128x1xf32>
    %42 = vector.broadcast %41 : vector<128x1xf32> to vector<128x128xf32>
    %43 = arith.subf %39, %42 : vector<128x128xf32>
    %44 = math.exp %43 : vector<128x128xf32>
    %cst_20 = arith.constant dense<0.000000e+00> : vector<128xf32>
    %45 = vector.multi_reduction <add>, %44, %cst_20 [1] : vector<128x128xf32> to vector<128xf32>
    %46 = vector.shape_cast %45 : vector<128xf32> to vector<128x1xf32>
    %cst_21 = arith.constant dense<0.000000e+00> : vector<128x32xf32>
    %47 = tpu.matmul %44, %36, %cst_21 {dimension_numbers = #tpu.dot_dimension_numbers<[1], [0], [0], [1], [0, 0, 1, 1], [], []>} : vector<128x128xf32>, vector<128x32xf32>, vector<128x32xf32> -> vector<128x32xf32>
    %48 = tpu.reciprocal %46 {approx = true} : vector<128x1xf32> -> vector<128x1xf32>
    %49 = vector.broadcast %48 : vector<128x1xf32> to vector<128x32xf32>
    %50 = arith.mulf %47, %49 : vector<128x32xf32>
    %c0_22 = arith.constant 0 : index
    %c0_23 = arith.constant 0 : index
    %51 = vector.load %arg6[%c0_22, %c0_23] : memref<128x128xf32, #tpu.memory_space<vmem>>, vector<32x128xf32>
    %cst_24 = arith.constant dense<0.000000e+00> : vector<128x128xf32>
    %52 = tpu.matmul %50, %51, %cst_24 {dimension_numbers = #tpu.dot_dimension_numbers<[1], [0], [0], [1], [0, 0, 1, 1], [], []>} : vector<128x32xf32>, vector<32x128xf32>, vector<128x128xf32> -> vector<128x128xf32>
    %53 = arith.addf %33, %52 : vector<128x128xf32>
    %54 = vector.extract_strided_slice %30 {offsets = [0, 32], sizes = [128, 32], strides = [1, 1]} : vector<128x384xf32> to vector<128x32xf32>
    %55 = vector.extract_strided_slice %30 {offsets = [0, 160], sizes = [128, 32], strides = [1, 1]} : vector<128x384xf32> to vector<128x32xf32>
    %56 = vector.extract_strided_slice %30 {offsets = [0, 288], sizes = [128, 32], strides = [1, 1]} : vector<128x384xf32> to vector<128x32xf32>
    %cst_25 = arith.constant dense<0.000000e+00> : vector<128x128xf32>
    %57 = tpu.matmul %54, %55, %cst_25 {dimension_numbers = #tpu.dot_dimension_numbers<[1], [1], [0], [0], [0, 0, 1, 0], [], []>} : vector<128x32xf32>, vector<128x32xf32>, vector<128x128xf32> -> vector<128x128xf32>
    %cst_26 = arith.constant 0.176776692 : f32
    %58 = vector.broadcast %cst_26 : f32 to vector<128x128xf32>
    %59 = arith.mulf %57, %58 : vector<128x128xf32>
    %cst_27 = arith.constant dense<0xFF800000> : vector<128xf32>
    %60 = vector.multi_reduction <maximumf>, %59, %cst_27 [1] : vector<128x128xf32> to vector<128xf32>
    %61 = vector.shape_cast %60 : vector<128xf32> to vector<128x1xf32>
    %62 = vector.broadcast %61 : vector<128x1xf32> to vector<128x128xf32>
    %63 = arith.subf %59, %62 : vector<128x128xf32>
    %64 = math.exp %63 : vector<128x128xf32>
    %cst_28 = arith.constant dense<0.000000e+00> : vector<128xf32>
    %65 = vector.multi_reduction <add>, %64, %cst_28 [1] : vector<128x128xf32> to vector<128xf32>
    %66 = vector.shape_cast %65 : vector<128xf32> to vector<128x1xf32>
    %cst_29 = arith.constant dense<0.000000e+00> : vector<128x32xf32>
    %67 = tpu.matmul %64, %56, %cst_29 {dimension_numbers = #tpu.dot_dimension_numbers<[1], [0], [0], [1], [0, 0, 1, 1], [], []>} : vector<128x128xf32>, vector<128x32xf32>, vector<128x32xf32> -> vector<128x32xf32>
    %68 = tpu.reciprocal %66 {approx = true} : vector<128x1xf32> -> vector<128x1xf32>
    %69 = vector.broadcast %68 : vector<128x1xf32> to vector<128x32xf32>
    %70 = arith.mulf %67, %69 : vector<128x32xf32>
    %c32 = arith.constant 32 : index
    %c0_30 = arith.constant 0 : index
    %71 = vector.load %arg6[%c32, %c0_30] : memref<128x128xf32, #tpu.memory_space<vmem>>, vector<32x128xf32>
    %cst_31 = arith.constant dense<0.000000e+00> : vector<128x128xf32>
    %72 = tpu.matmul %70, %71, %cst_31 {dimension_numbers = #tpu.dot_dimension_numbers<[1], [0], [0], [1], [0, 0, 1, 1], [], []>} : vector<128x32xf32>, vector<32x128xf32>, vector<128x128xf32> -> vector<128x128xf32>
    %73 = arith.addf %53, %72 : vector<128x128xf32>
    %74 = vector.extract_strided_slice %30 {offsets = [0, 64], sizes = [128, 32], strides = [1, 1]} : vector<128x384xf32> to vector<128x32xf32>
    %75 = vector.extract_strided_slice %30 {offsets = [0, 192], sizes = [128, 32], strides = [1, 1]} : vector<128x384xf32> to vector<128x32xf32>
    %76 = vector.extract_strided_slice %30 {offsets = [0, 320], sizes = [128, 32], strides = [1, 1]} : vector<128x384xf32> to vector<128x32xf32>
    %cst_32 = arith.constant dense<0.000000e+00> : vector<128x128xf32>
    %77 = tpu.matmul %74, %75, %cst_32 {dimension_numbers = #tpu.dot_dimension_numbers<[1], [1], [0], [0], [0, 0, 1, 0], [], []>} : vector<128x32xf32>, vector<128x32xf32>, vector<128x128xf32> -> vector<128x128xf32>
    %cst_33 = arith.constant 0.176776692 : f32
    %78 = vector.broadcast %cst_33 : f32 to vector<128x128xf32>
    %79 = arith.mulf %77, %78 : vector<128x128xf32>
    %cst_34 = arith.constant dense<0xFF800000> : vector<128xf32>
    %80 = vector.multi_reduction <maximumf>, %79, %cst_34 [1] : vector<128x128xf32> to vector<128xf32>
    %81 = vector.shape_cast %80 : vector<128xf32> to vector<128x1xf32>
    %82 = vector.broadcast %81 : vector<128x1xf32> to vector<128x128xf32>
    %83 = arith.subf %79, %82 : vector<128x128xf32>
    %84 = math.exp %83 : vector<128x128xf32>
    %cst_35 = arith.constant dense<0.000000e+00> : vector<128xf32>
    %85 = vector.multi_reduction <add>, %84, %cst_35 [1] : vector<128x128xf32> to vector<128xf32>
    %86 = vector.shape_cast %85 : vector<128xf32> to vector<128x1xf32>
    %cst_36 = arith.constant dense<0.000000e+00> : vector<128x32xf32>
    %87 = tpu.matmul %84, %76, %cst_36 {dimension_numbers = #tpu.dot_dimension_numbers<[1], [0], [0], [1], [0, 0, 1, 1], [], []>} : vector<128x128xf32>, vector<128x32xf32>, vector<128x32xf32> -> vector<128x32xf32>
    %88 = tpu.reciprocal %86 {approx = true} : vector<128x1xf32> -> vector<128x1xf32>
    %89 = vector.broadcast %88 : vector<128x1xf32> to vector<128x32xf32>
    %90 = arith.mulf %87, %89 : vector<128x32xf32>
    %c64 = arith.constant 64 : index
    %c0_37 = arith.constant 0 : index
    %91 = vector.load %arg6[%c64, %c0_37] : memref<128x128xf32, #tpu.memory_space<vmem>>, vector<32x128xf32>
    %cst_38 = arith.constant dense<0.000000e+00> : vector<128x128xf32>
    %92 = tpu.matmul %90, %91, %cst_38 {dimension_numbers = #tpu.dot_dimension_numbers<[1], [0], [0], [1], [0, 0, 1, 1], [], []>} : vector<128x32xf32>, vector<32x128xf32>, vector<128x128xf32> -> vector<128x128xf32>
    %93 = arith.addf %73, %92 : vector<128x128xf32>
    %94 = vector.extract_strided_slice %30 {offsets = [0, 96], sizes = [128, 32], strides = [1, 1]} : vector<128x384xf32> to vector<128x32xf32>
    %95 = vector.extract_strided_slice %30 {offsets = [0, 224], sizes = [128, 32], strides = [1, 1]} : vector<128x384xf32> to vector<128x32xf32>
    %96 = vector.extract_strided_slice %30 {offsets = [0, 352], sizes = [128, 32], strides = [1, 1]} : vector<128x384xf32> to vector<128x32xf32>
    %cst_39 = arith.constant dense<0.000000e+00> : vector<128x128xf32>
    %97 = tpu.matmul %94, %95, %cst_39 {dimension_numbers = #tpu.dot_dimension_numbers<[1], [1], [0], [0], [0, 0, 1, 0], [], []>} : vector<128x32xf32>, vector<128x32xf32>, vector<128x128xf32> -> vector<128x128xf32>
    %cst_40 = arith.constant 0.176776692 : f32
    %98 = vector.broadcast %cst_40 : f32 to vector<128x128xf32>
    %99 = arith.mulf %97, %98 : vector<128x128xf32>
    %cst_41 = arith.constant dense<0xFF800000> : vector<128xf32>
    %100 = vector.multi_reduction <maximumf>, %99, %cst_41 [1] : vector<128x128xf32> to vector<128xf32>
    %101 = vector.shape_cast %100 : vector<128xf32> to vector<128x1xf32>
    %102 = vector.broadcast %101 : vector<128x1xf32> to vector<128x128xf32>
    %103 = arith.subf %99, %102 : vector<128x128xf32>
    %104 = math.exp %103 : vector<128x128xf32>
    %cst_42 = arith.constant dense<0.000000e+00> : vector<128xf32>
    %105 = vector.multi_reduction <add>, %104, %cst_42 [1] : vector<128x128xf32> to vector<128xf32>
    %106 = vector.shape_cast %105 : vector<128xf32> to vector<128x1xf32>
    %cst_43 = arith.constant dense<0.000000e+00> : vector<128x32xf32>
    %107 = tpu.matmul %104, %96, %cst_43 {dimension_numbers = #tpu.dot_dimension_numbers<[1], [0], [0], [1], [0, 0, 1, 1], [], []>} : vector<128x128xf32>, vector<128x32xf32>, vector<128x32xf32> -> vector<128x32xf32>
    %108 = tpu.reciprocal %106 {approx = true} : vector<128x1xf32> -> vector<128x1xf32>
    %109 = vector.broadcast %108 : vector<128x1xf32> to vector<128x32xf32>
    %110 = arith.mulf %107, %109 : vector<128x32xf32>
    %c96 = arith.constant 96 : index
    %c0_44 = arith.constant 0 : index
    %111 = vector.load %arg6[%c96, %c0_44] : memref<128x128xf32, #tpu.memory_space<vmem>>, vector<32x128xf32>
    %cst_45 = arith.constant dense<0.000000e+00> : vector<128x128xf32>
    %112 = tpu.matmul %110, %111, %cst_45 {dimension_numbers = #tpu.dot_dimension_numbers<[1], [0], [0], [1], [0, 0, 1, 1], [], []>} : vector<128x32xf32>, vector<32x128xf32>, vector<128x128xf32> -> vector<128x128xf32>
    %113 = arith.addf %93, %112 : vector<128x128xf32>
    %114 = vector.shape_cast %113 : vector<128x128xf32> to vector<1x128x128xf32>
    %c0_46 = arith.constant 0 : index
    %c0_47 = arith.constant 0 : index
    %c0_48 = arith.constant 0 : index
    %115 = vector.load %arg8[%c0_46, %c0_47, %c0_48] : memref<1x128x128xf32, #tpu.memory_space<vmem>>, vector<1x128x128xf32>
    tpu.vector_store %arg8[%c0_46, %c0_47, %c0_48], %114 {strides = array<i32>} : memref<1x128x128xf32, #tpu.memory_space<vmem>>, vector<1x128x128xf32>,
    return
  }
  func.func @transform_0(%arg0: i32) -> (i32, i32, i32) {
    %c0_i32 = arith.constant 0 : i32
    %c0_i32_0 = arith.constant 0 : i32
    %c0_i32_1 = arith.constant 0 : i32
    return %arg0, %c0_i32, %c0_i32_0 : i32, i32, i32
  }
  func.func @transform_1(%arg0: i32) -> (i32, i32) {
    %c0_i32 = arith.constant 0 : i32
    %c0_i32_0 = arith.constant 0 : i32
    %c0_i32_1 = arith.constant 0 : i32
    return %c0_i32, %c0_i32_0 : i32, i32
  }
  func.func @transform_2(%arg0: i32) -> (i32, i32) {
    %c0_i32 = arith.constant 0 : i32
    %c0_i32_0 = arith.constant 0 : i32
    %c0_i32_1 = arith.constant 0 : i32
    return %c0_i32, %c0_i32_0 : i32, i32
  }
  func.func @transform_3(%arg0: i32) -> (i32, i32) {
    %c0_i32 = arith.constant 0 : i32
    %c0_i32_0 = arith.constant 0 : i32
    %c0_i32_1 = arith.constant 0 : i32
    return %c0_i32, %c0_i32_0 : i32, i32
  }
  func.func @transform_4(%arg0: i32) -> (i32, i32) {
    %c0_i32 = arith.constant 0 : i32
    %c0_i32_0 = arith.constant 0 : i32
    %c0_i32_1 = arith.constant 0 : i32
    return %c0_i32, %c0_i32_0 : i32, i32
  }
  func.func @transform_5(%arg0: i32) -> (i32, i32) {
    %c0_i32 = arith.constant 0 : i32
    %c0_i32_0 = arith.constant 0 : i32
    %c0_i32_1 = arith.constant 0 : i32
    return %c0_i32, %c0_i32_0 : i32, i32
  }
  func.func @transform_6(%arg0: i32) -> (i32, i32) {
    %c0_i32 = arith.constant 0 : i32
    %c0_i32_0 = arith.constant 0 : i32
    %c0_i32_1 = arith.constant 0 : i32
    return %c0_i32, %c0_i32_0 : i32, i32
  }
  func.func @transform_7(%arg0: i32) -> (i32, i32, i32) {
    %c0_i32 = arith.constant 0 : i32
    %c0_i32_0 = arith.constant 0 : i32
    %c0_i32_1 = arith.constant 0 : i32
    return %arg0, %c0_i32, %c0_i32_0 : i32, i32, i32
  }
}

module attributes {stable_mosaic.version = 11 : i64} {
  func.func @_embed_kernel(%arg0: i32, %arg1: i32, %arg2: memref<1x64x1xf32, #tpu.memory_space<vmem>>, %arg3: memref<1x1xf32, #tpu.memory_space<vmem>>, %arg4: memref<1x1xf32, #tpu.memory_space<vmem>>, %arg5: memref<1x128xf32, #tpu.memory_space<vmem>>, %arg6: memref<1x128xf32, #tpu.memory_space<vmem>>, %arg7: memref<64x128xf32, #tpu.memory_space<vmem>>, %arg8: memref<1x64x128xf32, #tpu.memory_space<vmem>>) attributes {dimension_semantics = [#tpu.dimension_semantics<parallel>, #tpu.dimension_semantics<parallel>], iteration_bounds = array<i64: 2, 2>, scalar_prefetch = 0 : i64, scratch_operands = 0 : i64, tpu.core_type = #tpu.core_type<tc>, window_params = [{transform_indices = @transform_0, window_bounds = array<i64: 1, 64, 1>}, {pipeline_mode = #tpu.pipeline_mode<synchronous>, transform_indices = @transform_1, window_bounds = array<i64: 1, 1>}, {pipeline_mode = #tpu.pipeline_mode<synchronous>, transform_indices = @transform_2, window_bounds = array<i64: 1, 1>}, {pipeline_mode = #tpu.pipeline_mode<synchronous>, transform_indices = @transform_3, window_bounds = array<i64: 1, 128>}, {pipeline_mode = #tpu.pipeline_mode<synchronous>, transform_indices = @transform_4, window_bounds = array<i64: 1, 128>}, {transform_indices = @transform_5, window_bounds = array<i64: 64, 128>}, {transform_indices = @transform_6, window_bounds = array<i64: 1, 64, 128>}]} {
    %c0 = arith.constant 0 : index
    %c0_0 = arith.constant 0 : index
    %c0_1 = arith.constant 0 : index
    %0 = vector.load %arg2[%c0, %c0_0, %c0_1] : memref<1x64x1xf32, #tpu.memory_space<vmem>>, vector<1x64x1xf32>
    %1 = vector.shape_cast %0 : vector<1x64x1xf32> to vector<64x1xf32>
    %c0_2 = arith.constant 0 : index
    %c0_3 = arith.constant 0 : index
    %2 = vector.load %arg3[%c0_2, %c0_3] : memref<1x1xf32, #tpu.memory_space<vmem>>, vector<1x1xf32>
    %3 = vector.broadcast %2 : vector<1x1xf32> to vector<64x1xf32>
    %4 = arith.subf %1, %3 : vector<64x1xf32>
    %c0_4 = arith.constant 0 : index
    %c0_5 = arith.constant 0 : index
    %5 = vector.load %arg4[%c0_4, %c0_5] : memref<1x1xf32, #tpu.memory_space<vmem>>, vector<1x1xf32>
    %6 = vector.broadcast %5 : vector<1x1xf32> to vector<64x1xf32>
    %7 = arith.divf %4, %6 : vector<64x1xf32>
    %c0_6 = arith.constant 0 : index
    %c0_7 = arith.constant 0 : index
    %8 = vector.load %arg5[%c0_6, %c0_7] : memref<1x128xf32, #tpu.memory_space<vmem>>, vector<1x128xf32>
    %9 = vector.broadcast %7 : vector<64x1xf32> to vector<64x128xf32>
    %10 = vector.broadcast %8 : vector<1x128xf32> to vector<64x128xf32>
    %11 = arith.mulf %9, %10 : vector<64x128xf32>
    %c0_8 = arith.constant 0 : index
    %c0_9 = arith.constant 0 : index
    %12 = vector.load %arg6[%c0_8, %c0_9] : memref<1x128xf32, #tpu.memory_space<vmem>>, vector<1x128xf32>
    %13 = vector.broadcast %12 : vector<1x128xf32> to vector<64x128xf32>
    %14 = arith.addf %11, %13 : vector<64x128xf32>
    %c0_10 = arith.constant 0 : index
    %c0_11 = arith.constant 0 : index
    %15 = vector.load %arg7[%c0_10, %c0_11] : memref<64x128xf32, #tpu.memory_space<vmem>>, vector<64x128xf32>
    %16 = arith.addf %14, %15 : vector<64x128xf32>
    %17 = vector.shape_cast %16 : vector<64x128xf32> to vector<1x64x128xf32>
    %c0_12 = arith.constant 0 : index
    %c0_13 = arith.constant 0 : index
    %c0_14 = arith.constant 0 : index
    %18 = vector.load %arg8[%c0_12, %c0_13, %c0_14] : memref<1x64x128xf32, #tpu.memory_space<vmem>>, vector<1x64x128xf32>
    tpu.vector_store %arg8[%c0_12, %c0_13, %c0_14], %17 {strides = array<i32>} : memref<1x64x128xf32, #tpu.memory_space<vmem>>, vector<1x64x128xf32>,
    return
  }
  func.func @transform_0(%arg0: i32, %arg1: i32) -> (i32, i32, i32) {
    %c0_i32 = arith.constant 0 : i32
    %c0_i32_0 = arith.constant 0 : i32
    return %arg0, %arg1, %c0_i32 : i32, i32, i32
  }
  func.func @transform_1(%arg0: i32, %arg1: i32) -> (i32, i32) {
    %c0_i32 = arith.constant 0 : i32
    %c0_i32_0 = arith.constant 0 : i32
    %c0_i32_1 = arith.constant 0 : i32
    return %c0_i32, %c0_i32_0 : i32, i32
  }
  func.func @transform_2(%arg0: i32, %arg1: i32) -> (i32, i32) {
    %c0_i32 = arith.constant 0 : i32
    %c0_i32_0 = arith.constant 0 : i32
    %c0_i32_1 = arith.constant 0 : i32
    return %c0_i32, %c0_i32_0 : i32, i32
  }
  func.func @transform_3(%arg0: i32, %arg1: i32) -> (i32, i32) {
    %c0_i32 = arith.constant 0 : i32
    %c0_i32_0 = arith.constant 0 : i32
    %c0_i32_1 = arith.constant 0 : i32
    return %c0_i32, %c0_i32_0 : i32, i32
  }
  func.func @transform_4(%arg0: i32, %arg1: i32) -> (i32, i32) {
    %c0_i32 = arith.constant 0 : i32
    %c0_i32_0 = arith.constant 0 : i32
    %c0_i32_1 = arith.constant 0 : i32
    return %c0_i32, %c0_i32_0 : i32, i32
  }
  func.func @transform_5(%arg0: i32, %arg1: i32) -> (i32, i32) {
    %c0_i32 = arith.constant 0 : i32
    %c0_i32_0 = arith.constant 0 : i32
    return %arg1, %c0_i32 : i32, i32
  }
  func.func @transform_6(%arg0: i32, %arg1: i32) -> (i32, i32, i32) {
    %c0_i32 = arith.constant 0 : i32
    %c0_i32_0 = arith.constant 0 : i32
    return %arg0, %arg1, %c0_i32 : i32, i32, i32
  }
}

module attributes {stable_mosaic.version = 11 : i64} {
  func.func @_ln_mlp_residual_kernel(%arg0: i32, %arg1: memref<128x128xf32, #tpu.memory_space<vmem>>, %arg2: memref<1x128xf32, #tpu.memory_space<vmem>>, %arg3: memref<1x128xf32, #tpu.memory_space<vmem>>, %arg4: memref<128x512xf32, #tpu.memory_space<vmem>>, %arg5: memref<1x512xf32, #tpu.memory_space<vmem>>, %arg6: memref<512x128xf32, #tpu.memory_space<vmem>>, %arg7: memref<1x128xf32, #tpu.memory_space<vmem>>, %arg8: memref<128x128xf32, #tpu.memory_space<vmem>>) attributes {dimension_semantics = [#tpu.dimension_semantics<parallel>], iteration_bounds = array<i64: 2>, scalar_prefetch = 0 : i64, scratch_operands = 0 : i64, tpu.core_type = #tpu.core_type<tc>, window_params = [{transform_indices = @transform_0, window_bounds = array<i64: 128, 128>}, {pipeline_mode = #tpu.pipeline_mode<synchronous>, transform_indices = @transform_1, window_bounds = array<i64: 1, 128>}, {pipeline_mode = #tpu.pipeline_mode<synchronous>, transform_indices = @transform_2, window_bounds = array<i64: 1, 128>}, {pipeline_mode = #tpu.pipeline_mode<synchronous>, transform_indices = @transform_3, window_bounds = array<i64: 128, 512>}, {pipeline_mode = #tpu.pipeline_mode<synchronous>, transform_indices = @transform_4, window_bounds = array<i64: 1, 512>}, {pipeline_mode = #tpu.pipeline_mode<synchronous>, transform_indices = @transform_5, window_bounds = array<i64: 512, 128>}, {pipeline_mode = #tpu.pipeline_mode<synchronous>, transform_indices = @transform_6, window_bounds = array<i64: 1, 128>}, {transform_indices = @transform_7, window_bounds = array<i64: 128, 128>}]} {
    %c0 = arith.constant 0 : index
    %c0_0 = arith.constant 0 : index
    %0 = vector.load %arg1[%c0, %c0_0] : memref<128x128xf32, #tpu.memory_space<vmem>>, vector<128x128xf32>
    %c0_1 = arith.constant 0 : index
    %c0_2 = arith.constant 0 : index
    %1 = vector.load %arg2[%c0_1, %c0_2] : memref<1x128xf32, #tpu.memory_space<vmem>>, vector<1x128xf32>
    %c0_3 = arith.constant 0 : index
    %c0_4 = arith.constant 0 : index
    %2 = vector.load %arg3[%c0_3, %c0_4] : memref<1x128xf32, #tpu.memory_space<vmem>>, vector<1x128xf32>
    %cst = arith.constant dense<0.000000e+00> : vector<128xf32>
    %3 = vector.multi_reduction <add>, %0, %cst [1] : vector<128x128xf32> to vector<128xf32>
    %4 = vector.shape_cast %3 : vector<128xf32> to vector<128x1xf32>
    %cst_5 = arith.constant 1.280000e+02 : f32
    %5 = vector.broadcast %cst_5 : f32 to vector<128x1xf32>
    %6 = arith.divf %4, %5 : vector<128x1xf32>
    %7 = vector.broadcast %6 : vector<128x1xf32> to vector<128x128xf32>
    %8 = arith.subf %0, %7 : vector<128x128xf32>
    %9 = arith.mulf %8, %8 : vector<128x128xf32>
    %cst_6 = arith.constant dense<0.000000e+00> : vector<128xf32>
    %10 = vector.multi_reduction <add>, %9, %cst_6 [1] : vector<128x128xf32> to vector<128xf32>
    %11 = vector.shape_cast %10 : vector<128xf32> to vector<128x1xf32>
    %cst_7 = arith.constant 1.280000e+02 : f32
    %12 = vector.broadcast %cst_7 : f32 to vector<128x1xf32>
    %13 = arith.divf %11, %12 : vector<128x1xf32>
    %14 = vector.broadcast %6 : vector<128x1xf32> to vector<128x128xf32>
    %15 = arith.subf %0, %14 : vector<128x128xf32>
    %cst_8 = arith.constant 9.99999974E-6 : f32
    %16 = vector.broadcast %cst_8 : f32 to vector<128x1xf32>
    %17 = arith.addf %13, %16 : vector<128x1xf32>
    %18 = math.rsqrt %17 : vector<128x1xf32>
    %19 = vector.broadcast %18 : vector<128x1xf32> to vector<128x128xf32>
    %20 = arith.mulf %15, %19 : vector<128x128xf32>
    %21 = vector.broadcast %1 : vector<1x128xf32> to vector<128x128xf32>
    %22 = arith.mulf %20, %21 : vector<128x128xf32>
    %23 = vector.broadcast %2 : vector<1x128xf32> to vector<128x128xf32>
    %24 = arith.addf %22, %23 : vector<128x128xf32>
    %c0_9 = arith.constant 0 : index
    %c0_10 = arith.constant 0 : index
    %25 = vector.load %arg4[%c0_9, %c0_10] : memref<128x512xf32, #tpu.memory_space<vmem>>, vector<128x512xf32>
    %cst_11 = arith.constant dense<0.000000e+00> : vector<128x512xf32>
    %26 = tpu.matmul %24, %25, %cst_11 {dimension_numbers = #tpu.dot_dimension_numbers<[1], [0], [0], [1], [0, 0, 1, 1], [], []>} : vector<128x128xf32>, vector<128x512xf32>, vector<128x512xf32> -> vector<128x512xf32>
    %c0_12 = arith.constant 0 : index
    %c0_13 = arith.constant 0 : index
    %27 = vector.load %arg5[%c0_12, %c0_13] : memref<1x512xf32, #tpu.memory_space<vmem>>, vector<1x512xf32>
    %28 = vector.broadcast %27 : vector<1x512xf32> to vector<128x512xf32>
    %29 = arith.addf %26, %28 : vector<128x512xf32>
    %cst_14 = arith.constant 5.000000e-01 : f32
    %30 = vector.broadcast %cst_14 : f32 to vector<128x512xf32>
    %31 = arith.mulf %30, %29 : vector<128x512xf32>
    %cst_15 = arith.constant 0.707106769 : f32
    %32 = vector.broadcast %cst_15 : f32 to vector<128x512xf32>
    %33 = arith.mulf %29, %32 : vector<128x512xf32>
    %34 = math.erf %33 : vector<128x512xf32>
    %cst_16 = arith.constant 1.000000e+00 : f32
    %35 = vector.broadcast %cst_16 : f32 to vector<128x512xf32>
    %36 = arith.addf %35, %34 : vector<128x512xf32>
    %37 = arith.mulf %31, %36 : vector<128x512xf32>
    %c0_17 = arith.constant 0 : index
    %c0_18 = arith.constant 0 : index
    %38 = vector.load %arg6[%c0_17, %c0_18] : memref<512x128xf32, #tpu.memory_space<vmem>>, vector<512x128xf32>
    %cst_19 = arith.constant dense<0.000000e+00> : vector<128x128xf32>
    %39 = tpu.matmul %37, %38, %cst_19 {dimension_numbers = #tpu.dot_dimension_numbers<[1], [0], [0], [1], [0, 0, 1, 1], [], []>} : vector<128x512xf32>, vector<512x128xf32>, vector<128x128xf32> -> vector<128x128xf32>
    %c0_20 = arith.constant 0 : index
    %c0_21 = arith.constant 0 : index
    %40 = vector.load %arg7[%c0_20, %c0_21] : memref<1x128xf32, #tpu.memory_space<vmem>>, vector<1x128xf32>
    %41 = vector.broadcast %40 : vector<1x128xf32> to vector<128x128xf32>
    %42 = arith.addf %39, %41 : vector<128x128xf32>
    %43 = arith.addf %0, %42 : vector<128x128xf32>
    %c0_22 = arith.constant 0 : index
    %c0_23 = arith.constant 0 : index
    %44 = vector.load %arg8[%c0_22, %c0_23] : memref<128x128xf32, #tpu.memory_space<vmem>>, vector<128x128xf32>
    tpu.vector_store %arg8[%c0_22, %c0_23], %43 {strides = array<i32>} : memref<128x128xf32, #tpu.memory_space<vmem>>, vector<128x128xf32>,
    return
  }
  func.func @transform_0(%arg0: i32) -> (i32, i32) {
    %c0_i32 = arith.constant 0 : i32
    %c0_i32_0 = arith.constant 0 : i32
    return %arg0, %c0_i32 : i32, i32
  }
  func.func @transform_1(%arg0: i32) -> (i32, i32) {
    %c0_i32 = arith.constant 0 : i32
    %c0_i32_0 = arith.constant 0 : i32
    %c0_i32_1 = arith.constant 0 : i32
    return %c0_i32, %c0_i32_0 : i32, i32
  }
  func.func @transform_2(%arg0: i32) -> (i32, i32) {
    %c0_i32 = arith.constant 0 : i32
    %c0_i32_0 = arith.constant 0 : i32
    %c0_i32_1 = arith.constant 0 : i32
    return %c0_i32, %c0_i32_0 : i32, i32
  }
  func.func @transform_3(%arg0: i32) -> (i32, i32) {
    %c0_i32 = arith.constant 0 : i32
    %c0_i32_0 = arith.constant 0 : i32
    %c0_i32_1 = arith.constant 0 : i32
    return %c0_i32, %c0_i32_0 : i32, i32
  }
  func.func @transform_4(%arg0: i32) -> (i32, i32) {
    %c0_i32 = arith.constant 0 : i32
    %c0_i32_0 = arith.constant 0 : i32
    %c0_i32_1 = arith.constant 0 : i32
    return %c0_i32, %c0_i32_0 : i32, i32
  }
  func.func @transform_5(%arg0: i32) -> (i32, i32) {
    %c0_i32 = arith.constant 0 : i32
    %c0_i32_0 = arith.constant 0 : i32
    %c0_i32_1 = arith.constant 0 : i32
    return %c0_i32, %c0_i32_0 : i32, i32
  }
  func.func @transform_6(%arg0: i32) -> (i32, i32) {
    %c0_i32 = arith.constant 0 : i32
    %c0_i32_0 = arith.constant 0 : i32
    %c0_i32_1 = arith.constant 0 : i32
    return %c0_i32, %c0_i32_0 : i32, i32
  }
  func.func @transform_7(%arg0: i32) -> (i32, i32) {
    %c0_i32 = arith.constant 0 : i32
    %c0_i32_0 = arith.constant 0 : i32
    return %arg0, %c0_i32 : i32, i32
  }
}

module attributes {stable_mosaic.version = 11 : i64} {
  func.func @_final_kernel(%arg0: i32, %arg1: memref<1x128x128xf32, #tpu.memory_space<vmem>>, %arg2: memref<1x128xf32, #tpu.memory_space<vmem>>, %arg3: memref<1x128xf32, #tpu.memory_space<vmem>>, %arg4: memref<128x8xf32, #tpu.memory_space<vmem>>, %arg5: memref<1x8xf32, #tpu.memory_space<vmem>>, %arg6: memref<1x1x8xf32, #tpu.memory_space<vmem>>) attributes {dimension_semantics = [#tpu.dimension_semantics<parallel>], iteration_bounds = array<i64: 2>, scalar_prefetch = 0 : i64, scratch_operands = 0 : i64, tpu.core_type = #tpu.core_type<tc>, window_params = [{transform_indices = @transform_0, window_bounds = array<i64: 1, 128, 128>}, {pipeline_mode = #tpu.pipeline_mode<synchronous>, transform_indices = @transform_1, window_bounds = array<i64: 1, 128>}, {pipeline_mode = #tpu.pipeline_mode<synchronous>, transform_indices = @transform_2, window_bounds = array<i64: 1, 128>}, {pipeline_mode = #tpu.pipeline_mode<synchronous>, transform_indices = @transform_3, window_bounds = array<i64: 128, 8>}, {pipeline_mode = #tpu.pipeline_mode<synchronous>, transform_indices = @transform_4, window_bounds = array<i64: 1, 8>}, {transform_indices = @transform_5, window_bounds = array<i64: 1, 1, 8>}]} {
    %c0 = arith.constant 0 : index
    %c0_0 = arith.constant 0 : index
    %c0_1 = arith.constant 0 : index
    %0 = vector.load %arg1[%c0, %c0_0, %c0_1] : memref<1x128x128xf32, #tpu.memory_space<vmem>>, vector<1x128x128xf32>
    %1 = vector.shape_cast %0 : vector<1x128x128xf32> to vector<128x128xf32>
    %c0_2 = arith.constant 0 : index
    %c0_3 = arith.constant 0 : index
    %2 = vector.load %arg2[%c0_2, %c0_3] : memref<1x128xf32, #tpu.memory_space<vmem>>, vector<1x128xf32>
    %c0_4 = arith.constant 0 : index
    %c0_5 = arith.constant 0 : index
    %3 = vector.load %arg3[%c0_4, %c0_5] : memref<1x128xf32, #tpu.memory_space<vmem>>, vector<1x128xf32>
    %cst = arith.constant dense<0.000000e+00> : vector<128xf32>
    %4 = vector.multi_reduction <add>, %1, %cst [1] : vector<128x128xf32> to vector<128xf32>
    %5 = vector.shape_cast %4 : vector<128xf32> to vector<128x1xf32>
    %cst_6 = arith.constant 1.280000e+02 : f32
    %6 = vector.broadcast %cst_6 : f32 to vector<128x1xf32>
    %7 = arith.divf %5, %6 : vector<128x1xf32>
    %8 = vector.broadcast %7 : vector<128x1xf32> to vector<128x128xf32>
    %9 = arith.subf %1, %8 : vector<128x128xf32>
    %10 = arith.mulf %9, %9 : vector<128x128xf32>
    %cst_7 = arith.constant dense<0.000000e+00> : vector<128xf32>
    %11 = vector.multi_reduction <add>, %10, %cst_7 [1] : vector<128x128xf32> to vector<128xf32>
    %12 = vector.shape_cast %11 : vector<128xf32> to vector<128x1xf32>
    %cst_8 = arith.constant 1.280000e+02 : f32
    %13 = vector.broadcast %cst_8 : f32 to vector<128x1xf32>
    %14 = arith.divf %12, %13 : vector<128x1xf32>
    %15 = vector.broadcast %7 : vector<128x1xf32> to vector<128x128xf32>
    %16 = arith.subf %1, %15 : vector<128x128xf32>
    %cst_9 = arith.constant 9.99999974E-6 : f32
    %17 = vector.broadcast %cst_9 : f32 to vector<128x1xf32>
    %18 = arith.addf %14, %17 : vector<128x1xf32>
    %19 = math.rsqrt %18 : vector<128x1xf32>
    %20 = vector.broadcast %19 : vector<128x1xf32> to vector<128x128xf32>
    %21 = arith.mulf %16, %20 : vector<128x128xf32>
    %22 = vector.broadcast %2 : vector<1x128xf32> to vector<128x128xf32>
    %23 = arith.mulf %21, %22 : vector<128x128xf32>
    %24 = vector.broadcast %3 : vector<1x128xf32> to vector<128x128xf32>
    %25 = arith.addf %23, %24 : vector<128x128xf32>
    %cst_10 = arith.constant dense<0.000000e+00> : vector<128xf32>
    %26 = vector.multi_reduction <add>, %25, %cst_10 [0] : vector<128x128xf32> to vector<128xf32>
    %27 = vector.shape_cast %26 : vector<128xf32> to vector<1x128xf32>
    %cst_11 = arith.constant 7.812500e-03 : f32
    %28 = vector.broadcast %cst_11 : f32 to vector<1x128xf32>
    %29 = arith.mulf %27, %28 : vector<1x128xf32>
    %c0_12 = arith.constant 0 : index
    %c0_13 = arith.constant 0 : index
    %30 = vector.load %arg4[%c0_12, %c0_13] : memref<128x8xf32, #tpu.memory_space<vmem>>, vector<128x8xf32>
    %cst_14 = arith.constant dense<0.000000e+00> : vector<1x8xf32>
    %31 = tpu.matmul %29, %30, %cst_14 {dimension_numbers = #tpu.dot_dimension_numbers<[1], [0], [0], [1], [0, 0, 1, 1], [], []>} : vector<1x128xf32>, vector<128x8xf32>, vector<1x8xf32> -> vector<1x8xf32>
    %c0_15 = arith.constant 0 : index
    %c0_16 = arith.constant 0 : index
    %32 = vector.load %arg5[%c0_15, %c0_16] : memref<1x8xf32, #tpu.memory_space<vmem>>, vector<1x8xf32>
    %33 = arith.addf %31, %32 : vector<1x8xf32>
    %34 = vector.shape_cast %33 : vector<1x8xf32> to vector<1x1x8xf32>
    %c0_17 = arith.constant 0 : index
    %c0_18 = arith.constant 0 : index
    %c0_19 = arith.constant 0 : index
    %35 = vector.load %arg6[%c0_17, %c0_18, %c0_19] : memref<1x1x8xf32, #tpu.memory_space<vmem>>, vector<1x1x8xf32>
    tpu.vector_store %arg6[%c0_17, %c0_18, %c0_19], %34 {strides = array<i32>} : memref<1x1x8xf32, #tpu.memory_space<vmem>>, vector<1x1x8xf32>,
    return
  }
  func.func @transform_0(%arg0: i32) -> (i32, i32, i32) {
    %c0_i32 = arith.constant 0 : i32
    %c0_i32_0 = arith.constant 0 : i32
    %c0_i32_1 = arith.constant 0 : i32
    return %arg0, %c0_i32, %c0_i32_0 : i32, i32, i32
  }
  func.func @transform_1(%arg0: i32) -> (i32, i32) {
    %c0_i32 = arith.constant 0 : i32
    %c0_i32_0 = arith.constant 0 : i32
    %c0_i32_1 = arith.constant 0 : i32
    return %c0_i32, %c0_i32_0 : i32, i32
  }
  func.func @transform_2(%arg0: i32) -> (i32, i32) {
    %c0_i32 = arith.constant 0 : i32
    %c0_i32_0 = arith.constant 0 : i32
    %c0_i32_1 = arith.constant 0 : i32
    return %c0_i32, %c0_i32_0 : i32, i32
  }
  func.func @transform_3(%arg0: i32) -> (i32, i32) {
    %c0_i32 = arith.constant 0 : i32
    %c0_i32_0 = arith.constant 0 : i32
    %c0_i32_1 = arith.constant 0 : i32
    return %c0_i32, %c0_i32_0 : i32, i32
  }
  func.func @transform_4(%arg0: i32) -> (i32, i32) {
    %c0_i32 = arith.constant 0 : i32
    %c0_i32_0 = arith.constant 0 : i32
    %c0_i32_1 = arith.constant 0 : i32
    return %c0_i32, %c0_i32_0 : i32, i32
  }
  func.func @transform_5(%arg0: i32) -> (i32, i32, i32) {
    %c0_i32 = arith.constant 0 : i32
    %c0_i32_0 = arith.constant 0 : i32
    %c0_i32_1 = arith.constant 0 : i32
    return %arg0, %c0_i32, %c0_i32_0 : i32, i32, i32
  }
}

</mosaic_0001>

<bundles_post_ra>
// kernel: specformer_forward.6
= control target key start
LH: loop header
LB: loop body
LE: loop exit
PB: predicated region body
PF: predicated region fallthrough
CT: control target
= control target key end

     0   :  { %s698_s25 = smov 0   ;;  %s700_s26 = smov 0   ;;  %s789_s0 = inlined_call_operand.vmem [shape: f32[2,128,1], index: 0, kind: input, shape index: {}]   ;;  %s790_s1 = inlined_call_operand.<no memory space> [shape: f32[1,1], index: 1, kind: input, shape index: {}]   ;;  %s791_s3 = inlined_call_operand.vmem [shape: f32[1,128], index: 3, kind: input, shape index: {}]   ;;  %s792_s4 = inlined_call_operand.vmem [shape: f32[1,128], index: 4, kind: input, shape index: {}]   ;;  %s793_s5 = inlined_call_operand.vmem [shape: f32[128,128], index: 5, kind: input, shape index: {}]   ;;  %s794_s6 = inlined_call_operand.vmem [shape: f32[2,128,128], index: 6, kind: output, shape index: {}]   ;;  %s795_s2 = inlined_call_operand.<no memory space> [shape: f32[1,1], index: 2, kind: input, shape index: {}]  }
   0x1   :  { %v11_v0 = vstv %s790_s1  ;;  %v13_v1 = vstv %s795_s2  ;;  %s702_s27 = smov 0   ;;  %s704_s28 = smov 0  }
   0x2   :  { %12 = vst [vmem:[#allocation2] sm:$0x1] %v11_v0  ;;  %14 = vst [vmem:[#allocation3] sm:$0x1] %v13_v1  ;;  %s706_s29 = smov 0  }
   0x3 LB: > { %s29_s1 = sadd.s32 1, %s646_s27  ;;  %s32_s2 = sadd.s32 1, %s650_s28  ;;  %s654_s29 = sphi %s706_s29, %s20_s29   ;;  %s650_s28 = sphi %s704_s28, %s799_s28   ;;  %s646_s27 = sphi %s702_s27, %s798_s27   ;;  %s642_s26 = sphi %s700_s26, %s797_s26   ;;  %s638_s25 = sphi %s698_s25, %s796_s25  }
   0x4   : > { %p30_p0 = scmp.ge.s32.totalorder %s29_s1, 2  ;;  %p556_p1 = scmp.ge.s32.totalorder %s654_s29, 1 }
   0x5   : > { %p248_p2 = scmp.lt.s32.totalorder %s654_s29, 5 }
   0x6   : > { %s801_s1 = smov (%p30_p0, %s29_s1), 0  ;;  %s803_s2 = smov (!%p30_p0, %s32_s2), %s650_s28 }
   0x7   : > { %p249_p3 = pnand %p556_p1, %p248_p2  ;;  %p34_p4 = scmp.ge.s32.totalorder %s803_s2, 2 }
   0x8   : > { %s557_s30 = sshll.u32 (!%p249_p3), %s638_s25, 3  ;;  %p292_p5 = scmp.lt.s32.totalorder (!%p249_p3), %s642_s26, 1  ;;  %v656_v2 = vmov (!%p249_p3), 0   ;;  %v567_v30 = vld [vmem:[%s791_s3] ss:$0 sm:$0xff] (!%p249_p3) }
   0x9   : > { %s805_s2 = smov (%p34_p4, %s803_s2), 0  ;;  %252 = sbr.rel (%p249_p3) target bundleno = 173 (0xad), region = 44 }
   0xa   : > { %613 = vset.pattern.permute.xlu1 (!%p249_p3), %v656_v2  ;;  %612 = vset.pattern.permute.xlu0 (!%p249_p3), %v656_v2  ;;  %p294_p6 = scmp.lt.s32.totalorder (!%p249_p3), %s557_s30, 15  ;;  %v566_v3 = vld [vmem:[#allocation3] ss:$0 sm:$0xff] (!%p249_p3)  ;;  %v565_v4 = vld [vmem:[#allocation2] ss:$0 sm:$0xff] (!%p249_p3) }
   0xb   : > { %614 = vrcp.f32 (!%p249_p3), %v566_v3  ;;  %v568_v31 = vld [vmem:[%s792_s4] ss:$0 sm:$0xff] (!%p249_p3) }
  0x10   : > { %s807_s26 = smov (!%p292_p5, %s642_s26), 1  ;;  %s809_s30 = smov (!%p294_p6, %s557_s30), 15 }
  0x11   : > { %s558_s7 = sshll.u32 %s807_s26, 4  ;;  %s561_s13 = sshll.u32 %s809_s30, 3 }
  0x12   : > { %s731_s8 = sadd.s32 %s558_s7, %s809_s30  ;;  %s746_s18 = scalar_lea.vmem %s793_s5, %s561_s13 }
  0x13   : > { %s559_s9 = sshll.u32 %s731_s8, 3  ;;  %v428_v36 = vld [vmem:[%s746_s18 + $0x10] sm:$0xff]  ;;  %v426_v37 = vld [vmem:[%s746_s18] sm:$0xff]  ;;  %v429_v46 = vld [vmem:[%s746_s18 + $0x18] sm:$0xff] }
  0x14   : > { %s299_s12 = scalar_lea.vmem %s789_s0, %s559_s9  ;;  %s758_s23 = scalar_lea.vmem %s794_s6, %s559_s9  ;;  %v427_v47 = vld [vmem:[%s746_s18 + $0x8] sm:$0xff]  ;;  %v430_v57 = vld [vmem:[%s746_s18 + $0x20] sm:$0xff]  ;;  %v433_v2 = vld [vmem:[%s746_s18 + $0x38] sm:$0xff] }
  0x15   : > { %v319_v5 = vld [vmem:[%s299_s12 + $0x10] sm:$0xff]  ;;  %v317_v6 = vld [vmem:[%s299_s12] sm:$0xff]  ;;  %v320_v7 = vld [vmem:[%s299_s12 + $0x18] sm:$0xff]  ;;  %v615_v14 = vpop.eup %614 }
  0x16   : > { %v334_v8 = vsub.f32 %v319_v5, %v565_v4  ;;  %v332_v9 = vsub.f32 %v317_v6, %v565_v4  ;;  %v318_v10 = vld [vmem:[%s299_s12 + $0x8] sm:$0xff]  ;;  %v335_v11 = vsub.f32 %v320_v7, %v565_v4  ;;  %v321_v15 = vld [vmem:[%s299_s12 + $0x20] sm:$0xff]  ;;  %v324_v22 = vld [vmem:[%s299_s12 + $0x38] sm:$0xff] }
  0x17   : > { %v333_v12 = vsub.f32 %v318_v10, %v565_v4  ;;  %v322_v13 = vld [vmem:[%s299_s12 + $0x28] sm:$0xff]  ;;  %v336_v21 = vsub.f32 %v321_v15, %v565_v4  ;;  %v323_v23 = vld [vmem:[%s299_s12 + $0x30] sm:$0xff]  ;;  %v339_v24 = vsub.f32 %v324_v22, %v565_v4 }
  0x18   : > { %v350_v16 = vmul.f32 %v615_v14, %v334_v8  ;;  %v348_v17 = vmul.f32 %v615_v14, %v332_v9  ;;  %v337_v18 = vsub.f32 %v322_v13, %v565_v4  ;;  %v351_v19 = vmul.f32 %v615_v14, %v335_v11  ;;  %v431_v56 = vld [vmem:[%s746_s18 + $0x28] sm:$0xff]  ;;  %v432_v3 = vld [vmem:[%s746_s18 + $0x30] sm:$0xff] }
  0x19   : > { %v349_v20 = vmul.f32 %v615_v14, %v333_v12  ;;  %v352_v26 = vmul.f32 %v615_v14, %v336_v21  ;;  %v338_v27 = vsub.f32 %v323_v23, %v565_v4  ;;  %v355_v28 = vmul.f32 %v615_v14, %v339_v24 }
  0x1a   : > { %369 = vperm.xlu1 %613, %v350_v16   ;;  %359 = vperm.xlu0 %612, %v348_v17   ;;  %v353_v25 = vmul.f32 %v615_v14, %v337_v18 }
  0x1b   : > { %v354_v29 = vmul.f32 %v615_v14, %v338_v27 }
  0x1e   : > { %374 = vperm.xlu1 %613, %v351_v19   ;;  %364 = vperm.xlu0 %612, %v349_v20  }
  0x22   : > { %384 = vperm.xlu1 %613, %v353_v25   ;;  %379 = vperm.xlu0 %612, %v352_v26  }
  0x26   : > { %394 = vperm.xlu1 %613, %v355_v28   ;;  %389 = vperm.xlu0 %612, %v354_v29  }
  0x99   : > { %v370_v32 = vpop.permute.xlu1 %369  ;;  %v360_v33 = vpop.permute.xlu0 %359 }
  0x9a   : > { %v405_v34 = vmul.f32 %v567_v30, %v370_v32  ;;  %v403_v35 = vmul.f32 %v567_v30, %v360_v33 }
  0x9c   : > { %v420_v38 = vadd.f32 %v568_v31, %v405_v34  ;;  %v418_v39 = vadd.f32 %v568_v31, %v403_v35 }
  0x9d   : > { %v375_v40 = vpop.permute.xlu1 %374  ;;  %v365_v41 = vpop.permute.xlu0 %364 }
  0x9e   : > { %v436_v42 = vadd.f32 %v428_v36, %v420_v38  ;;  %v434_v43 = vadd.f32 %v426_v37, %v418_v39  ;;  %v406_v44 = vmul.f32 %v567_v30, %v375_v40  ;;  %v404_v45 = vmul.f32 %v567_v30, %v365_v41 }
  0xa0   : > { %444 = vst [vmem:[%s758_s23 + $0x10] sm:$0xff] %v436_v42  ;;  %442 = vst [vmem:[%s758_s23] sm:$0xff] %v434_v43  ;;  %v421_v48 = vadd.f32 %v568_v31, %v406_v44  ;;  %v419_v49 = vadd.f32 %v568_v31, %v404_v45 }
  0xa1   : > { %v385_v50 = vpop.permute.xlu1 %384  ;;  %v380_v51 = vpop.permute.xlu0 %379 }
  0xa2   : > { %v437_v52 = vadd.f32 %v429_v46, %v421_v48  ;;  %v435_v53 = vadd.f32 %v427_v47, %v419_v49  ;;  %v408_v54 = vmul.f32 %v567_v30, %v385_v50  ;;  %v407_v55 = vmul.f32 %v567_v30, %v380_v51 }
  0xa4   : > { %445 = vst [vmem:[%s758_s23 + $0x18] sm:$0xff] %v437_v52  ;;  %443 = vst [vmem:[%s758_s23 + $0x8] sm:$0xff] %v435_v53  ;;  %v423_v58 = vadd.f32 %v568_v31, %v408_v54  ;;  %v422_v59 = vadd.f32 %v568_v31, %v407_v55 }
  0xa5   : > { %v395_v60 = vpop.permute.xlu1 %394  ;;  %v390_v61 = vpop.permute.xlu0 %389 }
  0xa6   : > { %v439_v62 = vadd.f32 %v431_v56, %v423_v58  ;;  %v438_v63 = vadd.f32 %v430_v57, %v422_v59  ;;  %v410_v0 = vmul.f32 %v567_v30, %v395_v60  ;;  %v409_v1 = vmul.f32 %v567_v30, %v390_v61 }
  0xa8   : > { %447 = vst [vmem:[%s758_s23 + $0x28] sm:$0xff] %v439_v62  ;;  %446 = vst [vmem:[%s758_s23 + $0x20] sm:$0xff] %v438_v63  ;;  %v425_v4 = vadd.f32 %v568_v31, %v410_v0  ;;  %v424_v5 = vadd.f32 %v568_v31, %v409_v1 }
  0xaa   : > { %v441_v6 = vadd.f32 %v433_v2, %v425_v4  ;;  %v440_v7 = vadd.f32 %v432_v3, %v424_v5 }
  0xac   : > { %449 = vst [vmem:[%s758_s23 + $0x38] sm:$0xff] %v441_v6  ;;  %448 = vst [vmem:[%s758_s23 + $0x30] sm:$0xff] %v440_v7 }
  0xad PF: > { %s20_s29 = sadd.s32 1, %s654_s29   ;;  %s796_s25 = smov %s646_s27 }
  0xae   : > { %p17_p7 = scmp.ge.s32.totalorder %s20_s29, 6   ;;  %s797_s26 = smov %s650_s28 }
  0xaf   : > { %s798_s27 = smov %s801_s1  ;;  %s799_s28 = smov %s805_s2 }
  0xb0   :  { %19 = sbr.rel (!%p17_p7) target bundleno = 3 (0x3), region = 77 }

// kernel: specformer_forward.8
= control target key start
LH: loop header
LB: loop body
LE: loop exit
PB: predicated region body
PF: predicated region fallthrough
CT: control target
= control target key end

     0   :  { %s2234_s24 = smov 0   ;;  %s3377_s0 = inlined_call_operand.vmem [shape: f32[256,128], index: 0, kind: input, shape index: {}]   ;;  %s3378_s1 = inlined_call_operand.vmem [shape: f32[1,128], index: 1, kind: input, shape index: {}]   ;;  %s3379_s2 = inlined_call_operand.vmem [shape: f32[1,128], index: 2, kind: input, shape index: {}]   ;;  %s3380_s3 = inlined_call_operand.vmem [shape: f32[128,512], index: 3, kind: input, shape index: {}]   ;;  %s3381_s4 = inlined_call_operand.vmem [shape: f32[1,512], index: 4, kind: input, shape index: {}]   ;;  %s3382_s5 = inlined_call_operand.vmem [shape: f32[512,128], index: 5, kind: input, shape index: {}]   ;;  %s3383_s6 = inlined_call_operand.vmem [shape: f32[1,128], index: 6, kind: input, shape index: {}]   ;;  %s3384_s7 = inlined_call_operand.vmem [shape: f32[256,128], index: 7, kind: output, shape index: {}]  }
   0x1 LB: > { %s1698_s25 = sadd.s32 4294967295, %s2191_s24   ;;  %p1702_p0 = scmp.ge.s32.totalorder %s2191_s24, 1  ;;  %s2191_s24 = sphi %s2234_s24, %s17_s24  }
   0x2   : > { %p238_p1 = scmp.lt.s32.totalorder %s2191_s24, 3 }
   0x4   : > { %p239_p2 = pnand %p1702_p0, %p238_p1 }
   0x6   : > { %242 = sbr.rel (%p239_p2) target bundleno = 871 (0x367), region = 48 }
   0xd   : > { %s1703_s26 = sshll.u32 %s1698_s25, 4  ;;  %v522_v16 = vld [vmem:[%s3380_s3 + $0x8] sm:$0xff]  ;;  %v524_v18 = vld [vmem:[%s3380_s3 + $0x18] sm:$0xff]  ;;  %v521_v21 = vld [vmem:[%s3380_s3] sm:$0xff] }
   0xe   : > { %p271_p3 = scmp.lt.s32.totalorder %s1703_s26, 31  ;;  %v526_v17 = vld [vmem:[%s3380_s3 + $0x28] sm:$0xff]  ;;  %v528_v20 = vld [vmem:[%s3380_s3 + $0x38] sm:$0xff]  ;;  %v525_v22 = vld [vmem:[%s3380_s3 + $0x20] sm:$0xff] }
   0xf   : > { %v1872_v19 = vpack.c.bf16 %v526_v17, %v522_v16  ;;  %v1904_v23 = vpack.c.bf16 %v528_v20, %v524_v18  ;;  %v1874_v24 = vpack.c.bf16 %v525_v22, %v521_v21  ;;  %v523_v25 = vld [vmem:[%s3380_s3 + $0x10] sm:$0xff]  ;;  %v530_v27 = vld [vmem:[%s3380_s3 + $0x48] sm:$0xff]  ;;  %v532_v30 = vld [vmem:[%s3380_s3 + $0x58] sm:$0xff] }
  0x10   : > { %s3392_s26 = smov (!%p271_p3, %s1703_s26), 31  ;;  %v527_v26 = vld [vmem:[%s3380_s3 + $0x30] sm:$0xff]  ;;  %v534_v29 = vld [vmem:[%s3380_s3 + $0x68] sm:$0xff]  ;;  %v536_v31 = vld [vmem:[%s3380_s3 + $0x78] sm:$0xff] }
  0x11   : > { %s1704_s27 = sshll.u32 %s3392_s26, 3  ;;  %1873 = vmatprep.subr.bf16.mxu0 %v1872_v19  ;;  %v1906_v28 = vpack.c.bf16 %v527_v26, %v523_v25  ;;  %1905 = vmatprep.subr.bf16.mxu1 %v1904_v23  ;;  %v1876_v32 = vpack.c.bf16 %v534_v29, %v530_v27  ;;  %v1908_v33 = vpack.c.bf16 %v536_v31, %v532_v30  ;;  %v529_v34 = vld [vmem:[%s3380_s3 + $0x40] sm:$0xff]  ;;  %v531_v36 = vld [vmem:[%s3380_s3 + $0x50] sm:$0xff]  ;;  %v538_v39 = vld [vmem:[%s3380_s3 + $0x88] sm:$0xff] }
  0x12   : > { %s2250_s30 = scalar_lea.vmem %s3377_s0, %s1704_s27  ;;  %1875 = vmatpush1.bf16.msra.mxu0 %v1874_v24  ;;  %v533_v35 = vld [vmem:[%s3380_s3 + $0x60] sm:$0xff]  ;;  %v535_v38 = vld [vmem:[%s3380_s3 + $0x70] sm:$0xff]  ;;  %v542_v40 = vld [vmem:[%s3380_s3 + $0xa8] sm:$0xff]  ;;  %s3325_s8 = scalar_lea.vmem %s3384_s7, %s1704_s27 }
  0x13   : > { %v2253_v0 = vld [vmem:[%s2250_s30] sm:$0xff]  ;;  %v2256_v1 = vld [vmem:[%s2250_s30 + $0x10] sm:$0xff]  ;;  %v2261_v2 = vld [vmem:[%s2250_s30 + $0x8] sm:$0xff]  ;;  %1907 = vmatpush1.bf16.msra.mxu1 %v1906_v28  ;;  %v1878_v37 = vpack.c.bf16 %v533_v35, %v529_v34  ;;  %1877 = vmatprep.subr.bf16.mxu0 %v1876_v32  ;;  %v1910_v41 = vpack.c.bf16 %v535_v38, %v531_v36  ;;  %v1880_v42 = vpack.c.bf16 %v542_v40, %v538_v39 }
  0x14   : > { %300 = vadd.xlane.f32.xlu0 %v2253_v0  ;;  %304 = vadd.xlane.f32.xlu1 %v2256_v1  ;;  %v2264_v3 = vld [vmem:[%s2250_s30 + $0x18] sm:$0xff]  ;;  %v2269_v4 = vld [vmem:[%s2250_s30 + $0x20] sm:$0xff]  ;;  %v2272_v5 = vld [vmem:[%s2250_s30 + $0x28] sm:$0xff] }
  0x15   : > { %v2277_v6 = vld [vmem:[%s2250_s30 + $0x30] sm:$0xff]  ;;  %v2280_v7 = vld [vmem:[%s2250_s30 + $0x38] sm:$0xff]  ;;  %v2285_v8 = vld [vmem:[%s2250_s30 + $0x40] sm:$0xff]  ;;  %1909 = vmatprep.subr.bf16.mxu1 %v1908_v33 }
  0x16   : > { %v2288_v9 = vld [vmem:[%s2250_s30 + $0x48] sm:$0xff]  ;;  %v2293_v10 = vld [vmem:[%s2250_s30 + $0x50] sm:$0xff]  ;;  %v2296_v11 = vld [vmem:[%s2250_s30 + $0x58] sm:$0xff]  ;;  %1879 = vmatpush1.bf16.msra.mxu0 %v1878_v37 }
  0x17   : > { %v2301_v12 = vld [vmem:[%s2250_s30 + $0x60] sm:$0xff]  ;;  %v2304_v13 = vld [vmem:[%s2250_s30 + $0x68] sm:$0xff]  ;;  %v2309_v14 = vld [vmem:[%s2250_s30 + $0x70] sm:$0xff]  ;;  %1911 = vmatpush1.bf16.msra.mxu1 %v1910_v41  ;;  %1881 = vmatprep.subr.bf16.mxu0 %v1880_v42 }
  0x18   : > { %302 = vadd.xlane.f32.xlu0 %v2261_v2  ;;  %306 = vadd.xlane.f32.xlu1 %v2264_v3  ;;  %v2312_v15 = vld [vmem:[%s2250_s30 + $0x78] sm:$0xff]  ;;  %v537_v45 = vld [vmem:[%s3380_s3 + $0x80] sm:$0xff]  ;;  %v539_v48 = vld [vmem:[%s3380_s3 + $0x90] sm:$0xff] }
  0x19   : > { %v540_v43 = vld [vmem:[%s3380_s3 + $0x98] sm:$0xff]  ;;  %v541_v47 = vld [vmem:[%s3380_s3 + $0xa0] sm:$0xff]  ;;  %v543_v49 = vld [vmem:[%s3380_s3 + $0xb0] sm:$0xff] }
  0x1a   : > { %v544_v44 = vld [vmem:[%s3380_s3 + $0xb8] sm:$0xff]  ;;  %v1882_v50 = vpack.c.bf16 %v541_v47, %v537_v45  ;;  %v1914_v51 = vpack.c.bf16 %v543_v49, %v539_v48  ;;  %v546_v34 = vld [vmem:[%s3380_s3 + $0xc8] sm:$0xff]  ;;  %v545_v39 = vld [vmem:[%s3380_s3 + $0xc0] sm:$0xff] }
  0x1b   : > { %v1912_v46 = vpack.c.bf16 %v544_v44, %v540_v43  ;;  %v550_v35 = vld [vmem:[%s3380_s3 + $0xe8] sm:$0xff]  ;;  %v549_v40 = vld [vmem:[%s3380_s3 + $0xe0] sm:$0xff]  ;;  %v547_v44 = vld [vmem:[%s3380_s3 + $0xd0] sm:$0xff] }
  0x1c   : > { %308 = vadd.xlane.f32.xlu0 %v2269_v4  ;;  %310 = vadd.xlane.f32.xlu1 %v2272_v5  ;;  %v1884_v38 = vpack.c.bf16 %v550_v35, %v546_v34  ;;  %v551_v45 = vld [vmem:[%s3380_s3 + $0xf0] sm:$0xff]  ;;  %v1886_v47 = vpack.c.bf16 %v549_v40, %v545_v39  ;;  %v570_v40 = vld [vmem:[%s3380_s3 + $0x188] sm:$0xff] }
  0x1d   : > { %1913 = vmatprep.subr.bf16.mxu1 %v1912_v46  ;;  %1883 = vmatpush1.bf16.msra.mxu0 %v1882_v50  ;;  %v1918_v48 = vpack.c.bf16 %v551_v45, %v547_v44  ;;  %v569_v44 = vld [vmem:[%s3380_s3 + $0x180] sm:$0xff] }
  0x1e   : > { %1915 = vmatpush1.bf16.msra.mxu1 %v1914_v51  ;;  %1885 = vmatprep.subr.bf16.mxu0 %v1884_v38  ;;  %v573_v45 = vld [vmem:[%s3380_s3 + $0x1a0] sm:$0xff] }
  0x20   : > { %312 = vadd.xlane.f32.xlu0 %v2277_v6  ;;  %314 = vadd.xlane.f32.xlu1 %v2280_v7 }
  0x21   : > { %1887 = vmatpush1.bf16.msra.mxu0 %v1886_v47  ;;  %v1898_v47 = vpack.c.bf16 %v573_v45, %v569_v44  ;;  %v2605_v44 = vld [vmem:[%s3378_s1] ss:$0 sm:$0xff] }
  0x24   : > { %316 = vadd.xlane.f32.xlu0 %v2285_v8  ;;  %318 = vadd.xlane.f32.xlu1 %v2288_v9 }
  0x28   : > { %320 = vadd.xlane.f32.xlu0 %v2293_v10  ;;  %322 = vadd.xlane.f32.xlu1 %v2296_v11 }
  0x2c   : > { %324 = vadd.xlane.f32.xlu0 %v2301_v12  ;;  %326 = vadd.xlane.f32.xlu1 %v2304_v13 }
  0x30   : > { %328 = vadd.xlane.f32.xlu0 %v2309_v14  ;;  %330 = vadd.xlane.f32.xlu1 %v2312_v15 }
  0xa1   : > { %v301_v52 = vpop.xlane.xlu0 %300  ;;  %v305_v53 = vpop.xlane.xlu1 %304 }
  0xa2   : > { %v333_v54 = vmul.f32 0.0078125, %v301_v52  ;;  %v335_v55 = vmul.f32 0.0078125, %v305_v53 }
  0xa4   : > { %v2389_v56 = vsub.f32 %v2253_v0, %v333_v54  ;;  %v2392_v57 = vsub.f32 %v2256_v1, %v335_v55  ;;  %v554_v54 = vld [vmem:[%s3380_s3 + $0x108] sm:$0xff] }
  0xa5   : > { %v303_v58 = vpop.xlane.xlu0 %302  ;;  %v307_v59 = vpop.xlane.xlu1 %306 }
  0xa6   : > { %v334_v60 = vmul.f32 0.0078125, %v303_v58  ;;  %v365_v61 = vmul.f32 %v2389_v56, %v2389_v56  ;;  %v336_v62 = vmul.f32 0.0078125, %v307_v59  ;;  %v367_v0 = vmul.f32 %v2392_v57, %v2392_v57 }
  0xa8   : > { %v2397_v63 = vsub.f32 %v2261_v2, %v334_v60  ;;  %381 = vadd.xlane.f32.xlu0 %v365_v61  ;;  %v2400_v16 = vsub.f32 %v2264_v3, %v336_v62  ;;  %v560_v60 = vld [vmem:[%s3380_s3 + $0x138] sm:$0xff]  ;;  %v553_v61 = vld [vmem:[%s3380_s3 + $0x100] sm:$0xff] }
  0xa9   : > { %v309_v17 = vpop.xlane.xlu0 %308  ;;  %v311_v1 = vpop.xlane.xlu1 %310  ;;  %v557_v62 = vld [vmem:[%s3380_s3 + $0x120] sm:$0xff] }
  0xaa   : > { %v337_v18 = vmul.f32 0.0078125, %v309_v17  ;;  %v366_v19 = vmul.f32 %v2397_v63, %v2397_v63  ;;  %v338_v20 = vmul.f32 0.0078125, %v311_v1  ;;  %v368_v3 = vmul.f32 %v2400_v16, %v2400_v16 }
  0xac   : > { %v2407_v21 = vsub.f32 %v2269_v4, %v337_v18  ;;  %385 = vadd.xlane.f32.xlu0 %v367_v0  ;;  %383 = vadd.xlane.f32.xlu1 %v366_v19  ;;  %v2410_v2 = vsub.f32 %v2272_v5, %v338_v20  ;;  %v1890_v18 = vpack.c.bf16 %v557_v62, %v553_v61  ;;  %v555_v19 = vld [vmem:[%s3380_s3 + $0x110] sm:$0xff] }
  0xad   : > { %v313_v22 = vpop.xlane.xlu0 %312  ;;  %v315_v23 = vpop.xlane.xlu1 %314  ;;  %v559_v20 = vld [vmem:[%s3380_s3 + $0x130] sm:$0xff] }
  0xae   : > { %v339_v24 = vmul.f32 0.0078125, %v313_v22  ;;  %v369_v25 = vmul.f32 %v2407_v21, %v2407_v21  ;;  %v340_v26 = vmul.f32 0.0078125, %v315_v23  ;;  %v370_v5 = vmul.f32 %v2410_v2, %v2410_v2 }
  0xaf   : > { %v1922_v23 = vpack.c.bf16 %v559_v20, %v555_v19  ;;  %v1265_v19 = vld [vmem:[%s3382_s5 + $0x80] sm:$0xff]  ;;  %v1266_v20 = vld [vmem:[%s3382_s5 + $0x88] sm:$0xff] }
  0xb0   : > { %v2417_v27 = vsub.f32 %v2277_v6, %v339_v24  ;;  %387 = vadd.xlane.f32.xlu1 %v368_v3  ;;  %389 = vadd.xlane.f32.xlu0 %v369_v25  ;;  %v2420_v4 = vsub.f32 %v2280_v7, %v340_v26  ;;  %v562_v26 = vld [vmem:[%s3380_s3 + $0x148] sm:$0xff] }
  0xb1   : > { %v317_v28 = vpop.xlane.xlu0 %316  ;;  %v319_v29 = vpop.xlane.xlu1 %318 }
  0xb2   : > { %v341_v30 = vmul.f32 0.0078125, %v317_v28  ;;  %v371_v31 = vmul.f32 %v2417_v27, %v2417_v27  ;;  %v342_v32 = vmul.f32 0.0078125, %v319_v29  ;;  %v372_v7 = vmul.f32 %v2420_v4, %v2420_v4 }
  0xb4   : > { %v2427_v33 = vsub.f32 %v2285_v8, %v341_v30  ;;  %391 = vadd.xlane.f32.xlu1 %v370_v5  ;;  %393 = vadd.xlane.f32.xlu0 %v371_v31  ;;  %v2430_v6 = vsub.f32 %v2288_v9, %v342_v32  ;;  %v548_v8 = vld [vmem:[%s3380_s3 + $0xd8] sm:$0xff]  ;;  %v566_v5 = vld [vmem:[%s3380_s3 + $0x168] sm:$0xff]  ;;  %v561_v31 = vld [vmem:[%s3380_s3 + $0x140] sm:$0xff] }
  0xb5   : > { %v321_v36 = vpop.xlane.xlu0 %320  ;;  %v323_v37 = vpop.xlane.xlu1 %322  ;;  %v552_v9 = vld [vmem:[%s3380_s3 + $0xf8] sm:$0xff]  ;;  %v565_v32 = vld [vmem:[%s3380_s3 + $0x160] sm:$0xff]  ;;  %v1892_v34 = vpack.c.bf16 %v566_v5, %v562_v26 }
  0xb6   : > { %v343_v41 = vmul.f32 0.0078125, %v321_v36  ;;  %v373_v42 = vmul.f32 %v2427_v33, %v2427_v33  ;;  %v344_v43 = vmul.f32 0.0078125, %v323_v37  ;;  %v1916_v46 = vpack.c.bf16 %v552_v9, %v548_v8  ;;  %v568_v30 = vld [vmem:[%s3380_s3 + $0x178] sm:$0xff]  ;;  %v563_v36 = vld [vmem:[%s3380_s3 + $0x150] sm:$0xff] }
  0xb7   : > { %v374_v51 = vmul.f32 %v2430_v6, %v2430_v6  ;;  %v1894_v8 = vpack.c.bf16 %v565_v32, %v561_v31  ;;  %v567_v37 = vld [vmem:[%s3380_s3 + $0x170] sm:$0xff] }
  0xb8   : > { %v2461_v49 = vsub.f32 %v2293_v10, %v343_v41  ;;  %395 = vadd.xlane.f32.xlu1 %v372_v7  ;;  %397 = vadd.xlane.f32.xlu0 %v373_v42  ;;  %v2464_v50 = vsub.f32 %v2296_v11, %v344_v43  ;;  %v558_v10 = vld [vmem:[%s3380_s3 + $0x128] sm:$0xff]  ;;  %v556_v11 = vld [vmem:[%s3380_s3 + $0x118] sm:$0xff]  ;;  %v1926_v39 = vpack.c.bf16 %v567_v37, %v563_v36 }
  0xb9   : > { %v325_v52 = vpop.xlane.xlu0 %324  ;;  %v327_v53 = vpop.xlane.xlu1 %326  ;;  %1917 = vmatprep.subr.bf16.mxu1 %v1916_v46  ;;  %v1888_v17 = vpack.c.bf16 %v558_v10, %v554_v54  ;;  %v1920_v1 = vpack.c.bf16 %v560_v60, %v556_v11  ;;  %v574_v41 = vld [vmem:[%s3380_s3 + $0x1a8] sm:$0xff]  ;;  %v576_v43 = vld [vmem:[%s3380_s3 + $0x1b8] sm:$0xff]  ;;  %v581_v60 = vld [vmem:[%s3380_s3 + $0x1e0] sm:$0xff] }
  0xba   : > { %v345_v55 = vmul.f32 0.0078125, %v325_v52  ;;  %v375_v58 = vmul.f32 %v2461_v49, %v2461_v49  ;;  %v346_v59 = vmul.f32 0.0078125, %v327_v53  ;;  %1919 = vmatpush1.bf16.msra.mxu1 %v1918_v48  ;;  %v376_v0 = vmul.f32 %v2464_v50, %v2464_v50  ;;  %v571_v48 = vld [vmem:[%s3380_s3 + $0x190] sm:$0xff]  ;;  %v578_v54 = vld [vmem:[%s3380_s3 + $0x1c8] sm:$0xff]  ;;  %v580_v11 = vld [vmem:[%s3380_s3 + $0x1d8] sm:$0xff] }
  0xbb   : > { %1889 = vmatprep.subr.bf16.mxu0 %v1888_v17  ;;  %1921 = vmatprep.subr.bf16.mxu1 %v1920_v1  ;;  %v582_v10 = vld [vmem:[%s3380_s3 + $0x1e8] sm:$0xff]  ;;  %v583_v17 = vld [vmem:[%s3380_s3 + $0x1f0] sm:$0xff] }
  0xbc   : > { %v2497_v3 = vsub.f32 %v2301_v12, %v345_v55  ;;  %399 = vadd.xlane.f32.xlu1 %v374_v51  ;;  %401 = vadd.xlane.f32.xlu0 %v375_v58  ;;  %v2500_v22 = vsub.f32 %v2304_v13, %v346_v59  ;;  %v564_v12 = vld [vmem:[%s3380_s3 + $0x158] sm:$0xff]  ;;  %v575_v51 = vld [vmem:[%s3380_s3 + $0x1b0] sm:$0xff]  ;;  %v1900_v55 = vpack.c.bf16 %v582_v10, %v578_v54  ;;  %v577_v59 = vld [vmem:[%s3380_s3 + $0x1c0] sm:$0xff] }
  0xbd   : > { %v329_v24 = vpop.xlane.xlu0 %328  ;;  %v331_v25 = vpop.xlane.xlu1 %330  ;;  %1891 = vmatpush1.bf16.msra.mxu0 %v1890_v18  ;;  %v1924_v35 = vpack.c.bf16 %v568_v30, %v564_v12  ;;  %v1930_v53 = vpack.c.bf16 %v575_v51, %v571_v48  ;;  %v584_v58 = vld [vmem:[%s3380_s3 + $0x1f8] sm:$0xff]  ;;  %v1902_v62 = vpack.c.bf16 %v581_v60, %v577_v59  ;;  %v2193_v18 = vmov 0.0   ;;  %v1249_v48 = vld [vmem:[%s3382_s5] sm:$0xff]  ;;  %v1250_v51 = vld [vmem:[%s3382_s5 + $0x8] sm:$0xff] }
  0xbe   : > { %v347_v28 = vmul.f32 0.0078125, %v329_v24  ;;  %v377_v13 = vmul.f32 %v2497_v3, %v2497_v3  ;;  %v348_v29 = vmul.f32 0.0078125, %v331_v25  ;;  %1923 = vmatpush1.bf16.msra.mxu1 %v1922_v23  ;;  %v378_v7 = vmul.f32 %v2500_v22, %v2500_v22  ;;  %1893 = vmatprep.subr.bf16.mxu0 %v1892_v34  ;;  %v1297_v24 = vld [vmem:[%s3382_s5 + $0x180] sm:$0xff]  ;;  %v1298_v25 = vld [vmem:[%s3382_s5 + $0x188] sm:$0xff]  ;;  %v1268_v10 = vld [vmem:[%s3382_s5 + $0x98] sm:$0xff] }
  0xbf   : > { %1925 = vmatprep.subr.bf16.mxu1 %v1924_v35  ;;  %v1932_v61 = vpack.c.bf16 %v584_v58, %v580_v11  ;;  %671 = vmatprep.mubr.f32.mxu0 %v2193_v18  ;;  %v1936_v23 = vpack.c.bf16 %v1266_v20, %v1265_v19  ;;  %v1968_v26 = vpack.c.bf16 %v1298_v25, %v1297_v24  ;;  %v1299_v11 = vld [vmem:[%s3382_s5 + $0x190] sm:$0xff]  ;;  %v1284_v25 = vld [vmem:[%s3382_s5 + $0x118] sm:$0xff] }
  0xc0   : > { %v2531_v38 = vsub.f32 %v2309_v14, %v347_v28  ;;  %403 = vadd.xlane.f32.xlu1 %v376_v0  ;;  %405 = vadd.xlane.f32.xlu0 %v377_v13  ;;  %v2534_v9 = vsub.f32 %v2312_v15, %v348_v29  ;;  %v572_v14 = vld [vmem:[%s3380_s3 + $0x198] sm:$0xff]  ;;  %v1896_v15 = vpack.c.bf16 %v574_v41, %v570_v40  ;;  %v579_v0 = vld [vmem:[%s3380_s3 + $0x1d0] sm:$0xff] }
  0xc1   : > { %1895 = vmatpush1.bf16.msra.mxu0 %v1894_v8  ;;  %v1928_v46 = vpack.c.bf16 %v576_v43, %v572_v14  ;;  %v1934_v1 = vpack.c.bf16 %v583_v17, %v579_v0  ;;  %832 = vmatprep.mubr.f32.mxu1 %v2193_v18  ;;  %v1938_v20 = vpack.c.bf16 %v1250_v51, %v1249_v48  ;;  %v1283_v24 = vld [vmem:[%s3382_s5 + $0x110] sm:$0xff]  ;;  %v1304_v51 = vld [vmem:[%s3382_s5 + $0x1b8] sm:$0xff] }
  0xc2   : > { %v379_v42 = vmul.f32 %v2531_v38, %v2531_v38  ;;  %1927 = vmatpush1.bf16.msra.mxu1 %v1926_v39  ;;  %v380_v52 = vmul.f32 %v2534_v9, %v2534_v9  ;;  %1897 = vmatprep.subr.bf16.mxu0 %v1896_v15  ;;  %v1303_v48 = vld [vmem:[%s3382_s5 + $0x1b0] sm:$0xff] }
  0xc3   : > { %1929 = vmatprep.subr.bf16.mxu1 %v1928_v46  ;;  %v2610_v46 = vld [vmem:[%s3379_s2] ss:$0 sm:$0xff] }
  0xc4   : > { %407 = vadd.xlane.f32.xlu1 %v378_v7  ;;  %409 = vadd.xlane.f32.xlu0 %v379_v42 }
  0xc5   : > { %1899 = vmatpush1.bf16.msra.mxu0 %v1898_v47 }
  0xc6   : > { %1931 = vmatpush1.bf16.msra.mxu1 %v1930_v53  ;;  %1901 = vmatprep.subr.bf16.mxu0 %v1900_v55  ;;  %v1282_v53 = vld [vmem:[%s3382_s5 + $0x108] sm:$0xff]  ;;  %v1300_v55 = vld [vmem:[%s3382_s5 + $0x198] sm:$0xff] }
  0xc7   : > { %1933 = vmatprep.subr.bf16.mxu1 %v1932_v61  ;;  %v1251_v61 = vld [vmem:[%s3382_s5 + $0x10] sm:$0xff] }
  0xc8   : > { %411 = vadd.xlane.f32.xlu1 %v380_v52  ;;  %v1281_v52 = vld [vmem:[%s3382_s5 + $0x100] sm:$0xff] }
  0xc9   : > { %1903 = vmatpush1.bf16.msra.mxu0 %v1902_v62  ;;  %v1252_v62 = vld [vmem:[%s3382_s5 + $0x18] sm:$0xff] }
  0xca   : > { %1935 = vmatpush1.bf16.msra.mxu1 %v1934_v1  ;;  %1937 = vmatprep.subr.bf16.mxu0 %v1936_v23  ;;  %v1970_v23 = vpack.c.bf16 %v1282_v53, %v1281_v52 }
  0xcb   : > { %1969 = vmatprep.subr.bf16.mxu1 %v1968_v26 }
 0x135   : > { %v382_v5 = vpop.xlane.xlu0 %381 }
 0x136   : > { %v413_v12 = vmul.f32 0.0078125, %v382_v5 }
 0x138   : > { %v429_v28 = vadd.f32 1e-05, %v413_v12  ;;  %v1972_v12 = vpack.c.bf16 %v1300_v55, %v1299_v11 }
 0x139   : > { %v384_v13 = vpop.xlane.xlu1 %383  ;;  %v386_v29 = vpop.xlane.xlu0 %385 }
 0x13a   : > { %2009 = vrsqrt.f32 %v429_v28  ;;  %v414_v30 = vmul.f32 0.0078125, %v384_v13  ;;  %v415_v31 = vmul.f32 0.0078125, %v386_v29  ;;  %v1269_v28 = vld [vmem:[%s3382_s5 + $0xa0] sm:$0xff]  ;;  %v1942_v13 = vpack.c.bf16 %v1252_v62, %v1251_v61  ;;  %v1270_v29 = vld [vmem:[%s3382_s5 + $0xa8] sm:$0xff]  ;;  %v1288_v61 = vld [vmem:[%s3382_s5 + $0x138] sm:$0xff] }
 0x13c   : > { %v430_v32 = vadd.f32 1e-05, %v414_v30  ;;  %v431_v7 = vadd.f32 1e-05, %v415_v31  ;;  %v1301_v30 = vld [vmem:[%s3382_s5 + $0x1a0] sm:$0xff] }
 0x13d   : > { %v388_v34 = vpop.xlane.xlu1 %387  ;;  %v390_v35 = vpop.xlane.xlu0 %389 }
 0x13e   : > { %2011 = vrsqrt.f32 %v430_v32  ;;  %v416_v8 = vmul.f32 0.0078125, %v388_v34  ;;  %v417_v36 = vmul.f32 0.0078125, %v390_v35  ;;  %v1974_v34 = vpack.c.bf16 %v1284_v25, %v1283_v24  ;;  %v1253_v35 = vld [vmem:[%s3382_s5 + $0x20] sm:$0xff] }
 0x13f   : > { %2013 = vrsqrt.f32 %v431_v7 }
 0x140   : > { %v432_v37 = vadd.f32 1e-05, %v416_v8  ;;  %v433_v39 = vadd.f32 1e-05, %v417_v36  ;;  %v1254_v8 = vld [vmem:[%s3382_s5 + $0x28] sm:$0xff] }
 0x141   : > { %v392_v40 = vpop.xlane.xlu1 %391  ;;  %v394_v41 = vpop.xlane.xlu0 %393 }
 0x142   : > { %2015 = vrsqrt.f32 %v432_v37  ;;  %v418_v14 = vmul.f32 0.0078125, %v392_v40  ;;  %v419_v43 = vmul.f32 0.0078125, %v394_v41  ;;  %v1285_v41 = vld [vmem:[%s3382_s5 + $0x120] sm:$0xff] }
 0x143   : > { %2017 = vrsqrt.f32 %v433_v39 }
 0x144   : > { %v2010_v42 = vpop.eup %2009  ;;  %v434_v15 = vadd.f32 1e-05, %v418_v14  ;;  %v435_v59 = vadd.f32 1e-05, %v419_v43  ;;  %v1286_v14 = vld [vmem:[%s3382_s5 + $0x128] sm:$0xff] }
 0x145   : > { %v396_v45 = vpop.xlane.xlu1 %395  ;;  %v461_v47 = vmul.f32 %v2010_v42, %v2389_v56  ;;  %v1267_v56 = vld [vmem:[%s3382_s5 + $0x90] sm:$0xff]  ;;  %v398_v17 = vpop.xlane.xlu0 %397 }
 0x146   : > { %2019 = vrsqrt.f32 %v434_v15  ;;  %v420_v60 = vmul.f32 0.0078125, %v396_v45  ;;  %v1940_v5 = vpack.c.bf16 %v1268_v10, %v1267_v56  ;;  %v421_v7 = vmul.f32 0.0078125, %v398_v17  ;;  %v1271_v45 = vld [vmem:[%s3382_s5 + $0xb0] sm:$0xff]  ;;  %v1256_v10 = vld [vmem:[%s3382_s5 + $0x38] sm:$0xff] }
 0x147   : > { %v483_v54 = vmul.f32 %v2605_v44, %v461_v47  ;;  %2021 = vrsqrt.f32 %v435_v59  ;;  %v1944_v15 = vpack.c.bf16 %v1270_v29, %v1269_v28  ;;  %v1272_v47 = vld [vmem:[%s3382_s5 + $0xb8] sm:$0xff]  ;;  %v1978_v56 = vpack.c.bf16 %v1286_v14, %v1285_v41 }
 0x148   : > { %v2012_v58 = vpop.eup %2011  ;;  %v436_v32 = vadd.f32 1e-05, %v420_v60  ;;  %v437_v52 = vadd.f32 1e-05, %v421_v7  ;;  %v1287_v60 = vld [vmem:[%s3382_s5 + $0x130] sm:$0xff]  ;;  %v1980_v17 = vpack.c.bf16 %v1304_v51, %v1303_v48 }
 0x149   : > { %v2014_v0 = vpop.eup %2013  ;;  %v505_v1 = vadd.f32 %v2610_v46, %v483_v54  ;;  %v462_v19 = vmul.f32 %v2012_v58, %v2397_v63  ;;  %v400_v36 = vpop.xlane.xlu1 %399  ;;  %v1255_v54 = vld [vmem:[%s3382_s5 + $0x30] sm:$0xff] }
 0x14a   : > { %v463_v26 = vmul.f32 %v2014_v0, %v2392_v57  ;;  %v1302_v57 = vld [vmem:[%s3382_s5 + $0x1a8] sm:$0xff]  ;;  %2023 = vrsqrt.f32 %v436_v32  ;;  %v422_v53 = vmul.f32 0.0078125, %v400_v36  ;;  %v402_v11 = vpop.xlane.xlu0 %401  ;;  %v1948_v0 = vpack.c.bf16 %v1272_v47, %v1271_v45  ;;  %v1308_v36 = vld [vmem:[%s3382_s5 + $0x1d8] sm:$0xff] }
 0x14b   : > { %672 = vmatmul.mubr.f32.vlgmr.msra.gmra.mrb[0].mxu0 %v505_v1  ;;  %833 = vmatmul.mubr.f32.vlgmr.msra.gmra.mrb[0].mxu1 %v505_v1  ;;  %v484_v63 = vmul.f32 %v2605_v44, %v462_v19  ;;  %v1976_v43 = vpack.c.bf16 %v1302_v57, %v1301_v30  ;;  %v1273_v1 = vld [vmem:[%s3382_s5 + $0xc0] sm:$0xff]  ;;  %v1274_v19 = vld [vmem:[%s3382_s5 + $0xc8] sm:$0xff]  ;;  %2025 = vrsqrt.f32 %v437_v52  ;;  %v423_v25 = vmul.f32 0.0078125, %v402_v11  ;;  %v1260_v45 = vld [vmem:[%s3382_s5 + $0x58] sm:$0xff] }
 0x14c   : > { %v2016_v31 = vpop.eup %2015  ;;  %677 = vmatprep.mubr.f32.mxu0 %v2193_v18  ;;  %838 = vmatprep.mubr.f32.mxu1 %v2193_v18  ;;  %v485_v39 = vmul.f32 %v2605_v44, %v463_v26  ;;  %v438_v24 = vadd.f32 1e-05, %v422_v53  ;;  %v1982_v26 = vpack.c.bf16 %v1288_v61, %v1287_v60  ;;  %v1289_v30 = vld [vmem:[%s3382_s5 + $0x140] sm:$0xff]  ;;  %v1290_v57 = vld [vmem:[%s3382_s5 + $0x148] sm:$0xff]  ;;  %v1952_v32 = vpack.c.bf16 %v1274_v19, %v1273_v1 }
 0x14d   : > { %v506_v37 = vadd.f32 %v2610_v46, %v484_v63  ;;  %v464_v40 = vmul.f32 %v2016_v31, %v2400_v16  ;;  %1939 = vmatpush3.bf16.msra.mxu0 %v1938_v20  ;;  %1971 = vmatpush3.bf16.msra.mxu1 %v1970_v23  ;;  %v2018_v42 = vpop.eup %2017  ;;  %v1946_v16 = vpack.c.bf16 %v1254_v8, %v1253_v35  ;;  %v1305_v20 = vld [vmem:[%s3382_s5 + $0x1c0] sm:$0xff]  ;;  %v1306_v23 = vld [vmem:[%s3382_s5 + $0x1c8] sm:$0xff]  ;;  %v404_v28 = vpop.xlane.xlu1 %403  ;;  %v1276_v35 = vld [vmem:[%s3382_s5 + $0xd8] sm:$0xff] }
 0x14e   : > { %1941 = vmatprep.subr.bf16.mxu0 %v1940_v5  ;;  %1973 = vmatprep.subr.bf16.mxu1 %v1972_v12  ;;  %v507_v55 = vadd.f32 %v2610_v46, %v485_v39  ;;  %v465_v59 = vmul.f32 %v2018_v42, %v2407_v21  ;;  %v1950_v21 = vpack.c.bf16 %v1256_v10, %v1255_v54  ;;  %v1257_v5 = vld [vmem:[%s3382_s5 + $0x40] sm:$0xff]  ;;  %v1258_v12 = vld [vmem:[%s3382_s5 + $0x48] sm:$0xff]  ;;  %v1307_v8 = vld [vmem:[%s3382_s5 + $0x1d0] sm:$0xff]  ;;  %2027 = vrsqrt.f32 %v438_v24  ;;  %v406_v41 = vpop.xlane.xlu0 %405 }
 0x14f   : > { %678 = vmatmul.mubr.f32.gmra.mrb[2].mxu0 %v506_v37  ;;  %839 = vmatmul.mubr.f32.gmra.mrb[2].mxu1 %v506_v37  ;;  %v486_v58 = vmul.f32 %v2605_v44, %v464_v40  ;;  %v1984_v7 = vpack.c.bf16 %v1306_v23, %v1305_v20  ;;  %v439_v37 = vadd.f32 1e-05, %v423_v25  ;;  %v424_v39 = vmul.f32 0.0078125, %v404_v28 }
 0x150   : > { %683 = vmatprep.mubr.f32.mxu0 %v2193_v18  ;;  %844 = vmatprep.mubr.f32.mxu1 %v2193_v18  ;;  %v2020_v62 = vpop.eup %2019  ;;  %v1986_v40 = vpack.c.bf16 %v1290_v57, %v1289_v30  ;;  %v1988_v48 = vpack.c.bf16 %v1308_v36, %v1307_v8 }
 0x151   : > { %1943 = vmatpush3.bf16.msra.mxu0 %v1942_v13  ;;  %1975 = vmatpush3.bf16.msra.mxu1 %v1974_v34  ;;  %v508_v63 = vadd.f32 %v2610_v46, %v486_v58  ;;  %v487_v13 = vmul.f32 %v2605_v44, %v465_v59  ;;  %v466_v29 = vmul.f32 %v2020_v62, %v2410_v2  ;;  %v2022_v31 = vpop.eup %2021  ;;  %v1275_v34 = vld [vmem:[%s3382_s5 + $0xd0] sm:$0xff]  ;;  %2029 = vrsqrt.f32 %v439_v37  ;;  %v408_v53 = vpop.xlane.xlu1 %407 }
 0x152   : > { %1945 = vmatprep.subr.bf16.mxu0 %v1944_v15  ;;  %1977 = vmatprep.subr.bf16.mxu1 %v1976_v43  ;;  %v1954_v2 = vpack.c.bf16 %v1258_v12, %v1257_v5  ;;  %v467_v15 = vmul.f32 %v2022_v31, %v2417_v27  ;;  %v1259_v43 = vld [vmem:[%s3382_s5 + $0x50] sm:$0xff]  ;;  %v1956_v47 = vpack.c.bf16 %v1276_v35, %v1275_v34  ;;  %v440_v51 = vadd.f32 1e-05, %v424_v39  ;;  %v410_v59 = vpop.xlane.xlu0 %409 }
 0x153   : > { %684 = vmatmul.mubr.f32.gmra.mrb[4].mxu0 %v507_v55  ;;  %845 = vmatmul.mubr.f32.gmra.mrb[4].mxu1 %v507_v55  ;;  %v509_v14 = vadd.f32 %v2610_v46, %v487_v13  ;;  %v488_v42 = vmul.f32 %v2605_v44, %v466_v29  ;;  %v425_v27 = vmul.f32 0.0078125, %v406_v41  ;;  %v1958_v52 = vpack.c.bf16 %v1260_v45, %v1259_v43  ;;  %v1292_v41 = vld [vmem:[%s3382_s5 + $0x158] sm:$0xff]  ;;  %v1262_v43 = vld [vmem:[%s3382_s5 + $0x68] sm:$0xff] }
 0x154   : > { %689 = vmatprep.mubr.f32.mxu0 %v2193_v18  ;;  %850 = vmatprep.mubr.f32.mxu1 %v2193_v18  ;;  %v489_v54 = vmul.f32 %v2605_v44, %v467_v15  ;;  %2031 = vrsqrt.f32 %v440_v51  ;;  %v426_v58 = vmul.f32 0.0078125, %v408_v53  ;;  %v1261_v15 = vld [vmem:[%s3382_s5 + $0x60] sm:$0xff]  ;;  %v1310_v45 = vld [vmem:[%s3382_s5 + $0x1e8] sm:$0xff]  ;;  %v1280_v53 = vld [vmem:[%s3382_s5 + $0xf8] sm:$0xff] }
 0x155   : > { %1947 = vmatpush3.bf16.msra.mxu0 %v1946_v16  ;;  %1979 = vmatpush3.bf16.msra.mxu1 %v1978_v56  ;;  %v2024_v16 = vpop.eup %2023  ;;  %v510_v56 = vadd.f32 %v2610_v46, %v488_v42  ;;  %v441_v55 = vadd.f32 1e-05, %v425_v27  ;;  %v412_v1 = vpop.xlane.xlu1 %411  ;;  %v1294_v51 = vld [vmem:[%s3382_s5 + $0x168] sm:$0xff] }
 0x156   : > { %1949 = vmatprep.subr.bf16.mxu0 %v1948_v0  ;;  %1981 = vmatprep.subr.bf16.mxu1 %v1980_v17  ;;  %v468_v10 = vmul.f32 %v2024_v16, %v2420_v4  ;;  %v2026_v11 = vpop.eup %2025  ;;  %v511_v60 = vadd.f32 %v2610_v46, %v489_v54  ;;  %v442_v0 = vadd.f32 1e-05, %v426_v58  ;;  %v427_v17 = vmul.f32 0.0078125, %v410_v59 }
 0x157   : > { %690 = vmatmul.mubr.f32.gmra.mrb[6].mxu0 %v508_v63  ;;  %851 = vmatmul.mubr.f32.gmra.mrb[6].mxu1 %v508_v63  ;;  %v469_v4 = vmul.f32 %v2026_v11, %v2427_v33  ;;  %2033 = vrsqrt.f32 %v441_v55  ;;  %v428_v24 = vmul.f32 0.0078125, %v412_v1  ;;  %v1962_v16 = vpack.c.bf16 %v1262_v43, %v1261_v15  ;;  %v1264_v11 = vld [vmem:[%s3382_s5 + $0x78] sm:$0xff]  ;;  %v585_v1 = vld [vmem:[%s3381_s4] sm:$0xf] }
 0x158   : > { %695 = vmatprep.mubr.f32.mxu0 %v2193_v18  ;;  %856 = vmatprep.mubr.f32.mxu1 %v2193_v18  ;;  %v490_v61 = vmul.f32 %v2605_v44, %v468_v10  ;;  %v2028_v62 = vpop.eup %2027  ;;  %2035 = vrsqrt.f32 %v442_v0  ;;  %v443_v33 = vadd.f32 1e-05, %v427_v17  ;;  %v1263_v10 = vld [vmem:[%s3382_s5 + $0x70] sm:$0xff]  ;;  %v1312_v55 = vld [vmem:[%s3382_s5 + $0x1f8] sm:$0xff] }
 0x159   : > { %1951 = vmatpush3.bf16.msra.mxu0 %v1950_v21  ;;  %1983 = vmatpush3.bf16.msra.mxu1 %v1982_v26  ;;  %v491_v19 = vmul.f32 %v2605_v44, %v469_v4  ;;  %v470_v20 = vmul.f32 %v2028_v62, %v2430_v6  ;;  %v444_v6 = vadd.f32 1e-05, %v428_v24  ;;  %v1966_v58 = vpack.c.bf16 %v1264_v11, %v1263_v10 }
 0x15a   : > { %1953 = vmatprep.subr.bf16.mxu0 %v1952_v32  ;;  %1985 = vmatprep.subr.bf16.mxu1 %v1984_v7  ;;  %v512_v21 = vadd.f32 %v2610_v46, %v490_v61  ;;  %2037 = vrsqrt.f32 %v443_v33  ;;  %v1296_v61 = vld [vmem:[%s3382_s5 + $0x178] sm:$0xff]  ;;  %v587_v62 = vlaneseq }
 0x15b   : > { %696 = vmatmul.mubr.f32.gmra.mrb[8].mxu0 %v509_v14  ;;  %857 = vmatmul.mubr.f32.gmra.mrb[8].mxu1 %v509_v14  ;;  %v2030_v23 = vpop.eup %2029  ;;  %v513_v25 = vadd.f32 %v2610_v46, %v491_v19  ;;  %v492_v26 = vmul.f32 %v2605_v44, %v470_v20  ;;  %2039 = vrsqrt.f32 %v444_v6 }
 0x15c   : > { %701 = vmatprep.mubr.f32.mxu0 %v2193_v18  ;;  %862 = vmatprep.mubr.f32.mxu1 %v2193_v18  ;;  %v471_v5 = vmul.f32 %v2030_v23, %v2461_v49  ;;  %v588_v0 = vshrl.u32 %v587_v62, 7 }
 0x15d   : > { %1955 = vmatpush3.bf16.msra.mxu0 %v1954_v2  ;;  %1987 = vmatpush3.bf16.msra.mxu1 %v1986_v40  ;;  %v514_v28 = vadd.f32 %v2610_v46, %v492_v26 }
 0x15e   : > { %1957 = vmatprep.subr.bf16.mxu0 %v1956_v47  ;;  %1989 = vmatprep.subr.bf16.mxu1 %v1988_v48  ;;  %v2032_v12 = vpop.eup %2031  ;;  %v493_v63 = vmul.f32 %v2605_v44, %v471_v5  ;;  %v1293_v48 = vld [vmem:[%s3382_s5 + $0x160] sm:$0xff]  ;;  %v589_v17 = vsub.s32 0, %v588_v0  ;;  %v593_v19 = vsub.s32 1, %v588_v0  ;;  %v601_v20 = vsub.s32 3, %v588_v0 }
 0x15f   : > { %702 = vmatmul.mubr.f32.gmra.mrb[10].mxu0 %v510_v56  ;;  %863 = vmatmul.mubr.f32.gmra.mrb[10].mxu1 %v510_v56  ;;  %v472_v13 = vmul.f32 %v2032_v12, %v2464_v50  ;;  %v1994_v27 = vpack.c.bf16 %v1294_v51, %v1293_v48  ;;  %v1311_v56 = vld [vmem:[%s3382_s5 + $0x1f0] sm:$0xff] }
 0x160   : > { %707 = vmatprep.mubr.f32.mxu0 %v2193_v18  ;;  %868 = vmatprep.mubr.f32.mxu1 %v2193_v18  ;;  %v515_v49 = vadd.f32 %v2610_v46, %v493_v63  ;;  %v1996_v59 = vpack.c.bf16 %v1312_v55, %v1311_v56  ;;  %v2873_v23 = vrot.slane %v585_v1, %v589_v17 }
 0x161   : > { %1959 = vmatpush3.bf16.msra.mxu0 %v1958_v52  ;;  %v2034_v29 = vpop.eup %2033  ;;  %v494_v30 = vmul.f32 %v2605_v44, %v472_v13  ;;  %v1279_v52 = vld [vmem:[%s3382_s5 + $0xf0] sm:$0xff]  ;;  %v2877_v26 = vrot.slane %v585_v1, %v593_v19  ;;  %v2879_v12 = vrot.slane %v585_v1, %v601_v20 }
 0x162   : > { %v473_v57 = vmul.f32 %v2034_v29, %v2497_v3  ;;  %v2036_v31 = vpop.eup %2035  ;;  %v1964_v54 = vpack.c.bf16 %v1280_v53, %v1279_v52 }
 0x163   : > { %708 = vmatmul.mubr.f32.gmra.mrb[12].mxu0 %v511_v60  ;;  %869 = vmatmul.mubr.f32.gmra.mrb[12].mxu1 %v511_v60  ;;  %v516_v50 = vadd.f32 %v2610_v46, %v494_v30  ;;  %v474_v7 = vmul.f32 %v2036_v31, %v2500_v22  ;;  %v1295_v60 = vld [vmem:[%s3382_s5 + $0x170] sm:$0xff] }
 0x164   : > { %713 = vmatprep.mubr.f32.mxu0 %v2193_v18  ;;  %874 = vmatprep.mubr.f32.mxu1 %v2193_v18  ;;  %v495_v32 = vmul.f32 %v2605_v44, %v473_v57  ;;  %v2038_v34 = vpop.eup %2037  ;;  %v1998_v4 = vpack.c.bf16 %v1296_v61, %v1295_v60 }
 0x165   : > { %v496_v2 = vmul.f32 %v2605_v44, %v474_v7  ;;  %v475_v35 = vmul.f32 %v2038_v34, %v2531_v38  ;;  %v2040_v8 = vpop.eup %2039 }
 0x166   : > { %v517_v3 = vadd.f32 %v2610_v46, %v495_v32  ;;  %v476_v37 = vmul.f32 %v2040_v8, %v2534_v9  ;;  %v1291_v9 = vld [vmem:[%s3382_s5 + $0x150] sm:$0xff] }
 0x167   : > { %714 = vmatmul.mubr.f32.gmra.mrb[14].mxu0 %v512_v21  ;;  %875 = vmatmul.mubr.f32.gmra.mrb[14].mxu1 %v512_v21  ;;  %v518_v22 = vadd.f32 %v2610_v46, %v496_v2  ;;  %v497_v36 = vmul.f32 %v2605_v44, %v475_v35  ;;  %v1990_v14 = vpack.c.bf16 %v1292_v41, %v1291_v9  ;;  %v597_v21 = vsub.s32 2, %v588_v0 }
 0x168   : > { %719 = vmatprep.mubr.f32.mxu0 %v2193_v18  ;;  %880 = vmatprep.mubr.f32.mxu1 %v2193_v18  ;;  %v498_v39 = vmul.f32 %v2605_v44, %v476_v37  ;;  %v1277_v44 = vld [vmem:[%s3382_s5 + $0xe0] sm:$0xff] }
 0x169   : > { %v519_v38 = vadd.f32 %v2610_v46, %v497_v36  ;;  %1991 = vmatpush3.bf16.msra.mxu1 %v1990_v14  ;;  %v2875_v33 = vrot.slane %v585_v1, %v597_v21 }
 0x16a   : > { %v520_v40 = vadd.f32 %v2610_v46, %v498_v39  ;;  %v1309_v46 = vld [vmem:[%s3382_s5 + $0x1e0] sm:$0xff] }
 0x16b   : > { %720 = vmatmul.mubr.f32.gmra.mrb[16].mxu0 %v513_v25  ;;  %881 = vmatmul.mubr.f32.gmra.mrb[16].mxu1 %v513_v25  ;;  %v1992_v47 = vpack.c.bf16 %v1310_v45, %v1309_v46 }
 0x16c   : > { %725 = vmatprep.mubr.f32.mxu0 %v2193_v18  ;;  %886 = vmatprep.mubr.f32.mxu1 %v2193_v18 }
 0x16d   : > { %1993 = vmatprep.subr.bf16.mxu1 %v1992_v47 }
 0x16e   : > { %1995 = vmatpush3.bf16.msra.mxu1 %v1994_v27 }
 0x16f   : > { %726 = vmatmul.mubr.f32.gmra.mrb[18].mxu0 %v514_v28  ;;  %887 = vmatmul.mubr.f32.gmra.mrb[18].mxu1 %v514_v28 }
 0x170   : > { %731 = vmatprep.mubr.f32.mxu0 %v2193_v18  ;;  %892 = vmatprep.mubr.f32.mxu1 %v2193_v18 }
 0x171   : > { %1997 = vmatprep.subr.bf16.mxu1 %v1996_v59 }
 0x172   : > { %1999 = vmatpush3.bf16.msra.mxu1 %v1998_v4 }
 0x173   : > { %732 = vmatmul.mubr.f32.gmra.mrb[20].mxu0 %v515_v49  ;;  %893 = vmatmul.mubr.f32.gmra.mrb[20].mxu1 %v515_v49 }
 0x174   : > { %737 = vmatprep.mubr.f32.mxu0 %v2193_v18  ;;  %898 = vmatprep.mubr.f32.mxu1 %v2193_v18 }
 0x177   : > { %738 = vmatmul.mubr.f32.gmra.mrb[22].mxu0 %v516_v50  ;;  %899 = vmatmul.mubr.f32.gmra.mrb[22].mxu1 %v516_v50 }
 0x178   : > { %743 = vmatprep.mubr.f32.mxu0 %v2193_v18  ;;  %904 = vmatprep.mubr.f32.mxu1 %v2193_v18 }
 0x17b   : > { %744 = vmatmul.mubr.f32.gmra.mrb[24].mxu0 %v517_v3  ;;  %905 = vmatmul.mubr.f32.gmra.mrb[24].mxu1 %v517_v3 }
 0x17c   : > { %749 = vmatprep.mubr.f32.mxu0 %v2193_v18  ;;  %910 = vmatprep.mubr.f32.mxu1 %v2193_v18 }
 0x17f   : > { %750 = vmatmul.mubr.f32.gmra.mrb[26].mxu0 %v518_v22  ;;  %911 = vmatmul.mubr.f32.gmra.mrb[26].mxu1 %v518_v22 }
 0x180   : > { %755 = vmatprep.mubr.f32.mxu0 %v2193_v18  ;;  %916 = vmatprep.mubr.f32.mxu1 %v2193_v18 }
 0x183   : > { %756 = vmatmul.mubr.f32.gmra.mrb[28].mxu0 %v519_v38  ;;  %917 = vmatmul.mubr.f32.gmra.mrb[28].mxu1 %v519_v38 }
 0x184   : > { %761 = vmatprep.mubr.f32.mxu0 %v2193_v18  ;;  %922 = vmatprep.mubr.f32.mxu1 %v2193_v18  ;;  %v1278_v18 = vld [vmem:[%s3382_s5 + $0xe8] sm:$0xff] }
 0x185   : > { %v1960_v42 = vpack.c.bf16 %v1278_v18, %v1277_v44 }
 0x187   : > { %762 = vmatmul.mubr.f32.gmra.mrb[30].mxu0 %v520_v40  ;;  %923 = vmatmul.mubr.f32.gmra.mrb[30].mxu1 %v520_v40 }
 0x188   : > { %1961 = vmatprep.subr.bf16.mxu0 %v1960_v42 }
 0x189   : > { %1963 = vmatpush3.bf16.msra.mxu0 %v1962_v16 }
 0x18a   : > { %1965 = vmatprep.subr.bf16.mxu0 %v1964_v54 }
 0x18d   : > { %1967 = vmatpush3.bf16.msra.mxu0 %v1966_v58 }
 0x21e   : > { %v673_v24 = vpop.f32.mrb[0].mxu0  ;;  %v834_v25 = vpop.f32.mrb[0].mxu1 }
 0x21f   : > { %v675_v5 = vpop.f32.mrb[1].mxu0  ;;  %v836_v6 = vpop.f32.mrb[1].mxu1  ;;  %v674_v28 = vadd.f32 %v673_v24, %v2873_v23  ;;  %v835_v63 = vadd.f32 %v834_v25, %v2875_v33 }
 0x220   : > { %v676_v13 = vadd.f32 %v675_v5, %v2877_v26  ;;  %v837_v29 = vadd.f32 %v836_v6, %v2879_v12 }
 0x221   : > { %v993_v57 = vmul.f32 0.70710677, %v674_v28  ;;  %v995_v32 = vmul.f32 0.70710677, %v835_v63  ;;  %v2892_v43 = vmul.f32 0.5, %v674_v28  ;;  %v2894_v45 = vmul.f32 0.5, %v835_v63 }
 0x222   : > { %v679_v49 = vpop.f32.mrb[2].mxu0  ;;  %v840_v30 = vpop.f32.mrb[2].mxu1  ;;  %v994_v7 = vmul.f32 0.70710677, %v676_v13  ;;  %v996_v35 = vmul.f32 0.70710677, %v837_v29 }
 0x223   : > { %v681_v31 = vpop.f32.mrb[3].mxu0  ;;  %v842_v50 = vpop.f32.mrb[3].mxu1  ;;  %v680_v34 = vadd.f32 %v679_v49, %v2873_v23  ;;  %v841_v8 = vadd.f32 %v840_v30, %v2875_v33  ;;  %2041 = verf.f32 %v993_v57  ;;  %v2896_v16 = vmul.f32 0.5, %v676_v13 }
 0x224   : > { %v682_v22 = vadd.f32 %v681_v31, %v2877_v26  ;;  %2043 = verf.f32 %v995_v32  ;;  %v843_v38 = vadd.f32 %v842_v50, %v2879_v12  ;;  %v2898_v48 = vmul.f32 0.5, %v837_v29 }
 0x225   : > { %2045 = verf.f32 %v994_v7  ;;  %v997_v39 = vmul.f32 0.70710677, %v680_v34  ;;  %v999_v14 = vmul.f32 0.70710677, %v841_v8  ;;  %v2901_v56 = vmul.f32 0.5, %v680_v34 }
 0x226   : > { %v685_v3 = vpop.f32.mrb[4].mxu0  ;;  %v846_v2 = vpop.f32.mrb[4].mxu1  ;;  %2047 = verf.f32 %v996_v35  ;;  %v998_v46 = vmul.f32 0.70710677, %v682_v22  ;;  %v1000_v47 = vmul.f32 0.70710677, %v843_v38 }
 0x227   : > { %v687_v36 = vpop.f32.mrb[5].mxu0  ;;  %v848_v37 = vpop.f32.mrb[5].mxu1  ;;  %v686_v40 = vadd.f32 %v685_v3, %v2873_v23  ;;  %v847_v44 = vadd.f32 %v846_v2, %v2875_v33  ;;  %2049 = verf.f32 %v997_v39  ;;  %v2904_v58 = vmul.f32 0.5, %v841_v8 }
 0x228   : > { %v688_v42 = vadd.f32 %v687_v36, %v2877_v26  ;;  %v849_v27 = vadd.f32 %v848_v37, %v2879_v12  ;;  %2051 = verf.f32 %v999_v14  ;;  %v2907_v61 = vmul.f32 0.5, %v682_v22 }
 0x229   : > { %v1001_v51 = vmul.f32 0.70710677, %v686_v40  ;;  %v1003_v54 = vmul.f32 0.70710677, %v847_v44  ;;  %2053 = verf.f32 %v998_v46  ;;  %v2909_v4 = vmul.f32 0.5, %v843_v38 }
 0x22a   : > { %v691_v9 = vpop.f32.mrb[6].mxu0  ;;  %v852_v41 = vpop.f32.mrb[6].mxu1  ;;  %v1002_v59 = vmul.f32 0.70710677, %v688_v42  ;;  %2055 = verf.f32 %v1000_v47  ;;  %v2912_v17 = vmul.f32 0.5, %v686_v40  ;;  %v2915_v25 = vmul.f32 0.5, %v847_v44 }
 0x22b   : > { %v693_v18 = vpop.f32.mrb[7].mxu0  ;;  %v854_v15 = vpop.f32.mrb[7].mxu1  ;;  %v692_v10 = vadd.f32 %v691_v9, %v2873_v23  ;;  %v853_v60 = vadd.f32 %v852_v41, %v2875_v33  ;;  %2057 = verf.f32 %v1001_v51  ;;  %v1004_v1 = vmul.f32 0.70710677, %v849_v27 }
 0x22c   : > { %v694_v62 = vadd.f32 %v693_v18, %v2877_v26  ;;  %v855_v21 = vadd.f32 %v854_v15, %v2879_v12  ;;  %2059 = verf.f32 %v1003_v54  ;;  %v2920_v29 = vmul.f32 0.5, %v688_v42 }
 0x22d   : > { %v2042_v0 = vpop.eup %2041  ;;  %v1005_v5 = vmul.f32 0.70710677, %v692_v10  ;;  %2061 = verf.f32 %v1002_v59  ;;  %v2922_v49 = vmul.f32 0.5, %v849_v27  ;;  %v1007_v30 = vmul.f32 0.70710677, %v853_v60 }
 0x22e   : > { %v697_v52 = vpop.f32.mrb[8].mxu0  ;;  %v858_v53 = vpop.f32.mrb[8].mxu1  ;;  %v1121_v31 = vadd.f32 1.0, %v2042_v0  ;;  %v2924_v50 = vmul.f32 0.5, %v692_v10  ;;  %v1006_v32 = vmul.f32 0.70710677, %v694_v62  ;;  %2063 = verf.f32 %v1004_v1 }
 0x22f   : > { %v699_v11 = vpop.f32.mrb[9].mxu0  ;;  %v860_v55 = vpop.f32.mrb[9].mxu1  ;;  %v2918_v6 = vadd.f32 %v697_v52, %v2873_v23  ;;  %v859_v7 = vadd.f32 %v858_v53, %v2875_v33  ;;  %v1008_v3 = vmul.f32 0.70710677, %v855_v21  ;;  %2065 = verf.f32 %v1005_v5 }
 0x230   : > { %v2044_v24 = vpop.eup %2043  ;;  %v700_v2 = vadd.f32 %v699_v11, %v2877_v26  ;;  %v2928_v22 = vmul.f32 0.5, %v853_v60  ;;  %v861_v37 = vadd.f32 %v860_v55, %v2879_v12  ;;  %2067 = verf.f32 %v1007_v30 }
 0x231   : > { %v2046_v13 = vpop.eup %2045  ;;  %v1123_v34 = vadd.f32 1.0, %v2044_v24  ;;  %v1009_v36 = vmul.f32 0.70710677, %v2918_v6  ;;  %v1185_v18 = vmul.f32 %v1121_v31, %v2892_v43  ;;  %v2938_v46 = vmul.f32 0.5, %v694_v62 }
 0x232   : > { %v703_v19 = vpop.f32.mrb[10].mxu0  ;;  %v864_v20 = vpop.f32.mrb[10].mxu1  ;;  %v1122_v9 = vadd.f32 1.0, %v2046_v13  ;;  %2069 = verf.f32 %v1006_v32  ;;  %v1011_v42 = vmul.f32 0.70710677, %v859_v7  ;;  %v2946_v10 = vmul.f32 0.5, %v855_v21 }
 0x233   : > { %v705_v28 = vpop.f32.mrb[11].mxu0  ;;  %v866_v63 = vpop.f32.mrb[11].mxu1  ;;  %v2935_v14 = vadd.f32 %v703_v19, %v2873_v23  ;;  %v1187_v47 = vmul.f32 %v1123_v34, %v2894_v45  ;;  %2071 = verf.f32 %v1008_v3  ;;  %v1010_v51 = vmul.f32 0.70710677, %v700_v2 }
 0x234   : > { %v2048_v57 = vpop.eup %2047  ;;  %v2942_v27 = vadd.f32 %v864_v20, %v2875_v33  ;;  %2073 = verf.f32 %v1009_v36  ;;  %v1012_v43 = vmul.f32 0.70710677, %v861_v37  ;;  %v2954_v60 = vadd.f32 %v705_v28, %v2877_v26 }
 0x235   : > { %v2050_v40 = vpop.eup %2049  ;;  %v1124_v41 = vadd.f32 1.0, %v2048_v57  ;;  %v1013_v45 = vmul.f32 0.70710677, %v2935_v14  ;;  %v1186_v62 = vmul.f32 %v1122_v9, %v2896_v16  ;;  %2075 = verf.f32 %v1011_v42 }
 0x236   : > { %v709_v35 = vpop.f32.mrb[12].mxu0  ;;  %v870_v8 = vpop.f32.mrb[12].mxu1  ;;  %v1125_v54 = vadd.f32 1.0, %v2050_v40  ;;  %v2961_v24 = vadd.f32 %v866_v63, %v2879_v12  ;;  %2077 = verf.f32 %v1010_v51  ;;  %v1015_v30 = vmul.f32 0.70710677, %v2942_v27 }
 0x237   : > { %v711_v38 = vpop.f32.mrb[13].mxu0  ;;  %v2932_v39 = vpop.f32.mrb[13].mxu1  ;;  %v1188_v0 = vmul.f32 %v1124_v41, %v2898_v48  ;;  %1384 = vmatprep.mubr.f32.mxu0 %v1186_v62  ;;  %v710_v16 = vadd.f32 %v709_v35, %v2873_v23  ;;  %v2970_v57 = vmul.f32 0.5, %v2918_v6  ;;  %v2972_v31 = vmul.f32 0.5, %v859_v7 }
 0x238   : > { %v2052_v44 = vpop.eup %2051  ;;  %2079 = verf.f32 %v1012_v43  ;;  %1385 = vmatmul.mubr.f32.vlgmr.msra.gmra.mrb[32].mxu0 %v1185_v18  ;;  %v2975_v63 = vadd.f32 %v870_v8, %v2875_v33  ;;  %v2981_v35 = vmul.f32 0.5, %v700_v2  ;;  %v2983_v36 = vmul.f32 0.5, %v861_v37 }
 0x239   : > { %v2054_v15 = vpop.eup %2053  ;;  %v1127_v19 = vadd.f32 1.0, %v2052_v44  ;;  %1529 = vmatprep.mubr.f32.mxu1 %v1188_v0  ;;  %2081 = verf.f32 %v1013_v45  ;;  %v1014_v6 = vmul.f32 0.70710677, %v2954_v60  ;;  %v1016_v41 = vmul.f32 0.70710677, %v2961_v24 }
 0x23a   : > { %v2944_v52 = vpop.f32.mrb[14].mxu0  ;;  %v2056_v53 = vpop.eup %2055  ;;  %v1126_v20 = vadd.f32 1.0, %v2054_v15  ;;  %1530 = vmatmul.mubr.f32.vlgmr.msra.gmra.mrb[32].mxu1 %v1187_v47  ;;  %v712_v8 = vadd.f32 %v711_v38, %v2877_v26  ;;  %2083 = verf.f32 %v1015_v30  ;;  %v1017_v18 = vmul.f32 0.70710677, %v710_v16 }
 0x23b   : > { %v2948_v11 = vpop.f32.mrb[14].mxu1  ;;  %v2950_v55 = vpop.f32.mrb[15].mxu0  ;;  %v1128_v13 = vadd.f32 1.0, %v2056_v53  ;;  %v1019_v51 = vmul.f32 0.70710677, %v2975_v63  ;;  %v873_v53 = vadd.f32 %v2932_v39, %v2879_v12  ;;  %v1189_v43 = vmul.f32 %v1125_v54, %v2901_v56 }
 0x23c   : > { %v2058_v59 = vpop.eup %2057  ;;  %v2958_v1 = vpop.f32.mrb[15].mxu1  ;;  %v1190_v42 = vmul.f32 %v1126_v20, %v2907_v61  ;;  %v1191_v38 = vmul.f32 %v1127_v19, %v2904_v58  ;;  %v3004_v0 = vmul.f32 0.5, %v2935_v14  ;;  %2085 = verf.f32 %v1014_v6 }
 0x23d   : > { %v2060_v21 = vpop.eup %2059  ;;  %v1129_v40 = vadd.f32 1.0, %v2058_v59  ;;  %v1192_v2 = vmul.f32 %v1128_v13, %v2909_v4  ;;  %v3007_v39 = vmul.f32 0.5, %v2942_v27  ;;  %2087 = verf.f32 %v1016_v41 }
 0x23e   : > { %v2062_v5 = vpop.eup %2061  ;;  %v2965_v28 = vpop.f32.mrb[16].mxu0  ;;  %v1131_v4 = vadd.f32 1.0, %v2060_v21  ;;  %1389 = vmatprep.mubr.f32.mxu0 %v1190_v42  ;;  %v1018_v56 = vmul.f32 0.70710677, %v712_v8  ;;  %v3011_v21 = vmul.f32 0.5, %v2954_v60  ;;  %2089 = verf.f32 %v1017_v18 }
 0x23f   : > { %v2967_v48 = vpop.f32.mrb[16].mxu1  ;;  %v2977_v32 = vpop.f32.mrb[17].mxu0  ;;  %v1130_v9 = vadd.f32 1.0, %v2062_v5  ;;  %1534 = vmatprep.mubr.f32.mxu1 %v1192_v2  ;;  %1390 = vmatmul.mubr.f32.gmra.mrb[34].mxu0 %v1189_v43  ;;  %v716_v14 = vadd.f32 %v2944_v52, %v2873_v23  ;;  %2091 = verf.f32 %v1019_v51  ;;  %v1020_v30 = vmul.f32 0.70710677, %v873_v53 }
 0x240   : > { %v2979_v34 = vpop.f32.mrb[17].mxu1  ;;  %v2064_v3 = vpop.eup %2063  ;;  %1535 = vmatmul.mubr.f32.gmra.mrb[34].mxu1 %v1191_v38  ;;  %v877_v60 = vadd.f32 %v2948_v11, %v2875_v33  ;;  %2093 = verf.f32 %v1018_v56  ;;  %v1193_v42 = vmul.f32 %v1129_v40, %v2912_v17  ;;  %v3035_v2 = vmul.f32 0.5, %v2975_v63 }
 0x241   : > { %v2066_v7 = vpop.eup %2065  ;;  %v1132_v62 = vadd.f32 1.0, %v2064_v3  ;;  %v1194_v58 = vmul.f32 %v1130_v9, %v2920_v29  ;;  %v3018_v29 = vmul.f32 0.5, %v2961_v24  ;;  %v1021_v11 = vmul.f32 0.70710677, %v716_v14 }
 0x242   : > { %v2068_v44 = vpop.eup %2067  ;;  %v2990_v15 = vpop.f32.mrb[18].mxu0  ;;  %v1133_v54 = vadd.f32 1.0, %v2066_v7  ;;  %v3020_v7 = vmul.f32 0.5, %v710_v16  ;;  %v1195_v51 = vmul.f32 %v1131_v4, %v2915_v25  ;;  %2095 = verf.f32 %v1020_v30 }
 0x243   : > { %v2992_v37 = vpop.f32.mrb[18].mxu1  ;;  %v2070_v47 = vpop.eup %2069  ;;  %v1135_v13 = vadd.f32 1.0, %v2068_v44  ;;  %1394 = vmatprep.mubr.f32.mxu0 %v1194_v58  ;;  %v718_v44 = vadd.f32 %v2950_v55, %v2877_v26  ;;  %v1196_v18 = vmul.f32 %v1132_v62, %v2922_v49  ;;  %v3046_v49 = vmul.f32 0.5, %v712_v8 }
 0x244   : > { %v2999_v59 = vpop.f32.mrb[19].mxu0  ;;  %v3001_v45 = vpop.f32.mrb[19].mxu1  ;;  %v1134_v27 = vadd.f32 1.0, %v2070_v47  ;;  %v879_v47 = vadd.f32 %v2958_v1, %v2879_v12  ;;  %1395 = vmatmul.mubr.f32.gmra.mrb[36].mxu0 %v1193_v42  ;;  %v3053_v4 = vmul.f32 0.5, %v873_v53  ;;  %v1023_v62 = vmul.f32 0.70710677, %v877_v60 }
 0x245   : > { %v2072_v61 = vpop.eup %2071  ;;  %1539 = vmatprep.mubr.f32.mxu1 %v1196_v18  ;;  %v3057_v8 = vmul.f32 0.5, %v716_v14  ;;  %v1022_v58 = vmul.f32 0.70710677, %v718_v44  ;;  %2097 = verf.f32 %v1021_v11  ;;  %v883_v14 = vadd.f32 %v2967_v48, %v2875_v33 }
 0x246   : > { %v2074_v20 = vpop.eup %2073  ;;  %v3015_v19 = vpop.f32.mrb[20].mxu0  ;;  %v1136_v6 = vadd.f32 1.0, %v2072_v61  ;;  %v1198_v17 = vmul.f32 %v1134_v27, %v2938_v46  ;;  %1540 = vmatmul.mubr.f32.gmra.mrb[36].mxu1 %v1195_v51  ;;  %v3059_v46 = vmul.f32 0.5, %v877_v60  ;;  %v1024_v27 = vmul.f32 0.70710677, %v879_v47 }
 0x247   : > { %v2076_v5 = vpop.eup %2075  ;;  %v3024_v9 = vpop.f32.mrb[20].mxu1  ;;  %v3044_v55 = vadd.f32 1.0, %v2074_v20  ;;  %2099 = verf.f32 %v1023_v62  ;;  %v1027_v62 = vmul.f32 0.70710677, %v883_v14 }
 0x248   : > { %v2078_v3 = vpop.eup %2077  ;;  %v3026_v52 = vpop.f32.mrb[21].mxu0  ;;  %v1139_v61 = vadd.f32 1.0, %v2076_v5  ;;  %1399 = vmatprep.mubr.f32.mxu0 %v1198_v17  ;;  %3385 = vst [vmem:[#allocation2_spill] sm:$0xff] %v3059_v46  ;;  %v722_v5 = vadd.f32 %v2965_v28, %v2873_v23  ;;  %v1200_v42 = vmul.f32 %v1136_v6, %v2946_v10  ;;  %v3077_v28 = vmul.f32 0.5, %v718_v44 }
 0x249   : > { %v2080_v41 = vpop.eup %2079  ;;  %v3032_v24 = vpop.f32.mrb[21].mxu1  ;;  %v1138_v25 = vadd.f32 1.0, %v2078_v3  ;;  %v724_v17 = vadd.f32 %v2977_v32, %v2877_v26  ;;  %2101 = verf.f32 %v1022_v58  ;;  %v885_v10 = vadd.f32 %v2979_v34, %v2879_v12 }
 0x24a   : > { %v2082_v16 = vpop.eup %2081  ;;  %v3040_v43 = vpop.f32.mrb[22].mxu0  ;;  %v1140_v20 = vadd.f32 1.0, %v2080_v41  ;;  %1544 = vmatprep.mubr.f32.mxu1 %v1200_v42  ;;  %2103 = verf.f32 %v1024_v27  ;;  %v1025_v6 = vmul.f32 0.70710677, %v722_v5  ;;  %v1201_v42 = vmul.f32 %v3044_v55, %v2970_v57 }
 0x24b   : > { %v3042_v38 = vpop.f32.mrb[22].mxu1  ;;  %v3049_v63 = vpop.f32.mrb[23].mxu0  ;;  %v3055_v56 = vadd.f32 1.0, %v2082_v16  ;;  %v1197_v16 = vmul.f32 %v1133_v54, %v2924_v50  ;;  %v1202_v50 = vmul.f32 %v1138_v25, %v2981_v35  ;;  %v3085_v54 = vmul.f32 0.5, %v879_v47 }
 0x24c   : > { %v3051_v40 = vpop.f32.mrb[23].mxu1  ;;  %v2084_v1 = vpop.eup %2083  ;;  %v1026_v35 = vmul.f32 0.70710677, %v724_v17  ;;  %v728_v47 = vadd.f32 %v2990_v15, %v2873_v23  ;;  %v1204_v25 = vmul.f32 %v1140_v20, %v2983_v36  ;;  %2105 = verf.f32 %v1025_v6 }
 0x24d   : > { %v2086_v30 = vpop.eup %2085  ;;  %v3067_v41 = vadd.f32 1.0, %v2084_v1  ;;  %v1199_v1 = vmul.f32 %v1135_v13, %v2928_v22  ;;  %1400 = vmatmul.mubr.f32.gmra.mrb[38].mxu0 %v1197_v16  ;;  %v3089_v22 = vmul.f32 0.5, %v722_v5  ;;  %v3091_v13 = vmul.f32 0.5, %v883_v14 }
 0x24e   : > { %v3063_v3 = vpop.f32.mrb[24].mxu0  ;;  %v3065_v53 = vpop.f32.mrb[24].mxu1  ;;  %v1142_v46 = vadd.f32 1.0, %v2086_v30  ;;  %1404 = vmatprep.mubr.f32.mxu0 %v1202_v50  ;;  %v889_v14 = vadd.f32 %v2992_v37, %v2875_v33  ;;  %v3111_v15 = vmul.f32 0.5, %v724_v17  ;;  %v730_v36 = vadd.f32 %v2999_v59, %v2877_v26 }
 0x24f   : > { %3386 = vst [vmem:[#allocation3_spill] sm:$0xff] %v3065_v53  ;;  %v2088_v18 = vpop.eup %2087  ;;  %v3073_v60 = vpop.f32.mrb[25].mxu0  ;;  %1545 = vmatmul.mubr.f32.gmra.mrb[38].mxu1 %v1199_v1  ;;  %2107 = verf.f32 %v1027_v62  ;;  %v3119_v37 = vmul.f32 0.5, %v885_v10  ;;  %v891_v57 = vadd.f32 %v3001_v45, %v2879_v12  ;;  %v1029_v50 = vmul.f32 0.70710677, %v728_v47 }
 0x250   : > { %v3075_v11 = vpop.f32.mrb[25].mxu1  ;;  %v2090_v51 = vpop.eup %2089  ;;  %v1144_v48 = vadd.f32 1.0, %v2088_v18  ;;  %v1028_v18 = vmul.f32 0.70710677, %v885_v10  ;;  %1549 = vmatprep.mubr.f32.mxu1 %v1204_v25  ;;  %2109 = verf.f32 %v1026_v35  ;;  %v734_v6 = vadd.f32 %v3015_v19, %v2873_v23 }
 0x251   : > { %v2092_v53 = vpop.eup %2091  ;;  %v3087_v32 = vadd.f32 1.0, %v2090_v51  ;;  %1405 = vmatmul.mubr.f32.gmra.mrb[40].mxu0 %v1201_v42  ;;  %v3130_v10 = vmul.f32 0.5, %v728_v47  ;;  %v895_v45 = vadd.f32 %v3024_v9, %v2875_v33  ;;  %v1030_v62 = vmul.f32 0.70710677, %v730_v36 }
 0x252   : > { %v2094_v44 = vpop.eup %2093  ;;  %v3093_v34 = vpop.f32.mrb[26].mxu0  ;;  %v3095_v58 = vadd.f32 1.0, %v2092_v53  ;;  %v1203_v53 = vmul.f32 %v1139_v61, %v2972_v31  ;;  %v1206_v31 = vmul.f32 %v1142_v46, %v3011_v21  ;;  %2111 = verf.f32 %v1028_v18 }
 0x253   : > { %v3100_v30 = vpop.f32.mrb[26].mxu1  ;;  %v3102_v27 = vpop.f32.mrb[27].mxu0  ;;  %v1146_v51 = vadd.f32 1.0, %v2094_v44  ;;  %v1031_v44 = vmul.f32 0.70710677, %v889_v14  ;;  %v3134_v46 = vmul.f32 0.5, %v889_v14  ;;  %v736_v25 = vadd.f32 %v3026_v52, %v2877_v26 }
 0x254   : > { %v2096_v5 = vpop.eup %2095  ;;  %v3109_v16 = vpop.f32.mrb[27].mxu1  ;;  %1550 = vmatmul.mubr.f32.gmra.mrb[40].mxu1 %v1203_v53  ;;  %1409 = vmatprep.mubr.f32.mxu0 %v1206_v31  ;;  %v1208_v35 = vmul.f32 %v1144_v48, %v3018_v29  ;;  %v1032_v42 = vmul.f32 0.70710677, %v891_v57  ;;  %v1205_v9 = vmul.f32 %v3055_v56, %v3004_v0  ;;  %v1207_v14 = vmul.f32 %v3067_v41, %v3007_v39 }
 0x255   : > { %v2098_v59 = vpop.eup %2097  ;;  %v1148_v17 = vadd.f32 1.0, %v2096_v5  ;;  %2113 = verf.f32 %v1029_v50  ;;  %v3153_v29 = vmul.f32 0.5, %v730_v36  ;;  %v1033_v48 = vmul.f32 0.70710677, %v734_v6 }
 0x256   : > { %v3115_v20 = vpop.f32.mrb[28].mxu0  ;;  %v3117_v1 = vpop.f32.mrb[28].mxu1  ;;  %v3143_v18 = vadd.f32 1.0, %v2098_v59  ;;  %v3157_v59 = vadd.f32 %v3032_v24, %v2879_v12  ;;  %1554 = vmatprep.mubr.f32.mxu1 %v1208_v35  ;;  %2115 = verf.f32 %v1031_v44  ;;  %1410 = vmatmul.mubr.f32.gmra.mrb[42].mxu0 %v1205_v9  ;;  %v3161_v0 = vadd.f32 %v3040_v43, %v2873_v23 }
 0x257   : > { %v3124_v55 = vpop.f32.mrb[29].mxu0  ;;  %v3126_v61 = vpop.f32.mrb[29].mxu1  ;;  %v1210_v39 = vmul.f32 %v1146_v51, %v3046_v49  ;;  %2117 = verf.f32 %v1030_v62  ;;  %v3164_v56 = vmul.f32 0.5, %v891_v57  ;;  %v1034_v41 = vmul.f32 0.70710677, %v736_v25 }
 0x258   : > { %v2100_v21 = vpop.eup %2099  ;;  %1555 = vmatmul.mubr.f32.gmra.mrb[42].mxu1 %v1207_v14  ;;  %v3168_v36 = vadd.f32 %v3042_v38, %v2875_v33  ;;  %2119 = verf.f32 %v1032_v42  ;;  %v3172_v44 = vadd.f32 %v3049_v63, %v2877_v26  ;;  %v1036_v49 = vmul.f32 0.70710677, %v3157_v59 }
 0x259   : > { %v2102_v47 = vpop.eup %2101  ;;  %v1151_v24 = vadd.f32 1.0, %v2100_v21  ;;  %1414 = vmatprep.mubr.f32.mxu0 %v1210_v39  ;;  %2121 = verf.f32 %v1033_v48  ;;  %v3177_v51 = vadd.f32 %v3051_v40, %v2879_v12  ;;  %v1212_v57 = vmul.f32 %v1148_v17, %v3053_v4 }
 0x25a   : > { %v3139_v5 = vpop.f32.mrb[30].mxu0  ;;  %v3141_v19 = vpop.f32.mrb[30].mxu1  ;;  %v1150_v50 = vadd.f32 1.0, %v2102_v47  ;;  %v1037_v21 = vmul.f32 0.70710677, %v3161_v0  ;;  %v1209_v62 = vmul.f32 %v3087_v32, %v3020_v7  ;;  %v1211_v63 = vmul.f32 %v3095_v58, %v3035_v2 }
 0x25b   : > { %3387 = vst [vmem:[#allocation4_spill] sm:$0xff] %v3141_v19  ;;  %v3149_v53 = vpop.f32.mrb[31].mxu0  ;;  %v3151_v31 = vpop.f32.mrb[31].mxu1  ;;  %v1035_v19 = vmul.f32 0.70710677, %v895_v45  ;;  %v3185_v42 = vmul.f32 0.5, %v734_v6  ;;  %1559 = vmatprep.mubr.f32.mxu1 %v1212_v57  ;;  %v3191_v17 = vadd.f32 %v3073_v60, %v2877_v26  ;;  %v3195_v7 = vadd.f32 %v3075_v11, %v2879_v12 }
 0x25c   : > { %v2104_v52 = vpop.eup %2103  ;;  %v1039_v40 = vmul.f32 0.70710677, %v3168_v36  ;;  %v1038_v4 = vmul.f32 0.70710677, %v3172_v44  ;;  %1415 = vmatmul.mubr.f32.gmra.mrb[44].mxu0 %v1209_v62  ;;  %1560 = vmatmul.mubr.f32.gmra.mrb[44].mxu1 %v1211_v63  ;;  %v1214_v2 = vmul.f32 %v1150_v50, %v3077_v28  ;;  %v3198_v58 = vmul.f32 0.5, %v895_v45 }
 0x25d   : > { %v2106_v43 = vpop.eup %2105  ;;  %2123 = verf.f32 %v1035_v19  ;;  %v1152_v47 = vadd.f32 1.0, %v2104_v52  ;;  %v1040_v6 = vmul.f32 0.70710677, %v3177_v51  ;;  %v3201_v14 = vmul.f32 0.5, %v736_v25 }
 0x25e   : > { %v2108_v38 = vpop.eup %2107  ;;  %2125 = verf.f32 %v1034_v41  ;;  %v1153_v32 = vadd.f32 1.0, %v2106_v43  ;;  %v3205_v60 = vadd.f32 %v3063_v3, %v2873_v23  ;;  %1419 = vmatprep.mubr.f32.mxu0 %v1214_v2  ;;  %v1042_v28 = vmul.f32 0.70710677, %v3191_v17  ;;  %v3388_v41 = vld [vmem:[#allocation2_spill] sm:$0xff] }
 0x25f   : > { %v2110_v35 = vpop.eup %2109  ;;  %2127 = verf.f32 %v1036_v49  ;;  %v1155_v11 = vadd.f32 1.0, %v2108_v38  ;;  %v1216_v45 = vmul.f32 %v1152_v47, %v3085_v54  ;;  %v1044_v39 = vmul.f32 0.70710677, %v3195_v7  ;;  %v3389_v49 = vld [vmem:[#allocation3_spill] sm:$0xff] }
 0x260   : > { %v2112_v9 = vpop.eup %2111  ;;  %v1154_v19 = vadd.f32 1.0, %v2110_v35  ;;  %2129 = verf.f32 %v1037_v21  ;;  %v1213_v25 = vmul.f32 %v3143_v18, %v3057_v8  ;;  %v1215_v50 = vmul.f32 %v1151_v24, %v3388_v41 }
 0x261   : > { %v2114_v52 = vpop.eup %2113  ;;  %2131 = verf.f32 %v1039_v40  ;;  %v1156_v3 = vadd.f32 1.0, %v2112_v9  ;;  %v3215_v57 = vadd.f32 %v3389_v49, %v2875_v33  ;;  %1564 = vmatprep.mubr.f32.mxu1 %v1216_v45  ;;  %v3219_v54 = vadd.f32 %v3093_v34, %v2873_v23 }
 0x262   : > { %v2116_v48 = vpop.eup %2115  ;;  %2133 = verf.f32 %v1038_v4  ;;  %v1041_v21 = vmul.f32 0.70710677, %v3205_v60  ;;  %1420 = vmatmul.mubr.f32.gmra.mrb[46].mxu0 %v1213_v25  ;;  %1565 = vmatmul.mubr.f32.gmra.mrb[46].mxu1 %v1215_v50  ;;  %v3224_v8 = vadd.f32 %v3102_v27, %v2877_v26  ;;  %v3228_v18 = vadd.f32 %v3109_v16, %v2879_v12 }
 0x263   : > { %v2118_v43 = vpop.eup %2117  ;;  %2135 = verf.f32 %v1040_v6  ;;  %v1218_v24 = vmul.f32 %v1154_v19, %v3111_v15  ;;  %v1157_v63 = vadd.f32 1.0, %v2114_v52  ;;  %v3232_v34 = vmul.f32 0.5, %v3157_v59 }
 0x264   : > { %v2120_v38 = vpop.eup %2119  ;;  %2137 = verf.f32 %v1042_v28  ;;  %v3236_v35 = vadd.f32 %v3100_v30, %v2875_v33  ;;  %v1159_v40 = vadd.f32 1.0, %v2116_v48  ;;  %v1158_v27 = vadd.f32 1.0, %v2118_v43 }
 0x265   : > { %v2122_v62 = vpop.eup %2121  ;;  %2139 = verf.f32 %v1044_v39  ;;  %v1046_v9 = vmul.f32 0.70710677, %v3224_v8  ;;  %1424 = vmatprep.mubr.f32.mxu0 %v1218_v24  ;;  %v1160_v4 = vadd.f32 1.0, %v2120_v38  ;;  %v1043_v15 = vmul.f32 0.70710677, %v3215_v57 }
 0x266   : > { %v1048_v2 = vmul.f32 0.70710677, %v3228_v18  ;;  %v1220_v59 = vmul.f32 %v1156_v3, %v3119_v37  ;;  %2141 = verf.f32 %v1041_v21  ;;  %v1045_v6 = vmul.f32 0.70710677, %v3219_v54 }
 0x267   : > { %v2124_v47 = vpop.eup %2123  ;;  %v1217_v30 = vmul.f32 %v1153_v32, %v3089_v22  ;;  %v1219_v19 = vmul.f32 %v1155_v11, %v3091_v13  ;;  %v1047_v28 = vmul.f32 0.70710677, %v3236_v35  ;;  %2143 = verf.f32 %v1046_v9 }
 0x268   : > { %v2126_v16 = vpop.eup %2125  ;;  %1569 = vmatprep.mubr.f32.mxu1 %v1220_v59  ;;  %v3248_v45 = vadd.f32 %v3115_v20, %v2873_v23  ;;  %v3252_v48 = vadd.f32 %v3117_v1, %v2875_v33  ;;  %2145 = verf.f32 %v1048_v2  ;;  %v3256_v22 = vadd.f32 %v3124_v55, %v2877_v26 }
 0x269   : > { %v2128_v52 = vpop.eup %2127  ;;  %1425 = vmatmul.mubr.f32.gmra.mrb[48].mxu0 %v1217_v30  ;;  %1570 = vmatmul.mubr.f32.gmra.mrb[48].mxu1 %v1219_v19  ;;  %v3260_v13 = vadd.f32 %v3126_v61, %v2879_v12  ;;  %v1222_v32 = vmul.f32 %v1158_v27, %v3153_v29  ;;  %v1161_v11 = vadd.f32 1.0, %v2122_v62  ;;  %v974_v39 = vmul.f32 0.5, %v3172_v44  ;;  %v3390_v62 = vld [vmem:[#allocation4_spill] sm:$0xff] }
 0x26a   : > { %v2130_v37 = vpop.eup %2129  ;;  %v976_v1 = vmul.f32 0.5, %v3177_v51  ;;  %2147 = verf.f32 %v1043_v15  ;;  %v1163_v41 = vadd.f32 1.0, %v2124_v47  ;;  %v1162_v50 = vadd.f32 1.0, %v2126_v16 }
 0x26b   : > { %v2132_v20 = vpop.eup %2131  ;;  %v978_v43 = vmul.f32 0.5, %v3191_v17  ;;  %v1050_v55 = vmul.f32 0.70710677, %v3256_v22  ;;  %1429 = vmatprep.mubr.f32.mxu0 %v1222_v32  ;;  %2149 = verf.f32 %v1045_v6  ;;  %v1049_v61 = vmul.f32 0.70710677, %v3248_v45 }
 0x26c   : > { %v2134_v25 = vpop.eup %2133  ;;  %v1052_v29 = vmul.f32 0.70710677, %v3260_v13  ;;  %v1224_v49 = vmul.f32 %v1160_v4, %v3164_v56  ;;  %2151 = verf.f32 %v1047_v28  ;;  %v1051_v44 = vmul.f32 0.70710677, %v3252_v48 }
 0x26d   : > { %v2136_v3 = vpop.eup %2135  ;;  %v1221_v51 = vmul.f32 %v1157_v63, %v3130_v10  ;;  %v1223_v38 = vmul.f32 %v1159_v40, %v3134_v46  ;;  %v1164_v17 = vadd.f32 1.0, %v2128_v52  ;;  %2153 = verf.f32 %v1050_v55 }
 0x26e   : > { %v2138_v21 = vpop.eup %2137  ;;  %1574 = vmatprep.mubr.f32.mxu1 %v1224_v49  ;;  %v3275_v24 = vadd.f32 %v3139_v5, %v2873_v23  ;;  %v3279_v47 = vadd.f32 %v3390_v62, %v2875_v33  ;;  %2155 = verf.f32 %v1052_v29  ;;  %v3283_v10 = vadd.f32 %v3149_v53, %v2877_v26 }
 0x26f   : > { %v2140_v56 = vpop.eup %2139  ;;  %1430 = vmatmul.mubr.f32.gmra.mrb[50].mxu0 %v1221_v51  ;;  %1575 = vmatmul.mubr.f32.gmra.mrb[50].mxu1 %v1223_v38  ;;  %v3287_v46 = vadd.f32 %v3151_v31, %v2879_v12  ;;  %v1226_v63 = vmul.f32 %v1162_v50, %v3201_v14  ;;  %v1166_v23 = vadd.f32 1.0, %v2134_v25  ;;  %v1168_v5 = vadd.f32 1.0, %v2136_v3 }
 0x270   : > { %2157 = verf.f32 %v1049_v61  ;;  %v1053_v33 = vmul.f32 0.70710677, %v3275_v24  ;;  %v2142_v40 = vpop.eup %2141  ;;  %v1165_v27 = vadd.f32 1.0, %v2130_v37  ;;  %v1170_v9 = vadd.f32 1.0, %v2138_v21 }
 0x271   : > { %2159 = verf.f32 %v1051_v44  ;;  %v1054_v16 = vmul.f32 0.70710677, %v3283_v10  ;;  %1434 = vmatprep.mubr.f32.mxu0 %v1226_v63  ;;  %v2144_v26 = vpop.eup %2143  ;;  %v1172_v53 = vadd.f32 1.0, %v2140_v56  ;;  %v1055_v4 = vmul.f32 0.70710677, %v3279_v47 }
 0x272   : > { %v1056_v12 = vmul.f32 0.70710677, %v3287_v46  ;;  %v1228_v31 = vmul.f32 %v1164_v17, %v3232_v34  ;;  %v2146_v14 = vpop.eup %2145  ;;  %v1167_v15 = vadd.f32 1.0, %v2132_v20  ;;  %2161 = verf.f32 %v1053_v33 }
 0x273   : > { %v1225_v2 = vmul.f32 %v1161_v11, %v3185_v42  ;;  %v1227_v59 = vmul.f32 %v1163_v41, %v3198_v58  ;;  %v980_v30 = vmul.f32 0.5, %v3195_v7  ;;  %2163 = verf.f32 %v1054_v16 }
 0x274   : > { %v2148_v6 = vpop.eup %2147  ;;  %1579 = vmatprep.mubr.f32.mxu1 %v1228_v31  ;;  %v1230_v19 = vmul.f32 %v1166_v23, %v974_v39  ;;  %v1232_v52 = vmul.f32 %v1168_v5, %v976_v1  ;;  %v973_v28 = vmul.f32 0.5, %v3161_v0  ;;  %v975_v37 = vmul.f32 0.5, %v3168_v36 }
 0x275   : > { %v1174_v32 = vadd.f32 1.0, %v2144_v26  ;;  %2165 = verf.f32 %v1056_v12  ;;  %1435 = vmatmul.mubr.f32.gmra.mrb[52].mxu0 %v1225_v2  ;;  %1580 = vmatmul.mubr.f32.gmra.mrb[52].mxu1 %v1227_v59  ;;  %v2150_v34 = vpop.eup %2149  ;;  %v1176_v20 = vadd.f32 1.0, %v2146_v14  ;;  %v1234_v42 = vmul.f32 %v1170_v9, %v978_v43 }
 0x276   : > { %2167 = verf.f32 %v1055_v4  ;;  %1439 = vmatprep.mubr.f32.mxu0 %v1230_v19  ;;  %1584 = vmatprep.mubr.f32.mxu1 %v1232_v52  ;;  %v1236_v58 = vmul.f32 %v1172_v53, %v980_v30  ;;  %v2152_v7 = vpop.eup %2151  ;;  %v1169_v11 = vadd.f32 1.0, %v2142_v40  ;;  %v1171_v25 = vadd.f32 1.0, %v2148_v6  ;;  %v3317_v19 = vld [vmem:[%s3383_s6] ss:$0 sm:$0xff] }
 0x277   : > { %v1229_v39 = vmul.f32 %v1165_v27, %v973_v28  ;;  %v1231_v1 = vmul.f32 %v1167_v15, %v975_v37  ;;  %v2154_v41 = vpop.eup %2153  ;;  %v982_v0 = vmul.f32 0.5, %v3224_v8  ;;  %v984_v36 = vmul.f32 0.5, %v3228_v18 }
 0x278   : > { %v2156_v50 = vpop.eup %2155  ;;  %v977_v55 = vmul.f32 0.5, %v3205_v60  ;;  %v979_v3 = vmul.f32 0.5, %v3215_v57  ;;  %v1178_v43 = vadd.f32 1.0, %v2154_v41  ;;  %v1173_v38 = vadd.f32 1.0, %v2150_v34 }
 0x279   : > { %1440 = vmatmul.mubr.f32.gmra.mrb[54].mxu0 %v1229_v39  ;;  %1585 = vmatmul.mubr.f32.gmra.mrb[54].mxu1 %v1231_v1  ;;  %v1180_v29 = vadd.f32 1.0, %v2156_v50  ;;  %v1238_v49 = vmul.f32 %v1174_v32, %v982_v0  ;;  %v1240_v44 = vmul.f32 %v1176_v20, %v984_v36  ;;  %v1175_v21 = vadd.f32 1.0, %v2152_v7  ;;  %v2169_v7 = vld [vmem:[%s2250_s30] sm:$0xff] }
 0x27a   : > { %v2158_v61 = vpop.eup %2157  ;;  %1444 = vmatprep.mubr.f32.mxu0 %v1234_v42  ;;  %1589 = vmatprep.mubr.f32.mxu1 %v1236_v58  ;;  %v1233_v8 = vmul.f32 %v1169_v11, %v977_v55  ;;  %v1235_v17 = vmul.f32 %v1171_v25, %v979_v3  ;;  %v986_v18 = vmul.f32 0.5, %v3256_v22  ;;  %v988_v60 = vmul.f32 0.5, %v3260_v13  ;;  %v2170_v55 = vld [vmem:[%s2250_s30 + $0x8] sm:$0xff] }
 0x27b   : > { %v2160_v51 = vpop.eup %2159  ;;  %v981_v57 = vmul.f32 0.5, %v3219_v54  ;;  %v983_v56 = vmul.f32 0.5, %v3236_v35  ;;  %v1177_v23 = vadd.f32 1.0, %v2158_v61  ;;  %v990_v13 = vmul.f32 0.5, %v3283_v10 }
 0x27c   : > { %v2162_v62 = vpop.eup %2161  ;;  %v1242_v5 = vmul.f32 %v1178_v43, %v986_v18  ;;  %v1244_v33 = vmul.f32 %v1180_v29, %v988_v60  ;;  %v1179_v27 = vadd.f32 1.0, %v2160_v51  ;;  %v992_v54 = vmul.f32 0.5, %v3287_v46 }
 0x27d   : > { %1445 = vmatmul.mubr.f32.gmra.mrb[56].mxu0 %v1233_v8  ;;  %1590 = vmatmul.mubr.f32.gmra.mrb[56].mxu1 %v1235_v17  ;;  %v2164_v63 = vpop.eup %2163  ;;  %v1237_v16 = vmul.f32 %v1173_v38, %v981_v57  ;;  %v1239_v22 = vmul.f32 %v1175_v21, %v983_v56  ;;  %v985_v35 = vmul.f32 0.5, %v3248_v45  ;;  %v987_v4 = vmul.f32 0.5, %v3252_v48  ;;  %v2171_v8 = vld [vmem:[%s2250_s30 + $0x10] sm:$0xff] }
 0x27e   : > { %1449 = vmatprep.mubr.f32.mxu0 %v1238_v49  ;;  %1594 = vmatprep.mubr.f32.mxu1 %v1240_v44  ;;  %v1182_v9 = vadd.f32 1.0, %v2164_v63  ;;  %v1181_v14 = vadd.f32 1.0, %v2162_v62  ;;  %v989_v6 = vmul.f32 0.5, %v3275_v24  ;;  %v991_v10 = vmul.f32 0.5, %v3279_v47 }
 0x27f   : > { %v2166_v40 = vpop.eup %2165  ;;  %v1241_v2 = vmul.f32 %v1177_v23, %v985_v35  ;;  %v1243_v59 = vmul.f32 %v1179_v27, %v987_v4  ;;  %v2173_v4 = vld [vmem:[%s2250_s30 + $0x20] sm:$0xff] }
 0x280   : > { %v2168_v26 = vpop.eup %2167  ;;  %v1184_v53 = vadd.f32 1.0, %v2166_v40  ;;  %v1246_v12 = vmul.f32 %v1182_v9, %v990_v13  ;;  %v1245_v45 = vmul.f32 %v1181_v14, %v989_v6  ;;  %v2172_v40 = vld [vmem:[%s2250_s30 + $0x18] sm:$0xff] }
 0x281   : > { %1450 = vmatmul.mubr.f32.gmra.mrb[58].mxu0 %v1237_v16  ;;  %1595 = vmatmul.mubr.f32.gmra.mrb[58].mxu1 %v1239_v22  ;;  %v1183_v15 = vadd.f32 1.0, %v2168_v26 }
 0x282   : > { %1454 = vmatprep.mubr.f32.mxu0 %v1242_v5  ;;  %1599 = vmatprep.mubr.f32.mxu1 %v1244_v33  ;;  %v1248_v31 = vmul.f32 %v1184_v53, %v992_v54 }
 0x283   : > { %v1247_v48 = vmul.f32 %v1183_v15, %v991_v10 }
 0x285   : > { %1455 = vmatmul.mubr.f32.gmra.mrb[60].mxu0 %v1241_v2  ;;  %1600 = vmatmul.mubr.f32.gmra.mrb[60].mxu1 %v1243_v59 }
 0x286   : > { %1459 = vmatprep.mubr.f32.mxu0 %v1246_v12  ;;  %1604 = vmatprep.mubr.f32.mxu1 %v1248_v31 }
 0x289   : > { %1460 = vmatmul.mubr.f32.gmra.mrb[62].mxu0 %v1245_v45  ;;  %1605 = vmatmul.mubr.f32.gmra.mrb[62].mxu1 %v1247_v48  ;;  %v2174_v48 = vld [vmem:[%s2250_s30 + $0x28] sm:$0xff] }
 0x30b   : > { %v1744_v46 = vpop.f32.mrb[32].mxu0 }
 0x30c   : > { %v1745_v24 = vpop.f32.mrb[33].mxu0 }
 0x30d   : > { %v1824_v30 = vpop.f32.mrb[32].mxu1  ;;  %v1746_v47 = vadd.f32 %v1745_v24, %v1744_v46 }
 0x30e   : > { %v1825_v52 = vpop.f32.mrb[33].mxu1 }
 0x30f   : > { %v1826_v28 = vadd.f32 %v1825_v52, %v1824_v30  ;;  %v1387_v37 = vadd.f32 %v1746_v47, %v3317_v19 }
 0x311   : > { %v1532_v32 = vadd.f32 %v1826_v28, %v1387_v37 }
 0x312   : > { %v1747_v34 = vpop.f32.mrb[34].mxu0 }
 0x313   : > { %v1827_v20 = vpop.f32.mrb[34].mxu1  ;;  %v1748_v42 = vpop.f32.mrb[35].mxu0  ;;  %v1610_v11 = vadd.f32 %v2169_v7, %v1532_v32 }
 0x314   : > { %v1828_v58 = vpop.f32.mrb[35].mxu1  ;;  %v1749_v25 = vadd.f32 %v1748_v42, %v1747_v34 }
 0x315   : > { %v1829_v39 = vadd.f32 %v1828_v58, %v1827_v20  ;;  %1626 = vst [vmem:[%s3325_s8] sm:$0xff] %v1610_v11  ;;  %v2175_v20 = vld [vmem:[%s2250_s30 + $0x30] sm:$0xff] }
 0x316   : > { %v1392_v1 = vadd.f32 %v1749_v25, %v3317_v19 }
 0x317   : > { %v1750_v0 = vpop.f32.mrb[36].mxu0 }
 0x318   : > { %v1537_v41 = vadd.f32 %v1829_v39, %v1392_v1  ;;  %v1751_v50 = vpop.f32.mrb[37].mxu0 }
 0x319   : > { %v1830_v36 = vpop.f32.mrb[36].mxu1  ;;  %v1752_v61 = vadd.f32 %v1751_v50, %v1750_v0 }
 0x31a   : > { %v1611_v3 = vadd.f32 %v2170_v55, %v1537_v41  ;;  %v1831_v43 = vpop.f32.mrb[37].mxu1 }
 0x31b   : > { %v1832_v29 = vadd.f32 %v1831_v43, %v1830_v36  ;;  %v1397_v49 = vadd.f32 %v1752_v61, %v3317_v19  ;;  %v2176_v36 = vld [vmem:[%s2250_s30 + $0x38] sm:$0xff] }
 0x31c   : > { %1627 = vst [vmem:[%s3325_s8 + $0x8] sm:$0xff] %v1611_v3 }
 0x31d   : > { %v1542_v44 = vadd.f32 %v1832_v29, %v1397_v49 }
 0x31f   : > { %v1612_v17 = vadd.f32 %v2171_v8, %v1542_v44 }
 0x320   : > { %v1753_v51 = vpop.f32.mrb[38].mxu0 }
 0x321   : > { %v1754_v21 = vpop.f32.mrb[39].mxu0  ;;  %1628 = vst [vmem:[%s3325_s8 + $0x10] sm:$0xff] %v1612_v17 }
 0x322   : > { %v1833_v38 = vpop.f32.mrb[38].mxu1  ;;  %v1755_v18 = vadd.f32 %v1754_v21, %v1753_v51 }
 0x323   : > { %v1834_v60 = vpop.f32.mrb[39].mxu1 }
 0x324   : > { %v1835_v62 = vadd.f32 %v1834_v60, %v1833_v38  ;;  %v1402_v57 = vadd.f32 %v1755_v18, %v3317_v19  ;;  %v1756_v63 = vpop.f32.mrb[40].mxu0  ;;  %v2177_v38 = vld [vmem:[%s2250_s30 + $0x40] sm:$0xff] }
 0x325   : > { %v1757_v5 = vpop.f32.mrb[41].mxu0 }
 0x326   : > { %v1547_v56 = vadd.f32 %v1835_v62, %v1402_v57  ;;  %v1758_v9 = vadd.f32 %v1757_v5, %v1756_v63 }
 0x327   : > { %v1836_v23 = vpop.f32.mrb[40].mxu1 }
 0x328   : > { %v1837_v33 = vpop.f32.mrb[41].mxu1  ;;  %v1613_v27 = vadd.f32 %v2172_v40, %v1547_v56  ;;  %v1407_v22 = vadd.f32 %v1758_v9, %v3317_v19 }
 0x329   : > { %v1838_v16 = vadd.f32 %v1837_v33, %v1836_v23  ;;  %v1759_v13 = vpop.f32.mrb[42].mxu0  ;;  %v2178_v23 = vld [vmem:[%s2250_s30 + $0x48] sm:$0xff] }
 0x32a   : > { %1629 = vst [vmem:[%s3325_s8 + $0x18] sm:$0xff] %v1613_v27  ;;  %v1760_v53 = vpop.f32.mrb[43].mxu0 }
 0x32b   : > { %v1552_v26 = vadd.f32 %v1838_v16, %v1407_v22  ;;  %v1839_v54 = vpop.f32.mrb[42].mxu1  ;;  %v1761_v31 = vadd.f32 %v1760_v53, %v1759_v13 }
 0x32c   : > { %v1840_v35 = vpop.f32.mrb[43].mxu1 }
 0x32d   : > { %v1614_v12 = vadd.f32 %v2173_v4, %v1552_v26  ;;  %v1841_v14 = vadd.f32 %v1840_v35, %v1839_v54  ;;  %v1412_v15 = vadd.f32 %v1761_v31, %v3317_v19  ;;  %v2179_v35 = vld [vmem:[%s2250_s30 + $0x50] sm:$0xff] }
 0x32f   : > { %1630 = vst [vmem:[%s3325_s8 + $0x20] sm:$0xff] %v1614_v12  ;;  %v1557_v2 = vadd.f32 %v1841_v14, %v1412_v15  ;;  %v1762_v59 = vpop.f32.mrb[44].mxu0  ;;  %v1842_v6 = vpop.f32.mrb[44].mxu1 }
 0x330   : > { %v1763_v10 = vpop.f32.mrb[45].mxu0  ;;  %v1843_v45 = vpop.f32.mrb[45].mxu1 }
 0x331   : > { %v1615_v46 = vadd.f32 %v2174_v48, %v1557_v2  ;;  %v1764_v30 = vadd.f32 %v1763_v10, %v1762_v59  ;;  %v1844_v24 = vadd.f32 %v1843_v45, %v1842_v6  ;;  %v2180_v45 = vld [vmem:[%s2250_s30 + $0x58] sm:$0xff] }
 0x333   : > { %1631 = vst [vmem:[%s3325_s8 + $0x28] sm:$0xff] %v1615_v46  ;;  %v1417_v52 = vadd.f32 %v1764_v30, %v3317_v19 }
 0x335   : > { %v1562_v47 = vadd.f32 %v1844_v24, %v1417_v52  ;;  %v1765_v28 = vpop.f32.mrb[46].mxu0  ;;  %v1845_v37 = vpop.f32.mrb[46].mxu1 }
 0x336   : > { %v1766_v32 = vpop.f32.mrb[47].mxu0  ;;  %v1846_v34 = vpop.f32.mrb[47].mxu1 }
 0x337   : > { %v1616_v42 = vadd.f32 %v2175_v20, %v1562_v47  ;;  %v1767_v58 = vadd.f32 %v1766_v32, %v1765_v28  ;;  %v1847_v7 = vadd.f32 %v1846_v34, %v1845_v37  ;;  %v2181_v34 = vld [vmem:[%s2250_s30 + $0x60] sm:$0xff] }
 0x339   : > { %1632 = vst [vmem:[%s3325_s8 + $0x30] sm:$0xff] %v1616_v42  ;;  %v1422_v11 = vadd.f32 %v1767_v58, %v3317_v19 }
 0x33b   : > { %v1567_v25 = vadd.f32 %v1847_v7, %v1422_v11 }
 0x33c   : > { %v1768_v39 = vpop.f32.mrb[48].mxu0  ;;  %v1848_v1 = vpop.f32.mrb[48].mxu1 }
 0x33d   : > { %v1769_v41 = vpop.f32.mrb[49].mxu0  ;;  %v1849_v0 = vpop.f32.mrb[49].mxu1  ;;  %v1617_v50 = vadd.f32 %v2176_v36, %v1567_v25 }
 0x33e   : > { %v1770_v55 = vadd.f32 %v1769_v41, %v1768_v39  ;;  %v1850_v3 = vadd.f32 %v1849_v0, %v1848_v1  ;;  %v2182_v0 = vld [vmem:[%s2250_s30 + $0x68] sm:$0xff] }
 0x33f   : > { %1633 = vst [vmem:[%s3325_s8 + $0x38] sm:$0xff] %v1617_v50 }
 0x340   : > { %v1427_v61 = vadd.f32 %v1770_v55, %v3317_v19 }
 0x342   : > { %v1572_v43 = vadd.f32 %v1850_v3, %v1427_v61  ;;  %v1771_v29 = vpop.f32.mrb[50].mxu0  ;;  %v1851_v49 = vpop.f32.mrb[50].mxu1 }
 0x343   : > { %v1772_v44 = vpop.f32.mrb[51].mxu0  ;;  %v1852_v51 = vpop.f32.mrb[51].mxu1 }
 0x344   : > { %v1618_v21 = vadd.f32 %v2177_v38, %v1572_v43  ;;  %v1773_v8 = vadd.f32 %v1772_v44, %v1771_v29  ;;  %v1853_v17 = vadd.f32 %v1852_v51, %v1851_v49  ;;  %v2183_v51 = vld [vmem:[%s2250_s30 + $0x70] sm:$0xff] }
 0x346   : > { %1634 = vst [vmem:[%s3325_s8 + $0x40] sm:$0xff] %v1618_v21  ;;  %v1432_v18 = vadd.f32 %v1773_v8, %v3317_v19 }
 0x348   : > { %v1577_v60 = vadd.f32 %v1853_v17, %v1432_v18  ;;  %v1774_v62 = vpop.f32.mrb[52].mxu0  ;;  %v1854_v57 = vpop.f32.mrb[52].mxu1  ;;  %v2184_v17 = vld [vmem:[%s2250_s30 + $0x78] sm:$0xff] }
 0x349   : > { %v1775_v56 = vpop.f32.mrb[53].mxu0  ;;  %v1855_v63 = vpop.f32.mrb[53].mxu1 }
 0x34a   : > { %v1619_v5 = vadd.f32 %v2178_v23, %v1577_v60  ;;  %v1776_v33 = vadd.f32 %v1775_v56, %v1774_v62  ;;  %v1856_v40 = vadd.f32 %v1855_v63, %v1854_v57 }
 0x34c   : > { %1635 = vst [vmem:[%s3325_s8 + $0x48] sm:$0xff] %v1619_v5  ;;  %v1437_v27 = vadd.f32 %v1776_v33, %v3317_v19  ;;  %v1777_v9 = vpop.f32.mrb[54].mxu0  ;;  %v1857_v16 = vpop.f32.mrb[54].mxu1 }
 0x34d   : > { %v1778_v22 = vpop.f32.mrb[55].mxu0  ;;  %v1858_v26 = vpop.f32.mrb[55].mxu1 }
 0x34e   : > { %v1582_v13 = vadd.f32 %v1856_v40, %v1437_v27  ;;  %v1779_v54 = vadd.f32 %v1778_v22, %v1777_v9  ;;  %v1859_v53 = vadd.f32 %v1858_v26, %v1857_v16 }
 0x350   : > { %v1620_v4 = vadd.f32 %v2179_v35, %v1582_v13  ;;  %v1442_v12 = vadd.f32 %v1779_v54, %v3317_v19  ;;  %v1780_v31 = vpop.f32.mrb[56].mxu0  ;;  %v1860_v14 = vpop.f32.mrb[56].mxu1 }
 0x351   : > { %v1781_v15 = vpop.f32.mrb[57].mxu0  ;;  %v1861_v2 = vpop.f32.mrb[57].mxu1 }
 0x352   : > { %1636 = vst [vmem:[%s3325_s8 + $0x50] sm:$0xff] %v1620_v4  ;;  %v1587_v59 = vadd.f32 %v1859_v53, %v1442_v12  ;;  %v1782_v6 = vadd.f32 %v1781_v15, %v1780_v31  ;;  %v1862_v10 = vadd.f32 %v1861_v2, %v1860_v14 }
 0x354   : > { %v1621_v48 = vadd.f32 %v2180_v45, %v1587_v59  ;;  %v1447_v46 = vadd.f32 %v1782_v6, %v3317_v19  ;;  %v1783_v30 = vpop.f32.mrb[58].mxu0  ;;  %v1863_v24 = vpop.f32.mrb[58].mxu1 }
 0x355   : > { %v1784_v52 = vpop.f32.mrb[59].mxu0  ;;  %v1864_v47 = vpop.f32.mrb[59].mxu1 }
 0x356   : > { %1637 = vst [vmem:[%s3325_s8 + $0x58] sm:$0xff] %v1621_v48  ;;  %v1592_v28 = vadd.f32 %v1862_v10, %v1447_v46  ;;  %v1785_v37 = vadd.f32 %v1784_v52, %v1783_v30  ;;  %v1865_v32 = vadd.f32 %v1864_v47, %v1863_v24 }
 0x358   : > { %v1622_v20 = vadd.f32 %v2181_v34, %v1592_v28  ;;  %v1452_v42 = vadd.f32 %v1785_v37, %v3317_v19  ;;  %v1786_v58 = vpop.f32.mrb[60].mxu0  ;;  %v1866_v7 = vpop.f32.mrb[60].mxu1 }
 0x359   : > { %v1787_v11 = vpop.f32.mrb[61].mxu0  ;;  %v1867_v25 = vpop.f32.mrb[61].mxu1 }
 0x35a   : > { %1638 = vst [vmem:[%s3325_s8 + $0x60] sm:$0xff] %v1622_v20  ;;  %v1597_v39 = vadd.f32 %v1865_v32, %v1452_v42  ;;  %v1788_v1 = vadd.f32 %v1787_v11, %v1786_v58  ;;  %v1868_v41 = vadd.f32 %v1867_v25, %v1866_v7 }
 0x35c   : > { %v1623_v36 = vadd.f32 %v2182_v0, %v1597_v39  ;;  %v1457_v50 = vadd.f32 %v1788_v1, %v3317_v19  ;;  %v1789_v55 = vpop.f32.mrb[62].mxu0  ;;  %v1869_v3 = vpop.f32.mrb[62].mxu1 }
 0x35d   : > { %v1790_v61 = vpop.f32.mrb[63].mxu0  ;;  %v1870_v43 = vpop.f32.mrb[63].mxu1 }
 0x35e   : > { %1639 = vst [vmem:[%s3325_s8 + $0x68] sm:$0xff] %v1623_v36  ;;  %v1602_v29 = vadd.f32 %v1868_v41, %v1457_v50  ;;  %v1791_v49 = vadd.f32 %v1790_v61, %v1789_v55  ;;  %v1871_v44 = vadd.f32 %v1870_v43, %v1869_v3 }
 0x360   : > { %v1624_v38 = vadd.f32 %v2183_v51, %v1602_v29  ;;  %v1462_v21 = vadd.f32 %v1791_v49, %v3317_v19 }
 0x362   : > { %1640 = vst [vmem:[%s3325_s8 + $0x70] sm:$0xff] %v1624_v38  ;;  %v1607_v8 = vadd.f32 %v1871_v44, %v1462_v21 }
 0x364   : > { %v1625_v18 = vadd.f32 %v2184_v17, %v1607_v8 }
 0x366   : > { %1641 = vst [vmem:[%s3325_s8 + $0x78] sm:$0xff] %v1625_v18 }
 0x367 PF: > { %s17_s24 = sadd.s32 1, %s2191_s24  }
 0x368   : > { %p14_p4 = scmp.ge.s32.totalorder %s17_s24, 4  }
 0x36a   :  { %16 = sbr.rel (!%p14_p4) target bundleno = 1 (0x1), region = 78 }

// kernel: specformer_forward.11
= control target key start
LH: loop header
LB: loop body
LE: loop exit
PB: predicated region body
PF: predicated region fallthrough
CT: control target
= control target key end

     0   :  { %10 = vsyncpa [#allocation3], 0  ;;  %s1193_s0 = inlined_call_operand.vmem [shape: f32[2,128,128], index: 0, kind: input, shape index: {}]   ;;  %s1194_s1 = inlined_call_operand.vmem [shape: f32[1,128], index: 1, kind: input, shape index: {}]   ;;  %s1195_s2 = inlined_call_operand.vmem [shape: f32[1,128], index: 2, kind: input, shape index: {}]   ;;  %s1196_s3 = inlined_call_operand.vmem [shape: f32[128,8], index: 3, kind: input, shape index: {}]   ;;  %s1197_s4 = inlined_call_operand.vmem [shape: f32[1,8], index: 4, kind: input, shape index: {}]   ;;  %s1198_s5 = inlined_call_operand.hbm [shape: f32[2,1,8], index: 5, kind: output, shape index: {}]  }
   0x1   :  { %12 = vsyncpa [#allocation3 + $0x1], 0  ;;  %s900_s18 = smov 0   ;;  %s902_s19 = smov 0  }
   0x2   :  { %s904_s20 = smov 0   ;;  %s906_s21 = smov 0  }
   0x3 LB: > { %s921_s22 = sadd.s32 4294967295, %s864_s21   ;;  %s640_s23 = sadd.s32 4294967294, %s864_s21   ;;  %s864_s21 = sphi %s906_s21, %s1204_s21   ;;  %s860_s20 = sphi %s904_s20, %s1203_s20   ;;  %s856_s19 = sphi %s902_s19, %s1202_s19   ;;  %s852_s18 = sphi %s900_s18, %s1201_s18  }
   0x4   : > { %s925_s24 = sadd.s32 1, %s864_s21   ;;  %s135_s25 = sadd.s32 1, %s860_s20 }
   0x5   : > { %s132_s26 = ssub.s32 %s864_s21, %s925_s24  ;;  %p145_p0 = scmp.ne.s32.totalorder %s860_s20, %s856_s19 }
   0x6   : > { %p133_p1 = scmp.eq.s32.totalorder %s132_s26, 0  ;;  %p146_p2 = scmp.eq.s32.totalorder %s921_s22, 1 }
   0x7   : > { %p151_p3 = scmp.ne.s32.totalorder %s856_s19, %s852_s18  ;;  %p152_p4 = scmp.eq.s32.totalorder %s640_s23, 1 }
   0x8   : > { %s936_s27 = scalar_select %p133_p1, %s860_s20, %s135_s25  }
   0x9   : > { %p938_p5 = por %p146_p2, %p145_p0  ;;  %p942_p6 = por %p152_p4, %p151_p3 }
   0xa   : > { %p643_p7 = scmp.ge.s32.totalorder %s864_s21, 1  ;;  %p190_p8 = scmp.lt.s32.totalorder %s864_s21, 3 }
   0xc   : > { %p191_p9 = pnand %p643_p7, %p190_p8 }
   0xd   : > { %p217_p10 = scmp.lt.s32.totalorder (!%p191_p9), %s921_s22, 1  ;;  %vm867_vm0 = vmmov (!%p191_p9), 0   ;;  %s215_s14 = sand.u32 (!%p191_p9), 1, %s856_s19   ;;  %vm570_vm1 = vcmask (!%p191_p9), 57344  }
   0xe   : > { %194 = sbr.rel (%p191_p9) target bundleno = 613 (0x265), region = 40  ;;  %s648_s17 = sshll.u32 (!%p191_p9), %s921_s22, 4 }
   0xf   : > { %s216_s23 = scalar_lea.vmem (!%p191_p9), [#allocation2], %s215_s14  ;;  %s573_s7 = scalar_lea.sflag (!%p191_p9), [#allocation3], %s215_s14 }
  0x10   : > { %s585_s25 = sshll.u32 (!%p191_p9), %s216_s23, 4  ;;  %s1153_s25 = int_to_ptr.vmem [resolvable:$true] %s585_s25 }
  0x11   : > { %s802_s8 = scalar_lea.vmem (!%p191_p9), %s1153_s25, 16 }
  0x12   : > { %p803_p11 = scmp.ne.s32.totalorder (!%p191_p9), %s1153_s25, %s802_s8 }
  0x14   : > { %p804_p12 = pnand (!%p191_p9), %p803_p11, %p938_p5 }
  0x15   : > { %s218_s30 = scalar_select %p217_p10, %s921_s22, 1 }
  0x16   : > { %p805_p13 = pneg %p804_p12  ;;  %s869_s22 = smov [#allocation2]  }
  0x17   : > { %s651_s6 = sshll.u32 %s218_s30, 7 }
  0x18   : > { %s221_s9 = scalar_lea.vmem %s1193_s0, %s651_s6  ;;  %s1151_s6 = scalar_lea.hbm %s1198_s5, %s648_s17 }
  0x19   : > { %v222_v0 = vld [vmem:[%s221_s9] sm:$0xff]  ;;  %v224_v1 = vld [vmem:[%s221_s9 + $0x10] sm:$0xff]  ;;  %v223_v2 = vld [vmem:[%s221_s9 + $0x8] sm:$0xff] }
  0x1a   : > { %240 = vadd.xlane.f32.xlu0 %v222_v0  ;;  %244 = vadd.xlane.f32.xlu1 %v224_v1  ;;  %v225_v3 = vld [vmem:[%s221_s9 + $0x18] sm:$0xff]  ;;  %v226_v4 = vld [vmem:[%s221_s9 + $0x20] sm:$0xff]  ;;  %v227_v5 = vld [vmem:[%s221_s9 + $0x28] sm:$0xff] }
  0x1b   : > { %v228_v6 = vld [vmem:[%s221_s9 + $0x30] sm:$0xff]  ;;  %v229_v7 = vld [vmem:[%s221_s9 + $0x38] sm:$0xff]  ;;  %v230_v8 = vld [vmem:[%s221_s9 + $0x40] sm:$0xff] }
  0x1c   : > { %v231_v9 = vld [vmem:[%s221_s9 + $0x48] sm:$0xff]  ;;  %v232_v10 = vld [vmem:[%s221_s9 + $0x50] sm:$0xff]  ;;  %v953_v11 = vld [vmem:[%s221_s9 + $0x58] sm:$0xff] }
  0x1d   : > { %v956_v12 = vld [vmem:[%s221_s9 + $0x60] sm:$0xff]  ;;  %v958_v13 = vld [vmem:[%s221_s9 + $0x68] sm:$0xff]  ;;  %v962_v14 = vld [vmem:[%s221_s9 + $0x70] sm:$0xff] }
  0x1e   : > { %242 = vadd.xlane.f32.xlu0 %v223_v2  ;;  %246 = vadd.xlane.f32.xlu1 %v225_v3  ;;  %v964_v15 = vld [vmem:[%s221_s9 + $0x78] sm:$0xff]  ;;  %s806_s9 = sshll.u32 %s869_s22, 4  ;;  %s807_s9 = int_to_ptr.vmem [resolvable:$false] %s806_s9 }
  0x1f   : > { %s808_s10 = scalar_lea.vmem %s807_s9, 32  ;;  %p809_p0 = scmp.lt.s32.totalorder %s1153_s25, %s807_s9 }
  0x20   : > { %p810_p1 = scmp.lt.s32.totalorder %s808_s10, %s802_s8 }
  0x22   : > { %248 = vadd.xlane.f32.xlu0 %v226_v4  ;;  %250 = vadd.xlane.f32.xlu1 %v227_v5  ;;  %p811_p2 = por %p810_p1, %p809_p0 }
  0x24   : > { %p812_p3 = pnand %p811_p2, %p805_p13 }
  0x26   : > { %252 = vadd.xlane.f32.xlu0 %v228_v6  ;;  %254 = vadd.xlane.f32.xlu1 %v229_v7 }
  0x2a   : > { %256 = vadd.xlane.f32.xlu0 %v230_v8  ;;  %258 = vadd.xlane.f32.xlu1 %v231_v9 }
  0x2e   : > { %260 = vadd.xlane.f32.xlu0 %v232_v10  ;;  %262 = vadd.xlane.f32.xlu1 %v953_v11 }
  0x32   : > { %264 = vadd.xlane.f32.xlu0 %v956_v12  ;;  %266 = vadd.xlane.f32.xlu1 %v958_v13 }
  0x36   : > { %268 = vadd.xlane.f32.xlu0 %v962_v14  ;;  %270 = vadd.xlane.f32.xlu1 %v964_v15 }
  0xa7   : > { %v241_v16 = vpop.xlane.xlu0 %240  ;;  %v245_v17 = vpop.xlane.xlu1 %244 }
  0xa8   : > { %v273_v18 = vmul.f32 0.0078125, %v241_v16  ;;  %v275_v19 = vmul.f32 0.0078125, %v245_v17 }
  0xaa   : > { %v968_v20 = vsub.f32 %v222_v0, %v273_v18  ;;  %v970_v21 = vsub.f32 %v224_v1, %v275_v19  ;;  %v866_v19 = vmov 0.0|0.0  }
  0xab   : > { %v243_v22 = vpop.xlane.xlu0 %242  ;;  %v247_v23 = vpop.xlane.xlu1 %246  ;;  %704 = vmatprep.subr.bf16.mxu0 %v866_v19 }
  0xac   : > { %v274_v24 = vmul.f32 0.0078125, %v243_v22  ;;  %v305_v25 = vmul.f32 %v968_v20, %v968_v20  ;;  %v276_v26 = vmul.f32 0.0078125, %v247_v23  ;;  %v307_v29 = vmul.f32 %v970_v21, %v970_v21  ;;  %v485_v22 = vld [vmem:[%s1196_s3 + $0x10] sm:$0xff]  ;;  %v486_v23 = vld [vmem:[%s1196_s3 + $0x18] sm:$0xff] }
  0xae   : > { %v974_v27 = vsub.f32 %v223_v2, %v274_v24  ;;  %321 = vadd.xlane.f32.xlu0 %v305_v25  ;;  %v976_v28 = vsub.f32 %v225_v3, %v276_v26  ;;  %v708_v24 = vpack.c.bf16 %v486_v23, %v485_v22  ;;  %v487_v25 = vld [vmem:[%s1196_s3 + $0x20] sm:$0xff]  ;;  %v488_v26 = vld [vmem:[%s1196_s3 + $0x28] sm:$0xff] }
  0xaf   : > { %v249_v30 = vpop.xlane.xlu0 %248  ;;  %v251_v31 = vpop.xlane.xlu1 %250 }
  0xb0   : > { %v277_v32 = vmul.f32 0.0078125, %v249_v30  ;;  %v306_v33 = vmul.f32 %v974_v27, %v974_v27  ;;  %v278_v34 = vmul.f32 0.0078125, %v251_v31  ;;  %v308_v37 = vmul.f32 %v976_v28, %v976_v28  ;;  %v489_v30 = vld [vmem:[%s1196_s3 + $0x30] sm:$0xff]  ;;  %v490_v31 = vld [vmem:[%s1196_s3 + $0x38] sm:$0xff] }
  0xb2   : > { %v982_v35 = vsub.f32 %v226_v4, %v277_v32  ;;  %325 = vadd.xlane.f32.xlu0 %v307_v29  ;;  %323 = vadd.xlane.f32.xlu1 %v306_v33  ;;  %v984_v36 = vsub.f32 %v227_v5, %v278_v34  ;;  %v711_v29 = vpack.c.bf16 %v488_v26, %v487_v25  ;;  %v491_v33 = vld [vmem:[%s1196_s3 + $0x40] sm:$0xff]  ;;  %v492_v34 = vld [vmem:[%s1196_s3 + $0x48] sm:$0xff] }
  0xb3   : > { %v253_v38 = vpop.xlane.xlu0 %252  ;;  %v255_v39 = vpop.xlane.xlu1 %254  ;;  %v714_v32 = vpack.c.bf16 %v490_v31, %v489_v30 }
  0xb4   : > { %v279_v40 = vmul.f32 0.0078125, %v253_v38  ;;  %v309_v41 = vmul.f32 %v982_v35, %v982_v35  ;;  %v280_v42 = vmul.f32 0.0078125, %v255_v39  ;;  %v310_v45 = vmul.f32 %v984_v36, %v984_v36  ;;  %v493_v39 = vld [vmem:[%s1196_s3 + $0x50] sm:$0xff] }
  0xb5   : > { %v717_v38 = vpack.c.bf16 %v492_v34, %v491_v33  ;;  %v1096_v33 = vld [vmem:[%s1195_s2] ss:$0 sm:$0xff] }
  0xb6   : > { %v990_v43 = vsub.f32 %v228_v6, %v279_v40  ;;  %327 = vadd.xlane.f32.xlu1 %v308_v37  ;;  %329 = vadd.xlane.f32.xlu0 %v309_v41  ;;  %v992_v44 = vsub.f32 %v229_v7, %v280_v42  ;;  %v868_v37 = vmov 0.0   ;;  %v494_v40 = vld [vmem:[%s1196_s3 + $0x58] sm:$0xff]  ;;  %v495_v42 = vld [vmem:[%s1196_s3 + $0x60] sm:$0xff] }
  0xb7   : > { %v257_v46 = vpop.xlane.xlu0 %256  ;;  %v259_v47 = vpop.xlane.xlu1 %258  ;;  %701 = vmatprep.mubr.msk.f32.mxu0 %vm867_vm0, %v868_v37  ;;  %v720_v41 = vpack.c.bf16 %v494_v40, %v493_v39 }
  0xb8   : > { %v281_v48 = vmul.f32 0.0078125, %v257_v46  ;;  %v311_v49 = vmul.f32 %v990_v43, %v990_v43  ;;  %v282_v50 = vmul.f32 0.0078125, %v259_v47  ;;  %v312_v53 = vmul.f32 %v992_v44, %v992_v44  ;;  %v497_v47 = vld [vmem:[%s1196_s3 + $0x70] sm:$0xff] }
  0xba   : > { %v998_v51 = vsub.f32 %v230_v8, %v281_v48  ;;  %331 = vadd.xlane.f32.xlu1 %v310_v45  ;;  %333 = vadd.xlane.f32.xlu0 %v311_v49  ;;  %v1000_v52 = vsub.f32 %v231_v9, %v282_v50  ;;  %v496_v45 = vld [vmem:[%s1196_s3 + $0x68] sm:$0xff]  ;;  %v498_v48 = vld [vmem:[%s1196_s3 + $0x78] sm:$0xff] }
  0xbb   : > { %v261_v54 = vpop.xlane.xlu0 %260  ;;  %v263_v55 = vpop.xlane.xlu1 %262  ;;  %v723_v46 = vpack.c.bf16 %v496_v45, %v495_v42  ;;  %v726_v49 = vpack.c.bf16 %v498_v48, %v497_v47 }
  0xbc   : > { %v283_v56 = vmul.f32 0.0078125, %v261_v54  ;;  %v313_v57 = vmul.f32 %v998_v51, %v998_v51  ;;  %v284_v58 = vmul.f32 0.0078125, %v263_v55  ;;  %v314_v61 = vmul.f32 %v1000_v52, %v1000_v52 }
  0xbe   : > { %v1006_v59 = vsub.f32 %v232_v10, %v283_v56  ;;  %335 = vadd.xlane.f32.xlu1 %v312_v53  ;;  %337 = vadd.xlane.f32.xlu0 %v313_v57  ;;  %v1009_v60 = vsub.f32 %v953_v11, %v284_v58 }
  0xbf   : > { %v265_v62 = vpop.xlane.xlu0 %264  ;;  %v267_v63 = vpop.xlane.xlu1 %266 }
  0xc0   : > { %v285_v0 = vmul.f32 0.0078125, %v265_v62  ;;  %v315_v1 = vmul.f32 %v1006_v59, %v1006_v59  ;;  %v286_v2 = vmul.f32 0.0078125, %v267_v63  ;;  %v316_v5 = vmul.f32 %v1009_v60, %v1009_v60 }
  0xc2   : > { %v1016_v3 = vsub.f32 %v956_v12, %v285_v0  ;;  %339 = vadd.xlane.f32.xlu1 %v314_v61  ;;  %341 = vadd.xlane.f32.xlu0 %v315_v1  ;;  %v1019_v4 = vsub.f32 %v958_v13, %v286_v2 }
  0xc3   : > { %v269_v6 = vpop.xlane.xlu0 %268  ;;  %v271_v7 = vpop.xlane.xlu1 %270 }
  0xc4   : > { %v287_v8 = vmul.f32 0.0078125, %v269_v6  ;;  %v317_v9 = vmul.f32 %v1016_v3, %v1016_v3  ;;  %v288_v10 = vmul.f32 0.0078125, %v271_v7  ;;  %v318_v13 = vmul.f32 %v1019_v4, %v1019_v4 }
  0xc6   : > { %v1026_v11 = vsub.f32 %v962_v14, %v287_v8  ;;  %343 = vadd.xlane.f32.xlu1 %v316_v5  ;;  %345 = vadd.xlane.f32.xlu0 %v317_v9  ;;  %v1029_v12 = vsub.f32 %v964_v15, %v288_v10  ;;  %v483_v14 = vld [vmem:[%s1196_s3] sm:$0xff]  ;;  %v484_v15 = vld [vmem:[%s1196_s3 + $0x8] sm:$0xff] }
  0xc7   : > { %v705_v18 = vpack.c.bf16 %v484_v15, %v483_v14 }
  0xc8   : > { %v319_v16 = vmul.f32 %v1026_v11, %v1026_v11  ;;  %v320_v17 = vmul.f32 %v1029_v12, %v1029_v12 }
  0xc9   : > { %706 = vmatpush3.bf16.msra.mxu0 %v705_v18 }
  0xca   : > { %347 = vadd.xlane.f32.xlu1 %v318_v13  ;;  %349 = vadd.xlane.f32.xlu0 %v319_v16 }
  0xcb   : > { %707 = vmatprep.subr.bf16.mxu0 %v866_v19 }
  0xcd   : > { %709 = vmatpush3.bf16.msra.mxu0 %v708_v24 }
  0xce   : > { %351 = vadd.xlane.f32.xlu1 %v320_v17  ;;  %710 = vmatprep.subr.bf16.mxu0 %v866_v19 }
  0xd1   : > { %712 = vmatpush3.bf16.msra.mxu0 %v711_v29 }
  0xd2   : > { %713 = vmatprep.subr.bf16.mxu0 %v866_v19 }
  0xd5   : > { %715 = vmatpush3.bf16.msra.mxu0 %v714_v32 }
  0xd6   : > { %716 = vmatprep.subr.bf16.mxu0 %v866_v19 }
  0xd9   : > { %718 = vmatpush3.bf16.msra.mxu0 %v717_v38 }
  0xda   : > { %719 = vmatprep.subr.bf16.mxu0 %v866_v19 }
  0xdd   : > { %721 = vmatpush3.bf16.msra.mxu0 %v720_v41 }
  0xde   : > { %722 = vmatprep.subr.bf16.mxu0 %v866_v19 }
  0xe1   : > { %724 = vmatpush3.bf16.msra.mxu0 %v723_v46 }
  0xe2   : > { %725 = vmatprep.subr.bf16.mxu0 %v866_v19  ;;  %v1089_v19 = vld [vmem:[%s1194_s1] ss:$0 sm:$0xff] }
  0xe5   : > { %727 = vmatpush3.bf16.msra.mxu0 %v726_v49 }
 0x13b   : > { %v322_v50 = vpop.xlane.xlu0 %321 }
 0x13c   : > { %v353_v53 = vmul.f32 0.0078125, %v322_v50 }
 0x13e   : > { %v369_v54 = vadd.f32 1e-05, %v353_v53 }
 0x13f   : > { %v324_v55 = vpop.xlane.xlu1 %323  ;;  %v326_v56 = vpop.xlane.xlu0 %325 }
 0x140   : > { %770 = vrsqrt.f32 %v369_v54  ;;  %v354_v57 = vmul.f32 0.0078125, %v324_v55  ;;  %v355_v58 = vmul.f32 0.0078125, %v326_v56 }
 0x142   : > { %v370_v61 = vadd.f32 1e-05, %v354_v57  ;;  %v371_v62 = vadd.f32 1e-05, %v355_v58 }
 0x143   : > { %v328_v63 = vpop.xlane.xlu1 %327  ;;  %v330_v0 = vpop.xlane.xlu0 %329 }
 0x144   : > { %772 = vrsqrt.f32 %v370_v61  ;;  %v356_v1 = vmul.f32 0.0078125, %v328_v63  ;;  %v357_v2 = vmul.f32 0.0078125, %v330_v0 }
 0x145   : > { %774 = vrsqrt.f32 %v371_v62 }
 0x146   : > { %v372_v5 = vadd.f32 1e-05, %v356_v1  ;;  %v373_v6 = vadd.f32 1e-05, %v357_v2 }
 0x147   : > { %v332_v7 = vpop.xlane.xlu1 %331  ;;  %v334_v8 = vpop.xlane.xlu0 %333 }
 0x148   : > { %776 = vrsqrt.f32 %v372_v5  ;;  %v358_v9 = vmul.f32 0.0078125, %v332_v7  ;;  %v359_v10 = vmul.f32 0.0078125, %v334_v8 }
 0x149   : > { %778 = vrsqrt.f32 %v373_v6 }
 0x14a   : > { %v771_v13 = vpop.eup %770  ;;  %v374_v16 = vadd.f32 1e-05, %v358_v9  ;;  %v375_v17 = vadd.f32 1e-05, %v359_v10 }
 0x14b   : > { %v401_v14 = vmul.f32 %v771_v13, %v968_v20  ;;  %v336_v15 = vpop.xlane.xlu1 %335  ;;  %v338_v18 = vpop.xlane.xlu0 %337 }
 0x14c   : > { %780 = vrsqrt.f32 %v374_v16  ;;  %v360_v22 = vmul.f32 0.0078125, %v336_v15  ;;  %v361_v23 = vmul.f32 0.0078125, %v338_v18 }
 0x14d   : > { %782 = vrsqrt.f32 %v375_v17  ;;  %v423_v30 = vmul.f32 %v1089_v19, %v401_v14 }
 0x14e   : > { %v773_v24 = vpop.eup %772  ;;  %v376_v25 = vadd.f32 1e-05, %v360_v22  ;;  %v377_v26 = vadd.f32 1e-05, %v361_v23 }
 0x14f   : > { %v775_v29 = vpop.eup %774  ;;  %v402_v31 = vmul.f32 %v773_v24, %v974_v27  ;;  %v340_v20 = vpop.xlane.xlu1 %339  ;;  %v445_v46 = vadd.f32 %v1096_v33, %v423_v30 }
 0x150   : > { %v342_v32 = vpop.xlane.xlu0 %341  ;;  %v403_v34 = vmul.f32 %v775_v29, %v970_v21  ;;  %784 = vrsqrt.f32 %v376_v25  ;;  %v362_v37 = vmul.f32 0.0078125, %v340_v20 }
 0x151   : > { %v363_v38 = vmul.f32 0.0078125, %v342_v32  ;;  %v424_v39 = vmul.f32 %v1089_v19, %v402_v31  ;;  %786 = vrsqrt.f32 %v377_v26 }
 0x152   : > { %v777_v40 = vpop.eup %776  ;;  %v425_v41 = vmul.f32 %v1089_v19, %v403_v34  ;;  %v378_v42 = vadd.f32 1e-05, %v362_v37 }
 0x153   : > { %v379_v27 = vadd.f32 1e-05, %v363_v38  ;;  %v779_v45 = vpop.eup %778  ;;  %v446_v47 = vadd.f32 %v1096_v33, %v424_v39  ;;  %v404_v48 = vmul.f32 %v777_v40, %v976_v28  ;;  %v344_v49 = vpop.xlane.xlu1 %343 }
 0x154   : > { %v346_v21 = vpop.xlane.xlu0 %345  ;;  %v447_v50 = vadd.f32 %v1096_v33, %v425_v41  ;;  %v405_v53 = vmul.f32 %v779_v45, %v982_v35  ;;  %788 = vrsqrt.f32 %v378_v42  ;;  %v364_v54 = vmul.f32 0.0078125, %v344_v49 }
 0x155   : > { %v461_v55 = vadd.f32 %v446_v47, %v445_v46  ;;  %v426_v56 = vmul.f32 %v1089_v19, %v404_v48  ;;  %790 = vrsqrt.f32 %v379_v27  ;;  %v365_v57 = vmul.f32 0.0078125, %v346_v21 }
 0x156   : > { %v781_v58 = vpop.eup %780  ;;  %v427_v61 = vmul.f32 %v1089_v19, %v405_v53  ;;  %v380_v62 = vadd.f32 1e-05, %v364_v54 }
 0x157   : > { %v783_v63 = vpop.eup %782  ;;  %v462_v0 = vadd.f32 %v461_v55, %v447_v50  ;;  %v448_v28 = vadd.f32 %v1096_v33, %v426_v56  ;;  %v406_v1 = vmul.f32 %v781_v58, %v984_v36  ;;  %v381_v2 = vadd.f32 1e-05, %v365_v57  ;;  %v348_v5 = vpop.xlane.xlu1 %347 }
 0x158   : > { %v350_v35 = vpop.xlane.xlu0 %349  ;;  %v449_v6 = vadd.f32 %v1096_v33, %v427_v61  ;;  %v407_v7 = vmul.f32 %v783_v63, %v990_v43  ;;  %792 = vrsqrt.f32 %v380_v62  ;;  %v366_v8 = vmul.f32 0.0078125, %v348_v5 }
 0x159   : > { %v463_v9 = vadd.f32 %v462_v0, %v448_v28  ;;  %v428_v10 = vmul.f32 %v1089_v19, %v406_v1  ;;  %794 = vrsqrt.f32 %v381_v2  ;;  %v367_v13 = vmul.f32 0.0078125, %v350_v35 }
 0x15a   : > { %v785_v16 = vpop.eup %784  ;;  %v429_v17 = vmul.f32 %v1089_v19, %v407_v7  ;;  %v382_v14 = vadd.f32 1e-05, %v366_v8 }
 0x15b   : > { %v787_v15 = vpop.eup %786  ;;  %v464_v36 = vadd.f32 %v463_v9, %v449_v6  ;;  %v450_v18 = vadd.f32 %v1096_v33, %v428_v10  ;;  %v408_v22 = vmul.f32 %v785_v16, %v992_v44  ;;  %v383_v23 = vadd.f32 1e-05, %v367_v13  ;;  %v352_v24 = vpop.xlane.xlu1 %351 }
 0x15c   : > { %v409_v43 = vmul.f32 %v787_v15, %v998_v51  ;;  %796 = vrsqrt.f32 %v382_v14  ;;  %v368_v25 = vmul.f32 0.0078125, %v352_v24  ;;  %v451_v29 = vadd.f32 %v1096_v33, %v429_v17 }
 0x15d   : > { %v465_v26 = vadd.f32 %v464_v36, %v450_v18  ;;  %v430_v30 = vmul.f32 %v1089_v19, %v408_v22  ;;  %798 = vrsqrt.f32 %v383_v23 }
 0x15e   : > { %v789_v31 = vpop.eup %788  ;;  %v431_v20 = vmul.f32 %v1089_v19, %v409_v43  ;;  %v384_v32 = vadd.f32 1e-05, %v368_v25 }
 0x15f   : > { %v791_v34 = vpop.eup %790  ;;  %v466_v37 = vadd.f32 %v465_v26, %v451_v29  ;;  %v452_v44 = vadd.f32 %v1096_v33, %v430_v30  ;;  %v410_v38 = vmul.f32 %v789_v31, %v1000_v52 }
 0x160   : > { %v411_v51 = vmul.f32 %v791_v34, %v1006_v59  ;;  %800 = vrsqrt.f32 %v384_v32  ;;  %v453_v40 = vadd.f32 %v1096_v33, %v431_v20 }
 0x161   : > { %v467_v39 = vadd.f32 %v466_v37, %v452_v44  ;;  %v432_v41 = vmul.f32 %v1089_v19, %v410_v38 }
 0x162   : > { %v793_v42 = vpop.eup %792  ;;  %v433_v27 = vmul.f32 %v1089_v19, %v411_v51 }
 0x163   : > { %v795_v45 = vpop.eup %794  ;;  %v468_v46 = vadd.f32 %v467_v39, %v453_v40  ;;  %v454_v47 = vadd.f32 %v1096_v33, %v432_v41  ;;  %v412_v48 = vmul.f32 %v793_v42, %v1009_v60 }
 0x164   : > { %v413_v49 = vmul.f32 %v795_v45, %v1016_v3  ;;  %v455_v59 = vadd.f32 %v1096_v33, %v433_v27 }
 0x165   : > { %v469_v52 = vadd.f32 %v468_v46, %v454_v47  ;;  %v434_v21 = vmul.f32 %v1089_v19, %v412_v48 }
 0x166   : > { %v797_v50 = vpop.eup %796  ;;  %v435_v53 = vmul.f32 %v1089_v19, %v413_v49 }
 0x167   : > { %v799_v54 = vpop.eup %798  ;;  %v470_v55 = vadd.f32 %v469_v52, %v455_v59  ;;  %v456_v56 = vadd.f32 %v1096_v33, %v434_v21  ;;  %v414_v57 = vmul.f32 %v797_v50, %v1019_v4 }
 0x168   : > { %v415_v58 = vmul.f32 %v799_v54, %v1026_v11  ;;  %v457_v60 = vadd.f32 %v1096_v33, %v435_v53 }
 0x169   : > { %v436_v3 = vmul.f32 %v1089_v19, %v414_v57  ;;  %v471_v61 = vadd.f32 %v470_v55, %v456_v56 }
 0x16a   : > { %v801_v62 = vpop.eup %800  ;;  %v437_v63 = vmul.f32 %v1089_v19, %v415_v58 }
 0x16b   : > { %v416_v0 = vmul.f32 %v801_v62, %v1029_v12  ;;  %v458_v28 = vadd.f32 %v1096_v33, %v436_v3  ;;  %v472_v1 = vadd.f32 %v471_v61, %v457_v60 }
 0x16c   : > { %v459_v4 = vadd.f32 %v1096_v33, %v437_v63 }
 0x16d   : > { %v438_v2 = vmul.f32 %v1089_v19, %v416_v0  ;;  %v473_v11 = vadd.f32 %v472_v1, %v458_v28  ;;  %v499_v19 = vld [vmem:[%s1197_s4] sm:$0x1] }
 0x16f   : > { %v460_v5 = vadd.f32 %v1096_v33, %v438_v2  ;;  %v474_v35 = vadd.f32 %v473_v11, %v459_v4 }
 0x171   : > { %v475_v6 = vadd.f32 %v474_v35, %v460_v5 }
 0x173   : > { %v476_v7 = vrot.slane %v475_v6, 4 }
 0x175   : > { %v477_v8 = vadd.f32 %v476_v7, %v475_v6 }
 0x177   : > { %v478_v9 = vrot.slane %v477_v8, 2 }
 0x179   : > { %v479_v10 = vadd.f32 %v478_v9, %v477_v8 }
 0x17b   : > { %v480_v13 = vrot.slane %v479_v10, 1 }
 0x17d   : > { %v481_v12 = vadd.f32 %v480_v13, %v479_v10 }
 0x17f   : > { %v482_v16 = vmul.f32 0.0078125, %v481_v12 }
 0x181   : > { %702 = vmatmul.mubr.f32.vlgmr.msra.gmra.mrb[0].mxu0 %v482_v16 }
 0x254   : > { %v566_v33 = vpop.f32.mrb[0].mxu0 }
 0x255   : > { %v567_v17 = vadd.f32 %v566_v33, %v499_v19  ;;  %v703_v14 = vpop.f32.mrb[1].mxu0 }
 0x257   : > { %571 = vst.msk [vmem:[%s216_s23] sm:$0x1] %vm570_vm1, %v567_v17 }
 0x258   : > { %815 = shalt.err (!%p812_p3)
}
 0x259   : > { %s816_s11 = scalar_lea.hbm %s1151_s6, 16  ;;  %s820_s14 = scalar_lea.hbm %s1198_s5, 32 }
 0x25a   : > { %p817_p4 = scmp.ne.s32.totalorder %s1151_s6, %s816_s11  ;;  %p821_p9 = scmp.lt.u32.totalorder %s1151_s6, %s1198_s5 }
 0x25b   : > { %p822_p10 = scmp.lt.u32.totalorder %s820_s14, %s816_s11  ;;  %p824_p12 = scmp.lt.u32.totalorder %s816_s11, %s1151_s6 }
 0x25c   : > { %p818_p7 = pnand %p817_p4, %p938_p5 }
 0x25d   : > { %p823_p11 = por %p822_p10, %p821_p9 }
 0x25e   : > { %p819_p8 = pneg %p818_p7 }
 0x25f   : > { %p825_p13 = por %p824_p12, %p823_p11 }
 0x261   : > { %p826_p0 = pnand %p825_p13, %p819_p8 }
 0x263   : > { %829 = shalt.err (!%p826_p0)
}
 0x264   : > { %728 = dma.vmem_to_hbm [thread:$0]  (%p938_p5), %s1153_s25, 16, %s1151_s6, %s573_s7  }
 0x265 PF: > { %p734_p1 = scmp.ge.s32.totalorder %s864_s21, 2  ;;  %s597_s17 = sand.u32 1, %s852_s18  }
 0x266   : > { %s598_s23 = scalar_lea.sflag [#allocation3], %s597_s17 }
 0x267   : > { %p731_p2 = pnand %p734_p1, %p942_p6 }
 0x269   : > { %847 = dma.done.wait (!%p731_p2), %s598_s23, 16  }
 0x26a   : > { %849 = vsyncadd (!%p731_p2), %s598_s23, 4294967280  ;;  %p15_p3 = scmp.ge.s32.totalorder %s925_s24, 4   ;;  %s1201_s18 = smov %s856_s19 }
 0x26b   : > { %s1202_s19 = smov %s860_s20  ;;  %s1203_s20 = smov %s936_s27 }
 0x26c   : > { %s1204_s21 = smov %s925_s24  ;;  %17 = sbr.rel (!%p15_p3) target bundleno = 3 (0x3), region = 75 }
 0x273   :  { %602 = vsyncpa [#allocation3], 1 }
 0x274   :  { %604 = vsyncpa [#allocation3 + $0x1], 1 }

// kernel: specformer_forward.7
= control target key start
LH: loop header
LB: loop body
LE: loop exit
PB: predicated region body
PF: predicated region fallthrough
CT: control target
= control target key end

     0   :  { %s6572_s24 = smov 0   ;;  %s8376_s0 = inlined_call_operand.vmem [shape: f32[2,128,128], index: 0, kind: input, shape index: {}]   ;;  %s8377_s1 = inlined_call_operand.vmem [shape: f32[1,128], index: 1, kind: input, shape index: {}]   ;;  %s8378_s2 = inlined_call_operand.vmem [shape: f32[1,128], index: 2, kind: input, shape index: {}]   ;;  %s8379_s3 = inlined_call_operand.vmem [shape: f32[128,384], index: 3, kind: input, shape index: {}]   ;;  %s8380_s4 = inlined_call_operand.vmem [shape: f32[1,384], index: 4, kind: input, shape index: {}]   ;;  %s8381_s5 = inlined_call_operand.vmem [shape: f32[128,128], index: 5, kind: input, shape index: {}]   ;;  %s8382_s6 = inlined_call_operand.vmem [shape: f32[1,128], index: 6, kind: input, shape index: {}]   ;;  %s8383_s7 = inlined_call_operand.vmem [shape: f32[2,128,128], index: 7, kind: output, shape index: {}]  }
   0x1 LB: > { %s4276_s25 = sadd.s32 4294967295, %s6526_s24   ;;  %p4280_p0 = scmp.ge.s32.totalorder %s6526_s24, 1  ;;  %s6526_s24 = sphi %s6572_s24, %s17_s24  }
   0x2   : > { %p237_p1 = scmp.lt.s32.totalorder %s6526_s24, 3 }
   0x4   : > { %p238_p2 = pnand %p4280_p0, %p237_p1 }
   0x6   : > { %241 = sbr.rel (%p238_p2) target bundleno = 2501 (0x9c5), region = 48 }
   0xd   : > { %p269_p3 = scmp.lt.s32.totalorder %s4276_s25, 1  ;;  %v519_v16 = vld [vmem:[%s8379_s3 + $0x8] sm:$0xff]  ;;  %v522_v17 = vld [vmem:[%s8379_s3 + $0x20] sm:$0xff]  ;;  %v521_v20 = vld [vmem:[%s8379_s3 + $0x18] sm:$0xff]  ;;  %vm912_vm0 = vcmask 261120   ;;  %s6529_s14 = smov 96  }
   0xe   : > { %v518_v18 = vld [vmem:[%s8379_s3] sm:$0xff]  ;;  %v5484_v19 = vpack.c.bf16 %v522_v17, %v519_v16  ;;  %v525_v21 = vld [vmem:[%s8379_s3 + $0x38] sm:$0xff]  ;;  %v528_v22 = vld [vmem:[%s8379_s3 + $0x50] sm:$0xff]  ;;  %s6530_s15 = smov 64   ;;  %s6531_s27 = smov 32  }
   0xf   : > { %s8441_s25 = smov (!%p269_p3, %s4276_s25), 1  ;;  %v5486_v23 = vpack.c.bf16 %v521_v20, %v518_v18  ;;  %v5488_v24 = vpack.c.bf16 %v528_v22, %v525_v21  ;;  %v520_v25 = vld [vmem:[%s8379_s3 + $0x10] sm:$0xff]  ;;  %v523_v26 = vld [vmem:[%s8379_s3 + $0x28] sm:$0xff]  ;;  %v534_v31 = vld [vmem:[%s8379_s3 + $0x80] sm:$0xff] }
  0x10   : > { %s4482_s26 = sshll.u32 %s8441_s25, 7  ;;  %v524_v27 = vld [vmem:[%s8379_s3 + $0x30] sm:$0xff]  ;;  %5485 = vmatprep.subr.bf16.mxu0 %v5484_v19  ;;  %v5516_v28 = vpack.c.bf16 %v523_v26, %v520_v25  ;;  %v527_v29 = vld [vmem:[%s8379_s3 + $0x48] sm:$0xff]  ;;  %v526_v33 = vld [vmem:[%s8379_s3 + $0x40] sm:$0xff] }
  0x11   : > { %s6588_s29 = scalar_lea.vmem %s8376_s0, %s4482_s26  ;;  %v531_v30 = vld [vmem:[%s8379_s3 + $0x68] sm:$0xff]  ;;  %5487 = vmatpush1.bf16.msra.mxu0 %v5486_v23  ;;  %v5490_v32 = vpack.c.bf16 %v527_v29, %v524_v27  ;;  %v529_v34 = vld [vmem:[%s8379_s3 + $0x58] sm:$0xff]  ;;  %v530_v37 = vld [vmem:[%s8379_s3 + $0x60] sm:$0xff] }
  0x12   : > { %v6591_v0 = vld [vmem:[%s6588_s29] sm:$0xff]  ;;  %v6594_v1 = vld [vmem:[%s6588_s29 + $0x10] sm:$0xff]  ;;  %v6599_v2 = vld [vmem:[%s6588_s29 + $0x8] sm:$0xff]  ;;  %5489 = vmatprep.subr.bf16.mxu0 %v5488_v24  ;;  %5517 = vmatprep.subr.bf16.mxu1 %v5516_v28  ;;  %v5492_v35 = vpack.c.bf16 %v534_v31, %v531_v30  ;;  %v5520_v36 = vpack.c.bf16 %v529_v34, %v526_v33 }
  0x13   : > { %297 = vadd.xlane.f32.xlu0 %v6591_v0  ;;  %301 = vadd.xlane.f32.xlu1 %v6594_v1  ;;  %v6602_v3 = vld [vmem:[%s6588_s29 + $0x18] sm:$0xff]  ;;  %v6607_v4 = vld [vmem:[%s6588_s29 + $0x20] sm:$0xff]  ;;  %v6610_v5 = vld [vmem:[%s6588_s29 + $0x28] sm:$0xff] }
  0x14   : > { %v6615_v6 = vld [vmem:[%s6588_s29 + $0x30] sm:$0xff]  ;;  %v6618_v7 = vld [vmem:[%s6588_s29 + $0x38] sm:$0xff]  ;;  %v6623_v8 = vld [vmem:[%s6588_s29 + $0x40] sm:$0xff]  ;;  %5519 = vmatpush3.bf16.msra.mxu1 %v5516_v28 }
  0x15   : > { %v6626_v9 = vld [vmem:[%s6588_s29 + $0x48] sm:$0xff]  ;;  %v6631_v10 = vld [vmem:[%s6588_s29 + $0x50] sm:$0xff]  ;;  %v6634_v11 = vld [vmem:[%s6588_s29 + $0x58] sm:$0xff]  ;;  %5521 = vmatprep.subr.bf16.mxu1 %v5520_v36  ;;  %5491 = vmatpush1.bf16.msra.mxu0 %v5490_v32 }
  0x16   : > { %v6639_v12 = vld [vmem:[%s6588_s29 + $0x60] sm:$0xff]  ;;  %v6642_v13 = vld [vmem:[%s6588_s29 + $0x68] sm:$0xff]  ;;  %v6647_v14 = vld [vmem:[%s6588_s29 + $0x70] sm:$0xff]  ;;  %5493 = vmatprep.subr.bf16.mxu0 %v5492_v35 }
  0x17   : > { %299 = vadd.xlane.f32.xlu0 %v6599_v2  ;;  %303 = vadd.xlane.f32.xlu1 %v6602_v3  ;;  %v6650_v15 = vld [vmem:[%s6588_s29 + $0x78] sm:$0xff]  ;;  %v540_v23 = vld [vmem:[%s8379_s3 + $0xb0] sm:$0xff]  ;;  %v539_v28 = vld [vmem:[%s8379_s3 + $0xa8] sm:$0xff] }
  0x18   : > { %v533_v38 = vld [vmem:[%s8379_s3 + $0x78] sm:$0xff]  ;;  %5523 = vmatpush3.bf16.msra.mxu1 %v5520_v36  ;;  %v532_v24 = vld [vmem:[%s8379_s3 + $0x70] sm:$0xff]  ;;  %vm6978_vm1 = vmpackc.low %vm912_vm0, %vm912_vm0 }
  0x19   : > { %v5494_v39 = vpack.c.bf16 %v533_v38, %v530_v37 }
  0x1b   : > { %305 = vadd.xlane.f32.xlu0 %v6607_v4  ;;  %307 = vadd.xlane.f32.xlu1 %v6610_v5 }
  0x1c   : > { %5495 = vmatpush1.bf16.msra.mxu0 %v5494_v39  ;;  %v543_v39 = vld [vmem:[%s8379_s3 + $0xc8] sm:$0xff] }
  0x1f   : > { %309 = vadd.xlane.f32.xlu0 %v6615_v6  ;;  %311 = vadd.xlane.f32.xlu1 %v6618_v7 }
  0x23   : > { %313 = vadd.xlane.f32.xlu0 %v6623_v8  ;;  %315 = vadd.xlane.f32.xlu1 %v6626_v9 }
  0x27   : > { %317 = vadd.xlane.f32.xlu0 %v6631_v10  ;;  %319 = vadd.xlane.f32.xlu1 %v6634_v11 }
  0x2b   : > { %321 = vadd.xlane.f32.xlu0 %v6639_v12  ;;  %323 = vadd.xlane.f32.xlu1 %v6642_v13 }
  0x2f   : > { %325 = vadd.xlane.f32.xlu0 %v6647_v14  ;;  %327 = vadd.xlane.f32.xlu1 %v6650_v15 }
  0xa0   : > { %v298_v40 = vpop.xlane.xlu0 %297  ;;  %v302_v41 = vpop.xlane.xlu1 %301 }
  0xa1   : > { %v330_v42 = vmul.f32 0.0078125, %v298_v40  ;;  %v332_v43 = vmul.f32 0.0078125, %v302_v41  ;;  %v546_v40 = vld [vmem:[%s8379_s3 + $0xe0] sm:$0xff] }
  0xa3   : > { %v6703_v44 = vsub.f32 %v6591_v0, %v330_v42  ;;  %v6706_v45 = vsub.f32 %v6594_v1, %v332_v43  ;;  %v541_v43 = vld [vmem:[%s8379_s3 + $0xb8] sm:$0xff] }
  0xa4   : > { %v300_v46 = vpop.xlane.xlu0 %299  ;;  %v304_v47 = vpop.xlane.xlu1 %303 }
  0xa5   : > { %v331_v48 = vmul.f32 0.0078125, %v300_v46  ;;  %v362_v49 = vmul.f32 %v6703_v44, %v6703_v44  ;;  %v333_v50 = vmul.f32 0.0078125, %v304_v47  ;;  %v364_v51 = vmul.f32 %v6706_v45, %v6706_v45  ;;  %v542_v46 = vld [vmem:[%s8379_s3 + $0xc0] sm:$0xff]  ;;  %v545_v47 = vld [vmem:[%s8379_s3 + $0xd8] sm:$0xff] }
  0xa7   : > { %378 = vadd.xlane.f32.xlu0 %v362_v49  ;;  %v6713_v52 = vsub.f32 %v6599_v2, %v331_v48  ;;  %v6716_v53 = vsub.f32 %v6602_v3, %v333_v50  ;;  %v5500_v48 = vpack.c.bf16 %v546_v40, %v543_v39  ;;  %v5502_v50 = vpack.c.bf16 %v545_v47, %v542_v46  ;;  %v562_v39 = vld [vmem:[%s8379_s3 + $0x160] sm:$0xff]  ;;  %v565_v40 = vld [vmem:[%s8379_s3 + $0x178] sm:$0xff] }
  0xa8   : > { %v306_v54 = vpop.xlane.xlu0 %305  ;;  %v308_v55 = vpop.xlane.xlu1 %307 }
  0xa9   : > { %v334_v56 = vmul.f32 0.0078125, %v306_v54  ;;  %v363_v57 = vmul.f32 %v6713_v52, %v6713_v52  ;;  %v335_v58 = vmul.f32 0.0078125, %v308_v55  ;;  %v365_v59 = vmul.f32 %v6716_v53, %v6716_v53 }
  0xab   : > { %382 = vadd.xlane.f32.xlu0 %v364_v51  ;;  %380 = vadd.xlane.f32.xlu1 %v363_v57  ;;  %v6723_v60 = vsub.f32 %v6607_v4, %v334_v56  ;;  %v6726_v61 = vsub.f32 %v6610_v5, %v335_v58  ;;  %v549_v58 = vld [vmem:[%s8379_s3 + $0xf8] sm:$0xff] }
  0xac   : > { %v310_v62 = vpop.xlane.xlu0 %309  ;;  %v312_v63 = vpop.xlane.xlu1 %311 }
  0xad   : > { %v336_v0 = vmul.f32 0.0078125, %v310_v62  ;;  %v366_v1 = vmul.f32 %v6723_v60, %v6723_v60  ;;  %v337_v2 = vmul.f32 0.0078125, %v312_v63  ;;  %v367_v3 = vmul.f32 %v6726_v61, %v6726_v61 }
  0xaf   : > { %384 = vadd.xlane.f32.xlu1 %v365_v59  ;;  %386 = vadd.xlane.f32.xlu0 %v366_v1  ;;  %v6733_v16 = vsub.f32 %v6615_v6, %v336_v0  ;;  %v6736_v4 = vsub.f32 %v6618_v7, %v337_v2  ;;  %v537_v7 = vld [vmem:[%s8379_s3 + $0x98] sm:$0xff]  ;;  %v552_v59 = vld [vmem:[%s8379_s3 + $0x110] sm:$0xff]  ;;  %v547_v0 = vld [vmem:[%s8379_s3 + $0xe8] sm:$0xff] }
  0xb0   : > { %v314_v5 = vpop.xlane.xlu0 %313  ;;  %v316_v17 = vpop.xlane.xlu1 %315  ;;  %v5496_v27 = vpack.c.bf16 %v540_v23, %v537_v7  ;;  %v548_v1 = vld [vmem:[%s8379_s3 + $0xf0] sm:$0xff]  ;;  %v551_v2 = vld [vmem:[%s8379_s3 + $0x108] sm:$0xff]  ;;  %v558_v7 = vld [vmem:[%s8379_s3 + $0x140] sm:$0xff] }
  0xb1   : > { %v338_v18 = vmul.f32 0.0078125, %v314_v5  ;;  %v368_v19 = vmul.f32 %v6733_v16, %v6733_v16  ;;  %v339_v20 = vmul.f32 0.0078125, %v316_v17  ;;  %v369_v21 = vmul.f32 %v6736_v4, %v6736_v4  ;;  %v550_v23 = vld [vmem:[%s8379_s3 + $0x100] sm:$0xff] }
  0xb2   : > { %5497 = vmatprep.subr.bf16.mxu0 %v5496_v27  ;;  %v5506_v17 = vpack.c.bf16 %v551_v2, %v548_v1 }
  0xb3   : > { %388 = vadd.xlane.f32.xlu1 %v367_v3  ;;  %390 = vadd.xlane.f32.xlu0 %v368_v19  ;;  %v6743_v22 = vsub.f32 %v6623_v8, %v338_v18  ;;  %v6746_v6 = vsub.f32 %v6626_v9, %v339_v20  ;;  %v535_v8 = vld [vmem:[%s8379_s3 + $0x88] sm:$0xff]  ;;  %v536_v9 = vld [vmem:[%s8379_s3 + $0x90] sm:$0xff]  ;;  %v5504_v3 = vpack.c.bf16 %v552_v59, %v549_v58 }
  0xb4   : > { %v318_v25 = vpop.xlane.xlu0 %317  ;;  %v320_v26 = vpop.xlane.xlu1 %319  ;;  %v5524_v32 = vpack.c.bf16 %v535_v8, %v532_v24  ;;  %v5498_v33 = vpack.c.bf16 %v539_v28, %v536_v9  ;;  %v553_v24 = vld [vmem:[%s8379_s3 + $0x118] sm:$0xff] }
  0xb5   : > { %v340_v29 = vmul.f32 0.0078125, %v318_v25  ;;  %v370_v30 = vmul.f32 %v6743_v22, %v6743_v22  ;;  %v341_v31 = vmul.f32 0.0078125, %v320_v26  ;;  %v371_v34 = vmul.f32 %v6746_v6, %v6746_v6  ;;  %v554_v25 = vld [vmem:[%s8379_s3 + $0x120] sm:$0xff]  ;;  %v557_v26 = vld [vmem:[%s8379_s3 + $0x138] sm:$0xff] }
  0xb6   : > { %5525 = vmatprep.subr.bf16.mxu1 %v5524_v32  ;;  %5499 = vmatpush1.bf16.msra.mxu0 %v5498_v33  ;;  %v5536_v27 = vpack.c.bf16 %v553_v24, %v550_v23  ;;  %v5510_v8 = vpack.c.bf16 %v557_v26, %v554_v25  ;;  %v561_v28 = vld [vmem:[%s8379_s3 + $0x158] sm:$0xff]  ;;  %v560_v33 = vld [vmem:[%s8379_s3 + $0x150] sm:$0xff] }
  0xb7   : > { %392 = vadd.xlane.f32.xlu1 %v369_v21  ;;  %394 = vadd.xlane.f32.xlu0 %v370_v30  ;;  %v6771_v35 = vsub.f32 %v6631_v10, %v340_v29  ;;  %v6774_v36 = vsub.f32 %v6634_v11, %v341_v31  ;;  %v538_v10 = vld [vmem:[%s8379_s3 + $0xa0] sm:$0xff]  ;;  %v555_v21 = vld [vmem:[%s8379_s3 + $0x128] sm:$0xff]  ;;  %v564_v29 = vld [vmem:[%s8379_s3 + $0x170] sm:$0xff] }
  0xb8   : > { %v322_v37 = vpop.xlane.xlu0 %321  ;;  %v324_v38 = vpop.xlane.xlu1 %323  ;;  %5527 = vmatpush3.bf16.msra.mxu1 %v5524_v32  ;;  %v5528_v49 = vpack.c.bf16 %v541_v43, %v538_v10  ;;  %5501 = vmatprep.subr.bf16.mxu0 %v5500_v48  ;;  %v556_v30 = vld [vmem:[%s8379_s3 + $0x130] sm:$0xff]  ;;  %v5512_v31 = vpack.c.bf16 %v564_v29, %v561_v28  ;;  %v559_v32 = vld [vmem:[%s8379_s3 + $0x148] sm:$0xff]  ;;  %v5544_v10 = vpack.c.bf16 %v565_v40, %v562_v39 }
  0xb9   : > { %v342_v41 = vmul.f32 0.0078125, %v322_v37  ;;  %v372_v11 = vmul.f32 %v6771_v35, %v6771_v35  ;;  %v343_v42 = vmul.f32 0.0078125, %v324_v38  ;;  %v373_v51 = vmul.f32 %v6774_v36, %v6774_v36 }
  0xba   : > { %5529 = vmatprep.subr.bf16.mxu1 %v5528_v49  ;;  %5503 = vmatpush1.bf16.msra.mxu0 %v5502_v50  ;;  %v5540_v37 = vpack.c.bf16 %v559_v32, %v556_v30 }
  0xbb   : > { %396 = vadd.xlane.f32.xlu1 %v371_v34  ;;  %398 = vadd.xlane.f32.xlu0 %v372_v11  ;;  %v6799_v54 = vsub.f32 %v6639_v12, %v342_v41  ;;  %v6802_v55 = vsub.f32 %v6642_v13, %v343_v42  ;;  %v544_v12 = vld [vmem:[%s8379_s3 + $0xd0] sm:$0xff]  ;;  %v563_v34 = vld [vmem:[%s8379_s3 + $0x168] sm:$0xff]  ;;  %v6528_v41 = vmov 0.0  }
  0xbc   : > { %v326_v56 = vpop.xlane.xlu0 %325  ;;  %v328_v57 = vpop.xlane.xlu1 %327  ;;  %5531 = vmatpush3.bf16.msra.mxu1 %v5528_v49  ;;  %v5532_v5 = vpack.c.bf16 %v547_v0, %v544_v12  ;;  %5505 = vmatprep.subr.bf16.mxu0 %v5504_v3  ;;  %v5514_v38 = vpack.c.bf16 %v563_v34, %v560_v33 }
  0xbd   : > { %v344_v62 = vmul.f32 0.0078125, %v326_v56  ;;  %v374_v13 = vmul.f32 %v6799_v54, %v6799_v54  ;;  %v345_v63 = vmul.f32 0.0078125, %v328_v57  ;;  %v375_v18 = vmul.f32 %v6802_v55, %v6802_v55  ;;  %647 = vmatprep.mubr.f32.mxu0 %v6528_v41 }
  0xbe   : > { %5533 = vmatprep.subr.bf16.mxu1 %v5532_v5  ;;  %5507 = vmatpush1.bf16.msra.mxu0 %v5506_v17  ;;  %v6882_v17 = vld [vmem:[%s8377_s1] ss:$0 sm:$0xff] }
  0xbf   : > { %400 = vadd.xlane.f32.xlu1 %v373_v51  ;;  %402 = vadd.xlane.f32.xlu0 %v374_v13  ;;  %v6827_v19 = vsub.f32 %v6647_v14, %v344_v62  ;;  %v6830_v20 = vsub.f32 %v6650_v15, %v345_v63  ;;  %v5508_v15 = vpack.c.bf16 %v558_v7, %v555_v21 }
  0xc0   : > { %5535 = vmatpush3.bf16.msra.mxu1 %v5532_v5 }
  0xc1   : > { %v376_v14 = vmul.f32 %v6827_v19, %v6827_v19  ;;  %v377_v9 = vmul.f32 %v6830_v20, %v6830_v20  ;;  %5509 = vmatprep.subr.bf16.mxu0 %v5508_v15  ;;  %5537 = vmatprep.subr.bf16.mxu1 %v5536_v27  ;;  %v6888_v15 = vld [vmem:[%s8378_s2] ss:$0 sm:$0xff] }
  0xc2   : > { %5511 = vmatpush1.bf16.msra.mxu0 %v5510_v8 }
  0xc3   : > { %404 = vadd.xlane.f32.xlu1 %v375_v18  ;;  %406 = vadd.xlane.f32.xlu0 %v376_v14 }
  0xc4   : > { %5539 = vmatpush3.bf16.msra.mxu1 %v5536_v27  ;;  %5513 = vmatprep.subr.bf16.mxu0 %v5512_v31 }
  0xc5   : > { %5541 = vmatprep.subr.bf16.mxu1 %v5540_v37 }
  0xc6   : > { %5515 = vmatpush1.bf16.msra.mxu0 %v5514_v38 }
  0xc7   : > { %408 = vadd.xlane.f32.xlu1 %v377_v9 }
  0xc8   : > { %5543 = vmatpush3.bf16.msra.mxu1 %v5540_v37 }
  0xc9   : > { %5545 = vmatprep.subr.bf16.mxu1 %v5544_v10 }
  0xcc   : > { %5547 = vmatpush3.bf16.msra.mxu1 %v5544_v10 }
 0x134   : > { %v379_v11 = vpop.xlane.xlu0 %378 }
 0x135   : > { %v410_v42 = vmul.f32 0.0078125, %v379_v11 }
 0x137   : > { %v426_v43 = vadd.f32 1e-05, %v410_v42 }
 0x138   : > { %v381_v46 = vpop.xlane.xlu1 %380  ;;  %v383_v47 = vpop.xlane.xlu0 %382 }
 0x139   : > { %6216 = vrsqrt.f32 %v426_v43  ;;  %v411_v48 = vmul.f32 0.0078125, %v381_v46  ;;  %v412_v49 = vmul.f32 0.0078125, %v383_v47 }
 0x13b   : > { %v427_v50 = vadd.f32 1e-05, %v411_v48  ;;  %v428_v51 = vadd.f32 1e-05, %v412_v49 }
 0x13c   : > { %v385_v56 = vpop.xlane.xlu1 %384  ;;  %v387_v57 = vpop.xlane.xlu0 %386 }
 0x13d   : > { %6218 = vrsqrt.f32 %v427_v50  ;;  %v413_v58 = vmul.f32 0.0078125, %v385_v56  ;;  %v414_v59 = vmul.f32 0.0078125, %v387_v57 }
 0x13e   : > { %6220 = vrsqrt.f32 %v428_v51 }
 0x13f   : > { %v429_v12 = vadd.f32 1e-05, %v413_v58  ;;  %v430_v62 = vadd.f32 1e-05, %v414_v59 }
 0x140   : > { %v389_v13 = vpop.xlane.xlu1 %388  ;;  %v391_v63 = vpop.xlane.xlu0 %390 }
 0x141   : > { %6222 = vrsqrt.f32 %v429_v12  ;;  %v415_v0 = vmul.f32 0.0078125, %v389_v13  ;;  %v416_v1 = vmul.f32 0.0078125, %v391_v63 }
 0x142   : > { %6224 = vrsqrt.f32 %v430_v62 }
 0x143   : > { %v6217_v2 = vpop.eup %6216  ;;  %v431_v3 = vadd.f32 1e-05, %v415_v0  ;;  %v432_v5 = vadd.f32 1e-05, %v416_v1 }
 0x144   : > { %v393_v18 = vpop.xlane.xlu1 %392  ;;  %v395_v21 = vpop.xlane.xlu0 %394  ;;  %v458_v7 = vmul.f32 %v6217_v2, %v6703_v44 }
 0x145   : > { %6226 = vrsqrt.f32 %v431_v3  ;;  %v417_v23 = vmul.f32 0.0078125, %v393_v18  ;;  %v418_v14 = vmul.f32 0.0078125, %v395_v21 }
 0x146   : > { %6228 = vrsqrt.f32 %v432_v5  ;;  %v480_v24 = vmul.f32 %v6882_v17, %v458_v7 }
 0x147   : > { %v6219_v25 = vpop.eup %6218  ;;  %v433_v26 = vadd.f32 1e-05, %v417_v23  ;;  %v434_v27 = vadd.f32 1e-05, %v418_v14 }
 0x148   : > { %v6221_v8 = vpop.eup %6220  ;;  %v397_v9 = vpop.xlane.xlu1 %396  ;;  %v502_v29 = vadd.f32 %v6888_v15, %v480_v24  ;;  %v459_v44 = vmul.f32 %v6219_v25, %v6713_v52 }
 0x149   : > { %v399_v28 = vpop.xlane.xlu0 %398  ;;  %6230 = vrsqrt.f32 %v433_v26  ;;  %v419_v30 = vmul.f32 0.0078125, %v397_v9  ;;  %v460_v32 = vmul.f32 %v6221_v8, %v6706_v45 }
 0x14a   : > { %v420_v31 = vmul.f32 0.0078125, %v399_v28  ;;  %6232 = vrsqrt.f32 %v434_v27  ;;  %648 = vmatmul.mubr.f32.vlgmr.msra.gmra.mrb[0].mxu0 %v502_v29  ;;  %4884 = vmatprep.mubr.f32.mxu1 %v502_v29  ;;  %v481_v33 = vmul.f32 %v6882_v17, %v459_v44 }
 0x14b   : > { %v6223_v34 = vpop.eup %6222  ;;  %v435_v37 = vadd.f32 1e-05, %v419_v30  ;;  %653 = vmatprep.mubr.f32.mxu0 %v6528_v41  ;;  %v482_v39 = vmul.f32 %v6882_v17, %v460_v32 }
 0x14c   : > { %v436_v38 = vadd.f32 1e-05, %v420_v31  ;;  %v6225_v40 = vpop.eup %6224  ;;  %v401_v10 = vpop.xlane.xlu1 %400  ;;  %v503_v11 = vadd.f32 %v6888_v15, %v481_v33  ;;  %v461_v42 = vmul.f32 %v6223_v34, %v6716_v53 }
 0x14d   : > { %v403_v52 = vpop.xlane.xlu0 %402  ;;  %6234 = vrsqrt.f32 %v435_v37  ;;  %v421_v45 = vmul.f32 0.0078125, %v401_v10  ;;  %v504_v46 = vadd.f32 %v6888_v15, %v482_v39  ;;  %v462_v48 = vmul.f32 %v6225_v40, %v6723_v60 }
 0x14e   : > { %v422_v43 = vmul.f32 0.0078125, %v403_v52  ;;  %6236 = vrsqrt.f32 %v436_v38  ;;  %654 = vmatmul.mubr.f32.gmra.mrb[2].mxu0 %v503_v11  ;;  %4885 = vmatmul.mubr.f32.vlgmr.msra.gmra.mrb[0].mxu1 %v503_v11  ;;  %v483_v47 = vmul.f32 %v6882_v17, %v461_v42 }
 0x14f   : > { %v6227_v49 = vpop.eup %6226  ;;  %v437_v50 = vadd.f32 1e-05, %v421_v45  ;;  %4887 = vmatprep.mubr.f32.mxu1 %v504_v46  ;;  %659 = vmatprep.mubr.f32.mxu0 %v6528_v41  ;;  %v484_v59 = vmul.f32 %v6882_v17, %v462_v48 }
 0x150   : > { %v438_v51 = vadd.f32 1e-05, %v422_v43  ;;  %v6229_v56 = vpop.eup %6228  ;;  %v405_v53 = vpop.xlane.xlu1 %404  ;;  %v505_v58 = vadd.f32 %v6888_v15, %v483_v47  ;;  %v463_v12 = vmul.f32 %v6227_v49, %v6726_v61  ;;  %v566_v47 = vld [vmem:[%s8380_s4] sm:$0x7] }
 0x151   : > { %v407_v57 = vpop.xlane.xlu0 %406  ;;  %6238 = vrsqrt.f32 %v437_v50  ;;  %v423_v62 = vmul.f32 0.0078125, %v405_v53  ;;  %v464_v60 = vmul.f32 %v6229_v56, %v6733_v16  ;;  %v506_v63 = vadd.f32 %v6888_v15, %v484_v59 }
 0x152   : > { %v424_v13 = vmul.f32 0.0078125, %v407_v57  ;;  %6240 = vrsqrt.f32 %v438_v51  ;;  %660 = vmatmul.mubr.f32.gmra.mrb[4].mxu0 %v504_v46  ;;  %4888 = vmatmul.mubr.f32.gmra.mrb[2].mxu1 %v505_v58  ;;  %v485_v0 = vmul.f32 %v6882_v17, %v463_v12 }
 0x153   : > { %v6231_v1 = vpop.eup %6230  ;;  %v439_v2 = vadd.f32 1e-05, %v423_v62  ;;  %665 = vmatprep.mubr.f32.mxu0 %v6528_v41  ;;  %v486_v5 = vmul.f32 %v6882_v17, %v464_v60  ;;  %4890 = vmatprep.mubr.f32.mxu1 %v506_v63 }
 0x154   : > { %v440_v3 = vadd.f32 1e-05, %v424_v13  ;;  %v6233_v61 = vpop.eup %6232  ;;  %v409_v18 = vpop.xlane.xlu1 %408  ;;  %v507_v21 = vadd.f32 %v6888_v15, %v485_v0  ;;  %v465_v16 = vmul.f32 %v6231_v1, %v6736_v4 }
 0x155   : > { %6242 = vrsqrt.f32 %v439_v2  ;;  %v425_v7 = vmul.f32 0.0078125, %v409_v18  ;;  %v508_v23 = vadd.f32 %v6888_v15, %v486_v5  ;;  %v466_v14 = vmul.f32 %v6233_v61, %v6743_v22 }
 0x156   : > { %6244 = vrsqrt.f32 %v440_v3  ;;  %666 = vmatmul.mubr.f32.gmra.mrb[6].mxu0 %v505_v58  ;;  %4891 = vmatmul.mubr.f32.gmra.mrb[4].mxu1 %v507_v21  ;;  %v487_v24 = vmul.f32 %v6882_v17, %v465_v16 }
 0x157   : > { %v6235_v25 = vpop.eup %6234  ;;  %v441_v26 = vadd.f32 1e-05, %v425_v7  ;;  %4893 = vmatprep.mubr.f32.mxu1 %v508_v23  ;;  %671 = vmatprep.mubr.f32.mxu0 %v6528_v41  ;;  %v488_v27 = vmul.f32 %v6882_v17, %v466_v14 }
 0x158   : > { %v6237_v8 = vpop.eup %6236  ;;  %v509_v4 = vadd.f32 %v6888_v15, %v487_v24  ;;  %v467_v9 = vmul.f32 %v6235_v25, %v6746_v6 }
 0x159   : > { %6246 = vrsqrt.f32 %v441_v26  ;;  %v510_v22 = vadd.f32 %v6888_v15, %v488_v27  ;;  %v468_v28 = vmul.f32 %v6237_v8, %v6771_v35 }
 0x15a   : > { %672 = vmatmul.mubr.f32.gmra.mrb[8].mxu0 %v506_v63  ;;  %4894 = vmatmul.mubr.f32.gmra.mrb[6].mxu1 %v509_v4  ;;  %v489_v29 = vmul.f32 %v6882_v17, %v467_v9 }
 0x15b   : > { %v6239_v44 = vpop.eup %6238  ;;  %4896 = vmatprep.mubr.f32.mxu1 %v510_v22  ;;  %677 = vmatprep.mubr.f32.mxu0 %v6528_v41  ;;  %v490_v30 = vmul.f32 %v6882_v17, %v468_v28 }
 0x15c   : > { %v6241_v31 = vpop.eup %6240  ;;  %v511_v32 = vadd.f32 %v6888_v15, %v489_v29  ;;  %v469_v6 = vmul.f32 %v6239_v44, %v6774_v36 }
 0x15d   : > { %v512_v33 = vadd.f32 %v6888_v15, %v490_v30  ;;  %v470_v34 = vmul.f32 %v6241_v31, %v6799_v54 }
 0x15e   : > { %678 = vmatmul.mubr.f32.gmra.mrb[10].mxu0 %v507_v21  ;;  %4897 = vmatmul.mubr.f32.gmra.mrb[8].mxu1 %v511_v32  ;;  %v491_v35 = vmul.f32 %v6882_v17, %v469_v6 }
 0x15f   : > { %v6243_v37 = vpop.eup %6242  ;;  %4899 = vmatprep.mubr.f32.mxu1 %v512_v33  ;;  %683 = vmatprep.mubr.f32.mxu0 %v6528_v41  ;;  %v492_v38 = vmul.f32 %v6882_v17, %v470_v34 }
 0x160   : > { %v6245_v39 = vpop.eup %6244  ;;  %v513_v40 = vadd.f32 %v6888_v15, %v491_v35  ;;  %v471_v10 = vmul.f32 %v6243_v37, %v6802_v55 }
 0x161   : > { %v514_v36 = vadd.f32 %v6888_v15, %v492_v38  ;;  %v472_v52 = vmul.f32 %v6245_v39, %v6827_v19 }
 0x162   : > { %684 = vmatmul.mubr.f32.gmra.mrb[12].mxu0 %v508_v23  ;;  %4900 = vmatmul.mubr.f32.gmra.mrb[10].mxu1 %v513_v40  ;;  %v493_v54 = vmul.f32 %v6882_v17, %v471_v10 }
 0x163   : > { %v6247_v11 = vpop.eup %6246  ;;  %4902 = vmatprep.mubr.f32.mxu1 %v514_v36  ;;  %689 = vmatprep.mubr.f32.mxu0 %v6528_v41  ;;  %v494_v42 = vmul.f32 %v6882_v17, %v472_v52 }
 0x164   : > { %v515_v45 = vadd.f32 %v6888_v15, %v493_v54  ;;  %v473_v43 = vmul.f32 %v6247_v11, %v6830_v20  ;;  %v568_v20 = vlaneseq }
 0x165   : > { %v516_v55 = vadd.f32 %v6888_v15, %v494_v42 }
 0x166   : > { %690 = vmatmul.mubr.f32.gmra.mrb[14].mxu0 %v509_v4  ;;  %4903 = vmatmul.mubr.f32.gmra.mrb[12].mxu1 %v515_v45  ;;  %v495_v19 = vmul.f32 %v6882_v17, %v473_v43  ;;  %v569_v17 = vshrl.u32 %v568_v20, 7 }
 0x167   : > { %4905 = vmatprep.mubr.f32.mxu1 %v516_v55  ;;  %695 = vmatprep.mubr.f32.mxu0 %v6528_v41 }
 0x168   : > { %v517_v46 = vadd.f32 %v6888_v15, %v495_v19  ;;  %v570_v15 = vsub.s32 0, %v569_v17  ;;  %v578_v49 = vsub.s32 2, %v569_v17  ;;  %v574_v50 = vsub.s32 1, %v569_v17 }
 0x16a   : > { %696 = vmatmul.mubr.f32.gmra.mrb[16].mxu0 %v510_v22  ;;  %4906 = vmatmul.mubr.f32.gmra.mrb[14].mxu1 %v517_v46  ;;  %v6955_v48 = vrot.slane %v566_v47, %v570_v15  ;;  %v6960_v57 = vrot.slane %v566_v47, %v578_v49 }
 0x16b   : > { %701 = vmatprep.mubr.f32.mxu0 %v6528_v41 }
 0x16e   : > { %702 = vmatmul.mubr.f32.gmra.mrb[18].mxu0 %v511_v32 }
 0x16f   : > { %707 = vmatprep.mubr.f32.mxu0 %v6528_v41 }
 0x172   : > { %708 = vmatmul.mubr.f32.gmra.mrb[20].mxu0 %v512_v33 }
 0x173   : > { %713 = vmatprep.mubr.f32.mxu0 %v6528_v41 }
 0x176   : > { %714 = vmatmul.mubr.f32.gmra.mrb[22].mxu0 %v513_v40 }
 0x177   : > { %719 = vmatprep.mubr.f32.mxu0 %v6528_v41 }
 0x17a   : > { %720 = vmatmul.mubr.f32.gmra.mrb[24].mxu0 %v514_v36 }
 0x17b   : > { %725 = vmatprep.mubr.f32.mxu0 %v6528_v41 }
 0x17e   : > { %726 = vmatmul.mubr.f32.gmra.mrb[26].mxu0 %v515_v45 }
 0x17f   : > { %731 = vmatprep.mubr.f32.mxu0 %v6528_v41 }
 0x182   : > { %732 = vmatmul.mubr.f32.gmra.mrb[28].mxu0 %v516_v55 }
 0x183   : > { %737 = vmatprep.mubr.f32.mxu0 %v6528_v41  ;;  %v6962_v41 = vrot.slane %v566_v47, %v574_v50 }
 0x186   : > { %738 = vmatmul.mubr.f32.gmra.mrb[30].mxu0 %v517_v46 }
 0x21d   : > { %v649_v51 = vpop.f32.mrb[0].mxu0 }
 0x21e   : > { %v6958_v56 = vadd.f32 %v649_v51, %v6955_v48  ;;  %v651_v53 = vpop.f32.mrb[1].mxu0 }
 0x21f   : > { %v652_v60 = vadd.f32 %v651_v53, %v6962_v41 }
 0x220   : > { %4940 = vmatprep.mubr.msk.f32.mxu0 %vm912_vm0, %v6958_v56 }
 0x221   : > { %v6966_v58 = vpop.f32.mrb[2].mxu0  ;;  %v4886_v59 = vpop.f32.mrb[0].mxu1 }
 0x222   : > { %v816_v12 = vadd.f32 %v4886_v59, %v6960_v57  ;;  %v657_v62 = vpop.f32.mrb[3].mxu0  ;;  %v810_v13 = vpop.f32.mrb[1].mxu1 }
 0x223   : > { %v658_v63 = vadd.f32 %v657_v62, %v6962_v41  ;;  %v811_v0 = vadd.f32 %v810_v13, %v6960_v57 }
 0x225   : > { %v6972_v1 = vpop.f32.mrb[4].mxu0  ;;  %v4889_v2 = vpop.f32.mrb[2].mxu1  ;;  %v5596_v3 = vpack.c.bf16 %v816_v12, %v811_v0  ;;  %v6974_v5 = vpack.i.bf16 %v658_v63, %v652_v60  ;;  %v5548_v61 = vpack.c.bf16 %v658_v63, %v652_v60  ;;  %v6983_v23 = vpack.i.bf16 %v816_v12, %v811_v0 }
 0x226   : > { %v826_v21 = vadd.f32 %v4889_v2, %v6960_v57  ;;  %v663_v16 = vpop.f32.mrb[5].mxu0  ;;  %v820_v7 = vpop.f32.mrb[3].mxu1 }
 0x227   : > { %v821_v14 = vadd.f32 %v820_v7, %v6960_v57  ;;  %5597 = vmatprep.subr.bf16.mxu1 %v5596_v3  ;;  %5977 = vrot.lane.b32.xlu0 %v6974_v5, %s6529_s14  ;;  %v664_v22 = vadd.f32 %v663_v16, %v6962_v41 }
 0x228   : > { %5550 = vmatprep.subr.msk.bf16.mxu0 %vm6978_vm1, %v5548_v61  ;;  %5599 = vmatpush3.bf16.msra.mxu1 %v5596_v3 }
 0x229   : > { %5553 = vmatpush3.bf16.xpose.msk.msra.mxu0 %vm6978_vm1, %v5548_v61  ;;  %v6992_v24 = vpop.f32.mrb[6].mxu0  ;;  %v4892_v25 = vpop.f32.mrb[4].mxu1  ;;  %v5600_v26 = vpack.c.bf16 %v826_v21, %v821_v14  ;;  %v6994_v27 = vpack.i.bf16 %v826_v21, %v821_v14 }
 0x22a   : > { %v836_v8 = vadd.f32 %v4892_v25, %v6960_v57  ;;  %v669_v4 = vpop.f32.mrb[7].mxu0  ;;  %v830_v9 = vpop.f32.mrb[5].mxu1 }
 0x22b   : > { %v670_v28 = vadd.f32 %v669_v4, %v6962_v41  ;;  %v831_v29 = vadd.f32 %v830_v9, %v6960_v57  ;;  %5601 = vmatprep.subr.bf16.mxu1 %v5600_v26 }
 0x22c   : > { %5603 = vmatpush3.bf16.msra.mxu1 %v5600_v26 }
 0x22d   : > { %v7000_v44 = vpop.f32.mrb[8].mxu0  ;;  %v4895_v30 = vpop.f32.mrb[6].mxu1  ;;  %v7002_v31 = vpack.i.bf16 %v670_v28, %v664_v22  ;;  %v5554_v32 = vpack.c.bf16 %v670_v28, %v664_v22  ;;  %v5604_v6 = vpack.c.bf16 %v836_v8, %v831_v29  ;;  %v7005_v37 = vpack.i.bf16 %v836_v8, %v831_v29 }
 0x22e   : > { %v846_v33 = vadd.f32 %v4895_v30, %v6960_v57  ;;  %v675_v34 = vpop.f32.mrb[9].mxu0  ;;  %v840_v35 = vpop.f32.mrb[7].mxu1  ;;  %v7059_v28 = vadd.f32 %v6966_v58, %v6955_v48  ;;  %v7071_v58 = vadd.f32 %v6992_v24, %v6955_v48 }
 0x22f   : > { %8404 = vst [vmem:[#allocation2_spill] sm:$0xff] %v7005_v37  ;;  %v841_v38 = vadd.f32 %v840_v35, %v6960_v57  ;;  %5982 = vrot.lane.b32.xlu1 %v7002_v31, %s6529_s14  ;;  %5556 = vmatprep.subr.msk.bf16.mxu0 %vm6978_vm1, %v5554_v32  ;;  %v676_v42 = vadd.f32 %v675_v34, %v6962_v41 }
 0x230   : > { %5605 = vmatprep.subr.bf16.mxu1 %v5604_v6 }
 0x231   : > { %5559 = vmatpush3.bf16.xpose.msk.msra.mxu0 %vm6978_vm1, %v5554_v32  ;;  %5607 = vmatpush3.bf16.msra.mxu1 %v5604_v6  ;;  %v7014_v39 = vpop.f32.mrb[10].mxu0  ;;  %v4898_v40 = vpop.f32.mrb[8].mxu1  ;;  %v5608_v10 = vpack.c.bf16 %v846_v33, %v841_v38  ;;  %v7016_v36 = vpack.i.bf16 %v846_v33, %v841_v38 }
 0x232   : > { %v856_v52 = vadd.f32 %v4898_v40, %v6960_v57  ;;  %v681_v54 = vpop.f32.mrb[11].mxu0  ;;  %v850_v11 = vpop.f32.mrb[9].mxu1  ;;  %v7086_v24 = vadd.f32 %v7014_v39, %v6955_v48 }
 0x233   : > { %8405 = vst [vmem:[#allocation3_spill] sm:$0xff] %v7016_v36  ;;  %v682_v45 = vadd.f32 %v681_v54, %v6962_v41  ;;  %v851_v43 = vadd.f32 %v850_v11, %v6960_v57  ;;  %5609 = vmatprep.subr.bf16.mxu1 %v5608_v10 }
 0x235   : > { %5611 = vmatpush3.bf16.msra.mxu1 %v5608_v10  ;;  %v7022_v55 = vpop.f32.mrb[12].mxu0  ;;  %v4901_v19 = vpop.f32.mrb[10].mxu1  ;;  %v7024_v46 = vpack.i.bf16 %v682_v45, %v676_v42  ;;  %v5560_v20 = vpack.c.bf16 %v682_v45, %v676_v42  ;;  %v5612_v17 = vpack.c.bf16 %v856_v52, %v851_v43  ;;  %v7027_v50 = vpack.i.bf16 %v856_v52, %v851_v43 }
 0x236   : > { %v866_v15 = vadd.f32 %v4901_v19, %v6960_v57  ;;  %v687_v47 = vpop.f32.mrb[13].mxu0  ;;  %v860_v49 = vpop.f32.mrb[11].mxu1  ;;  %v7098_v45 = vadd.f32 %v6972_v1, %v6955_v48  ;;  %v7113_v1 = vadd.f32 %v7000_v44, %v6955_v48 }
 0x237   : > { %8406 = vst [vmem:[#allocation4_spill] sm:$0xff] %v7027_v50  ;;  %v861_v51 = vadd.f32 %v860_v49, %v6960_v57  ;;  %5987 = vrot.lane.b32.xlu1 %v7024_v46, %s6529_s14  ;;  %5562 = vmatprep.subr.msk.bf16.mxu0 %vm6978_vm1, %v5560_v20  ;;  %v688_v0 = vadd.f32 %v687_v47, %v6962_v41 }
 0x238   : > { %5613 = vmatprep.subr.bf16.mxu1 %v5612_v17 }
 0x239   : > { %5565 = vmatpush3.bf16.xpose.msk.msra.mxu0 %vm6978_vm1, %v5560_v20  ;;  %5615 = vmatpush3.bf16.msra.mxu1 %v5612_v17  ;;  %v7036_v53 = vpop.f32.mrb[14].mxu0  ;;  %v4904_v59 = vpop.f32.mrb[12].mxu1  ;;  %v5616_v12 = vpack.c.bf16 %v866_v15, %v861_v51  ;;  %v7038_v62 = vpack.i.bf16 %v866_v15, %v861_v51 }
 0x23a   : > { %v876_v13 = vadd.f32 %v4904_v59, %v6960_v57  ;;  %v693_v60 = vpop.f32.mrb[15].mxu0  ;;  %v870_v63 = vpop.f32.mrb[13].mxu1  ;;  %v7117_v15 = vadd.f32 %v7036_v53, %v6955_v48 }
 0x23b   : > { %8407 = vst [vmem:[#allocation5_spill] sm:$0xff] %v7038_v62  ;;  %v694_v2 = vadd.f32 %v693_v60, %v6962_v41  ;;  %v871_v3 = vadd.f32 %v870_v63, %v6960_v57  ;;  %5617 = vmatprep.subr.bf16.mxu1 %v5616_v12 }
 0x23d   : > { %5619 = vmatpush3.bf16.msra.mxu1 %v5616_v12  ;;  %v697_v61 = vpop.f32.mrb[16].mxu0  ;;  %v4907_v21 = vpop.f32.mrb[14].mxu1  ;;  %v7044_v16 = vpack.i.bf16 %v694_v2, %v688_v0  ;;  %v5566_v7 = vpack.c.bf16 %v694_v2, %v688_v0  ;;  %v5620_v14 = vpack.c.bf16 %v876_v13, %v871_v3  ;;  %v7050_v9 = vpack.i.bf16 %v876_v13, %v871_v3 }
 0x23e   : > { %v7047_v25 = vadd.f32 %v697_v61, %v6955_v48  ;;  %v886_v26 = vadd.f32 %v4907_v21, %v6960_v57  ;;  %v699_v8 = vpop.f32.mrb[17].mxu0  ;;  %v880_v4 = vpop.f32.mrb[15].mxu1  ;;  %v7146_v2 = vadd.f32 %v7022_v55, %v6955_v48 }
 0x23f   : > { %v881_v22 = vadd.f32 %v880_v4, %v6960_v57  ;;  %5992 = vrot.lane.b32.xlu1 %v7044_v16, %s6529_s14  ;;  %5568 = vmatprep.subr.msk.bf16.mxu0 %vm6978_vm1, %v5566_v7  ;;  %v700_v6 = vadd.f32 %v699_v8, %v6962_v41 }
 0x240   : > { %5621 = vmatprep.subr.bf16.mxu1 %v5620_v14 }
 0x241   : > { %5571 = vmatpush3.bf16.xpose.msk.msra.mxu0 %vm6978_vm1, %v5566_v7  ;;  %5623 = vmatpush3.bf16.msra.mxu1 %v5620_v14  ;;  %v703_v29 = vpop.f32.mrb[18].mxu0  ;;  %v5624_v30 = vpack.c.bf16 %v886_v26, %v881_v22  ;;  %v7063_v32 = vpack.i.bf16 %v886_v26, %v881_v22 }
 0x242   : > { %v705_v57 = vpop.f32.mrb[19].mxu0  ;;  %v7131_v44 = vadd.f32 %v703_v29, %v6955_v48 }
 0x243   : > { %8408 = vst [vmem:[#allocation6_spill] sm:$0xff] %v7063_v32  ;;  %v706_v33 = vadd.f32 %v705_v57, %v6962_v41  ;;  %1674 = vrot.lane.b32.xlu1 %v7059_v28, %s6529_s14  ;;  %5625 = vmatprep.subr.bf16.mxu1 %v5624_v30 }
 0x245   : > { %5627 = vmatpush3.bf16.msra.mxu1 %v5624_v30  ;;  %v709_v34 = vpop.f32.mrb[20].mxu0  ;;  %v7073_v35 = vpack.i.bf16 %v706_v33, %v700_v6  ;;  %v5572_v38 = vpack.c.bf16 %v706_v33, %v700_v6 }
 0x246   : > { %v7076_v40 = vadd.f32 %v709_v34, %v6955_v48  ;;  %v711_v10 = vpop.f32.mrb[21].mxu0 }
 0x247   : > { %1678 = vrot.lane.b32.xlu1 %v7071_v58, %s6529_s14  ;;  %5997 = vrot.lane.b32.xlu0 %v7073_v35, %s6529_s14  ;;  %v712_v11 = vadd.f32 %v711_v10, %v6962_v41 }
 0x248   : > { %5574 = vmatprep.subr.msk.bf16.mxu0 %vm6978_vm1, %v5572_v38 }
 0x249   : > { %5577 = vmatpush3.bf16.xpose.msk.msra.mxu0 %vm6978_vm1, %v5572_v38  ;;  %v715_v52 = vpop.f32.mrb[22].mxu0 }
 0x24a   : > { %v717_v54 = vpop.f32.mrb[23].mxu0  ;;  %v7149_v3 = vadd.f32 %v715_v52, %v6955_v48 }
 0x24b   : > { %v718_v42 = vadd.f32 %v717_v54, %v6962_v41  ;;  %1682 = vrot.lane.b32.xlu1 %v7086_v24, %s6529_s14  ;;  %1672 = vrot.lane.b32.xlu0 %v6958_v56, %s6529_s14 }
 0x24d   : > { %v721_v39 = vpop.f32.mrb[24].mxu0  ;;  %v7100_v43 = vpack.i.bf16 %v718_v42, %v712_v11  ;;  %v5578_v19 = vpack.c.bf16 %v718_v42, %v712_v11 }
 0x24e   : > { %v7103_v20 = vadd.f32 %v721_v39, %v6955_v48  ;;  %v723_v17 = vpop.f32.mrb[25].mxu0 }
 0x24f   : > { %1676 = vrot.lane.b32.xlu0 %v7098_v45, %s6529_s14  ;;  %6002 = vrot.lane.b32.xlu1 %v7100_v43, %s6529_s14  ;;  %v724_v59 = vadd.f32 %v723_v17, %v6962_v41 }
 0x250   : > { %5580 = vmatprep.subr.msk.bf16.mxu0 %vm6978_vm1, %v5578_v19 }
 0x251   : > { %5583 = vmatpush3.bf16.xpose.msk.msra.mxu0 %vm6978_vm1, %v5578_v19  ;;  %v727_v47 = vpop.f32.mrb[26].mxu0 }
 0x252   : > { %v7122_v49 = vadd.f32 %v727_v47, %v6955_v48  ;;  %v729_v51 = vpop.f32.mrb[27].mxu0 }
 0x253   : > { %v730_v12 = vadd.f32 %v729_v51, %v6962_v41  ;;  %1680 = vrot.lane.b32.xlu0 %v7113_v1, %s6529_s14  ;;  %1686 = vrot.lane.b32.xlu1 %v7117_v15, %s6529_s14 }
 0x255   : > { %v733_v53 = vpop.f32.mrb[28].mxu0  ;;  %v7133_v13 = vpack.i.bf16 %v730_v12, %v724_v59  ;;  %v5584_v60 = vpack.c.bf16 %v730_v12, %v724_v59 }
 0x256   : > { %v7136_v63 = vadd.f32 %v733_v53, %v6955_v48  ;;  %v735_v0 = vpop.f32.mrb[29].mxu0 }
 0x257   : > { %1690 = vrot.lane.b32.xlu1 %v7131_v44, %s6529_s14  ;;  %6007 = vrot.lane.b32.xlu0 %v7133_v13, %s6529_s14  ;;  %v736_v14 = vadd.f32 %v735_v0, %v6962_v41 }
 0x258   : > { %8409 = vst [vmem:[#allocation7_spill] sm:$0xff] %v7136_v63  ;;  %5586 = vmatprep.subr.msk.bf16.mxu0 %vm6978_vm1, %v5584_v60 }
 0x259   : > { %5589 = vmatpush3.bf16.xpose.msk.msra.mxu0 %vm6978_vm1, %v5584_v60  ;;  %v739_v61 = vpop.f32.mrb[30].mxu0 }
 0x25a   : > { %v7154_v21 = vadd.f32 %v739_v61, %v6955_v48  ;;  %v741_v7 = vpop.f32.mrb[31].mxu0 }
 0x25b   : > { %v742_v26 = vadd.f32 %v741_v7, %v6962_v41  ;;  %1694 = vrot.lane.b32.xlu1 %v7149_v3, %s6529_s14  ;;  %1684 = vrot.lane.b32.xlu0 %v7146_v2, %s6529_s14 }
 0x25c   : > { %8410 = vst [vmem:[#allocation8_spill] sm:$0xff] %v7154_v21 }
 0x25d   : > { %v5590_v55 = vpack.c.bf16 %v742_v26, %v736_v14  ;;  %v7162_v8 = vpack.i.bf16 %v742_v26, %v736_v14 }
 0x25f   : > { %1698 = vrot.lane.b32.xlu1 %v7122_v49, %s6529_s14  ;;  %1688 = vrot.lane.b32.xlu0 %v7047_v25, %s6529_s14 }
 0x260   : > { %5592 = vmatprep.subr.msk.bf16.mxu0 %vm6978_vm1, %v5590_v55 }
 0x261   : > { %5595 = vmatpush3.bf16.xpose.msk.msra.mxu0 %vm6978_vm1, %v5590_v55 }
 0x263   : > { %1692 = vrot.lane.b32.xlu0 %v7076_v40, %s6529_s14  ;;  %1702 = vrot.lane.b32.xlu1 %v7154_v21, %s6529_s14 }
 0x267   : > { %1696 = vrot.lane.b32.xlu0 %v7103_v20, %s6529_s14  ;;  %6012 = vrot.lane.b32.xlu1 %v7162_v8, %s6529_s14 }
 0x268   : > { %4941 = vmatmul.mubr.msk.f32.vlgmr.msra.gmra.mrb[32].mxu0 %vm912_vm0, %v7059_v28 }
 0x269   : > { %4943 = vmatprep.mubr.msk.f32.mxu0 %vm912_vm0, %v7098_v45 }
 0x26b   : > { %1700 = vrot.lane.b32.xlu0 %v7136_v63, %s6529_s14 }
 0x26c   : > { %4944 = vmatmul.mubr.msk.f32.gmra.mrb[34].mxu0 %vm912_vm0, %v7071_v58 }
 0x26d   : > { %4946 = vmatprep.mubr.msk.f32.mxu0 %vm912_vm0, %v7113_v1 }
 0x270   : > { %4947 = vmatmul.mubr.msk.f32.gmra.mrb[36].mxu0 %vm912_vm0, %v7086_v24 }
 0x271   : > { %4949 = vmatprep.mubr.msk.f32.mxu0 %vm912_vm0, %v7146_v2 }
 0x274   : > { %4950 = vmatmul.mubr.msk.f32.gmra.mrb[38].mxu0 %vm912_vm0, %v7117_v15 }
 0x275   : > { %4952 = vmatprep.mubr.msk.f32.mxu0 %vm912_vm0, %v7047_v25 }
 0x278   : > { %4953 = vmatmul.mubr.msk.f32.gmra.mrb[40].mxu0 %vm912_vm0, %v7131_v44 }
 0x279   : > { %4955 = vmatprep.mubr.msk.f32.mxu0 %vm912_vm0, %v7076_v40 }
 0x27c   : > { %4956 = vmatmul.mubr.msk.f32.gmra.mrb[42].mxu0 %vm912_vm0, %v7149_v3 }
 0x27d   : > { %4958 = vmatprep.mubr.msk.f32.mxu0 %vm912_vm0, %v7103_v20 }
 0x280   : > { %4959 = vmatmul.mubr.msk.f32.gmra.mrb[44].mxu0 %vm912_vm0, %v7122_v49 }
 0x281   : > { %4961 = vmatprep.mubr.msk.f32.mxu0 %vm912_vm0, %v7136_v63 }
 0x284   : > { %4962 = vmatmul.mubr.msk.f32.gmra.mrb[46].mxu0 %vm912_vm0, %v7154_v21 }
 0x299   : > { %v5978_v48 = vpop.permute.xlu0 %5977 }
 0x29a   : > { %v5980_v41 = vunpack.i.h.bf16 %v5978_v48  ;;  %v5979_v4 = vunpack.i.l.bf16 %v5978_v48 }
 0x29c   : > { %v5636_v22 = vpack.c.bf16 %v5980_v41, %v5979_v4 }
 0x29e   : > { %5638 = vmatprep.subr.msk.bf16.mxu0 %vm6978_vm1, %v5636_v22 }
 0x29f   : > { %5641 = vmatpush3.bf16.xpose.msk.msra.mxu0 %vm6978_vm1, %v5636_v22 }
 0x2a1   : > { %v5983_v29 = vpop.permute.xlu1 %5982 }
 0x2a2   : > { %v5985_v30 = vunpack.i.h.bf16 %v5983_v29  ;;  %v5984_v57 = vunpack.i.l.bf16 %v5983_v29 }
 0x2a4   : > { %v5642_v6 = vpack.c.bf16 %v5985_v30, %v5984_v57 }
 0x2a6   : > { %5644 = vmatprep.subr.msk.bf16.mxu0 %vm6978_vm1, %v5642_v6 }
 0x2a7   : > { %5647 = vmatpush3.bf16.xpose.msk.msra.mxu0 %vm6978_vm1, %v5642_v6 }
 0x2a9   : > { %v5988_v33 = vpop.permute.xlu1 %5987 }
 0x2aa   : > { %v5990_v34 = vunpack.i.h.bf16 %v5988_v33  ;;  %v5989_v38 = vunpack.i.l.bf16 %v5988_v33 }
 0x2ac   : > { %v5648_v10 = vpack.c.bf16 %v5990_v34, %v5989_v38 }
 0x2ae   : > { %5650 = vmatprep.subr.msk.bf16.mxu0 %vm6978_vm1, %v5648_v10 }
 0x2af   : > { %5653 = vmatpush3.bf16.xpose.msk.msra.mxu0 %vm6978_vm1, %v5648_v10 }
 0x2b1   : > { %v5993_v52 = vpop.permute.xlu1 %5992 }
 0x2b2   : > { %v5995_v54 = vunpack.i.h.bf16 %v5993_v52  ;;  %v5994_v11 = vunpack.i.l.bf16 %v5993_v52 }
 0x2b4   : > { %v5654_v42 = vpack.c.bf16 %v5995_v54, %v5994_v11 }
 0x2b5   : > { %v1675_v39 = vpop.permute.xlu1 %1674 }
 0x2b6   : > { %5656 = vmatprep.subr.msk.bf16.mxu0 %vm6978_vm1, %v5654_v42 }
 0x2b7   : > { %5659 = vmatpush3.bf16.xpose.msk.msra.mxu0 %vm6978_vm1, %v5654_v42 }
 0x2b9   : > { %v1679_v19 = vpop.permute.xlu1 %1678  ;;  %v5998_v17 = vpop.permute.xlu0 %5997 }
 0x2ba   : > { %v6000_v47 = vunpack.i.h.bf16 %v5998_v17  ;;  %v5999_v51 = vunpack.i.l.bf16 %v5998_v17 }
 0x2bc   : > { %v5660_v59 = vpack.c.bf16 %v6000_v47, %v5999_v51 }
 0x2bd   : > { %v1683_v12 = vpop.permute.xlu1 %1682  ;;  %v1673_v53 = vpop.permute.xlu0 %1672 }
 0x2be   : > { %5662 = vmatprep.subr.msk.bf16.mxu0 %vm6978_vm1, %v5660_v59  ;;  %5084 = vmatprep.mubr.msk.f32.mxu0 %vm912_vm0, %v1673_v53 }
 0x2bf   : > { %5665 = vmatpush3.bf16.xpose.msk.msra.mxu0 %vm6978_vm1, %v5660_v59 }
 0x2c1   : > { %v6003_v60 = vpop.permute.xlu1 %6002  ;;  %v1677_v0 = vpop.permute.xlu0 %1676 }
 0x2c2   : > { %v6005_v61 = vunpack.i.h.bf16 %v6003_v60  ;;  %v6004_v7 = vunpack.i.l.bf16 %v6003_v60 }
 0x2c4   : > { %v5666_v14 = vpack.c.bf16 %v6005_v61, %v6004_v7 }
 0x2c5   : > { %v1687_v26 = vpop.permute.xlu1 %1686  ;;  %v1681_v55 = vpop.permute.xlu0 %1680 }
 0x2c6   : > { %5668 = vmatprep.subr.msk.bf16.mxu0 %vm6978_vm1, %v5666_v14 }
 0x2c7   : > { %5671 = vmatpush3.bf16.xpose.msk.msra.mxu0 %vm6978_vm1, %v5666_v14 }
 0x2c9   : > { %v1691_v48 = vpop.permute.xlu1 %1690  ;;  %v6008_v41 = vpop.permute.xlu0 %6007 }
 0x2ca   : > { %v6010_v4 = vunpack.i.h.bf16 %v6008_v41  ;;  %v6009_v22 = vunpack.i.l.bf16 %v6008_v41 }
 0x2cc   : > { %v5672_v29 = vpack.c.bf16 %v6010_v4, %v6009_v22 }
 0x2cd   : > { %v1695_v30 = vpop.permute.xlu1 %1694  ;;  %v1685_v52 = vpop.permute.xlu0 %1684 }
 0x2ce   : > { %5674 = vmatprep.subr.msk.bf16.mxu0 %vm6978_vm1, %v5672_v29 }
 0x2cf   : > { %5677 = vmatpush3.bf16.xpose.msk.msra.mxu0 %vm6978_vm1, %v5672_v29 }
 0x2d1   : > { %v1699_v57 = vpop.permute.xlu1 %1698  ;;  %v1689_v54 = vpop.permute.xlu0 %1688 }
 0x2d5   : > { %v1703_v6 = vpop.permute.xlu1 %1702  ;;  %v1693_v11 = vpop.permute.xlu0 %1692 }
 0x2d9   : > { %v6013_v33 = vpop.permute.xlu1 %6012  ;;  %v1697_v42 = vpop.permute.xlu0 %1696 }
 0x2da   : > { %v6015_v34 = vunpack.i.h.bf16 %v6013_v33  ;;  %v6014_v38 = vunpack.i.l.bf16 %v6013_v33 }
 0x2dc   : > { %v5678_v10 = vpack.c.bf16 %v6015_v34, %v6014_v38 }
 0x2de   : > { %5680 = vmatprep.subr.msk.bf16.mxu0 %vm6978_vm1, %v5678_v10 }
 0x2df   : > { %5683 = vmatpush3.bf16.xpose.msk.msra.mxu0 %vm6978_vm1, %v5678_v10 }
 0x2e6   : > { %5085 = vmatmul.mubr.msk.f32.vlgmr.msra.gmra.mrb[48].mxu0 %vm912_vm0, %v1675_v39  ;;  %v1701_v39 = vpop.permute.xlu0 %1700 }
 0x2e7   : > { %5087 = vmatprep.mubr.msk.f32.mxu0 %vm912_vm0, %v1677_v0 }
 0x2ea   : > { %5088 = vmatmul.mubr.msk.f32.gmra.mrb[50].mxu0 %vm912_vm0, %v1679_v19 }
 0x2eb   : > { %5090 = vmatprep.mubr.msk.f32.mxu0 %vm912_vm0, %v1681_v55 }
 0x2ee   : > { %5091 = vmatmul.mubr.msk.f32.gmra.mrb[52].mxu0 %vm912_vm0, %v1683_v12 }
 0x2ef   : > { %5093 = vmatprep.mubr.msk.f32.mxu0 %vm912_vm0, %v1685_v52 }
 0x2f2   : > { %5094 = vmatmul.mubr.msk.f32.gmra.mrb[54].mxu0 %vm912_vm0, %v1687_v26 }
 0x2f3   : > { %5096 = vmatprep.mubr.msk.f32.mxu0 %vm912_vm0, %v1689_v54 }
 0x2f6   : > { %5097 = vmatmul.mubr.msk.f32.gmra.mrb[56].mxu0 %vm912_vm0, %v1691_v48 }
 0x2f7   : > { %5099 = vmatprep.mubr.msk.f32.mxu0 %vm912_vm0, %v1693_v11 }
 0x2fa   : > { %5100 = vmatmul.mubr.msk.f32.gmra.mrb[58].mxu0 %vm912_vm0, %v1695_v30 }
 0x2fb   : > { %5102 = vmatprep.mubr.msk.f32.mxu0 %vm912_vm0, %v1697_v42 }
 0x2fe   : > { %5103 = vmatmul.mubr.msk.f32.gmra.mrb[60].mxu0 %vm912_vm0, %v1699_v57 }
 0x2ff   : > { %5105 = vmatprep.mubr.msk.f32.mxu0 %vm912_vm0, %v1701_v39 }
 0x302   : > { %5106 = vmatmul.mubr.msk.f32.gmra.mrb[62].mxu0 %vm912_vm0, %v1703_v6 }
 0x33b   : > { %v4942_v19 = vpop.f32.mrb[32].mxu0 }
 0x33c   : > { %v7260_v17 = vmul.f32 0.17677669, %v4942_v19  ;;  %v1075_v47 = vpop.f32.mrb[33].mxu0 }
 0x33d   : > { %v7262_v51 = vmul.f32 0.17677669, %v1075_v47  ;;  %v1459_v47 = vld [vmem:[%s8381_s5] sm:$0xff] }
 0x33e   : > { %1172 = vmax.xlane.f32.xlu1 %v7260_v17 }
 0x33f   : > { %v4945_v59 = vpop.f32.mrb[34].mxu0  ;;  %1170 = vmax.xlane.f32.xlu0 %v7262_v51 }
 0x340   : > { %v7266_v12 = vmul.f32 0.17677669, %v4945_v59  ;;  %v1085_v53 = vpop.f32.mrb[35].mxu0  ;;  %v1460_v59 = vld [vmem:[%s8381_s5 + $0x8] sm:$0xff] }
 0x341   : > { %v7268_v60 = vmul.f32 0.17677669, %v1085_v53  ;;  %v7346_v53 = vpack.c.bf16 %v1460_v59, %v1459_v47 }
 0x342   : > { %1176 = vmax.xlane.f32.xlu1 %v7266_v12 }
 0x343   : > { %v4948_v0 = vpop.f32.mrb[36].mxu0  ;;  %1174 = vmax.xlane.f32.xlu0 %v7268_v60  ;;  %5629 = vmatprep.subr.bf16.mxu1 %v7346_v53 }
 0x344   : > { %v7272_v61 = vmul.f32 0.17677669, %v4948_v0  ;;  %v1095_v7 = vpop.f32.mrb[37].mxu0 }
 0x345   : > { %v7277_v48 = vmul.f32 0.17677669, %v1095_v7 }
 0x347   : > { %v4951_v14 = vpop.f32.mrb[38].mxu0  ;;  %1180 = vmax.xlane.f32.xlu0 %v7272_v61 }
 0x348   : > { %v7275_v26 = vmul.f32 0.17677669, %v4951_v14  ;;  %v1105_v55 = vpop.f32.mrb[39].mxu0 }
 0x349   : > { %v7283_v29 = vmul.f32 0.17677669, %v1105_v55 }
 0x34a   : > { %1184 = vmax.xlane.f32.xlu1 %v7275_v26 }
 0x34b   : > { %v4954_v41 = vpop.f32.mrb[40].mxu0  ;;  %1178 = vmax.xlane.f32.xlu0 %v7277_v48 }
 0x34c   : > { %v7281_v4 = vmul.f32 0.17677669, %v4954_v41  ;;  %v1115_v22 = vpop.f32.mrb[41].mxu0 }
 0x34d   : > { %v7289_v33 = vmul.f32 0.17677669, %v1115_v22 }
 0x34e   : > { %1188 = vmax.xlane.f32.xlu1 %v7281_v4 }
 0x34f   : > { %v4957_v30 = vpop.f32.mrb[42].mxu0  ;;  %1182 = vmax.xlane.f32.xlu0 %v7283_v29 }
 0x350   : > { %v7287_v57 = vmul.f32 0.17677669, %v4957_v30  ;;  %v1125_v6 = vpop.f32.mrb[43].mxu0 }
 0x351   : > { %v7295_v52 = vmul.f32 0.17677669, %v1125_v6 }
 0x352   : > { %1192 = vmax.xlane.f32.xlu1 %v7287_v57 }
 0x353   : > { %v4960_v34 = vpop.f32.mrb[44].mxu0  ;;  %1186 = vmax.xlane.f32.xlu0 %v7289_v33 }
 0x354   : > { %v7293_v38 = vmul.f32 0.17677669, %v4960_v34  ;;  %v1135_v10 = vpop.f32.mrb[45].mxu0 }
 0x355   : > { %v7301_v39 = vmul.f32 0.17677669, %v1135_v10 }
 0x356   : > { %1196 = vmax.xlane.f32.xlu1 %v7293_v38 }
 0x357   : > { %1190 = vmax.xlane.f32.xlu0 %v7295_v52  ;;  %v4963_v54 = vpop.f32.mrb[46].mxu0 }
 0x358   : > { %v7299_v11 = vmul.f32 0.17677669, %v4963_v54  ;;  %v1145_v42 = vpop.f32.mrb[47].mxu0 }
 0x359   : > { %v7305_v19 = vmul.f32 0.17677669, %v1145_v42 }
 0x35a   : > { %1200 = vmax.xlane.f32.xlu1 %v7299_v11 }
 0x35b   : > { %1194 = vmax.xlane.f32.xlu0 %v7301_v39 }
 0x35f   : > { %1198 = vmax.xlane.f32.xlu0 %v7305_v19 }
 0x36b   : > { %6022 = vrot.lane.b32.xlu1 %v7002_v31, %s6530_s15 }
 0x36f   : > { %6027 = vrot.lane.b32.xlu1 %v7024_v46, %s6530_s15 }
 0x373   : > { %6032 = vrot.lane.b32.xlu1 %v7044_v16, %s6530_s15 }
 0x375   : > { %6017 = vrot.lane.b32.xlu0 %v6974_v5, %s6530_s15 }
 0x377   : > { %6042 = vrot.lane.b32.xlu1 %v7100_v43, %s6530_s15 }
 0x379   : > { %6037 = vrot.lane.b32.xlu0 %v7073_v35, %s6530_s15 }
 0x37b   : > { %6052 = vrot.lane.b32.xlu1 %v7162_v8, %s6530_s15 }
 0x37d   : > { %6047 = vrot.lane.b32.xlu0 %v7133_v13, %s6530_s15 }
 0x37f   : > { %2529 = vrot.lane.b32.xlu1 %v7059_v28, %s6530_s15 }
 0x381   : > { %2527 = vrot.lane.b32.xlu0 %v6958_v56, %s6530_s15 }
 0x383   : > { %2531 = vrot.lane.b32.xlu1 %v7098_v45, %s6530_s15 }
 0x385   : > { %2533 = vrot.lane.b32.xlu0 %v7071_v58, %s6530_s15 }
 0x387   : > { %2535 = vrot.lane.b32.xlu1 %v7113_v1, %s6530_s15 }
 0x389   : > { %2539 = vrot.lane.b32.xlu0 %v7146_v2, %s6530_s15 }
 0x38b   : > { %2537 = vrot.lane.b32.xlu1 %v7086_v24, %s6530_s15 }
 0x38d   : > { %2541 = vrot.lane.b32.xlu0 %v7117_v15, %s6530_s15 }
 0x38f   : > { %6057 = vrot.lane.b32.xlu1 %v6983_v23, %s6529_s14 }
 0x391   : > { %2543 = vrot.lane.b32.xlu0 %v7047_v25, %s6530_s15 }
 0x393   : > { %2551 = vrot.lane.b32.xlu1 %v7103_v20, %s6530_s15 }
 0x395   : > { %2545 = vrot.lane.b32.xlu0 %v7131_v44, %s6530_s15 }
 0x397   : > { %6062 = vrot.lane.b32.xlu1 %v6994_v27, %s6529_s14 }
 0x399   : > { %2547 = vrot.lane.b32.xlu0 %v7076_v40, %s6530_s15 }
 0x39b   : > { %6072 = vrot.lane.b32.xlu1 %v7016_v36, %s6529_s14 }
 0x39d   : > { %2549 = vrot.lane.b32.xlu0 %v7149_v3, %s6530_s15 }
 0x39f   : > { %6082 = vrot.lane.b32.xlu1 %v7038_v62, %s6529_s14 }
 0x3a1   : > { %2553 = vrot.lane.b32.xlu0 %v7122_v49, %s6530_s15 }
 0x3a5   : > { %2555 = vrot.lane.b32.xlu0 %v7136_v63, %s6530_s15 }
 0x3a9   : > { %2557 = vrot.lane.b32.xlu0 %v7154_v21, %s6530_s15 }
 0x3ad   : > { %6067 = vrot.lane.b32.xlu0 %v7005_v37, %s6529_s14 }
 0x3b1   : > { %6077 = vrot.lane.b32.xlu0 %v7027_v50, %s6529_s14 }
 0x3b9   : > { %v5086_v0 = vpop.f32.mrb[48].mxu0 }
 0x3ba   : > { %v1866_v7 = vpop.f32.mrb[49].mxu0  ;;  %v7377_v41 = vmul.f32 0.17677669, %v5086_v0 }
 0x3bb   : > { %v7392_v21 = vmul.f32 0.17677669, %v1866_v7 }
 0x3bc   : > { %8411 = vst [vmem:[#allocation9_spill] sm:$0xff] %v7377_v41 }
 0x3bd   : > { %v5089_v14 = vpop.f32.mrb[50].mxu0 }
 0x3be   : > { %v1876_v55 = vpop.f32.mrb[51].mxu0  ;;  %v7380_v6 = vmul.f32 0.17677669, %v5089_v14 }
 0x3bf   : > { %v7383_v54 = vmul.f32 0.17677669, %v1876_v55 }
 0x3c0   : > { %8412 = vst [vmem:[#allocation10_spill] sm:$0xff] %v7380_v6 }
 0x3c1   : > { %v5092_v22 = vpop.f32.mrb[52].mxu0  ;;  %8413 = vst [vmem:[#allocation11_spill] sm:$0xff] %v7383_v54 }
 0x3c2   : > { %v1886_v30 = vpop.f32.mrb[53].mxu0  ;;  %v7387_v50 = vmul.f32 0.17677669, %v5092_v22 }
 0x3c3   : > { %1963 = vmax.xlane.f32.xlu1 %v7377_v41  ;;  %v7402_v7 = vmul.f32 0.17677669, %v1886_v30 }
 0x3c5   : > { %v5095_v34 = vpop.f32.mrb[54].mxu0 }
 0x3c6   : > { %v1896_v10 = vpop.f32.mrb[55].mxu0 }
 0x3c7   : > { %1967 = vmax.xlane.f32.xlu1 %v7380_v6 }
 0x3c9   : > { %v5098_v42 = vpop.f32.mrb[56].mxu0 }
 0x3ca   : > { %v1906_v47 = vpop.f32.mrb[57].mxu0 }
 0x3cb   : > { %v1173_v59 = vpop.xlane.xlu1 %1172  ;;  %1965 = vmax.xlane.f32.xlu1 %v7383_v54 }
 0x3cc   : > { %v1203_v0 = vsub.f32 %v7260_v17, %v1173_v59  ;;  %v1171_v62 = vpop.xlane.xlu0 %1170  ;;  %v7397_v17 = vmul.f32 0.17677669, %v5095_v34 }
 0x3cd   : > { %v1202_v37 = vsub.f32 %v7262_v51, %v1171_v62  ;;  %v7390_v14 = vpop.f32.mrb[58].mxu0 }
 0x3ce   : > { %v1220_v36 = vmul.f32 1.442695, %v1203_v0  ;;  %v1916_v63 = vpop.f32.mrb[59].mxu0  ;;  %8414 = vst [vmem:[#allocation12_spill] sm:$0xff] %v7397_v17 }
 0x3cf   : > { %v1218_v55 = vmul.f32 1.442695, %v1202_v37  ;;  %v1177_v6 = vpop.xlane.xlu1 %1176  ;;  %1971 = vmax.xlane.f32.xlu1 %v7387_v50 }
 0x3d0   : > { %6248 = vpow2.f32 %v1220_v36  ;;  %v1205_v54 = vsub.f32 %v7266_v12, %v1177_v6  ;;  %v1175_v41 = vpop.xlane.xlu0 %1174  ;;  %1961 = vmax.xlane.f32.xlu0 %v7392_v21  ;;  %v7408_v12 = vmul.f32 0.17677669, %v5098_v42  ;;  %v1461_v42 = vld [vmem:[%s8381_s5 + $0x10] sm:$0xff] }
 0x3d1   : > { %6250 = vpow2.f32 %v1218_v55  ;;  %v1204_v62 = vsub.f32 %v7268_v60, %v1175_v41  ;;  %v7400_v51 = vpop.f32.mrb[60].mxu0  ;;  %v7413_v41 = vmul.f32 0.17677669, %v1896_v10 }
 0x3d2   : > { %v1224_v22 = vmul.f32 1.442695, %v1205_v54  ;;  %v7404_v37 = vpop.f32.mrb[61].mxu0  ;;  %8415 = vst [vmem:[#allocation13_spill] sm:$0xff] %v7408_v12 }
 0x3d3   : > { %v1222_v59 = vmul.f32 1.442695, %v1204_v62  ;;  %1975 = vmax.xlane.f32.xlu1 %v7397_v17  ;;  %8416 = vst [vmem:[#allocation14_spill] sm:$0xff] %v7413_v41  ;;  %v7426_v62 = vmul.f32 0.17677669, %v1906_v47 }
 0x3d4   : > { %6252 = vpow2.f32 %v1224_v22  ;;  %v1181_v36 = vpop.xlane.xlu0 %1180  ;;  %1969 = vmax.xlane.f32.xlu0 %v7402_v7 }
 0x3d5   : > { %6254 = vpow2.f32 %v1222_v59  ;;  %v1207_v6 = vsub.f32 %v7272_v61, %v1181_v36  ;;  %v7411_v60 = vpop.f32.mrb[62].mxu0  ;;  %v1462_v61 = vld [vmem:[%s8381_s5 + $0x18] sm:$0xff] }
 0x3d6   : > { %v7415_v30 = vpop.f32.mrb[63].mxu0 }
 0x3d7   : > { %v1228_v34 = vmul.f32 1.442695, %v1207_v6  ;;  %v1185_v54 = vpop.xlane.xlu1 %1184  ;;  %1979 = vmax.xlane.f32.xlu1 %v7408_v12  ;;  %v5632_v12 = vpack.c.bf16 %v1462_v61, %v1461_v42 }
 0x3d8   : > { %v1179_v0 = vpop.xlane.xlu0 %1178  ;;  %1973 = vmax.xlane.f32.xlu0 %v7413_v41  ;;  %v1209_v22 = vsub.f32 %v7275_v26, %v1185_v54 }
 0x3d9   : > { %6256 = vpow2.f32 %v1228_v34  ;;  %v1206_v10 = vsub.f32 %v7277_v48, %v1179_v0  ;;  %v7431_v48 = vmul.f32 0.17677669, %v1916_v63 }
 0x3da   : > { %v6249_v55 = vpop.eup %6248  ;;  %v1232_v47 = vmul.f32 1.442695, %v1209_v22  ;;  %v7440_v22 = vmul.f32 0.17677669, %v7390_v14 }
 0x3db   : > { %v6251_v59 = vpop.eup %6250  ;;  %v1226_v36 = vmul.f32 1.442695, %v1206_v10  ;;  %v1189_v6 = vpop.xlane.xlu1 %1188  ;;  %1252 = vadd.xlane.f32.xlu1 %v6249_v55 }
 0x3dc   : > { %4996 = vmatprep.mubr.f32.mxu1 %v6251_v59  ;;  %v1183_v17 = vpop.xlane.xlu0 %1182  ;;  %1977 = vmax.xlane.f32.xlu0 %v7426_v62  ;;  %v1211_v0 = vsub.f32 %v7281_v4, %v1189_v6 }
 0x3dd   : > { %6258 = vpow2.f32 %v1226_v36  ;;  %v1208_v41 = vsub.f32 %v7283_v29, %v1183_v17  ;;  %4997 = vmatmul.mubr.f32.vlgmr.msra.gmra.mrb[16].mxu1 %v6249_v55 }
 0x3de   : > { %v6253_v34 = vpop.eup %6252  ;;  %5631 = vmatpush3.bf16.msra.mxu1 %v7346_v53  ;;  %v1236_v63 = vmul.f32 1.442695, %v1211_v0 }
 0x3df   : > { %v6255_v26 = vpop.eup %6254  ;;  %v1230_v54 = vmul.f32 1.442695, %v1208_v41  ;;  %v1193_v10 = vpop.xlane.xlu1 %1192  ;;  %1256 = vadd.xlane.f32.xlu1 %v6253_v34  ;;  %5633 = vmatprep.subr.bf16.mxu1 %v5632_v12 }
 0x3e0   : > { %4999 = vmatprep.mubr.f32.mxu1 %v6255_v26  ;;  %v1187_v42 = vpop.xlane.xlu0 %1186  ;;  %1981 = vmax.xlane.f32.xlu0 %v7431_v48  ;;  %v1213_v17 = vsub.f32 %v7287_v57, %v1193_v10 }
 0x3e1   : > { %6260 = vpow2.f32 %v1230_v54  ;;  %v1210_v29 = vsub.f32 %v7289_v33, %v1187_v42  ;;  %5000 = vmatmul.mubr.f32.gmra.mrb[18].mxu1 %v6253_v34 }
 0x3e2   : > { %6262 = vpow2.f32 %v1232_v47  ;;  %5635 = vmatpush3.bf16.msra.mxu1 %v5632_v12  ;;  %v1240_v33 = vmul.f32 1.442695, %v1213_v17 }
 0x3e3   : > { %v6257_v4 = vpop.eup %6256  ;;  %v1234_v53 = vmul.f32 1.442695, %v1210_v29  ;;  %v1197_v61 = vpop.xlane.xlu1 %1196 }
 0x3e4   : > { %v1191_v41 = vpop.xlane.xlu0 %1190  ;;  %1260 = vadd.xlane.f32.xlu1 %v6257_v4  ;;  %1250 = vadd.xlane.f32.xlu0 %v6251_v59  ;;  %v1215_v36 = vsub.f32 %v7293_v38, %v1197_v61 }
 0x3e5   : > { %6264 = vpow2.f32 %v1234_v53  ;;  %v1212_v55 = vsub.f32 %v7295_v52, %v1191_v41 }
 0x3e6   : > { %6266 = vpow2.f32 %v1236_v63  ;;  %v1244_v52 = vmul.f32 1.442695, %v1215_v36 }
 0x3e7   : > { %v6259_v6 = vpop.eup %6258  ;;  %v1238_v34 = vmul.f32 1.442695, %v1212_v55  ;;  %v1201_v57 = vpop.xlane.xlu1 %1200 }
 0x3e8   : > { %5002 = vmatprep.mubr.f32.mxu1 %v6259_v6  ;;  %v1195_v12 = vpop.xlane.xlu0 %1194  ;;  %1983 = vmax.xlane.f32.xlu1 %v7440_v22  ;;  %v1217_v14 = vsub.f32 %v7299_v11, %v1201_v57 }
 0x3e9   : > { %6268 = vpow2.f32 %v1238_v34  ;;  %v1214_v59 = vsub.f32 %v7301_v39, %v1195_v12  ;;  %1254 = vadd.xlane.f32.xlu0 %v6255_v26  ;;  %5003 = vmatmul.mubr.f32.gmra.mrb[20].mxu1 %v6257_v4 }
 0x3ea   : > { %6270 = vpow2.f32 %v1240_v33  ;;  %v1248_v39 = vmul.f32 1.442695, %v1217_v14 }
 0x3eb   : > { %v7446_v47 = vpop.eup %6260  ;;  %v1242_v0 = vmul.f32 1.442695, %v1214_v59  ;;  %v6023_v38 = vpop.permute.xlu1 %6022 }
 0x3ec   : > { %v6263_v54 = vpop.eup %6262  ;;  %5005 = vmatprep.mubr.f32.mxu1 %v7446_v47  ;;  %v1199_v10 = vpop.xlane.xlu0 %1198  ;;  %v6025_v17 = vunpack.i.h.bf16 %v6023_v38  ;;  %v6024_v53 = vunpack.i.l.bf16 %v6023_v38 }
 0x3ed   : > { %6272 = vpow2.f32 %v1242_v0  ;;  %v1216_v42 = vsub.f32 %v7305_v19, %v1199_v10  ;;  %1258 = vadd.xlane.f32.xlu0 %v6259_v6  ;;  %5006 = vmatmul.mubr.f32.gmra.mrb[22].mxu1 %v6263_v54 }
 0x3ee   : > { %6274 = vpow2.f32 %v1244_v52  ;;  %v5730_v34 = vpack.c.bf16 %v6025_v17, %v6024_v53 }
 0x3ef   : > { %v7450_v26 = vpop.eup %6264  ;;  %v1246_v29 = vmul.f32 1.442695, %v1216_v42  ;;  %v6028_v63 = vpop.permute.xlu1 %6027 }
 0x3f0   : > { %v7452_v11 = vpop.eup %6266  ;;  %5008 = vmatprep.mubr.f32.mxu1 %v7450_v26  ;;  %v6018_v4 = vpop.permute.xlu0 %6017  ;;  %v6030_v14 = vunpack.i.h.bf16 %v6028_v63  ;;  %v6029_v0 = vunpack.i.l.bf16 %v6028_v63 }
 0x3f1   : > { %6276 = vpow2.f32 %v1246_v29  ;;  %v6020_v61 = vunpack.i.h.bf16 %v6018_v4  ;;  %v6019_v41 = vunpack.i.l.bf16 %v6018_v4  ;;  %1264 = vadd.xlane.f32.xlu0 %v6263_v54  ;;  %5009 = vmatmul.mubr.f32.gmra.mrb[24].mxu1 %v7452_v11 }
 0x3f2   : > { %6278 = vpow2.f32 %v1248_v39  ;;  %v5736_v39 = vpack.c.bf16 %v6030_v14, %v6029_v0 }
 0x3f3   : > { %v7456_v19 = vpop.eup %6268  ;;  %v5724_v55 = vpack.c.bf16 %v6020_v61, %v6019_v41  ;;  %v6033_v33 = vpop.permute.xlu1 %6032 }
 0x3f4   : > { %v7458_v36 = vpop.eup %6270  ;;  %5011 = vmatprep.mubr.f32.mxu1 %v7456_v19  ;;  %v6038_v6 = vpop.permute.xlu0 %6037  ;;  %v6035_v63 = vunpack.i.h.bf16 %v6033_v33  ;;  %v6034_v17 = vunpack.i.l.bf16 %v6033_v33 }
 0x3f5   : > { %5012 = vmatmul.mubr.f32.gmra.mrb[26].mxu1 %v7458_v36  ;;  %5726 = vmatprep.subr.msk.bf16.mxu0 %vm6978_vm1, %v5724_v55  ;;  %v6040_v41 = vunpack.i.h.bf16 %v6038_v6 }
 0x3f6   : > { %5729 = vmatpush3.bf16.xpose.msk.msra.mxu0 %vm6978_vm1, %v5724_v55  ;;  %v5742_v53 = vpack.c.bf16 %v6035_v63, %v6034_v17  ;;  %v6039_v55 = vunpack.i.l.bf16 %v6038_v6 }
 0x3f7   : > { %v7466_v57 = vpop.eup %6272  ;;  %v6043_v12 = vpop.permute.xlu1 %6042  ;;  %5732 = vmatprep.subr.msk.bf16.mxu0 %vm6978_vm1, %v5730_v34 }
 0x3f8   : > { %v7470_v59 = vpop.eup %6274  ;;  %5014 = vmatprep.mubr.f32.mxu1 %v7466_v57  ;;  %v6048_v52 = vpop.permute.xlu0 %6047  ;;  %v5748_v14 = vpack.c.bf16 %v6040_v41, %v6039_v55  ;;  %v6044_v63 = vunpack.i.l.bf16 %v6043_v12  ;;  %v7502_v55 = vmul.f32 0.17677669, %v7400_v51 }
 0x3f9   : > { %5015 = vmatmul.mubr.f32.gmra.mrb[28].mxu1 %v7470_v59  ;;  %6092 = vrot.lane.b32.xlu1 %v7063_v32, %s6529_s14  ;;  %v6050_v6 = vunpack.i.h.bf16 %v6048_v52 }
 0x3fb   : > { %v6277_v38 = vpop.eup %6276  ;;  %v6053_v54 = vpop.permute.xlu1 %6052 }
 0x3fc   : > { %v7476_v10 = vpop.eup %6278  ;;  %5017 = vmatprep.mubr.f32.mxu1 %v6277_v38  ;;  %v2528_v42 = vpop.permute.xlu0 %2527 }
 0x3fd   : > { %5018 = vmatmul.mubr.f32.gmra.mrb[30].mxu1 %v7476_v10  ;;  %5228 = vmatprep.mubr.msk.f32.mxu0 %vm912_vm0, %v2528_v42 }
 0x3fe   : > { %5735 = vmatpush3.bf16.xpose.msk.msra.mxu0 %vm6978_vm1, %v5730_v34 }
 0x3ff   : > { %v2530_v29 = vpop.permute.xlu1 %2529  ;;  %5738 = vmatprep.subr.msk.bf16.mxu0 %vm6978_vm1, %v5736_v39 }
 0x400   : > { %v2534_v41 = vpop.permute.xlu0 %2533 }
 0x403   : > { %v2532_v4 = vpop.permute.xlu1 %2531 }
 0x406   : > { %5741 = vmatpush3.bf16.xpose.msk.msra.mxu0 %vm6978_vm1, %v5736_v39  ;;  %v6045_v39 = vunpack.i.h.bf16 %v6043_v12  ;;  %v2540_v12 = vpop.permute.xlu0 %2539 }
 0x407   : > { %6087 = vrot.lane.b32.xlu0 %v7050_v9, %s6529_s14  ;;  %v2536_v61 = vpop.permute.xlu1 %2535  ;;  %5744 = vmatprep.subr.msk.bf16.mxu0 %vm6978_vm1, %v5742_v53 }
 0x408   : > { %v5754_v32 = vpack.c.bf16 %v6045_v39, %v6044_v63 }
 0x40a   : > { %v2542_v51 = vpop.permute.xlu0 %2541 }
 0x40b   : > { %v2538_v34 = vpop.permute.xlu1 %2537 }
 0x40e   : > { %5747 = vmatpush3.bf16.xpose.msk.msra.mxu0 %vm6978_vm1, %v5742_v53  ;;  %v6049_v53 = vunpack.i.l.bf16 %v6048_v52  ;;  %v7511_v52 = vmul.f32 0.17677669, %v7404_v37  ;;  %v2544_v37 = vpop.permute.xlu0 %2543 }
 0x40f   : > { %v6058_v33 = vpop.permute.xlu1 %6057  ;;  %5750 = vmatprep.subr.msk.bf16.mxu0 %vm6978_vm1, %v5748_v14 }
 0x410   : > { %v6060_v0 = vunpack.i.h.bf16 %v6058_v33  ;;  %v6059_v42 = vunpack.i.l.bf16 %v6058_v33  ;;  %v5760_v33 = vpack.c.bf16 %v6050_v6, %v6049_v53 }
 0x412   : > { %v7494_v17 = vpack.c.bf16 %v6060_v0, %v6059_v42  ;;  %v6054_v0 = vunpack.i.l.bf16 %v6053_v54 }
 0x414   : > { %5685 = vmatprep.subr.bf16.mxu1 %v7494_v17 }
 0x416   : > { %5753 = vmatpush3.bf16.xpose.msk.msra.mxu0 %vm6978_vm1, %v5748_v14  ;;  %v6055_v14 = vunpack.i.h.bf16 %v6053_v54 }
 0x417   : > { %5756 = vmatprep.subr.msk.bf16.mxu0 %vm6978_vm1, %v5754_v32 }
 0x418   : > { %v5766_v42 = vpack.c.bf16 %v6055_v14, %v6054_v0 }
 0x41d   : > { %1987 = vmax.xlane.f32.xlu1 %v7502_v55 }
 0x41e   : > { %5759 = vmatpush3.bf16.xpose.msk.msra.mxu0 %vm6978_vm1, %v5754_v32  ;;  %v7520_v32 = vmul.f32 0.17677669, %v7415_v30 }
 0x41f   : > { %5762 = vmatprep.subr.msk.bf16.mxu0 %vm6978_vm1, %v5760_v33 }
 0x421   : > { %1262 = vadd.xlane.f32.xlu1 %v7446_v47  ;;  %v7528_v47 = vmul.f32 0.17677669, %v7411_v60 }
 0x425   : > { %1268 = vadd.xlane.f32.xlu1 %v7452_v11  ;;  %v2546_v11 = vpop.permute.xlu0 %2545 }
 0x426   : > { %1985 = vmax.xlane.f32.xlu0 %v7511_v52  ;;  %5765 = vmatpush3.bf16.xpose.msk.msra.mxu0 %vm6978_vm1, %v5760_v33 }
 0x427   : > { %5768 = vmatprep.subr.msk.bf16.mxu0 %vm6978_vm1, %v5766_v42 }
 0x429   : > { %1266 = vadd.xlane.f32.xlu1 %v7450_v26  ;;  %v2548_v30 = vpop.permute.xlu0 %2547 }
 0x42a   : > { %1989 = vmax.xlane.f32.xlu0 %v7520_v32 }
 0x42d   : > { %1272 = vadd.xlane.f32.xlu1 %v7458_v36  ;;  %v2550_v60 = vpop.permute.xlu0 %2549 }
 0x42e   : > { %1278 = vadd.xlane.f32.xlu0 %v6277_v38  ;;  %5771 = vmatpush3.bf16.xpose.msk.msra.mxu0 %vm6978_vm1, %v5766_v42 }
 0x431   : > { %1270 = vadd.xlane.f32.xlu1 %v7456_v19  ;;  %v2554_v26 = vpop.permute.xlu0 %2553  ;;  %v2552_v19 = vpop.permute.xlu1 %2551 }
 0x432   : > { %1991 = vmax.xlane.f32.xlu0 %v7528_v47 }
 0x435   : > { %5229 = vmatmul.mubr.msk.f32.vlgmr.msra.gmra.mrb[64].mxu0 %vm912_vm0, %v2530_v29  ;;  %1276 = vadd.xlane.f32.xlu1 %v7470_v59  ;;  %v2556_v36 = vpop.permute.xlu0 %2555 }
 0x436   : > { %5231 = vmatprep.mubr.msk.f32.mxu0 %vm912_vm0, %v2532_v4 }
 0x439   : > { %5232 = vmatmul.mubr.msk.f32.gmra.mrb[66].mxu0 %vm912_vm0, %v2534_v41  ;;  %1274 = vadd.xlane.f32.xlu1 %v7466_v57  ;;  %v2558_v57 = vpop.permute.xlu0 %2557 }
 0x43a   : > { %5234 = vmatprep.mubr.msk.f32.mxu0 %vm912_vm0, %v2536_v61 }
 0x43d   : > { %5235 = vmatmul.mubr.msk.f32.gmra.mrb[68].mxu0 %vm912_vm0, %v2538_v34  ;;  %1280 = vadd.xlane.f32.xlu1 %v7476_v10 }
 0x43e   : > { %5237 = vmatprep.mubr.msk.f32.mxu0 %vm912_vm0, %v2540_v12 }
 0x441   : > { %5238 = vmatmul.mubr.msk.f32.gmra.mrb[70].mxu0 %vm912_vm0, %v2542_v51 }
 0x442   : > { %5240 = vmatprep.mubr.msk.f32.mxu0 %vm912_vm0, %v2544_v37 }
 0x445   : > { %5241 = vmatmul.mubr.msk.f32.gmra.mrb[72].mxu0 %vm912_vm0, %v2546_v11 }
 0x446   : > { %5243 = vmatprep.mubr.msk.f32.mxu0 %vm912_vm0, %v2548_v30 }
 0x448   : > { %6097 = vrot.lane.b32.xlu0 %v6974_v5, %s6531_s27  ;;  %v7566_v5 = vpop.permute.xlu1 %6062 }
 0x449   : > { %5244 = vmatmul.mubr.msk.f32.gmra.mrb[74].mxu0 %vm912_vm0, %v2550_v60  ;;  %v6065_v39 = vunpack.i.h.bf16 %v7566_v5  ;;  %v6064_v63 = vunpack.i.l.bf16 %v7566_v5 }
 0x44a   : > { %5246 = vmatprep.mubr.msk.f32.mxu0 %vm912_vm0, %v2552_v19 }
 0x44b   : > { %v5688_v30 = vpack.c.bf16 %v6065_v39, %v6064_v63 }
 0x44c   : > { %6107 = vrot.lane.b32.xlu0 %v7024_v46, %s6531_s27 }
 0x44d   : > { %5247 = vmatmul.mubr.msk.f32.gmra.mrb[76].mxu0 %vm912_vm0, %v2554_v26 }
 0x44e   : > { %5249 = vmatprep.mubr.msk.f32.mxu0 %vm912_vm0, %v2556_v36  ;;  %6102 = vrot.lane.b32.xlu1 %v7002_v31, %s6531_s27  ;;  %v7574_v31 = vpop.permute.xlu1 %6072 }
 0x44f   : > { %v6075_v5 = vunpack.i.h.bf16 %v7574_v31 }
 0x450   : > { %6112 = vrot.lane.b32.xlu0 %v7044_v16, %s6531_s27  ;;  %v7596_v16 = vpop.permute.xlu0 %6067 }
 0x451   : > { %5250 = vmatmul.mubr.msk.f32.gmra.mrb[78].mxu0 %vm912_vm0, %v2558_v57  ;;  %v6070_v51 = vunpack.i.h.bf16 %v7596_v16  ;;  %v6069_v37 = vunpack.i.l.bf16 %v7596_v16  ;;  %v6074_v16 = vunpack.i.l.bf16 %v7574_v31 }
 0x452   : > { %6122 = vrot.lane.b32.xlu1 %v7100_v43, %s6531_s27  ;;  %v7582_v46 = vpop.permute.xlu1 %6082 }
 0x454   : > { %6117 = vrot.lane.b32.xlu0 %v7073_v35, %s6531_s27 }
 0x456   : > { %6132 = vrot.lane.b32.xlu1 %v7162_v8, %s6531_s27 }
 0x458   : > { %6127 = vrot.lane.b32.xlu0 %v7133_v13, %s6531_s27 }
 0x45a   : > { %3368 = vrot.lane.b32.xlu1 %v7059_v28, %s6531_s27 }
 0x45c   : > { %3366 = vrot.lane.b32.xlu0 %v6958_v56, %s6531_s27  ;;  %v7588_v56 = vpop.xlane.xlu1 %1963 }
 0x45e   : > { %3370 = vrot.lane.b32.xlu1 %v7098_v45, %s6531_s27 }
 0x460   : > { %3372 = vrot.lane.b32.xlu0 %v7071_v58, %s6531_s27  ;;  %v7598_v28 = vpop.xlane.xlu1 %1967  ;;  %v7606_v58 = vpop.permute.xlu0 %6077 }
 0x462   : > { %3374 = vrot.lane.b32.xlu1 %v7113_v1, %s6531_s27 }
 0x464   : > { %3378 = vrot.lane.b32.xlu0 %v7146_v2, %s6531_s27  ;;  %v7608_v35 = vpop.xlane.xlu1 %1965 }
 0x466   : > { %3376 = vrot.lane.b32.xlu1 %v7086_v24, %s6531_s27 }
 0x468   : > { %3380 = vrot.lane.b32.xlu0 %v7117_v15, %s6531_s27  ;;  %v7614_v24 = vpop.xlane.xlu1 %1971 }
 0x46a   : > { %6137 = vrot.lane.b32.xlu1 %v6983_v23, %s6530_s15 }
 0x46c   : > { %3382 = vrot.lane.b32.xlu0 %v7047_v25, %s6531_s27  ;;  %v7612_v25 = vpop.xlane.xlu0 %1961  ;;  %v7620_v43 = vpop.xlane.xlu1 %1975 }
 0x46e   : > { %3390 = vrot.lane.b32.xlu1 %v7103_v20, %s6531_s27 }
 0x470   : > { %3384 = vrot.lane.b32.xlu0 %v7131_v44, %s6531_s27  ;;  %v7618_v45 = vpop.xlane.xlu0 %1969 }
 0x472   : > { %6142 = vrot.lane.b32.xlu1 %v6994_v27, %s6530_s15 }
 0x474   : > { %3386 = vrot.lane.b32.xlu0 %v7076_v40, %s6531_s27  ;;  %v7622_v20 = vpop.xlane.xlu0 %1973  ;;  %v7624_v40 = vpop.xlane.xlu1 %1979 }
 0x478   : > { %3388 = vrot.lane.b32.xlu0 %v7149_v3, %s6531_s27  ;;  %v7626_v1 = vpop.xlane.xlu0 %1977  ;;  %v1253_v15 = vpop.xlane.xlu1 %1252 }
 0x47c   : > { %3392 = vrot.lane.b32.xlu0 %v7122_v49, %s6531_s27  ;;  %v7628_v44 = vpop.xlane.xlu0 %1981  ;;  %v1257_v13 = vpop.xlane.xlu1 %1256 }
 0x480   : > { %v1251_v2 = vpop.xlane.xlu0 %1250  ;;  %v1261_v3 = vpop.xlane.xlu1 %1260 }
 0x481   : > { %6280 = vrcp.f32 %v1251_v2 }
 0x482   : > { %6282 = vrcp.f32 %v1253_v15  ;;  %v5692_v15 = vpack.c.bf16 %v6070_v51, %v6069_v37 }
 0x484   : > { %v1255_v8 = vpop.xlane.xlu0 %1254  ;;  %v7630_v59 = vpop.xlane.xlu1 %1983 }
 0x485   : > { %6284 = vrcp.f32 %v1255_v8  ;;  %v6080_v8 = vunpack.i.h.bf16 %v7606_v58 }
 0x486   : > { %6286 = vrcp.f32 %v1257_v13 }
 0x488   : > { %v1259_v49 = vpop.xlane.xlu0 %1258  ;;  %v7632_v38 = vpop.permute.xlu1 %6092 }
 0x489   : > { %6288 = vrcp.f32 %v1259_v49  ;;  %v6079_v49 = vunpack.i.l.bf16 %v7606_v58  ;;  %v6084_v58 = vunpack.i.l.bf16 %v7582_v46 }
 0x48a   : > { %6290 = vrcp.f32 %v1261_v3 }
 0x48b   : > { %v6281_v34 = vpop.eup %6280 }
 0x48c   : > { %v1265_v54 = vpop.xlane.xlu0 %1264  ;;  %v6283_v53 = vpop.eup %6282 }
 0x48f   : > { %v6285_v42 = vpop.eup %6284 }
 0x490   : > { %v7636_v4 = vpop.permute.xlu0 %6087  ;;  %v6287_v60 = vpop.eup %6286 }
 0x493   : > { %v6289_v3 = vpop.eup %6288 }
 0x4aa   : > { %v7634_v10 = vpop.xlane.xlu1 %1987 }
 0x4ae   : > { %v1263_v29 = vpop.xlane.xlu1 %1262 }
 0x4af   : > { %6292 = vrcp.f32 %v1263_v29  ;;  %v5696_v29 = vpack.c.bf16 %v6075_v5, %v6074_v16 }
 0x4b0   : > { %v4998_v61 = vpop.f32.mrb[16].mxu1  ;;  %6294 = vrcp.f32 %v1265_v54 }
 0x4b1   : > { %v1348_v6 = vpop.f32.mrb[17].mxu1  ;;  %v1444_v12 = vmul.f32 %v6283_v53, %v4998_v61  ;;  %v6291_v61 = vpop.eup %6290 }
 0x4b2   : > { %v1443_v41 = vmul.f32 %v6281_v34, %v1348_v6  ;;  %v1269_v33 = vpop.xlane.xlu1 %1268 }
 0x4b3   : > { %v7640_v14 = vpop.xlane.xlu0 %1985 }
 0x4b4   : > { %v5001_v0 = vpop.f32.mrb[18].mxu1  ;;  %5028 = vmatprep.mubr.msk.f32.mxu1 %vm912_vm0, %v1443_v41  ;;  %v6085_v41 = vunpack.i.h.bf16 %v7582_v46  ;;  %v6089_v46 = vunpack.i.l.bf16 %v7636_v4 }
 0x4b5   : > { %v1358_v11 = vpop.f32.mrb[19].mxu1  ;;  %5029 = vmatmul.mubr.msk.f32.vlgmr.msra.gmra.mrb[32].mxu1 %vm912_vm0, %v1444_v12  ;;  %v1446_v36 = vmul.f32 %v6287_v60, %v5001_v0  ;;  %v5700_v12 = vpack.c.bf16 %v6080_v8, %v6079_v49 }
 0x4b6   : > { %v1445_v26 = vmul.f32 %v6285_v42, %v1358_v11  ;;  %5687 = vmatpush3.bf16.msra.mxu1 %v7494_v17  ;;  %v1267_v19 = vpop.xlane.xlu1 %1266  ;;  %v5704_v16 = vpack.c.bf16 %v6085_v41, %v6084_v58 }
 0x4b7   : > { %5689 = vmatprep.subr.bf16.mxu1 %v5688_v30  ;;  %v7647_v57 = vpop.xlane.xlu0 %1989  ;;  %6296 = vrcp.f32 %v1267_v19 }
 0x4b8   : > { %5031 = vmatprep.mubr.msk.f32.mxu1 %vm912_vm0, %v1445_v26  ;;  %6298 = vrcp.f32 %v1269_v33 }
 0x4b9   : > { %5032 = vmatmul.mubr.msk.f32.gmra.mrb[34].mxu1 %vm912_vm0, %v1446_v36  ;;  %v6293_v53 = vpop.eup %6292  ;;  %v6090_v36 = vunpack.i.h.bf16 %v7636_v4 }
 0x4ba   : > { %5691 = vmatpush3.bf16.msra.mxu1 %v5688_v30  ;;  %v1273_v13 = vpop.xlane.xlu1 %1272  ;;  %v6295_v0 = vpop.eup %6294 }
 0x4bb   : > { %5693 = vmatprep.subr.bf16.mxu1 %v5692_v15  ;;  %v1279_v17 = vpop.xlane.xlu0 %1278 }
 0x4bc   : > { %v5004_v2 = vpop.f32.mrb[20].mxu1 }
 0x4bd   : > { %v1368_v54 = vpop.f32.mrb[21].mxu1  ;;  %v1448_v39 = vmul.f32 %v6291_v61, %v5004_v2 }
 0x4be   : > { %v1447_v34 = vmul.f32 %v6289_v3, %v1368_v54  ;;  %5695 = vmatpush3.bf16.msra.mxu1 %v5692_v15  ;;  %v1271_v31 = vpop.xlane.xlu1 %1270 }
 0x4bf   : > { %5697 = vmatprep.subr.bf16.mxu1 %v5696_v29  ;;  %6300 = vrcp.f32 %v1271_v31  ;;  %v7655_v63 = vpop.xlane.xlu0 %1991 }
 0x4c0   : > { %6302 = vrcp.f32 %v1273_v13  ;;  %v5007_v6 = vpop.f32.mrb[22].mxu1  ;;  %5034 = vmatprep.mubr.msk.f32.mxu1 %vm912_vm0, %v1447_v34  ;;  %v1993_v13 = vsub.f32 %v7392_v21, %v7612_v25  ;;  %v6095_v21 = vunpack.i.h.bf16 %v7632_v38  ;;  %v6094_v25 = vunpack.i.l.bf16 %v7632_v38 }
 0x4c1   : > { %v1378_v33 = vpop.f32.mrb[23].mxu1  ;;  %5035 = vmatmul.mubr.msk.f32.gmra.mrb[36].mxu1 %vm912_vm0, %v1448_v39  ;;  %v1450_v37 = vmul.f32 %v6295_v0, %v5007_v6  ;;  %v6297_v19 = vpop.eup %6296  ;;  %v5708_v39 = vpack.c.bf16 %v6090_v36, %v6089_v46  ;;  %v8418_v6 = vld [vmem:[#allocation11_spill] sm:$0xff] }
 0x4c2   : > { %v1449_v42 = vmul.f32 %v6293_v53, %v1378_v33  ;;  %5699 = vmatpush3.bf16.msra.mxu1 %v5696_v29  ;;  %v1277_v51 = vpop.xlane.xlu1 %1276  ;;  %v6299_v15 = vpop.eup %6298  ;;  %v8417_v29 = vld [vmem:[#allocation9_spill] sm:$0xff]  ;;  %v1995_v53 = vsub.f32 %v8418_v6, %v7608_v35  ;;  %v2009_v41 = vmul.f32 1.442695, %v1993_v13  ;;  %v2315_v0 = vld [vmem:[%s8381_s5 + $0x28] sm:$0xff] }
 0x4c3   : > { %5701 = vmatprep.subr.bf16.mxu1 %v5700_v12  ;;  %v6098_v11 = vpop.permute.xlu0 %6097  ;;  %6304 = vrcp.f32 %v1277_v51  ;;  %v1994_v4 = vsub.f32 %v8417_v29, %v7588_v56  ;;  %v8419_v51 = vld [vmem:[#allocation10_spill] sm:$0xff] }
 0x4c4   : > { %v6100_v30 = vunpack.i.h.bf16 %v6098_v11  ;;  %v6099_v60 = vunpack.i.l.bf16 %v6098_v11  ;;  %v5010_v26 = vpop.f32.mrb[24].mxu1  ;;  %5037 = vmatprep.mubr.msk.f32.mxu1 %vm912_vm0, %v1449_v42 }
 0x4c5   : > { %v1388_v5 = vpop.f32.mrb[25].mxu1  ;;  %5038 = vmatmul.mubr.msk.f32.gmra.mrb[38].mxu1 %vm912_vm0, %v1450_v37  ;;  %v1452_v49 = vmul.f32 %v6299_v15, %v5010_v26  ;;  %v2011_v35 = vmul.f32 1.442695, %v1994_v4  ;;  %v1996_v37 = vsub.f32 %v8419_v51, %v7598_v28  ;;  %v1997_v26 = vsub.f32 %v7402_v7, %v7618_v45 }
 0x4c6   : > { %v5812_v2 = vpack.c.bf16 %v6100_v30, %v6099_v60  ;;  %v1451_v3 = vmul.f32 %v6297_v19, %v1388_v5  ;;  %5703 = vmatpush3.bf16.msra.mxu1 %v5700_v12  ;;  %v1275_v8 = vpop.xlane.xlu1 %1274  ;;  %v5712_v30 = vpack.c.bf16 %v6095_v21, %v6094_v25  ;;  %v2013_v60 = vmul.f32 1.442695, %v1995_v53 }
 0x4c7   : > { %5705 = vmatprep.subr.bf16.mxu1 %v5704_v16  ;;  %6306 = vrcp.f32 %v1275_v8  ;;  %v6108_v54 = vpop.permute.xlu0 %6107  ;;  %v2015_v29 = vmul.f32 1.442695, %v1996_v37  ;;  %v1998_v7 = vsub.f32 %v7387_v50, %v7614_v24  ;;  %v8421_v24 = vld [vmem:[#allocation12_spill] sm:$0xff]  ;;  %v2001_v53 = vsub.f32 %v7426_v62, %v7626_v1  ;;  %v2317_v1 = vld [vmem:[%s8381_s5 + $0x38] sm:$0xff] }
 0x4c8   : > { %5814 = vmatprep.subr.msk.bf16.mxu0 %vm6978_vm1, %v5812_v2  ;;  %v5013_v61 = vpop.f32.mrb[26].mxu1  ;;  %5040 = vmatprep.mubr.msk.f32.mxu1 %vm912_vm0, %v1451_v3  ;;  %6308 = vrcp.f32 %v1279_v17  ;;  %v2314_v17 = vld [vmem:[%s8381_s5 + $0x20] sm:$0xff]  ;;  %v6110_v46 = vunpack.i.h.bf16 %v6108_v54  ;;  %v6109_v5 = vunpack.i.l.bf16 %v6108_v54  ;;  %v2000_v6 = vsub.f32 %v8421_v24, %v7620_v43  ;;  %v2316_v62 = vld [vmem:[%s8381_s5 + $0x30] sm:$0xff] }
 0x4c9   : > { %v6301_v34 = vpop.eup %6300  ;;  %5817 = vmatpush3.bf16.xpose.msk.msra.mxu0 %vm6978_vm1, %v5812_v2  ;;  %v1398_v31 = vpop.f32.mrb[27].mxu1  ;;  %5041 = vmatmul.mubr.msk.f32.gmra.mrb[40].mxu1 %vm912_vm0, %v1452_v49  ;;  %v7693_v36 = vpack.c.bf16 %v2315_v0, %v2314_v17  ;;  %v2025_v51 = vmul.f32 1.442695, %v2001_v53 }
 0x4ca   : > { %v6303_v56 = vpop.eup %6302  ;;  %v1453_v58 = vmul.f32 %v6301_v34, %v1398_v31  ;;  %5707 = vmatpush3.bf16.msra.mxu1 %v5704_v16  ;;  %v1281_v33 = vpop.xlane.xlu1 %1280  ;;  %v8420_v34 = vld [vmem:[#allocation14_spill] sm:$0xff]  ;;  %v5824_v25 = vpack.c.bf16 %v6110_v46, %v6109_v5  ;;  %v2004_v46 = vsub.f32 %v7440_v22, %v7630_v59  ;;  %v2006_v59 = vsub.f32 %v7502_v55, %v7634_v10 }
 0x4cb   : > { %v1454_v12 = vmul.f32 %v6303_v56, %v5013_v61  ;;  %5709 = vmatprep.subr.bf16.mxu1 %v5708_v39  ;;  %6310 = vrcp.f32 %v1281_v33  ;;  %v7679_v38 = vpop.permute.xlu0 %6112  ;;  %v2017_v61 = vmul.f32 1.442695, %v1997_v26  ;;  %v1999_v21 = vsub.f32 %v8420_v34, %v7622_v20 }
 0x4cc   : > { %v5016_v42 = vpop.f32.mrb[28].mxu1  ;;  %5043 = vmatprep.mubr.msk.f32.mxu1 %vm912_vm0, %v1453_v58  ;;  %6312 = vpow2.f32 %v2009_v41  ;;  %v2019_v20 = vmul.f32 1.442695, %v1998_v7  ;;  %v6114_v43 = vunpack.i.l.bf16 %v7679_v38  ;;  %v5720_v26 = vpack.c.bf16 %v2317_v1, %v2316_v62 }
 0x4cd   : > { %v1408_v11 = vpop.f32.mrb[29].mxu1  ;;  %5044 = vmatmul.mubr.msk.f32.gmra.mrb[42].mxu1 %vm912_vm0, %v1454_v12  ;;  %v6305_v28 = vpop.eup %6304  ;;  %6314 = vpow2.f32 %v2011_v35  ;;  %v2021_v33 = vmul.f32 1.442695, %v1999_v21  ;;  %v6115_v12 = vunpack.i.h.bf16 %v7679_v38  ;;  %v8422_v35 = vld [vmem:[#allocation13_spill] sm:$0xff]  ;;  %v2031_v22 = vmul.f32 1.442695, %v2004_v46 }
 0x4ce   : > { %5711 = vmatpush3.bf16.msra.mxu1 %v5708_v39  ;;  %v6103_v19 = vpop.permute.xlu1 %6102  ;;  %6316 = vpow2.f32 %v2013_v60  ;;  %v1456_v31 = vmul.f32 %v6305_v28, %v5016_v42  ;;  %v2023_v42 = vmul.f32 1.442695, %v2000_v6  ;;  %v2002_v38 = vsub.f32 %v8422_v35, %v7624_v40 }
 0x4cf   : > { %5713 = vmatprep.subr.bf16.mxu1 %v5712_v30  ;;  %v6105_v16 = vunpack.i.h.bf16 %v6103_v19  ;;  %v6104_v15 = vunpack.i.l.bf16 %v6103_v19  ;;  %v7695_v13 = vpop.permute.xlu0 %6117  ;;  %6318 = vpow2.f32 %v2015_v29  ;;  %v5830_v60 = vpack.c.bf16 %v6115_v12, %v6114_v43 }
 0x4d0   : > { %v5019_v2 = vpop.f32.mrb[30].mxu1  ;;  %6320 = vpow2.f32 %v2017_v61  ;;  %v2027_v40 = vmul.f32 1.442695, %v2002_v38  ;;  %v2035_v55 = vmul.f32 1.442695, %v2006_v59  ;;  %v2008_v10 = vsub.f32 %v7528_v47, %v7655_v63 }
 0x4d1   : > { %v6307_v3 = vpop.eup %6306  ;;  %v5818_v8 = vpack.c.bf16 %v6105_v16, %v6104_v15  ;;  %v1418_v49 = vpop.f32.mrb[31].mxu1  ;;  %6322 = vpow2.f32 %v2019_v20  ;;  %v6120_v16 = vunpack.i.h.bf16 %v7695_v13  ;;  %v6119_v15 = vunpack.i.l.bf16 %v7695_v13 }
 0x4d2   : > { %v1455_v45 = vmul.f32 %v6307_v3, %v1408_v11  ;;  %5715 = vmatpush3.bf16.msra.mxu1 %v5712_v30  ;;  %v7699_v4 = vpop.permute.xlu1 %6122  ;;  %v6309_v54 = vpop.eup %6308  ;;  %6324 = vpow2.f32 %v2021_v33  ;;  %v2003_v30 = vsub.f32 %v7431_v48, %v7628_v44  ;;  %v2005_v44 = vsub.f32 %v7511_v52, %v7640_v14 }
 0x4d3   : > { %v7703_v39 = vpop.permute.xlu0 %6127  ;;  %5820 = vmatprep.subr.msk.bf16.mxu0 %vm6978_vm1, %v5818_v8  ;;  %5717 = vmatprep.subr.bf16.mxu1 %v7693_v36  ;;  %v1457_v56 = vmul.f32 %v6309_v54, %v1418_v49  ;;  %6326 = vpow2.f32 %v2023_v42  ;;  %v2007_v14 = vsub.f32 %v7520_v32, %v7647_v57  ;;  %v5836_v13 = vpack.c.bf16 %v6120_v16, %v6119_v15 }
 0x4d4   : > { %5046 = vmatprep.mubr.msk.f32.mxu1 %vm912_vm0, %v1455_v45  ;;  %5823 = vmatpush3.bf16.xpose.msk.msra.mxu0 %vm6978_vm1, %v5818_v8  ;;  %6328 = vpow2.f32 %v2025_v51  ;;  %v2029_v48 = vmul.f32 1.442695, %v2003_v30  ;;  %v2033_v52 = vmul.f32 1.442695, %v2005_v44  ;;  %v6125_v29 = vunpack.i.h.bf16 %v7699_v4 }
 0x4d5   : > { %v6311_v50 = vpop.eup %6310  ;;  %5047 = vmatmul.mubr.msk.f32.gmra.mrb[44].mxu1 %vm912_vm0, %v1456_v31  ;;  %5826 = vmatprep.subr.msk.bf16.mxu0 %vm6978_vm1, %v5824_v25  ;;  %6330 = vpow2.f32 %v2027_v40  ;;  %v2037_v57 = vmul.f32 1.442695, %v2007_v14  ;;  %v6124_v7 = vunpack.i.l.bf16 %v7699_v4  ;;  %v2039_v54 = vmul.f32 1.442695, %v2008_v10 }
 0x4d6   : > { %v1458_v41 = vmul.f32 %v6311_v50, %v5019_v2  ;;  %v7718_v58 = vpop.permute.xlu1 %6132  ;;  %5049 = vmatprep.mubr.msk.f32.mxu1 %vm912_vm0, %v1457_v56  ;;  %v7723_v0 = vpop.eup %6312  ;;  %6332 = vpow2.f32 %v2029_v48  ;;  %v6130_v31 = vunpack.i.h.bf16 %v7703_v39  ;;  %v6129_v56 = vunpack.i.l.bf16 %v7703_v39 }
 0x4d7   : > { %v3367_v17 = vpop.permute.xlu0 %3366  ;;  %v7738_v11 = vpop.eup %6314  ;;  %6334 = vpow2.f32 %v2031_v22  ;;  %v5842_v47 = vpack.c.bf16 %v6125_v29, %v6124_v7  ;;  %v6135_v39 = vunpack.i.h.bf16 %v7718_v58  ;;  %v8425_v29 = vld [vmem:[#allocation8_spill] sm:$0xff]  ;;  %v8426_v7 = vld [vmem:[#allocation2_spill] sm:$0xff] }
 0x4d8   : > { %5372 = vmatprep.mubr.msk.f32.mxu0 %vm912_vm0, %v3367_v17  ;;  %v7742_v19 = vpop.eup %6316  ;;  %6336 = vpow2.f32 %v2033_v52  ;;  %v5848_v6 = vpack.c.bf16 %v6130_v31, %v6129_v56 }
 0x4d9   : > { %5050 = vmatmul.mubr.msk.f32.gmra.mrb[46].mxu1 %vm912_vm0, %v1458_v41  ;;  %v7759_v28 = vpop.eup %6318  ;;  %6338 = vpow2.f32 %v2035_v55  ;;  %v6134_v41 = vunpack.i.l.bf16 %v7718_v58  ;;  %v8423_v55 = vld [vmem:[#allocation7_spill] sm:$0xff] }
 0x4da   : > { %v7735_v37 = vpop.permute.xlu1 %3368  ;;  %5140 = vmatprep.mubr.f32.mxu1 %v7723_v0  ;;  %v7761_v2 = vpop.eup %6320  ;;  %6340 = vpow2.f32 %v2037_v57 }
 0x4db   : > { %v7771_v3 = vpop.eup %6322  ;;  %6342 = vpow2.f32 %v2039_v54  ;;  %v3373_v12 = vpop.permute.xlu0 %3372  ;;  %v5854_v43 = vpack.c.bf16 %v6135_v39, %v6134_v41  ;;  %v8427_v54 = vld [vmem:[#allocation4_spill] sm:$0xff] }
 0x4dc   : > { %5829 = vmatpush3.bf16.xpose.msk.msra.mxu0 %vm6978_vm1, %v5824_v25  ;;  %v7775_v8 = vpop.eup %6324 }
 0x4dd   : > { %5141 = vmatmul.mubr.f32.vlgmr.msra.gmra.mrb[48].mxu1 %v7738_v11  ;;  %5832 = vmatprep.subr.msk.bf16.mxu0 %vm6978_vm1, %v5830_v60  ;;  %v7785_v32 = vpop.eup %6326 }
 0x4de   : > { %v7751_v5 = vpop.permute.xlu1 %3370  ;;  %5143 = vmatprep.mubr.f32.mxu1 %v7742_v19  ;;  %5719 = vmatpush3.bf16.msra.mxu1 %v7693_v36  ;;  %v7789_v45 = vpop.eup %6328 }
 0x4df   : > { %5721 = vmatprep.subr.bf16.mxu1 %v5720_v26  ;;  %v7793_v21 = vpop.eup %6330  ;;  %v3379_v17 = vpop.permute.xlu0 %3378 }
 0x4e0   : > { %v7797_v25 = vpop.eup %6332 }
 0x4e1   : > { %5144 = vmatmul.mubr.f32.gmra.mrb[50].mxu1 %v7759_v28  ;;  %v7808_v50 = vpop.eup %6334 }
 0x4e2   : > { %v7766_v36 = vpop.permute.xlu1 %3374  ;;  %5146 = vmatprep.mubr.f32.mxu1 %v7761_v2  ;;  %5723 = vmatpush3.bf16.msra.mxu1 %v5720_v26  ;;  %v7810_v24 = vpop.eup %6336 }
 0x4e3   : > { %v7814_v20 = vpop.eup %6338  ;;  %v3381_v62 = vpop.permute.xlu0 %3380 }
 0x4e4   : > { %5835 = vmatpush3.bf16.xpose.msk.msra.mxu0 %vm6978_vm1, %v5830_v60  ;;  %v7818_v53 = vpop.eup %6340 }
 0x4e5   : > { %5147 = vmatmul.mubr.f32.gmra.mrb[52].mxu1 %v7771_v3  ;;  %5838 = vmatprep.subr.msk.bf16.mxu0 %vm6978_vm1, %v5836_v13  ;;  %v7826_v33 = vpop.eup %6342 }
 0x4e6   : > { %v7782_v49 = vpop.permute.xlu1 %3376  ;;  %5149 = vmatprep.mubr.f32.mxu1 %v7775_v8 }
 0x4e7   : > { %v3383_v35 = vpop.permute.xlu0 %3382 }
 0x4e9   : > { %5150 = vmatmul.mubr.f32.gmra.mrb[54].mxu1 %v7785_v32 }
 0x4ea   : > { %v6138_v61 = vpop.permute.xlu1 %6137  ;;  %5152 = vmatprep.mubr.f32.mxu1 %v7789_v45 }
 0x4eb   : > { %v6140_v63 = vunpack.i.h.bf16 %v6138_v61  ;;  %v6139_v34 = vunpack.i.l.bf16 %v6138_v61  ;;  %v3385_v60 = vpop.permute.xlu0 %3384 }
 0x4ec   : > { %5841 = vmatpush3.bf16.xpose.msk.msra.mxu0 %vm6978_vm1, %v5836_v13 }
 0x4ed   : > { %5153 = vmatmul.mubr.f32.gmra.mrb[56].mxu1 %v7793_v21  ;;  %5844 = vmatprep.subr.msk.bf16.mxu0 %vm6978_vm1, %v5842_v47  ;;  %v7802_v4 = vpack.c.bf16 %v6140_v63, %v6139_v34 }
 0x4ee   : > { %5155 = vmatprep.mubr.f32.mxu1 %v7797_v25 }
 0x4ef   : > { %5773 = vmatprep.subr.bf16.mxu1 %v7802_v4  ;;  %v3387_v48 = vpop.permute.xlu0 %3386 }
 0x4f1   : > { %5156 = vmatmul.mubr.f32.gmra.mrb[58].mxu1 %v7808_v50 }
 0x4f2   : > { %5158 = vmatprep.mubr.f32.mxu1 %v7810_v24 }
 0x4f3   : > { %v3389_v15 = vpop.permute.xlu0 %3388 }
 0x4f4   : > { %5847 = vmatpush3.bf16.xpose.msk.msra.mxu0 %vm6978_vm1, %v5842_v47 }
 0x4f5   : > { %5159 = vmatmul.mubr.f32.gmra.mrb[60].mxu1 %v7814_v20  ;;  %5850 = vmatprep.subr.msk.bf16.mxu0 %vm6978_vm1, %v5848_v6 }
 0x4f6   : > { %5161 = vmatprep.mubr.f32.mxu1 %v7818_v53 }
 0x4f7   : > { %v3393_v13 = vpop.permute.xlu0 %3392 }
 0x4f9   : > { %5162 = vmatmul.mubr.f32.gmra.mrb[62].mxu1 %v7826_v33 }
 0x4fc   : > { %5853 = vmatpush3.bf16.xpose.msk.msra.mxu0 %vm6978_vm1, %v5848_v6 }
 0x4fd   : > { %5856 = vmatprep.subr.msk.bf16.mxu0 %vm6978_vm1, %v5854_v43 }
 0x504   : > { %5859 = vmatpush3.bf16.xpose.msk.msra.mxu0 %vm6978_vm1, %v5854_v43 }
 0x508   : > { %v5230_v1 = vpop.f32.mrb[64].mxu0 }
 0x509   : > { %v7835_v42 = vmul.f32 0.17677669, %v5230_v1  ;;  %v2721_v58 = vpop.f32.mrb[65].mxu0 }
 0x50a   : > { %v7837_v38 = vmul.f32 0.17677669, %v2721_v58 }
 0x50b   : > { %2818 = vmax.xlane.f32.xlu1 %v7835_v42  ;;  %5373 = vmatmul.mubr.msk.f32.vlgmr.msra.gmra.mrb[80].mxu0 %vm912_vm0, %v7735_v37 }
 0x50c   : > { %v5233_v51 = vpop.f32.mrb[66].mxu0  ;;  %2816 = vmax.xlane.f32.xlu0 %v7837_v38  ;;  %5375 = vmatprep.mubr.msk.f32.mxu0 %vm912_vm0, %v7751_v5 }
 0x50d   : > { %v2731_v18 = vpop.f32.mrb[67].mxu0  ;;  %v7851_v37 = vmul.f32 0.17677669, %v5233_v51 }
 0x50e   : > { %v7845_v30 = vmul.f32 0.17677669, %v2731_v18 }
 0x50f   : > { %5376 = vmatmul.mubr.msk.f32.gmra.mrb[82].mxu0 %vm912_vm0, %v3373_v12 }
 0x510   : > { %2820 = vmax.xlane.f32.xlu1 %v7845_v30  ;;  %v5236_v26 = vpop.f32.mrb[68].mxu0  ;;  %5378 = vmatprep.mubr.msk.f32.mxu0 %vm912_vm0, %v7766_v36  ;;  %v3391_v36 = vpop.permute.xlu1 %3390 }
 0x511   : > { %v2741_v40 = vpop.f32.mrb[69].mxu0  ;;  %v7880_v61 = vmul.f32 0.17677669, %v5236_v26 }
 0x512   : > { %v7883_v47 = vmul.f32 0.17677669, %v2741_v40 }
 0x513   : > { %5379 = vmatmul.mubr.msk.f32.gmra.mrb[84].mxu0 %vm912_vm0, %v7782_v49  ;;  %v8424_v49 = vld [vmem:[#allocation3_spill] sm:$0xff] }
 0x514   : > { %2822 = vmax.xlane.f32.xlu1 %v7851_v37  ;;  %v5239_v46 = vpop.f32.mrb[70].mxu0  ;;  %5381 = vmatprep.mubr.msk.f32.mxu0 %vm912_vm0, %v3379_v17 }
 0x515   : > { %v2751_v5 = vpop.f32.mrb[71].mxu0  ;;  %v7885_v63 = vmul.f32 0.17677669, %v5239_v46  ;;  %v8429_v46 = vld [vmem:[#allocation6_spill] sm:$0xff] }
 0x516   : > { %v7889_v34 = vmul.f32 0.17677669, %v2751_v5 }
 0x517   : > { %5382 = vmatmul.mubr.msk.f32.gmra.mrb[86].mxu0 %vm912_vm0, %v3381_v62 }
 0x518   : > { %v7858_v44 = vpop.f32.mrb[72].mxu0  ;;  %5384 = vmatprep.mubr.msk.f32.mxu0 %vm912_vm0, %v3383_v35 }
 0x519   : > { %v2761_v16 = vpop.f32.mrb[73].mxu0  ;;  %v7936_v12 = vmul.f32 0.17677669, %v7858_v44 }
 0x51b   : > { %5385 = vmatmul.mubr.msk.f32.gmra.mrb[88].mxu0 %vm912_vm0, %v3385_v60 }
 0x51c   : > { %v7862_v22 = vpop.f32.mrb[74].mxu0  ;;  %5387 = vmatprep.mubr.msk.f32.mxu0 %vm912_vm0, %v3387_v48 }
 0x51d   : > { %v2771_v59 = vpop.f32.mrb[75].mxu0  ;;  %v7943_v17 = vmul.f32 0.17677669, %v7862_v22 }
 0x51f   : > { %5388 = vmatmul.mubr.msk.f32.gmra.mrb[90].mxu0 %vm912_vm0, %v3389_v15 }
 0x520   : > { %v7866_v52 = vpop.f32.mrb[76].mxu0  ;;  %5390 = vmatprep.mubr.msk.f32.mxu0 %vm912_vm0, %v3391_v36 }
 0x521   : > { %v2781_v14 = vpop.f32.mrb[77].mxu0 }
 0x522   : > { %3394 = vrot.lane.b32.xlu0 %v8423_v55, %s6531_s27  ;;  %v7923_v31 = vmul.f32 0.17677669, %v2781_v14 }
 0x523   : > { %5391 = vmatmul.mubr.msk.f32.gmra.mrb[92].mxu0 %vm912_vm0, %v3393_v13 }
 0x524   : > { %v5251_v10 = vpop.f32.mrb[78].mxu0 }
 0x525   : > { %6152 = vrot.lane.b32.xlu1 %v8424_v49, %s6530_s15  ;;  %v2791_v57 = vpop.f32.mrb[79].mxu0  ;;  %v7932_v41 = vmul.f32 0.17677669, %v5251_v10 }
 0x526   : > { %3396 = vrot.lane.b32.xlu0 %v8425_v29, %s6531_s27  ;;  %v7928_v6 = vmul.f32 0.17677669, %v2791_v57 }
 0x52a   : > { %6147 = vrot.lane.b32.xlu0 %v8426_v7, %s6530_s15 }
 0x52e   : > { %6157 = vrot.lane.b32.xlu0 %v8427_v54, %s6530_s15 }
 0x549   : > { %2826 = vmax.xlane.f32.xlu1 %v7880_v61 }
 0x54d   : > { %2830 = vmax.xlane.f32.xlu1 %v7885_v63  ;;  %2824 = vmax.xlane.f32.xlu0 %v7883_v47 }
 0x551   : > { %2043 = vadd.xlane.f32.xlu1 %v7738_v11  ;;  %2828 = vmax.xlane.f32.xlu0 %v7889_v34  ;;  %v7903_v11 = vmul.f32 0.17677669, %v2761_v16 }
 0x555   : > { %2047 = vadd.xlane.f32.xlu1 %v7759_v28  ;;  %2041 = vadd.xlane.f32.xlu0 %v7723_v0  ;;  %v7907_v0 = vmul.f32 0.17677669, %v2771_v59  ;;  %v7918_v28 = vpop.permute.xlu1 %6142 }
 0x559   : > { %2051 = vadd.xlane.f32.xlu1 %v7771_v3  ;;  %2045 = vadd.xlane.f32.xlu0 %v7742_v19  ;;  %v8428_v19 = vld [vmem:[#allocation5_spill] sm:$0xff] }
 0x55d   : > { %2053 = vadd.xlane.f32.xlu1 %v7775_v8  ;;  %2049 = vadd.xlane.f32.xlu0 %v7761_v2 }
 0x561   : > { %2059 = vadd.xlane.f32.xlu1 %v7793_v21  ;;  %2055 = vadd.xlane.f32.xlu0 %v7785_v32 }
 0x565   : > { %2057 = vadd.xlane.f32.xlu1 %v7789_v45  ;;  %2069 = vadd.xlane.f32.xlu0 %v7818_v53 }
 0x569   : > { %2063 = vadd.xlane.f32.xlu1 %v7808_v50  ;;  %2832 = vmax.xlane.f32.xlu0 %v7903_v11 }
 0x56d   : > { %2061 = vadd.xlane.f32.xlu1 %v7797_v25  ;;  %2836 = vmax.xlane.f32.xlu0 %v7907_v0 }
 0x571   : > { %2067 = vadd.xlane.f32.xlu1 %v7814_v20 }
 0x575   : > { %2065 = vadd.xlane.f32.xlu1 %v7810_v24 }
 0x579   : > { %2071 = vadd.xlane.f32.xlu1 %v7826_v33 }
 0x583   : > { %6167 = vrot.lane.b32.xlu0 %v7050_v9, %s6530_s15 }
 0x58a   : > { %6162 = vrot.lane.b32.xlu1 %v8428_v19, %s6530_s15 }
 0x598   : > { %v2819_v2 = vpop.xlane.xlu1 %2818 }
 0x599   : > { %v2817_v3 = vpop.xlane.xlu0 %2816  ;;  %v2849_v21 = vsub.f32 %v7835_v42, %v2819_v2 }
 0x59a   : > { %v2848_v8 = vsub.f32 %v7837_v38, %v2817_v3 }
 0x59b   : > { %v2866_v50 = vmul.f32 1.442695, %v2849_v21 }
 0x59c   : > { %v2864_v25 = vmul.f32 1.442695, %v2848_v8 }
 0x59d   : > { %v3395_v32 = vpop.permute.xlu0 %3394  ;;  %v2821_v45 = vpop.xlane.xlu1 %2820 }
 0x59e   : > { %5393 = vmatprep.mubr.msk.f32.mxu0 %vm912_vm0, %v3395_v32  ;;  %6344 = vpow2.f32 %v2864_v25  ;;  %v2850_v24 = vsub.f32 %v7845_v30, %v2821_v45 }
 0x59f   : > { %6346 = vpow2.f32 %v2866_v50 }
 0x5a0   : > { %v2868_v53 = vmul.f32 1.442695, %v2850_v24 }
 0x5a1   : > { %v3397_v56 = vpop.permute.xlu0 %3396  ;;  %v2823_v20 = vpop.xlane.xlu1 %2822 }
 0x5a2   : > { %2840 = vmax.xlane.f32.xlu0 %v7923_v31  ;;  %5394 = vmatmul.mubr.msk.f32.gmra.mrb[94].mxu0 %vm912_vm0, %v3397_v56  ;;  %v2851_v39 = vsub.f32 %v7851_v37, %v2823_v20  ;;  %6348 = vpow2.f32 %v2868_v53  ;;  %v8008_v53 = vmul.f32 0.17677669, %v7866_v52 }
 0x5a4   : > { %v2870_v33 = vmul.f32 1.442695, %v2851_v39 }
 0x5a5   : > { %v7989_v59 = vpop.permute.xlu0 %6147  ;;  %v7991_v36 = vpop.permute.xlu1 %6152 }
 0x5a6   : > { %2844 = vmax.xlane.f32.xlu0 %v7928_v6  ;;  %6350 = vpow2.f32 %v2870_v33 }
 0x5a8   : > { %v7938_v43 = vpop.eup %6344 }
 0x5a9   : > { %v7947_v1 = vpop.eup %6346  ;;  %v7993_v14 = vpop.permute.xlu0 %6157 }
 0x5aa   : > { %2846 = vmax.xlane.f32.xlu0 %v7932_v41 }
 0x5ac   : > { %v7955_v35 = vpop.eup %6348 }
 0x5ae   : > { %2834 = vmax.xlane.f32.xlu1 %v7936_v12  ;;  %2896 = vadd.xlane.f32.xlu0 %v7938_v43 }
 0x5b0   : > { %v7945_v62 = vpop.f32.mrb[48].mxu1  ;;  %v7962_v18 = vpop.eup %6350 }
 0x5b1   : > { %v7949_v42 = vpop.f32.mrb[49].mxu1 }
 0x5b2   : > { %2838 = vmax.xlane.f32.xlu1 %v7943_v17  ;;  %2898 = vadd.xlane.f32.xlu0 %v7947_v1 }
 0x5b4   : > { %v7953_v58 = vpop.f32.mrb[50].mxu1 }
 0x5b5   : > { %v7957_v38 = vpop.f32.mrb[51].mxu1 }
 0x5b6   : > { %2900 = vadd.xlane.f32.xlu0 %v7955_v35 }
 0x5b8   : > { %v7960_v51 = vpop.f32.mrb[52].mxu1 }
 0x5b9   : > { %v7964_v30 = vpop.f32.mrb[53].mxu1 }
 0x5ba   : > { %2902 = vadd.xlane.f32.xlu0 %v7962_v18 }
 0x5bc   : > { %v7967_v60 = vpop.f32.mrb[54].mxu1 }
 0x5bd   : > { %v7969_v26 = vpop.f32.mrb[55].mxu1 }
 0x5c0   : > { %v7971_v40 = vpop.f32.mrb[56].mxu1 }
 0x5c1   : > { %v7973_v37 = vpop.f32.mrb[57].mxu1 }
 0x5c3   : > { %6172 = vrot.lane.b32.xlu1 %v8429_v46, %s6530_s15  ;;  %s8327_s15 = scalar_lea.vmem %s8383_s7, %s4482_s26 }
 0x5c4   : > { %v7977_v5 = vpop.f32.mrb[58].mxu1 }
 0x5c5   : > { %v7979_v48 = vpop.f32.mrb[59].mxu1 }
 0x5c8   : > { %v7981_v44 = vpop.f32.mrb[60].mxu1 }
 0x5c9   : > { %v7983_v16 = vpop.f32.mrb[61].mxu1 }
 0x5cc   : > { %v7985_v15 = vpop.f32.mrb[62].mxu1 }
 0x5cd   : > { %v7987_v22 = vpop.f32.mrb[63].mxu1 }
 0x5d6   : > { %v2827_v13 = vpop.xlane.xlu1 %2826 }
 0x5d7   : > { %v2853_v55 = vsub.f32 %v7880_v61, %v2827_v13 }
 0x5d9   : > { %v2874_v29 = vmul.f32 1.442695, %v2853_v55 }
 0x5da   : > { %v2831_v10 = vpop.xlane.xlu1 %2830  ;;  %v2825_v57 = vpop.xlane.xlu0 %2824 }
 0x5db   : > { %v2855_v2 = vsub.f32 %v7885_v63, %v2831_v10  ;;  %v2852_v3 = vsub.f32 %v7883_v47, %v2825_v57  ;;  %6352 = vpow2.f32 %v2874_v29 }
 0x5dd   : > { %v2872_v8 = vmul.f32 1.442695, %v2852_v3  ;;  %v2878_v32 = vmul.f32 1.442695, %v2855_v2 }
 0x5de   : > { %v2044_v45 = vpop.xlane.xlu1 %2043  ;;  %v2829_v21 = vpop.xlane.xlu0 %2828 }
 0x5df   : > { %v2854_v25 = vsub.f32 %v7889_v34, %v2829_v21  ;;  %v7999_v56 = vpop.f32.mrb[80].mxu0  ;;  %6354 = vpow2.f32 %v2872_v8  ;;  %v6144_v21 = vunpack.i.l.bf16 %v7918_v28 }
 0x5e0   : > { %v8001_v50 = vpop.f32.mrb[81].mxu0  ;;  %6356 = vpow2.f32 %v2878_v32 }
 0x5e1   : > { %v2876_v61 = vmul.f32 1.442695, %v2854_v25 }
 0x5e2   : > { %v2048_v24 = vpop.xlane.xlu1 %2047  ;;  %v2042_v20 = vpop.xlane.xlu0 %2041 }
 0x5e3   : > { %6358 = vpow2.f32 %v2876_v61  ;;  %v8003_v63 = vpop.f32.mrb[82].mxu0 }
 0x5e4   : > { %6360 = vrcp.f32 %v2044_v45  ;;  %v8005_v47 = vpop.f32.mrb[83].mxu0  ;;  %v6145_v45 = vunpack.i.h.bf16 %v7918_v28 }
 0x5e5   : > { %6362 = vrcp.f32 %v2042_v20  ;;  %v8015_v55 = vpop.eup %6352 }
 0x5e6   : > { %v2052_v34 = vpop.xlane.xlu1 %2051  ;;  %v2046_v39 = vpop.xlane.xlu0 %2045  ;;  %6364 = vrcp.f32 %v2048_v24  ;;  %v5776_v19 = vpack.c.bf16 %v6145_v45, %v6144_v21 }
 0x5e7   : > { %v8010_v33 = vpop.f32.mrb[84].mxu0  ;;  %2842 = vmax.xlane.f32.xlu1 %v8008_v53  ;;  %6366 = vrcp.f32 %v2046_v39 }
 0x5e8   : > { %v8013_v13 = vpop.f32.mrb[85].mxu0  ;;  %6368 = vrcp.f32 %v2052_v34 }
 0x5e9   : > { %v8017_v10 = vpop.eup %6354 }
 0x5ea   : > { %v2054_v57 = vpop.xlane.xlu1 %2053  ;;  %v2050_v29 = vpop.xlane.xlu0 %2049  ;;  %2904 = vadd.xlane.f32.xlu0 %v8017_v10 }
 0x5eb   : > { %v8020_v52 = vpop.f32.mrb[86].mxu0  ;;  %2906 = vadd.xlane.f32.xlu1 %v8015_v55  ;;  %v8023_v2 = vpop.eup %6356  ;;  %6370 = vrcp.f32 %v2050_v29 }
 0x5ec   : > { %8430 = vst [vmem:[#allocation9_spill] sm:$0xff] %v8020_v52  ;;  %v8025_v3 = vpop.f32.mrb[87].mxu0  ;;  %6372 = vrcp.f32 %v2054_v57 }
 0x5ed   : > { %8431 = vst [vmem:[#allocation11_spill] sm:$0xff] %v8025_v3  ;;  %v8027_v8 = vpop.eup %6358  ;;  %v6150_v3 = vunpack.i.h.bf16 %v7989_v59 }
 0x5ee   : > { %v6361_v32 = vpop.eup %6360  ;;  %v2060_v25 = vpop.xlane.xlu1 %2059  ;;  %2908 = vadd.xlane.f32.xlu0 %v8027_v8 }
 0x5ef   : > { %v2056_v61 = vpop.xlane.xlu0 %2055  ;;  %v6363_v24 = vpop.eup %6362  ;;  %2910 = vadd.xlane.f32.xlu1 %v8023_v2  ;;  %v2299_v29 = vmul.f32 %v6361_v32, %v7945_v62 }
 0x5f0   : > { %v8032_v20 = vpop.f32.mrb[88].mxu0  ;;  %6374 = vrcp.f32 %v2056_v61  ;;  %v2298_v39 = vmul.f32 %v6363_v24, %v7949_v42  ;;  %v6365_v57 = vpop.eup %6364  ;;  %v6154_v24 = vunpack.i.l.bf16 %v7991_v36 }
 0x5f1   : > { %8432 = vst [vmem:[#allocation10_spill] sm:$0xff] %v8032_v20  ;;  %v8035_v34 = vpop.f32.mrb[89].mxu0  ;;  %v6367_v46 = vpop.eup %6366  ;;  %v6149_v20 = vunpack.i.l.bf16 %v7989_v59  ;;  %v2301_v45 = vmul.f32 %v6365_v57, %v7953_v58  ;;  %v6155_v59 = vunpack.i.h.bf16 %v7991_v36 }
 0x5f2   : > { %5172 = vmatprep.mubr.msk.f32.mxu1 %vm912_vm0, %v2298_v39  ;;  %v2058_v28 = vpop.xlane.xlu1 %2057  ;;  %v8043_v61 = vpop.f32.mrb[90].mxu0  ;;  %v2300_v42 = vmul.f32 %v6367_v46, %v7957_v38 }
 0x5f3   : > { %v2070_v52 = vpop.xlane.xlu0 %2069  ;;  %5173 = vmatmul.mubr.msk.f32.vlgmr.msra.gmra.mrb[32].mxu1 %vm912_vm0, %v2299_v29  ;;  %6376 = vrcp.f32 %v2058_v28  ;;  %8433 = vst [vmem:[#allocation14_spill] sm:$0xff] %v8043_v61  ;;  %v8047_v62 = vpop.f32.mrb[91].mxu0  ;;  %v5780_v38 = vpack.c.bf16 %v6150_v3, %v6149_v20  ;;  %v5784_v61 = vpack.c.bf16 %v6155_v59, %v6154_v24  ;;  %v6160_v3 = vunpack.i.h.bf16 %v7993_v14 }
 0x5f4   : > { %6378 = vrcp.f32 %v2060_v25  ;;  %5775 = vmatpush3.bf16.msra.mxu1 %v7802_v4  ;;  %v6369_v32 = vpop.eup %6368  ;;  %5175 = vmatprep.mubr.msk.f32.mxu1 %vm912_vm0, %v2300_v42 }
 0x5f5   : > { %5777 = vmatprep.subr.bf16.mxu1 %v5776_v19  ;;  %v6371_v21 = vpop.eup %6370  ;;  %v2303_v36 = vmul.f32 %v6369_v32, %v7960_v51 }
 0x5f6   : > { %v2064_v39 = vpop.xlane.xlu1 %2063  ;;  %v6373_v28 = vpop.eup %6372  ;;  %v2302_v25 = vmul.f32 %v6371_v21, %v7964_v30  ;;  %v6159_v30 = vunpack.i.l.bf16 %v7993_v14 }
 0x5f7   : > { %v2833_v29 = vpop.xlane.xlu0 %2832  ;;  %5176 = vmatmul.mubr.msk.f32.gmra.mrb[34].mxu1 %vm912_vm0, %v2301_v45  ;;  %v8055_v46 = vpop.f32.mrb[92].mxu0  ;;  %6380 = vrcp.f32 %v2064_v39 }
 0x5f8   : > { %v2856_v4 = vsub.f32 %v7903_v11, %v2833_v29  ;;  %5779 = vmatpush3.bf16.msra.mxu1 %v5776_v19  ;;  %v8058_v42 = vpop.f32.mrb[93].mxu0  ;;  %5178 = vmatprep.mubr.msk.f32.mxu1 %vm912_vm0, %v2302_v25  ;;  %v2304_v11 = vmul.f32 %v6373_v28, %v7969_v26  ;;  %v5788_v39 = vpack.c.bf16 %v6160_v3, %v6159_v30 }
 0x5f9   : > { %5781 = vmatprep.subr.bf16.mxu1 %v5780_v38 }
 0x5fa   : > { %v2880_v58 = vmul.f32 1.442695, %v2856_v4  ;;  %v6375_v57 = vpop.eup %6374  ;;  %v2062_v20 = vpop.xlane.xlu1 %2061 }
 0x5fb   : > { %v2837_v45 = vpop.xlane.xlu0 %2836  ;;  %5179 = vmatmul.mubr.msk.f32.gmra.mrb[36].mxu1 %vm912_vm0, %v2303_v36  ;;  %v2305_v21 = vmul.f32 %v6375_v57, %v7967_v60 }
 0x5fc   : > { %6382 = vpow2.f32 %v2880_v58  ;;  %v2858_v19 = vsub.f32 %v7907_v0, %v2837_v45  ;;  %5783 = vmatpush3.bf16.msra.mxu1 %v5780_v38  ;;  %5181 = vmatprep.mubr.msk.f32.mxu1 %vm912_vm0, %v2304_v11 }
 0x5fd   : > { %6384 = vrcp.f32 %v2062_v20  ;;  %v6377_v51 = vpop.eup %6376  ;;  %5785 = vmatprep.subr.bf16.mxu1 %v5784_v61 }
 0x5fe   : > { %v2884_v32 = vmul.f32 1.442695, %v2858_v19  ;;  %v6379_v59 = vpop.eup %6378  ;;  %v2068_v24 = vpop.xlane.xlu1 %2067  ;;  %v2306_v26 = vmul.f32 %v6377_v51, %v7973_v37 }
 0x5ff   : > { %5182 = vmatmul.mubr.msk.f32.gmra.mrb[38].mxu1 %vm912_vm0, %v2305_v21  ;;  %v2307_v0 = vmul.f32 %v6379_v59, %v7971_v40 }
 0x600   : > { %6386 = vpow2.f32 %v2884_v32  ;;  %5787 = vmatpush3.bf16.msra.mxu1 %v5784_v61  ;;  %5184 = vmatprep.mubr.msk.f32.mxu1 %vm912_vm0, %v2306_v26 }
 0x601   : > { %6388 = vrcp.f32 %v2070_v52  ;;  %5789 = vmatprep.subr.bf16.mxu1 %v5788_v39  ;;  %v6381_v14 = vpop.eup %6380  ;;  %v6168_v52 = vpop.permute.xlu0 %6167 }
 0x602   : > { %6390 = vrcp.f32 %v2068_v24  ;;  %v2066_v60 = vpop.xlane.xlu1 %2065  ;;  %v2309_v38 = vmul.f32 %v6381_v14, %v7977_v5  ;;  %v6170_v58 = vunpack.i.h.bf16 %v6168_v52  ;;  %v6169_v36 = vunpack.i.l.bf16 %v6168_v52 }
 0x603   : > { %5185 = vmatmul.mubr.msk.f32.gmra.mrb[40].mxu1 %vm912_vm0, %v2307_v0  ;;  %6392 = vrcp.f32 %v2066_v60 }
 0x604   : > { %5791 = vmatpush3.bf16.msra.mxu1 %v5788_v39  ;;  %v5796_v5 = vpack.c.bf16 %v6170_v58, %v6169_v36 }
 0x606   : > { %v8074_v29 = vpop.eup %6382  ;;  %v2072_v28 = vpop.xlane.xlu1 %2071 }
 0x607   : > { %v6385_v37 = vpop.eup %6384  ;;  %2912 = vadd.xlane.f32.xlu0 %v8074_v29  ;;  %6394 = vrcp.f32 %v2072_v28 }
 0x608   : > { %v2308_v61 = vmul.f32 %v6385_v37, %v7979_v48 }
 0x60a   : > { %v8079_v40 = vpop.eup %6386  ;;  %5187 = vmatprep.mubr.msk.f32.mxu1 %vm912_vm0, %v2308_v61  ;;  %v6163_v4 = vpop.permute.xlu1 %6162 }
 0x60b   : > { %5188 = vmatmul.mubr.msk.f32.gmra.mrb[42].mxu1 %vm912_vm0, %v2309_v38  ;;  %2916 = vadd.xlane.f32.xlu0 %v8079_v40  ;;  %v6389_v25 = vpop.eup %6388  ;;  %v6165_v57 = vunpack.i.h.bf16 %v6163_v4  ;;  %v6164_v3 = vunpack.i.l.bf16 %v6163_v4 }
 0x60c   : > { %v6391_v20 = vpop.eup %6390  ;;  %v2312_v19 = vmul.f32 %v6389_v25, %v7987_v22 }
 0x60d   : > { %v6393_v11 = vpop.eup %6392  ;;  %v5792_v48 = vpack.c.bf16 %v6165_v57, %v6164_v3  ;;  %v2311_v30 = vmul.f32 %v6391_v20, %v7981_v44  ;;  %v8139_v57 = vmul.f32 0.17677669, %v8010_v33 }
 0x60e   : > { %v2310_v45 = vmul.f32 %v6393_v11, %v7983_v16 }
 0x60f   : > { %5793 = vmatprep.subr.bf16.mxu1 %v5792_v48 }
 0x610   : > { %5190 = vmatprep.mubr.msk.f32.mxu1 %vm912_vm0, %v2310_v45  ;;  %5795 = vmatpush3.bf16.msra.mxu1 %v5792_v48  ;;  %v8147_v45 = vmul.f32 0.17677669, %v8005_v47 }
 0x611   : > { %v6395_v21 = vpop.eup %6394  ;;  %5191 = vmatmul.mubr.msk.f32.gmra.mrb[44].mxu1 %vm912_vm0, %v2311_v30  ;;  %5797 = vmatprep.subr.bf16.mxu1 %v5796_v5 }
 0x612   : > { %5193 = vmatprep.mubr.msk.f32.mxu1 %vm912_vm0, %v2312_v19  ;;  %v2313_v51 = vmul.f32 %v6395_v21, %v7985_v15 }
 0x614   : > { %5799 = vmatpush3.bf16.msra.mxu1 %v5796_v5  ;;  %v8157_v5 = vmul.f32 0.17677669, %v8013_v13  ;;  %v8172_v13 = vmul.f32 0.17677669, %v8047_v62 }
 0x615   : > { %5194 = vmatmul.mubr.msk.f32.gmra.mrb[46].mxu1 %vm912_vm0, %v2313_v51 }
 0x616   : > { %5284 = vmatprep.mubr.f32.mxu1 %v7938_v43 }
 0x62f   : > { %v2841_v16 = vpop.xlane.xlu0 %2840 }
 0x630   : > { %v2860_v44 = vsub.f32 %v7923_v31, %v2841_v16  ;;  %v8434_v16 = vld [vmem:[#allocation11_spill] sm:$0xff] }
 0x632   : > { %v2888_v32 = vmul.f32 1.442695, %v2860_v44  ;;  %v8178_v44 = vmul.f32 0.17677669, %v8434_v16 }
 0x634   : > { %6396 = vpow2.f32 %v2888_v32  ;;  %v8435_v32 = vld [vmem:[#allocation9_spill] sm:$0xff] }
 0x63b   : > { %v2835_v59 = vpop.xlane.xlu1 %2834 }
 0x63c   : > { %v2857_v22 = vsub.f32 %v7936_v12, %v2835_v59  ;;  %v3153_v12 = vld [vmem:[%s8381_s5 + $0x40] sm:$0xff]  ;;  %v8182_v59 = vmul.f32 0.17677669, %v8435_v32 }
 0x63e   : > { %v6397_v24 = vpop.eup %6396  ;;  %v2882_v26 = vmul.f32 1.442695, %v2857_v22 }
 0x63f   : > { %v2839_v39 = vpop.xlane.xlu1 %2838  ;;  %2920 = vadd.xlane.f32.xlu0 %v6397_v24 }
 0x640   : > { %6398 = vpow2.f32 %v2882_v26  ;;  %v2859_v15 = vsub.f32 %v7943_v17, %v2839_v39  ;;  %v3154_v17 = vld [vmem:[%s8381_s5 + $0x48] sm:$0xff]  ;;  %v8436_v26 = vld [vmem:[#allocation5_spill] sm:$0xff] }
 0x641   : > { %v5804_v61 = vpack.c.bf16 %v3154_v17, %v3153_v12 }
 0x642   : > { %v2886_v0 = vmul.f32 1.442695, %v2859_v15 }
 0x643   : > { %v6173_v60 = vpop.permute.xlu1 %6172 }
 0x644   : > { %6400 = vpow2.f32 %v2886_v0  ;;  %v6175_v14 = vunpack.i.h.bf16 %v6173_v60  ;;  %v6174_v43 = vunpack.i.l.bf16 %v6173_v60 }
 0x646   : > { %v5800_v37 = vpack.c.bf16 %v6175_v14, %v6174_v43 }
 0x648   : > { %5801 = vmatprep.subr.bf16.mxu1 %v5800_v37 }
 0x649   : > { %5803 = vmatpush3.bf16.msra.mxu1 %v5800_v37 }
 0x64a   : > { %v6399_v31 = vpop.eup %6398  ;;  %5805 = vmatprep.subr.bf16.mxu1 %v5804_v61 }
 0x64b   : > { %2914 = vadd.xlane.f32.xlu1 %v6399_v31 }
 0x64c   : > { %5285 = vmatmul.mubr.f32.vlgmr.msra.gmra.mrb[64].mxu1 %v7947_v1  ;;  %v3155_v1 = vld [vmem:[%s8381_s5 + $0x50] sm:$0xff] }
 0x64d   : > { %5287 = vmatprep.mubr.f32.mxu1 %v7955_v35  ;;  %5807 = vmatpush3.bf16.msra.mxu1 %v5804_v61  ;;  %v3156_v35 = vld [vmem:[%s8381_s5 + $0x58] sm:$0xff] }
 0x64e   : > { %v6401_v28 = vpop.eup %6400  ;;  %v5808_v52 = vpack.c.bf16 %v3156_v35, %v3155_v1 }
 0x64f   : > { %2918 = vadd.xlane.f32.xlu1 %v6401_v28 }
 0x650   : > { %5288 = vmatmul.mubr.f32.gmra.mrb[66].mxu1 %v7962_v18  ;;  %5809 = vmatprep.subr.bf16.mxu1 %v5808_v52  ;;  %v2845_v18 = vpop.xlane.xlu0 %2844 }
 0x651   : > { %5290 = vmatprep.mubr.f32.mxu1 %v8017_v10  ;;  %5811 = vmatpush3.bf16.msra.mxu1 %v5808_v52  ;;  %v2862_v10 = vsub.f32 %v7928_v6, %v2845_v18 }
 0x653   : > { %v2892_v4 = vmul.f32 1.442695, %v2862_v10 }
 0x654   : > { %5291 = vmatmul.mubr.f32.gmra.mrb[68].mxu1 %v8015_v55  ;;  %v8120_v55 = vmul.f32 0.17677669, %v7999_v56 }
 0x655   : > { %6177 = vrot.lane.b32.xlu0 %v6983_v23, %s6531_s27  ;;  %5293 = vmatprep.mubr.f32.mxu1 %v8027_v8  ;;  %v2847_v23 = vpop.xlane.xlu0 %2846 }
 0x656   : > { %v2863_v8 = vsub.f32 %v7932_v41, %v2847_v23  ;;  %v8133_v41 = vmul.f32 0.17677669, %v8001_v50 }
 0x658   : > { %5294 = vmatmul.mubr.f32.gmra.mrb[70].mxu1 %v8023_v2  ;;  %v2894_v58 = vmul.f32 1.442695, %v2863_v8 }
 0x659   : > { %5296 = vmatprep.mubr.f32.mxu1 %v8074_v29 }
 0x65c   : > { %5297 = vmatmul.mubr.f32.gmra.mrb[72].mxu1 %v6399_v31 }
 0x65d   : > { %5299 = vmatprep.mubr.f32.mxu1 %v8079_v40 }
 0x660   : > { %5300 = vmatmul.mubr.f32.gmra.mrb[74].mxu1 %v6401_v28 }
 0x661   : > { %5302 = vmatprep.mubr.f32.mxu1 %v6397_v24  ;;  %v8190_v24 = vmul.f32 0.17677669, %v8058_v42 }
 0x674   : > { %v2843_v38 = vpop.xlane.xlu1 %2842  ;;  %3657 = vmax.xlane.f32.xlu0 %v8120_v55 }
 0x675   : > { %v2861_v2 = vsub.f32 %v8008_v53, %v2843_v38  ;;  %v8126_v29 = vpop.f32.mrb[94].mxu0  ;;  %v2897_v53 = vpop.xlane.xlu0 %2896 }
 0x676   : > { %v8128_v40 = vpop.f32.mrb[95].mxu0  ;;  %v8204_v42 = vmul.f32 0.17677669, %v8126_v29 }
 0x677   : > { %v2890_v25 = vmul.f32 1.442695, %v2861_v2  ;;  %v8198_v39 = vmul.f32 0.17677669, %v8128_v40 }
 0x678   : > { %v2907_v51 = vpop.xlane.xlu1 %2906 }
 0x679   : > { %6402 = vpow2.f32 %v2890_v25  ;;  %v2899_v3 = vpop.xlane.xlu0 %2898 }
 0x67a   : > { %6404 = vpow2.f32 %v2892_v4 }
 0x67b   : > { %6406 = vpow2.f32 %v2894_v58 }
 0x67c   : > { %6408 = vrcp.f32 %v2899_v3 }
 0x67d   : > { %v2901_v20 = vpop.xlane.xlu0 %2900  ;;  %6410 = vrcp.f32 %v2897_v53 }
 0x681   : > { %v2903_v11 = vpop.xlane.xlu0 %2902 }
 0x682   : > { %6412 = vrcp.f32 %v2903_v11 }
 0x683   : > { %v6403_v56 = vpop.eup %6402  ;;  %6414 = vrcp.f32 %v2901_v20 }
 0x684   : > { %v6405_v6 = vpop.eup %6404  ;;  %2922 = vadd.xlane.f32.xlu1 %v6403_v56  ;;  %5303 = vmatmul.mubr.f32.gmra.mrb[76].mxu1 %v6403_v56 }
 0x685   : > { %5305 = vmatprep.mubr.f32.mxu1 %v6405_v6  ;;  %v6407_v36 = vpop.eup %6406  ;;  %v2905_v48 = vpop.xlane.xlu0 %2904 }
 0x686   : > { %6416 = vrcp.f32 %v2905_v48  ;;  %v6409_v37 = vpop.eup %6408 }
 0x687   : > { %6418 = vrcp.f32 %v2907_v51  ;;  %v6411_v12 = vpop.eup %6410 }
 0x688   : > { %2924 = vadd.xlane.f32.xlu1 %v6405_v6  ;;  %5306 = vmatmul.mubr.f32.gmra.mrb[78].mxu1 %v6407_v36 }
 0x68a   : > { %6187 = vrot.lane.b32.xlu0 %v8426_v7, %s6531_s27  ;;  %v2909_v7 = vpop.xlane.xlu0 %2908 }
 0x68b   : > { %6420 = vrcp.f32 %v2909_v7 }
 0x68c   : > { %2926 = vadd.xlane.f32.xlu1 %v6407_v36 }
 0x690   : > { %3655 = vmax.xlane.f32.xlu1 %v8133_v41 }
 0x694   : > { %v8144_v50 = vpop.xlane.xlu0 %2912 }
 0x698   : > { %v8153_v33 = vpop.xlane.xlu0 %2916 }
 0x6a1   : > { %6182 = vrot.lane.b32.xlu1 %v6994_v27, %s6531_s27  ;;  %v8151_v27 = vmul.f32 0.17677669, %v8003_v63  ;;  %v8166_v63 = vmul.f32 0.17677669, %v8035_v34  ;;  %v2911_v34 = vpop.xlane.xlu1 %2910 }
 0x6a9   : > { %3665 = vmax.xlane.f32.xlu0 %v8139_v57 }
 0x6bf   : > { %6197 = vrot.lane.b32.xlu0 %v8427_v54, %s6531_s27 }
 0x6c5   : > { %3659 = vmax.xlane.f32.xlu1 %v8147_v45 }
 0x6c9   : > { %3661 = vmax.xlane.f32.xlu1 %v8151_v27 }
 0x6cc   : > { %v8159_v30 = vpop.xlane.xlu0 %2920 }
 0x6cd   : > { %3663 = vmax.xlane.f32.xlu1 %v8157_v5 }
 0x6d0   : > { %v6178_v54 = vpop.permute.xlu0 %6177 }
 0x6d1   : > { %v6180_v19 = vunpack.i.h.bf16 %v6178_v54  ;;  %v6179_v47 = vunpack.i.l.bf16 %v6178_v54 }
 0x6d3   : > { %v8162_v21 = vpack.c.bf16 %v6180_v19, %v6179_v47 }
 0x6d5   : > { %5861 = vmatprep.subr.bf16.mxu1 %v8162_v21 }
 0x6de   : > { %6192 = vrot.lane.b32.xlu1 %v8424_v49, %s6531_s27  ;;  %3671 = vmax.xlane.f32.xlu0 %v8166_v63  ;;  %v2915_v49 = vpop.xlane.xlu1 %2914 }
 0x6e2   : > { %3675 = vmax.xlane.f32.xlu0 %v8172_v13  ;;  %v8185_v62 = vpop.xlane.xlu1 %2918 }
 0x6f8   : > { %6207 = vrot.lane.b32.xlu0 %v7050_v9, %s6531_s27 }
 0x701   : > { %v3658_v0 = vpop.xlane.xlu0 %3657 }
 0x702   : > { %3667 = vmax.xlane.f32.xlu1 %v8178_v44  ;;  %v3688_v14 = vsub.f32 %v8120_v55, %v3658_v0  ;;  %v6413_v55 = vpop.eup %6412 }
 0x703   : > { %v6415_v8 = vpop.eup %6414 }
 0x704   : > { %v3705_v18 = vmul.f32 1.442695, %v3688_v14  ;;  %v6417_v6 = vpop.eup %6416 }
 0x705   : > { %v6188_v1 = vpop.permute.xlu0 %6187  ;;  %v6419_v53 = vpop.eup %6418 }
 0x706   : > { %3669 = vmax.xlane.f32.xlu1 %v8182_v59  ;;  %v6190_v2 = vunpack.i.h.bf16 %v6188_v1  ;;  %v6189_v29 = vunpack.i.l.bf16 %v6188_v1  ;;  %v6421_v11 = vpop.eup %6420 }
 0x708   : > { %v5868_v36 = vpack.c.bf16 %v6190_v2, %v6189_v29 }
 0x711   : > { %v8187_v22 = vpop.xlane.xlu1 %2922 }
 0x715   : > { %v8192_v9 = vpop.xlane.xlu1 %2924 }
 0x717   : > { %6202 = vrot.lane.b32.xlu1 %v8436_v26, %s6531_s27  ;;  %3679 = vmax.xlane.f32.xlu0 %v8190_v24 }
 0x719   : > { %v8200_v15 = vpop.xlane.xlu1 %2926 }
 0x71b   : > { %3683 = vmax.xlane.f32.xlu0 %v8198_v39 }
 0x71d   : > { %v3656_v60 = vpop.xlane.xlu1 %3655 }
 0x71e   : > { %v3687_v43 = vsub.f32 %v8133_v41, %v3656_v60 }
 0x71f   : > { %v5286_v31 = vpop.f32.mrb[64].mxu1  ;;  %3685 = vmax.xlane.f32.xlu0 %v8204_v42 }
 0x720   : > { %v3703_v17 = vmul.f32 1.442695, %v3687_v43  ;;  %v3138_v28 = vmul.f32 %v6409_v37, %v5286_v31  ;;  %v3042_v61 = vpop.f32.mrb[65].mxu1  ;;  %v8437_v37 = vld [vmem:[#allocation10_spill] sm:$0xff] }
 0x721   : > { %v3137_v35 = vmul.f32 %v6411_v12, %v3042_v61  ;;  %v6183_v52 = vpop.permute.xlu1 %6182  ;;  %v8232_v31 = vmul.f32 0.17677669, %v8437_v37  ;;  %v8438_v12 = vld [vmem:[#allocation14_spill] sm:$0xff] }
 0x722   : > { %6422 = vpow2.f32 %v3703_v17  ;;  %v6185_v10 = vunpack.i.h.bf16 %v6183_v52  ;;  %v6184_v23 = vunpack.i.l.bf16 %v6183_v52  ;;  %v8236_v17 = vmul.f32 0.17677669, %v8438_v12 }
 0x723   : > { %6424 = vrcp.f32 %v2911_v34  ;;  %v5289_v38 = vpop.f32.mrb[66].mxu1  ;;  %5316 = vmatprep.mubr.msk.f32.mxu1 %vm912_vm0, %v3137_v35 }
 0x724   : > { %v5864_v4 = vpack.c.bf16 %v6185_v10, %v6184_v23  ;;  %v3140_v40 = vmul.f32 %v6413_v55, %v5289_v38  ;;  %v3052_v25 = vpop.f32.mrb[67].mxu1  ;;  %5317 = vmatmul.mubr.msk.f32.vlgmr.msra.gmra.mrb[32].mxu1 %vm912_vm0, %v3138_v28  ;;  %6426 = vrcp.f32 %v8144_v50  ;;  %v8439_v28 = vld [vmem:[#allocation6_spill] sm:$0xff] }
 0x725   : > { %v3139_v58 = vmul.f32 %v6415_v8, %v3052_v25  ;;  %5863 = vmatpush3.bf16.msra.mxu1 %v8162_v21  ;;  %6428 = vpow2.f32 %v3705_v18 }
 0x726   : > { %5865 = vmatprep.subr.bf16.mxu1 %v5864_v4  ;;  %6430 = vrcp.f32 %v2915_v49 }
 0x727   : > { %v5292_v56 = vpop.f32.mrb[68].mxu1  ;;  %5319 = vmatprep.mubr.msk.f32.mxu1 %vm912_vm0, %v3139_v58  ;;  %6432 = vrcp.f32 %v8153_v33 }
 0x728   : > { %v3062_v41 = vpop.f32.mrb[69].mxu1  ;;  %5320 = vmatmul.mubr.msk.f32.gmra.mrb[34].mxu1 %vm912_vm0, %v3140_v40  ;;  %v3142_v20 = vmul.f32 %v6419_v53, %v5292_v56  ;;  %6434 = vrcp.f32 %v8185_v62 }
 0x729   : > { %v3141_v3 = vmul.f32 %v6417_v6, %v3062_v41  ;;  %5867 = vmatpush3.bf16.msra.mxu1 %v5864_v4  ;;  %6436 = vrcp.f32 %v8159_v30 }
 0x72a   : > { %5869 = vmatprep.subr.bf16.mxu1 %v5868_v36  ;;  %6438 = vrcp.f32 %v8187_v22 }
 0x72b   : > { %v5295_v48 = vpop.f32.mrb[70].mxu1  ;;  %5322 = vmatprep.mubr.msk.f32.mxu1 %vm912_vm0, %v3141_v3  ;;  %6440 = vrcp.f32 %v8192_v9 }
 0x72c   : > { %v8218_v7 = vpop.eup %6422  ;;  %v3072_v50 = vpop.f32.mrb[71].mxu1  ;;  %5323 = vmatmul.mubr.msk.f32.gmra.mrb[36].mxu1 %vm912_vm0, %v3142_v20  ;;  %6442 = vrcp.f32 %v8200_v15 }
 0x72d   : > { %v6425_v54 = vpop.eup %6424  ;;  %v3143_v19 = vmul.f32 %v6421_v11, %v3072_v50  ;;  %5871 = vmatpush3.bf16.msra.mxu1 %v5868_v36  ;;  %3735 = vadd.xlane.f32.xlu0 %v8218_v7 }
 0x72e   : > { %v3144_v47 = vmul.f32 %v6425_v54, %v5295_v48  ;;  %v6427_v33 = vpop.eup %6426 }
 0x72f   : > { %v5298_v21 = vpop.f32.mrb[72].mxu1  ;;  %5325 = vmatprep.mubr.msk.f32.mxu1 %vm912_vm0, %v3143_v19  ;;  %v8223_v51 = vpop.eup %6428 }
 0x730   : > { %v3082_v16 = vpop.f32.mrb[73].mxu1  ;;  %5326 = vmatmul.mubr.msk.f32.gmra.mrb[38].mxu1 %vm912_vm0, %v3144_v47  ;;  %v6431_v34 = vpop.eup %6430 }
 0x731   : > { %v3145_v32 = vmul.f32 %v6427_v33, %v3082_v16  ;;  %3737 = vadd.xlane.f32.xlu0 %v8223_v51  ;;  %v3146_v49 = vmul.f32 %v6431_v34, %v5298_v21  ;;  %v6433_v26 = vpop.eup %6432 }
 0x732   : > { %v6435_v60 = vpop.eup %6434 }
 0x733   : > { %v5301_v62 = vpop.f32.mrb[74].mxu1  ;;  %5328 = vmatprep.mubr.msk.f32.mxu1 %vm912_vm0, %v3145_v32  ;;  %v6437_v30 = vpop.eup %6436 }
 0x734   : > { %v3092_v0 = vpop.f32.mrb[75].mxu1  ;;  %5329 = vmatmul.mubr.msk.f32.gmra.mrb[40].mxu1 %vm912_vm0, %v3146_v49  ;;  %v3148_v43 = vmul.f32 %v6435_v60, %v5301_v62  ;;  %v6439_v22 = vpop.eup %6438 }
 0x735   : > { %v3147_v14 = vmul.f32 %v6433_v26, %v3092_v0 }
 0x736   : > { %v3666_v35 = vpop.xlane.xlu0 %3665 }
 0x737   : > { %5331 = vmatprep.mubr.msk.f32.mxu1 %vm912_vm0, %v3147_v14  ;;  %v3692_v50 = vsub.f32 %v8139_v57, %v3666_v35 }
 0x738   : > { %5332 = vmatmul.mubr.msk.f32.gmra.mrb[42].mxu1 %vm912_vm0, %v3148_v43 }
 0x739   : > { %v3713_v19 = vmul.f32 1.442695, %v3692_v50 }
 0x73a   : > { %v6198_v9 = vpop.permute.xlu0 %6197 }
 0x73b   : > { %3673 = vmax.xlane.f32.xlu1 %v8232_v31  ;;  %v6200_v56 = vunpack.i.h.bf16 %v6198_v9  ;;  %v6199_v41 = vunpack.i.l.bf16 %v6198_v9 }
 0x73d   : > { %v5876_v11 = vpack.c.bf16 %v6200_v56, %v6199_v41 }
 0x73f   : > { %3677 = vmax.xlane.f32.xlu1 %v8236_v17 }
 0x750   : > { %6212 = vrot.lane.b32.xlu1 %v8439_v28, %s6531_s27 }
 0x752   : > { %v3660_v61 = vpop.xlane.xlu1 %3659 }
 0x753   : > { %v3689_v1 = vsub.f32 %v8147_v45, %v3660_v61  ;;  %v6441_v45 = vpop.eup %6440 }
 0x755   : > { %v3707_v52 = vmul.f32 1.442695, %v3689_v1 }
 0x756   : > { %v3662_v18 = vpop.xlane.xlu1 %3661 }
 0x757   : > { %6444 = vpow2.f32 %v3707_v52  ;;  %v3690_v10 = vsub.f32 %v8151_v27, %v3662_v18  ;;  %v5304_v23 = vpop.f32.mrb[76].mxu1  ;;  %v6443_v27 = vpop.eup %6442 }
 0x758   : > { %v3102_v55 = vpop.f32.mrb[77].mxu1  ;;  %v3150_v2 = vmul.f32 %v6439_v22, %v5304_v23 }
 0x759   : > { %v3709_v38 = vmul.f32 1.442695, %v3690_v10  ;;  %v3149_v8 = vmul.f32 %v6437_v30, %v3102_v55 }
 0x75a   : > { %v3664_v29 = vpop.xlane.xlu1 %3663 }
 0x75b   : > { %6446 = vpow2.f32 %v3709_v38  ;;  %v3691_v15 = vsub.f32 %v8157_v5, %v3664_v29  ;;  %v5307_v4 = vpop.f32.mrb[78].mxu1  ;;  %5334 = vmatprep.mubr.msk.f32.mxu1 %vm912_vm0, %v3149_v8 }
 0x75c   : > { %v3112_v40 = vpop.f32.mrb[79].mxu1  ;;  %5335 = vmatmul.mubr.msk.f32.gmra.mrb[44].mxu1 %vm912_vm0, %v3150_v2  ;;  %v3152_v6 = vmul.f32 %v6443_v27, %v5307_v4 }
 0x75d   : > { %v3711_v25 = vmul.f32 1.442695, %v3691_v15  ;;  %v3151_v58 = vmul.f32 %v6441_v45, %v3112_v40 }
 0x75e   : > { %v6193_v36 = vpop.permute.xlu1 %6192 }
 0x75f   : > { %6448 = vpow2.f32 %v3711_v25  ;;  %v6195_v53 = vunpack.i.h.bf16 %v6193_v36  ;;  %v6194_v3 = vunpack.i.l.bf16 %v6193_v36  ;;  %5337 = vmatprep.mubr.msk.f32.mxu1 %vm912_vm0, %v3151_v58 }
 0x760   : > { %5338 = vmatmul.mubr.msk.f32.gmra.mrb[46].mxu1 %vm912_vm0, %v3152_v6  ;;  %6450 = vpow2.f32 %v3713_v19 }
 0x761   : > { %v8252_v5 = vpop.eup %6444  ;;  %v5872_v20 = vpack.c.bf16 %v6195_v53, %v6194_v3  ;;  %5428 = vmatprep.mubr.f32.mxu1 %v8218_v7  ;;  %v8264_v7 = vmul.f32 0.17677669, %v8055_v46  ;;  %v3992_v53 = vld [vmem:[%s8381_s5 + $0x60] sm:$0xff] }
 0x762   : > { %3739 = vadd.xlane.f32.xlu0 %v8252_v5 }
 0x763   : > { %5873 = vmatprep.subr.bf16.mxu1 %v5872_v20 }
 0x764   : > { %5875 = vmatpush3.bf16.msra.mxu1 %v5872_v20  ;;  %v3995_v20 = vld [vmem:[%s8381_s5 + $0x78] sm:$0xff] }
 0x765   : > { %v8256_v48 = vpop.eup %6446  ;;  %5877 = vmatprep.subr.bf16.mxu1 %v5876_v11 }
 0x766   : > { %3741 = vadd.xlane.f32.xlu0 %v8256_v48 }
 0x768   : > { %5879 = vmatpush3.bf16.msra.mxu1 %v5876_v11 }
 0x769   : > { %v8260_v54 = vpop.eup %6448 }
 0x76a   : > { %3743 = vadd.xlane.f32.xlu0 %v8260_v54  ;;  %v8267_v47 = vpop.eup %6450 }
 0x76b   : > { %v3672_v57 = vpop.xlane.xlu0 %3671 }
 0x76c   : > { %v3695_v21 = vsub.f32 %v8166_v63, %v3672_v57 }
 0x76e   : > { %v3719_v49 = vmul.f32 1.442695, %v3695_v21 }
 0x76f   : > { %v3676_v33 = vpop.xlane.xlu0 %3675 }
 0x770   : > { %v3697_v62 = vsub.f32 %v8172_v13, %v3676_v33 }
 0x772   : > { %v3723_v14 = vmul.f32 1.442695, %v3697_v62 }
 0x773   : > { %v6208_v46 = vpop.permute.xlu0 %6207 }
 0x774   : > { %3681 = vmax.xlane.f32.xlu1 %v8264_v7  ;;  %v6210_v43 = vunpack.i.h.bf16 %v6208_v46  ;;  %v6209_v12 = vunpack.i.l.bf16 %v6208_v46 }
 0x778   : > { %3745 = vadd.xlane.f32.xlu1 %v8267_v47 }
 0x78f   : > { %v3668_v16 = vpop.xlane.xlu1 %3667 }
 0x790   : > { %v3693_v34 = vsub.f32 %v8178_v44, %v3668_v16  ;;  %v5884_v44 = vpack.c.bf16 %v6210_v43, %v6209_v12 }
 0x792   : > { %v3715_v32 = vmul.f32 1.442695, %v3693_v34 }
 0x793   : > { %v3670_v26 = vpop.xlane.xlu1 %3669 }
 0x794   : > { %6452 = vpow2.f32 %v3715_v32  ;;  %v3694_v0 = vsub.f32 %v8182_v59, %v3670_v26 }
 0x795   : > { %6454 = vpow2.f32 %v3719_v49 }
 0x796   : > { %v3717_v60 = vmul.f32 1.442695, %v3694_v0 }
 0x797   : > { %v6203_v37 = vpop.permute.xlu1 %6202 }
 0x798   : > { %6456 = vpow2.f32 %v3717_v60  ;;  %v6205_v63 = vunpack.i.h.bf16 %v6203_v37  ;;  %v6204_v28 = vunpack.i.l.bf16 %v6203_v37 }
 0x799   : > { %6458 = vpow2.f32 %v3723_v14 }
 0x79a   : > { %v5880_v61 = vpack.c.bf16 %v6205_v63, %v6204_v28 }
 0x79c   : > { %5881 = vmatprep.subr.bf16.mxu1 %v5880_v61 }
 0x79d   : > { %5883 = vmatpush3.bf16.msra.mxu1 %v5880_v61 }
 0x79e   : > { %v6453_v13 = vpop.eup %6452  ;;  %5885 = vmatprep.subr.bf16.mxu1 %v5884_v44 }
 0x79f   : > { %3747 = vadd.xlane.f32.xlu0 %v6453_v13  ;;  %v6455_v1 = vpop.eup %6454 }
 0x7a1   : > { %5887 = vmatpush3.bf16.msra.mxu1 %v5884_v44 }
 0x7a2   : > { %v6457_v59 = vpop.eup %6456 }
 0x7a3   : > { %3749 = vadd.xlane.f32.xlu1 %v6457_v59  ;;  %3751 = vadd.xlane.f32.xlu0 %v6455_v1  ;;  %v6459_v18 = vpop.eup %6458 }
 0x7a4   : > { %v3680_v35 = vpop.xlane.xlu0 %3679 }
 0x7a5   : > { %v3699_v52 = vsub.f32 %v8190_v24, %v3680_v35 }
 0x7a7   : > { %v3727_v10 = vmul.f32 1.442695, %v3699_v52  ;;  %3755 = vadd.xlane.f32.xlu0 %v6459_v18 }
 0x7a8   : > { %v3684_v23 = vpop.xlane.xlu0 %3683 }
 0x7a9   : > { %6460 = vpow2.f32 %v3727_v10  ;;  %v3701_v30 = vsub.f32 %v8198_v39, %v3684_v23 }
 0x7ab   : > { %v3731_v55 = vmul.f32 1.442695, %v3701_v30 }
 0x7ad   : > { %6462 = vpow2.f32 %v3731_v55 }
 0x7b3   : > { %v6461_v22 = vpop.eup %6460 }
 0x7b4   : > { %3759 = vadd.xlane.f32.xlu0 %v6461_v22 }
 0x7b7   : > { %v6463_v38 = vpop.eup %6462 }
 0x7b8   : > { %3763 = vadd.xlane.f32.xlu0 %v6463_v38 }
 0x7c8   : > { %v3674_v8 = vpop.xlane.xlu1 %3673 }
 0x7c9   : > { %v3696_v2 = vsub.f32 %v8232_v31, %v3674_v8 }
 0x7cb   : > { %v3721_v29 = vmul.f32 1.442695, %v3696_v2 }
 0x7cc   : > { %v3678_v9 = vpop.xlane.xlu1 %3677 }
 0x7cd   : > { %6464 = vpow2.f32 %v3721_v29  ;;  %v3698_v24 = vsub.f32 %v8236_v17, %v3678_v9  ;;  %v3686_v17 = vpop.xlane.xlu0 %3685 }
 0x7cf   : > { %v3725_v15 = vmul.f32 1.442695, %v3698_v24 }
 0x7d0   : > { %v6213_v4 = vpop.permute.xlu1 %6212 }
 0x7d1   : > { %6466 = vpow2.f32 %v3725_v15  ;;  %v6215_v45 = vunpack.i.h.bf16 %v6213_v4  ;;  %v6214_v40 = vunpack.i.l.bf16 %v6213_v4 }
 0x7d3   : > { %v5888_v39 = vpack.c.bf16 %v6215_v45, %v6214_v40 }
 0x7d5   : > { %5889 = vmatprep.subr.bf16.mxu1 %v5888_v39 }
 0x7d6   : > { %5891 = vmatpush3.bf16.msra.mxu1 %v5888_v39 }
 0x7d7   : > { %v6465_v27 = vpop.eup %6464 }
 0x7d8   : > { %3753 = vadd.xlane.f32.xlu1 %v6465_v27 }
 0x7d9   : > { %5429 = vmatmul.mubr.f32.vlgmr.msra.gmra.mrb[80].mxu1 %v8223_v51  ;;  %v3702_v51 = vsub.f32 %v8204_v42, %v3686_v17  ;;  %v3993_v42 = vld [vmem:[%s8381_s5 + $0x68] sm:$0xff] }
 0x7da   : > { %5431 = vmatprep.mubr.f32.mxu1 %v8252_v5  ;;  %v5892_v3 = vpack.c.bf16 %v3993_v42, %v3992_v53  ;;  %v3994_v5 = vld [vmem:[%s8381_s5 + $0x70] sm:$0xff] }
 0x7db   : > { %v6467_v31 = vpop.eup %6466  ;;  %v3733_v6 = vmul.f32 1.442695, %v3702_v51  ;;  %v5896_v11 = vpack.c.bf16 %v3995_v20, %v3994_v5 }
 0x7dc   : > { %3757 = vadd.xlane.f32.xlu1 %v6467_v31  ;;  %5893 = vmatprep.subr.bf16.mxu1 %v5892_v3 }
 0x7dd   : > { %5432 = vmatmul.mubr.f32.gmra.mrb[82].mxu1 %v8256_v48  ;;  %v3736_v48 = vpop.xlane.xlu0 %3735 }
 0x7de   : > { %5434 = vmatprep.mubr.f32.mxu1 %v8260_v54  ;;  %5895 = vmatpush3.bf16.msra.mxu1 %v5892_v3 }
 0x7df   : > { %5897 = vmatprep.subr.bf16.mxu1 %v5896_v11 }
 0x7e1   : > { %5435 = vmatmul.mubr.f32.gmra.mrb[84].mxu1 %v8267_v47  ;;  %v3738_v50 = vpop.xlane.xlu0 %3737 }
 0x7e2   : > { %5437 = vmatprep.mubr.f32.mxu1 %v6453_v13  ;;  %5899 = vmatpush3.bf16.msra.mxu1 %v5896_v11 }
 0x7e5   : > { %5438 = vmatmul.mubr.f32.gmra.mrb[86].mxu1 %v6457_v59 }
 0x7e6   : > { %5440 = vmatprep.mubr.f32.mxu1 %v6455_v1 }
 0x7e9   : > { %5441 = vmatmul.mubr.f32.gmra.mrb[88].mxu1 %v6465_v27 }
 0x7ea   : > { %5443 = vmatprep.mubr.f32.mxu1 %v6459_v18 }
 0x7ed   : > { %5444 = vmatmul.mubr.f32.gmra.mrb[90].mxu1 %v6467_v31 }
 0x7ee   : > { %5446 = vmatprep.mubr.f32.mxu1 %v6461_v22 }
 0x7ef   : > { %v3740_v54 = vpop.xlane.xlu0 %3739 }
 0x7f3   : > { %v3742_v19 = vpop.xlane.xlu0 %3741 }
 0x801   : > { %v3682_v25 = vpop.xlane.xlu1 %3681 }
 0x802   : > { %v3700_v58 = vsub.f32 %v8264_v7, %v3682_v25  ;;  %v3744_v7 = vpop.xlane.xlu0 %3743 }
 0x804   : > { %v3729_v56 = vmul.f32 1.442695, %v3700_v58 }
 0x805   : > { %v3746_v47 = vpop.xlane.xlu1 %3745 }
 0x806   : > { %6468 = vpow2.f32 %v3729_v56 }
 0x807   : > { %6470 = vpow2.f32 %v3733_v6 }
 0x808   : > { %6472 = vrcp.f32 %v3736_v48  ;;  %v8316_v48 = vld [vmem:[%s8382_s6] ss:$0 sm:$0xff] }
 0x809   : > { %6474 = vrcp.f32 %v3738_v50  ;;  %v6504_v50 = vld [vmem:[%s6588_s29 + $0x8] sm:$0xff] }
 0x80a   : > { %6476 = vrcp.f32 %v3740_v54  ;;  %v897_v54 = vadd.f32 %v6504_v50, %v8316_v48 }
 0x80b   : > { %6478 = vrcp.f32 %v3742_v19  ;;  %v6505_v19 = vld [vmem:[%s6588_s29] sm:$0xff] }
 0x80c   : > { %6480 = vrcp.f32 %v3744_v7  ;;  %v896_v7 = vadd.f32 %v6505_v19, %v8316_v48 }
 0x80d   : > { %6482 = vrcp.f32 %v3746_v47 }
 0x810   : > { %v6469_v36 = vpop.eup %6468 }
 0x811   : > { %3761 = vadd.xlane.f32.xlu1 %v6469_v36  ;;  %5447 = vmatmul.mubr.f32.gmra.mrb[92].mxu1 %v6469_v36  ;;  %v6471_v41 = vpop.eup %6470 }
 0x812   : > { %5449 = vmatprep.mubr.f32.mxu1 %v6463_v38  ;;  %v6473_v16 = vpop.eup %6472 }
 0x813   : > { %v6475_v32 = vpop.eup %6474 }
 0x814   : > { %v6477_v60 = vpop.eup %6476 }
 0x815   : > { %3765 = vadd.xlane.f32.xlu1 %v6471_v41  ;;  %5450 = vmatmul.mubr.f32.gmra.mrb[94].mxu1 %v6471_v41  ;;  %v6479_v43 = vpop.eup %6478 }
 0x816   : > { %v6481_v61 = vpop.eup %6480 }
 0x817   : > { %v6483_v1 = vpop.eup %6482 }
 0x82c   : > { %v3748_v57 = vpop.xlane.xlu0 %3747 }
 0x82d   : > { %6484 = vrcp.f32 %v3748_v57 }
 0x830   : > { %v3750_v33 = vpop.xlane.xlu1 %3749  ;;  %v3752_v49 = vpop.xlane.xlu0 %3751 }
 0x831   : > { %6486 = vrcp.f32 %v3750_v33 }
 0x832   : > { %6488 = vrcp.f32 %v3752_v49 }
 0x834   : > { %v3756_v63 = vpop.xlane.xlu0 %3755 }
 0x837   : > { %v6485_v18 = vpop.eup %6484 }
 0x83b   : > { %v6487_v23 = vpop.eup %6486 }
 0x83c   : > { %v6489_v38 = vpop.eup %6488 }
 0x841   : > { %v3760_v27 = vpop.xlane.xlu0 %3759 }
 0x845   : > { %v3764_v17 = vpop.xlane.xlu0 %3763 }
 0x865   : > { %v3754_v26 = vpop.xlane.xlu1 %3753 }
 0x866   : > { %6490 = vrcp.f32 %v3754_v26 }
 0x867   : > { %6492 = vrcp.f32 %v3756_v63 }
 0x869   : > { %v3758_v44 = vpop.xlane.xlu1 %3757 }
 0x86a   : > { %6494 = vrcp.f32 %v3758_v44 }
 0x86b   : > { %6496 = vrcp.f32 %v3760_v27 }
 0x870   : > { %v6491_v2 = vpop.eup %6490 }
 0x871   : > { %v6493_v15 = vpop.eup %6492 }
 0x874   : > { %v6495_v45 = vpop.eup %6494 }
 0x875   : > { %v6497_v58 = vpop.eup %6496 }
 0x89e   : > { %v3762_v31 = vpop.xlane.xlu1 %3761 }
 0x89f   : > { %6498 = vrcp.f32 %v3762_v31  ;;  %v6516_v31 = vld [vmem:[%s6588_s29 + $0x68] sm:$0xff] }
 0x8a0   : > { %6500 = vrcp.f32 %v3764_v17  ;;  %v909_v17 = vadd.f32 %v6516_v31, %v8316_v48 }
 0x8a2   : > { %v3766_v25 = vpop.xlane.xlu1 %3765 }
 0x8a3   : > { %6502 = vrcp.f32 %v3766_v25  ;;  %v6517_v25 = vld [vmem:[%s6588_s29 + $0x60] sm:$0xff] }
 0x8a9   : > { %v6499_v6 = vpop.eup %6498 }
 0x8aa   : > { %v6501_v42 = vpop.eup %6500 }
 0x8ac   : > { %v5430_v21 = vpop.f32.mrb[80].mxu1 }
 0x8ad   : > { %v3881_v34 = vpop.f32.mrb[81].mxu1  ;;  %v3977_v46 = vmul.f32 %v6475_v32, %v5430_v21  ;;  %v6503_v5 = vpop.eup %6502  ;;  %v6506_v21 = vld [vmem:[%s6588_s29 + $0x18] sm:$0xff]  ;;  %v6507_v32 = vld [vmem:[%s6588_s29 + $0x10] sm:$0xff] }
 0x8ae   : > { %v3976_v62 = vmul.f32 %v6473_v16, %v3881_v34  ;;  %v899_v16 = vadd.f32 %v6506_v21, %v8316_v48  ;;  %v898_v49 = vadd.f32 %v6507_v32, %v8316_v48 }
 0x8b0   : > { %v5433_v0 = vpop.f32.mrb[82].mxu1  ;;  %5460 = vmatprep.mubr.msk.f32.mxu1 %vm912_vm0, %v3976_v62 }
 0x8b1   : > { %v3891_v14 = vpop.f32.mrb[83].mxu1  ;;  %5461 = vmatmul.mubr.msk.f32.vlgmr.msra.gmra.mrb[32].mxu1 %vm912_vm0, %v3977_v46  ;;  %v3979_v12 = vmul.f32 %v6479_v43, %v5433_v0  ;;  %v6508_v0 = vld [vmem:[%s6588_s29 + $0x28] sm:$0xff]  ;;  %v6509_v43 = vld [vmem:[%s6588_s29 + $0x20] sm:$0xff] }
 0x8b2   : > { %v3978_v37 = vmul.f32 %v6477_v60, %v3891_v14  ;;  %v901_v60 = vadd.f32 %v6508_v0, %v8316_v48 }
 0x8b4   : > { %v5436_v28 = vpop.f32.mrb[84].mxu1  ;;  %5463 = vmatprep.mubr.msk.f32.mxu1 %vm912_vm0, %v3978_v37  ;;  %v900_v37 = vadd.f32 %v6509_v43, %v8316_v48 }
 0x8b5   : > { %v3901_v13 = vpop.f32.mrb[85].mxu1  ;;  %5464 = vmatmul.mubr.msk.f32.gmra.mrb[34].mxu1 %vm912_vm0, %v3979_v12  ;;  %v3981_v35 = vmul.f32 %v6483_v1, %v5436_v28  ;;  %v6511_v1 = vld [vmem:[%s6588_s29 + $0x30] sm:$0xff] }
 0x8b6   : > { %v3980_v59 = vmul.f32 %v6481_v61, %v3901_v13  ;;  %v6510_v61 = vld [vmem:[%s6588_s29 + $0x38] sm:$0xff] }
 0x8b7   : > { %v903_v44 = vadd.f32 %v6510_v61, %v8316_v48 }
 0x8b8   : > { %v5439_v52 = vpop.f32.mrb[86].mxu1  ;;  %5466 = vmatprep.mubr.msk.f32.mxu1 %vm912_vm0, %v3980_v59  ;;  %v902_v59 = vadd.f32 %v6511_v1, %v8316_v48 }
 0x8b9   : > { %v3911_v10 = vpop.f32.mrb[87].mxu1  ;;  %5467 = vmatmul.mubr.msk.f32.gmra.mrb[36].mxu1 %vm912_vm0, %v3981_v35  ;;  %v3983_v55 = vmul.f32 %v6487_v23, %v5439_v52 }
 0x8ba   : > { %v3982_v30 = vmul.f32 %v6485_v18, %v3911_v10  ;;  %v6512_v10 = vld [vmem:[%s6588_s29 + $0x48] sm:$0xff] }
 0x8bb   : > { %v905_v23 = vadd.f32 %v6512_v10, %v8316_v48 }
 0x8bc   : > { %v5442_v22 = vpop.f32.mrb[88].mxu1  ;;  %5469 = vmatprep.mubr.msk.f32.mxu1 %vm912_vm0, %v3982_v30 }
 0x8bd   : > { %v3921_v8 = vpop.f32.mrb[89].mxu1  ;;  %5470 = vmatmul.mubr.msk.f32.gmra.mrb[38].mxu1 %vm912_vm0, %v3983_v55  ;;  %v3985_v9 = vmul.f32 %v6491_v2, %v5442_v22  ;;  %v6513_v55 = vld [vmem:[%s6588_s29 + $0x40] sm:$0xff] }
 0x8be   : > { %v3984_v29 = vmul.f32 %v6489_v38, %v3921_v8  ;;  %v904_v22 = vadd.f32 %v6513_v55, %v8316_v48 }
 0x8c0   : > { %v5445_v24 = vpop.f32.mrb[90].mxu1  ;;  %5472 = vmatprep.mubr.msk.f32.mxu1 %vm912_vm0, %v3984_v29  ;;  %v6514_v29 = vld [vmem:[%s6588_s29 + $0x58] sm:$0xff] }
 0x8c1   : > { %v3931_v4 = vpop.f32.mrb[91].mxu1  ;;  %5473 = vmatmul.mubr.msk.f32.gmra.mrb[40].mxu1 %vm912_vm0, %v3985_v9  ;;  %v3987_v39 = vmul.f32 %v6495_v45, %v5445_v24  ;;  %v907_v9 = vadd.f32 %v6514_v29, %v8316_v48 }
 0x8c2   : > { %v3986_v40 = vmul.f32 %v6493_v15, %v3931_v4  ;;  %v6515_v15 = vld [vmem:[%s6588_s29 + $0x50] sm:$0xff] }
 0x8c3   : > { %v906_v4 = vadd.f32 %v6515_v15, %v8316_v48 }
 0x8c4   : > { %5475 = vmatprep.mubr.msk.f32.mxu1 %vm912_vm0, %v3986_v40 }
 0x8c5   : > { %5476 = vmatmul.mubr.msk.f32.gmra.mrb[42].mxu1 %vm912_vm0, %v3987_v39 }
 0x8e4   : > { %v5448_v51 = vpop.f32.mrb[92].mxu1 }
 0x8e5   : > { %v3941_v56 = vpop.f32.mrb[93].mxu1  ;;  %v3989_v41 = vmul.f32 %v6499_v6, %v5448_v51  ;;  %v908_v51 = vadd.f32 %v6517_v25, %v8316_v48 }
 0x8e6   : > { %v3988_v36 = vmul.f32 %v6497_v58, %v3941_v56 }
 0x8e8   : > { %v5451_v53 = vpop.f32.mrb[94].mxu1  ;;  %5478 = vmatprep.mubr.msk.f32.mxu1 %vm912_vm0, %v3988_v36  ;;  %v6518_v36 = vld [vmem:[%s6588_s29 + $0x78] sm:$0xff] }
 0x8e9   : > { %v3951_v3 = vpop.f32.mrb[95].mxu1  ;;  %5479 = vmatmul.mubr.msk.f32.gmra.mrb[44].mxu1 %vm912_vm0, %v3989_v41  ;;  %v3991_v11 = vmul.f32 %v6503_v5, %v5451_v53  ;;  %v911_v41 = vadd.f32 %v6518_v36, %v8316_v48 }
 0x8ea   : > { %v3990_v20 = vmul.f32 %v6501_v42, %v3951_v3  ;;  %v6519_v42 = vld [vmem:[%s6588_s29 + $0x70] sm:$0xff] }
 0x8eb   : > { %v910_v3 = vadd.f32 %v6519_v42, %v8316_v48 }
 0x8ec   : > { %5481 = vmatprep.mubr.msk.f32.mxu1 %vm912_vm0, %v3990_v20 }
 0x8ed   : > { %5482 = vmatmul.mubr.msk.f32.gmra.mrb[46].mxu1 %vm912_vm0, %v3991_v11 }
 0x984   : > { %v5462_v47 = vpop.f32.mrb[32].mxu1 }
 0x985   : > { %v5900_v57 = vadd.f32 %v5462_v47, %v897_v54  ;;  %v4110_v33 = vpop.f32.mrb[33].mxu1 }
 0x986   : > { %v5901_v34 = vadd.f32 %v4110_v33, %v896_v7 }
 0x987   : > { %4206 = vst [vmem:[%s8327_s15 + $0x8] sm:$0xff] %v5900_v57 }
 0x988   : > { %4205 = vst [vmem:[%s8327_s15] sm:$0xff] %v5901_v34  ;;  %v5465_v62 = vpop.f32.mrb[34].mxu1 }
 0x989   : > { %v5902_v26 = vadd.f32 %v5465_v62, %v899_v16  ;;  %v4120_v46 = vpop.f32.mrb[35].mxu1 }
 0x98a   : > { %v5903_v14 = vadd.f32 %v4120_v46, %v898_v49 }
 0x98b   : > { %4208 = vst [vmem:[%s8327_s15 + $0x18] sm:$0xff] %v5902_v26 }
 0x98c   : > { %4207 = vst [vmem:[%s8327_s15 + $0x10] sm:$0xff] %v5903_v14  ;;  %v5468_v12 = vpop.f32.mrb[36].mxu1 }
 0x98d   : > { %v5904_v63 = vadd.f32 %v5468_v12, %v901_v60  ;;  %v4130_v28 = vpop.f32.mrb[37].mxu1 }
 0x98e   : > { %v5905_v13 = vadd.f32 %v4130_v28, %v900_v37 }
 0x98f   : > { %4210 = vst [vmem:[%s8327_s15 + $0x28] sm:$0xff] %v5904_v63 }
 0x990   : > { %4209 = vst [vmem:[%s8327_s15 + $0x20] sm:$0xff] %v5905_v13  ;;  %v5471_v35 = vpop.f32.mrb[38].mxu1 }
 0x991   : > { %v5906_v52 = vadd.f32 %v5471_v35, %v903_v44  ;;  %v4140_v18 = vpop.f32.mrb[39].mxu1 }
 0x992   : > { %v5907_v30 = vadd.f32 %v4140_v18, %v902_v59 }
 0x993   : > { %4212 = vst [vmem:[%s8327_s15 + $0x38] sm:$0xff] %v5906_v52 }
 0x994   : > { %4211 = vst [vmem:[%s8327_s15 + $0x30] sm:$0xff] %v5907_v30  ;;  %v5474_v38 = vpop.f32.mrb[40].mxu1 }
 0x995   : > { %v5908_v8 = vadd.f32 %v5474_v38, %v905_v23  ;;  %v4150_v2 = vpop.f32.mrb[41].mxu1 }
 0x996   : > { %v5909_v24 = vadd.f32 %v4150_v2, %v904_v22 }
 0x997   : > { %4214 = vst [vmem:[%s8327_s15 + $0x48] sm:$0xff] %v5908_v8 }
 0x998   : > { %4213 = vst [vmem:[%s8327_s15 + $0x40] sm:$0xff] %v5909_v24  ;;  %v5477_v45 = vpop.f32.mrb[42].mxu1 }
 0x999   : > { %v5910_v40 = vadd.f32 %v5477_v45, %v907_v9  ;;  %v4160_v39 = vpop.f32.mrb[43].mxu1 }
 0x99a   : > { %v5911_v27 = vadd.f32 %v4160_v39, %v906_v4 }
 0x99b   : > { %4216 = vst [vmem:[%s8327_s15 + $0x58] sm:$0xff] %v5910_v40 }
 0x99c   : > { %4215 = vst [vmem:[%s8327_s15 + $0x50] sm:$0xff] %v5911_v27 }
 0x9bc   : > { %v5480_v58 = vpop.f32.mrb[44].mxu1 }
 0x9bd   : > { %v5912_v56 = vadd.f32 %v5480_v58, %v909_v17  ;;  %v4170_v6 = vpop.f32.mrb[45].mxu1 }
 0x9be   : > { %v5913_v53 = vadd.f32 %v4170_v6, %v908_v51 }
 0x9bf   : > { %4218 = vst [vmem:[%s8327_s15 + $0x68] sm:$0xff] %v5912_v56 }
 0x9c0   : > { %4217 = vst [vmem:[%s8327_s15 + $0x60] sm:$0xff] %v5913_v53  ;;  %v5483_v5 = vpop.f32.mrb[46].mxu1 }
 0x9c1   : > { %v5914_v20 = vadd.f32 %v5483_v5, %v911_v41  ;;  %v4180_v11 = vpop.f32.mrb[47].mxu1 }
 0x9c2   : > { %v5915_v50 = vadd.f32 %v4180_v11, %v910_v3 }
 0x9c3   : > { %4220 = vst [vmem:[%s8327_s15 + $0x78] sm:$0xff] %v5914_v20 }
 0x9c4   : > { %4219 = vst [vmem:[%s8327_s15 + $0x70] sm:$0xff] %v5915_v50 }
 0x9c5 PF: > { %s17_s24 = sadd.s32 1, %s6526_s24  }
 0x9c6   : > { %p14_p4 = scmp.ge.s32.totalorder %s17_s24, 4  }
 0x9c8   :  { %16 = sbr.rel (!%p14_p4) target bundleno = 1 (0x1), region = 78 }

</bundles_post_ra>
